<compile_context>
chip_gen: v7x
topology: tpu7x:2x2x1
jax: 0.10.0
libtpu: 0.0.40
codegen_flags: <defaults>
</compile_context>

<pallas_src>
import functools
import math

import jax
import jax.numpy as jnp
from jax import lax
from jax.experimental import pallas as pl
from jax.experimental.pallas import tpu as pltpu


def _flash_attn_kernel(q_ref, k_ref, v_ref, o_ref, m_sc, l_sc, acc_sc,
                       *, scale, causal, groups, tq, tk, offset):
    qi = pl.program_id(2)
    ki = pl.program_id(3)
    q_start = qi * tq
    k_start = ki * tk

    # Initialize online-softmax state at the first KV tile of each (b, hkv, qi).
    @pl.when(ki == 0)
    def _init():
        m_sc[...] = jnp.full_like(m_sc, -jnp.inf)
        l_sc[...] = jnp.zeros_like(l_sc)
        acc_sc[...] = jnp.zeros_like(acc_sc)

    def compute(apply_mask):
        # K/V loaded once per KV tile and reused by every query head in the group.
        k = k_ref[0, 0]                                   # (tk, D), native dtype
        v = v_ref[0, 0]                                   # (tk, D), native dtype
        if apply_mask:
            row = q_start + lax.broadcasted_iota(jnp.int32, (tq, tk), 0)
            col = k_start + lax.broadcasted_iota(jnp.int32, (tq, tk), 1)
            mask = col <= row + offset                    # bottom-right aligned causal
        for g in range(groups):                           # static unrolled group loop
            q = q_ref[0, g] * scale                       # fold softmax scale into q tile
            # QK^T without materializing a transpose: contract last dims of q and k.
            s = lax.dot_general(q, k, (((1,), (1,)), ((), ())),
                                preferred_element_type=jnp.float32)   # (tq, tk) f32
            if apply_mask:
                s = jnp.where(mask, s, -1e30)
            m_prev = m_sc[g]                              # (tq, 1)
            m_new = jnp.maximum(m_prev, s.max(axis=-1, keepdims=True))
            alpha = jnp.exp(m_prev - m_new)
            p = jnp.exp(s - m_new)                        # (tq, tk) f32
            l_sc[g] = alpha * l_sc[g] + p.sum(axis=-1, keepdims=True)
            acc_sc[g] = alpha * acc_sc[g] + lax.dot_general(
                p.astype(v.dtype), v, (((1,), (0,)), ((), ())),
                preferred_element_type=jnp.float32)
            m_sc[g] = m_new

    if causal:
        # Skip fully-masked KV tiles entirely; only mask on diagonal tiles.
        in_range = k_start <= q_start + (tq - 1) + offset
        on_diag = (k_start + tk - 1) > (q_start + offset)

        @pl.when(jnp.logical_and(in_range, on_diag))
        def _diag():
            compute(True)

        @pl.when(jnp.logical_and(in_range, jnp.logical_not(on_diag)))
        def _interior():
            compute(False)
    else:
        compute(False)

    # Finalize on the last KV grid step.
    @pl.when(ki == pl.num_programs(3) - 1)
    def _finalize():
        inv = pl.reciprocal(jnp.maximum(l_sc[...], 1e-30), approx=True)
        o_ref[0] = (acc_sc[...] * inv).astype(o_ref.dtype)


def flash_attention_pallas(q, k, v, *, causal=False, softmax_scale=None,
                           tq=256, tk=256):
    """q: (B, Sq, H, D); k, v: (B, Sk, Hkv, D).  Returns (B, Sq, H, D)."""
    B, Sq, H, D = q.shape
    Bk, Sk, Hkv, Dk = k.shape
    assert (B, D) == (Bk, Dk) and v.shape == k.shape
    assert H % Hkv == 0
    groups = H // Hkv
    scale = float(softmax_scale) if softmax_scale is not None else 1.0 / math.sqrt(D)

    tq = min(tq, Sq)
    tk = min(tk, Sk)
    assert Sq % tq == 0 and Sk % tk == 0, "seq lengths must be divisible by tiles"
    assert tq == Sq or tq % 8 == 0, "tq must be a multiple of 8 (or full Sq)"
    assert tk == Sk or tk % 8 == 0, "tk must be a multiple of 8 (or full Sk)"

    offset = Sk - Sq                      # bottom-right aligned causal mask
    nq, nk = Sq // tq, Sk // tk

    # glue: (B, S, H, D) -> (B, H, S, D)
    # TODO(synk): adopt (B, H, S, D) upstream to avoid these HBM transpose passes.
    qt = jnp.transpose(q, (0, 2, 1, 3))
    kt = jnp.transpose(k, (0, 2, 1, 3))
    vt = jnp.transpose(v, (0, 2, 1, 3))

    def q_index_map(b, hkv, qi, ki):
        # One Q block covers all `groups` query heads of KV head `hkv`.
        return (b, hkv, qi, 0)

    if causal:
        def kv_index_map(b, hkv, qi, ki):
            # Clamp to the last KV tile visible from this query tile so Pallas
            # re-issues the same block index and skips the DMA for masked tiles.
            last = jnp.maximum((qi * tq + tq - 1 + offset) // tk, 0)
            last = jnp.minimum(last, nk - 1)
            return (b, hkv, jnp.minimum(ki, last), 0)
    else:
        def kv_index_map(b, hkv, qi, ki):
            return (b, hkv, ki, 0)

    kernel = functools.partial(_flash_attn_kernel, scale=scale, causal=causal,
                               groups=groups, tq=tq, tk=tk, offset=offset)

    out = pl.pallas_call(
        kernel,
        out_shape=jax.ShapeDtypeStruct((B, H, Sq, D), q.dtype),
        grid_spec=pltpu.PrefetchScalarGridSpec(
            num_scalar_prefetch=0,
            grid=(B, Hkv, nq, nk),
            in_specs=[
                pl.BlockSpec((1, groups, tq, D), q_index_map),
                pl.BlockSpec((1, 1, tk, D), kv_index_map),
                pl.BlockSpec((1, 1, tk, D), kv_index_map),
            ],
            out_specs=pl.BlockSpec((1, groups, tq, D), q_index_map),
            scratch_shapes=[
                pltpu.VMEM((groups, tq, 1), jnp.float32),   # running max m_i
                pltpu.VMEM((groups, tq, 1), jnp.float32),   # running denom l_i
                pltpu.VMEM((groups, tq, D), jnp.float32),   # output accumulator
            ],
        ),
        compiler_params=pltpu.CompilerParams(
            dimension_semantics=("parallel", "parallel", "parallel", "arbitrary")),
    )(qt, kt, vt)

    # glue: (B, H, Sq, D) -> (B, Sq, H, D)
    return jnp.transpose(out, (0, 2, 1, 3))


class FlashAttentionXla:
    """JAX/Pallas port of the PyTorch FlashAttentionXla module (forward only)."""

    def __init__(self, hidden_size, num_attention_heads, num_key_value_heads):
        self.hidden_size = hidden_size
        self.num_heads = num_attention_heads
        self.head_dim = hidden_size // num_attention_heads
        self.num_key_value_heads = num_key_value_heads
        self.num_key_value_groups = num_attention_heads // num_key_value_heads

    def __call__(self, query_states, key_states, value_states,
                 attention_mask=None, causal=False, position_ids=None):
        if attention_mask is not None or position_ids is not None:
            # TODO(synk): varlen paths (flash_attn_varlen_xla /
            # flash_attn_varlen_position_ids_xla) are not implemented.
            raise NotImplementedError("varlen attention not implemented")
        return flash_attention_pallas(query_states, key_states, value_states,
                                      causal=causal)


def _reference_attention(q, k, v, causal, scale):
    qf, kf, vf = (t.astype(jnp.float32) for t in (q, k, v))
    B, Sq, H, D = q.shape
    Sk = k.shape[1]
    g = H // k.shape[2]
    kr = jnp.repeat(kf, g, axis=2)
    vr = jnp.repeat(vf, g, axis=2)
    s = jnp.einsum("bqhd,bkhd->bhqk", qf, kr) * scale
    if causal:
        row = jnp.arange(Sq)[:, None]
        col = jnp.arange(Sk)[None, :]
        mask = col <= row + (Sk - Sq)       # bottom-right aligned
        s = jnp.where(mask[None, None], s, -jnp.inf)
    p = jax.nn.softmax(s, axis=-1)
    return jnp.einsum("bhqk,bkhd->bqhd", p, vr)


if __name__ == "__main__":
    # Small deterministic inputs consistent with the module's forward:
    # q: (bsz, q_len, num_heads, head_dim), k/v: (bsz, kv_len, num_kv_heads, head_dim)
    bsz, seq_len = 2, 512
    num_heads, num_kv_heads, head_dim = 4, 2, 128
    hidden_size = num_heads * head_dim

    key = jax.random.PRNGKey(0)
    kq, kk, kv = jax.random.split(key, 3)
    q = jax.random.normal(kq, (bsz, seq_len, num_heads, head_dim), jnp.bfloat16)
    k = jax.random.normal(kk, (bsz, seq_len, num_kv_heads, head_dim), jnp.bfloat16)
    v = jax.random.normal(kv, (bsz, seq_len, num_kv_heads, head_dim), jnp.bfloat16)

    attn = FlashAttentionXla(hidden_size, num_heads, num_kv_heads)
    scale = 1.0 / math.sqrt(head_dim)

    for causal in (False, True):
        out = jax.block_until_ready(attn(q, k, v, causal=causal))
        ref = _reference_attention(q, k, v, causal, scale)
        assert out.shape == (bsz, seq_len, num_heads, head_dim)
        assert jnp.allclose(out.astype(jnp.float32), ref, atol=2e-2, rtol=2e-2), (
            f"mismatch (causal={causal}): max abs err "
            f"{jnp.max(jnp.abs(out.astype(jnp.float32) - ref))}")

    print("KERNEL_OK")
</pallas_src>

<mosaic_0001>
module attributes {stable_mosaic.version = 11 : i64} {
  func.func @_flash_attn_kernel(%arg0: i32, %arg1: i32, %arg2: i32, %arg3: i32, %arg4: memref<1x2x256x128xbf16, #tpu.memory_space<vmem>>, %arg5: memref<1x1x256x128xbf16, #tpu.memory_space<vmem>>, %arg6: memref<1x1x256x128xbf16, #tpu.memory_space<vmem>>, %arg7: memref<1x2x256x128xbf16, #tpu.memory_space<vmem>>, %arg8: memref<2x256x1xf32, #tpu.memory_space<vmem>>, %arg9: memref<2x256x1xf32, #tpu.memory_space<vmem>>, %arg10: memref<2x256x128xf32, #tpu.memory_space<vmem>>) attributes {dimension_semantics = [#tpu.dimension_semantics<parallel>, #tpu.dimension_semantics<parallel>, #tpu.dimension_semantics<parallel>, #tpu.dimension_semantics<arbitrary>], iteration_bounds = array<i64: 2, 2, 2, 2>, scalar_prefetch = 0 : i64, scratch_operands = 3 : i64, tpu.core_type = #tpu.core_type<tc>, window_params = [{transform_indices = @transform_0, window_bounds = array<i64: 1, 2, 256, 128>}, {transform_indices = @transform_1, window_bounds = array<i64: 1, 1, 256, 128>}, {transform_indices = @transform_2, window_bounds = array<i64: 1, 1, 256, 128>}, {transform_indices = @transform_3, window_bounds = array<i64: 1, 2, 256, 128>}]} {
    %c0_i32 = arith.constant 0 : i32
    %0 = arith.cmpi eq, %arg3, %c0_i32 : i32
    %1 = arith.extui %0 : i1 to i32
    %c0_i32_0 = arith.constant 0 : i32
    %2 = arith.cmpi ne, %1, %c0_i32_0 : i32
    scf.if %2 {
      %cst_61 = arith.constant 0xFF800000 : f32
      %84 = vector.broadcast %cst_61 : f32 to vector<2x256x1xf32>
      %c0_62 = arith.constant 0 : index
      %c0_63 = arith.constant 0 : index
      %c0_64 = arith.constant 0 : index
      %85 = vector.load %arg8[%c0_62, %c0_63, %c0_64] : memref<2x256x1xf32, #tpu.memory_space<vmem>>, vector<2x256x1xf32>
      tpu.vector_store %arg8[%c0_62, %c0_63, %c0_64], %84 {strides = array<i32>} : memref<2x256x1xf32, #tpu.memory_space<vmem>>, vector<2x256x1xf32>,
      %cst_65 = arith.constant 0.000000e+00 : f32
      %86 = vector.broadcast %cst_65 : f32 to vector<2x256x1xf32>
      %c0_66 = arith.constant 0 : index
      %c0_67 = arith.constant 0 : index
      %c0_68 = arith.constant 0 : index
      %87 = vector.load %arg9[%c0_66, %c0_67, %c0_68] : memref<2x256x1xf32, #tpu.memory_space<vmem>>, vector<2x256x1xf32>
      tpu.vector_store %arg9[%c0_66, %c0_67, %c0_68], %86 {strides = array<i32>} : memref<2x256x1xf32, #tpu.memory_space<vmem>>, vector<2x256x1xf32>,
      %cst_69 = arith.constant 0.000000e+00 : f32
      %88 = vector.broadcast %cst_69 : f32 to vector<2x256x128xf32>
      %c0_70 = arith.constant 0 : index
      %c0_71 = arith.constant 0 : index
      %c0_72 = arith.constant 0 : index
      %89 = vector.load %arg10[%c0_70, %c0_71, %c0_72] : memref<2x256x128xf32, #tpu.memory_space<vmem>>, vector<2x256x128xf32>
      tpu.vector_store %arg10[%c0_70, %c0_71, %c0_72], %88 {strides = array<i32>} : memref<2x256x128xf32, #tpu.memory_space<vmem>>, vector<2x256x128xf32>,
    } else {
    }
    %c0 = arith.constant 0 : index
    %c0_1 = arith.constant 0 : index
    %c0_2 = arith.constant 0 : index
    %c0_3 = arith.constant 0 : index
    %3 = vector.load %arg5[%c0, %c0_1, %c0_2, %c0_3] : memref<1x1x256x128xbf16, #tpu.memory_space<vmem>>, vector<1x1x256x128xbf16>
    %4 = vector.shape_cast %3 : vector<1x1x256x128xbf16> to vector<256x128xbf16>
    %c0_4 = arith.constant 0 : index
    %c0_5 = arith.constant 0 : index
    %c0_6 = arith.constant 0 : index
    %c0_7 = arith.constant 0 : index
    %5 = vector.load %arg6[%c0_4, %c0_5, %c0_6, %c0_7] : memref<1x1x256x128xbf16, #tpu.memory_space<vmem>>, vector<1x1x256x128xbf16>
    %6 = vector.shape_cast %5 : vector<1x1x256x128xbf16> to vector<256x128xbf16>
    %c0_8 = arith.constant 0 : index
    %c0_9 = arith.constant 0 : index
    %c0_10 = arith.constant 0 : index
    %c0_11 = arith.constant 0 : index
    %7 = vector.load %arg4[%c0_8, %c0_9, %c0_10, %c0_11] : memref<1x2x256x128xbf16, #tpu.memory_space<vmem>>, vector<1x1x256x128xbf16>
    %8 = vector.shape_cast %7 : vector<1x1x256x128xbf16> to vector<256x128xbf16>
    %cst = arith.constant 8.837890e-02 : bf16
    %9 = vector.broadcast %cst : bf16 to vector<256x128xbf16>
    %10 = arith.mulf %8, %9 : vector<256x128xbf16>
    %cst_12 = arith.constant dense<0.000000e+00> : vector<256x256xf32>
    %11 = tpu.matmul %10, %4, %cst_12 {dimension_numbers = #tpu.dot_dimension_numbers<[1], [1], [0], [0], [0, 0, 1, 0], [], []>} : vector<256x128xbf16>, vector<256x128xbf16>, vector<256x256xf32> -> vector<256x256xf32>
    %c0_13 = arith.constant 0 : index
    %c0_14 = arith.constant 0 : index
    %c0_15 = arith.constant 0 : index
    %12 = vector.load %arg8[%c0_13, %c0_14, %c0_15] : memref<2x256x1xf32, #tpu.memory_space<vmem>>, vector<1x256x1xf32>
    %13 = vector.shape_cast %12 : vector<1x256x1xf32> to vector<256x1xf32>
    %cst_16 = arith.constant dense<0xFF800000> : vector<256xf32>
    %14 = vector.multi_reduction <maximumf>, %11, %cst_16 [1] : vector<256x256xf32> to vector<256xf32>
    %15 = vector.shape_cast %14 : vector<256xf32> to vector<256x1xf32>
    %16 = arith.maximumf %13, %15 : vector<256x1xf32>
    %17 = arith.subf %13, %16 : vector<256x1xf32>
    %18 = math.exp %17 : vector<256x1xf32>
    %19 = vector.broadcast %16 : vector<256x1xf32> to vector<256x256xf32>
    %20 = arith.subf %11, %19 : vector<256x256xf32>
    %21 = math.exp %20 : vector<256x256xf32>
    %c0_17 = arith.constant 0 : index
    %c0_18 = arith.constant 0 : index
    %c0_19 = arith.constant 0 : index
    %22 = vector.load %arg9[%c0_17, %c0_18, %c0_19] : memref<2x256x1xf32, #tpu.memory_space<vmem>>, vector<1x256x1xf32>
    %23 = vector.shape_cast %22 : vector<1x256x1xf32> to vector<256x1xf32>
    %24 = arith.mulf %18, %23 : vector<256x1xf32>
    %cst_20 = arith.constant dense<0.000000e+00> : vector<256xf32>
    %25 = vector.multi_reduction <add>, %21, %cst_20 [1] : vector<256x256xf32> to vector<256xf32>
    %26 = vector.shape_cast %25 : vector<256xf32> to vector<256x1xf32>
    %27 = arith.addf %24, %26 : vector<256x1xf32>
    %c0_21 = arith.constant 0 : index
    %c0_22 = arith.constant 0 : index
    %c0_23 = arith.constant 0 : index
    %28 = vector.load %arg9[%c0_21, %c0_22, %c0_23] : memref<2x256x1xf32, #tpu.memory_space<vmem>>, vector<1x256x1xf32>
    %29 = vector.shape_cast %28 : vector<1x256x1xf32> to vector<256x1xf32>
    %30 = vector.shape_cast %27 : vector<256x1xf32> to vector<1x256x1xf32>
    tpu.vector_store %arg9[%c0_21, %c0_22, %c0_23], %30 {strides = array<i32>} : memref<2x256x1xf32, #tpu.memory_space<vmem>>, vector<1x256x1xf32>,
    %c0_24 = arith.constant 0 : index
    %c0_25 = arith.constant 0 : index
    %c0_26 = arith.constant 0 : index
    %31 = vector.load %arg10[%c0_24, %c0_25, %c0_26] : memref<2x256x128xf32, #tpu.memory_space<vmem>>, vector<1x256x128xf32>
    %32 = vector.shape_cast %31 : vector<1x256x128xf32> to vector<256x128xf32>
    %33 = vector.broadcast %18 : vector<256x1xf32> to vector<256x128xf32>
    %34 = arith.mulf %33, %32 : vector<256x128xf32>
    %35 = arith.truncf %21 : vector<256x256xf32> to vector<256x256xbf16>
    %cst_27 = arith.constant dense<0.000000e+00> : vector<256x128xf32>
    %36 = tpu.matmul %35, %6, %cst_27 {dimension_numbers = #tpu.dot_dimension_numbers<[1], [0], [0], [1], [0, 0, 1, 1], [], []>} : vector<256x256xbf16>, vector<256x128xbf16>, vector<256x128xf32> -> vector<256x128xf32>
    %37 = arith.addf %34, %36 : vector<256x128xf32>
    %c0_28 = arith.constant 0 : index
    %c0_29 = arith.constant 0 : index
    %c0_30 = arith.constant 0 : index
    %38 = vector.load %arg10[%c0_28, %c0_29, %c0_30] : memref<2x256x128xf32, #tpu.memory_space<vmem>>, vector<1x256x128xf32>
    %39 = vector.shape_cast %38 : vector<1x256x128xf32> to vector<256x128xf32>
    %40 = vector.shape_cast %37 : vector<256x128xf32> to vector<1x256x128xf32>
    tpu.vector_store %arg10[%c0_28, %c0_29, %c0_30], %40 {strides = array<i32>} : memref<2x256x128xf32, #tpu.memory_space<vmem>>, vector<1x256x128xf32>,
    %c0_31 = arith.constant 0 : index
    %c0_32 = arith.constant 0 : index
    %c0_33 = arith.constant 0 : index
    %41 = vector.load %arg8[%c0_31, %c0_32, %c0_33] : memref<2x256x1xf32, #tpu.memory_space<vmem>>, vector<1x256x1xf32>
    %42 = vector.shape_cast %41 : vector<1x256x1xf32> to vector<256x1xf32>
    %43 = vector.shape_cast %16 : vector<256x1xf32> to vector<1x256x1xf32>
    tpu.vector_store %arg8[%c0_31, %c0_32, %c0_33], %43 {strides = array<i32>} : memref<2x256x1xf32, #tpu.memory_space<vmem>>, vector<1x256x1xf32>,
    %c0_34 = arith.constant 0 : index
    %c1 = arith.constant 1 : index
    %c0_35 = arith.constant 0 : index
    %c0_36 = arith.constant 0 : index
    %44 = vector.load %arg4[%c0_34, %c1, %c0_35, %c0_36] : memref<1x2x256x128xbf16, #tpu.memory_space<vmem>>, vector<1x1x256x128xbf16>
    %45 = vector.shape_cast %44 : vector<1x1x256x128xbf16> to vector<256x128xbf16>
    %cst_37 = arith.constant 8.837890e-02 : bf16
    %46 = vector.broadcast %cst_37 : bf16 to vector<256x128xbf16>
    %47 = arith.mulf %45, %46 : vector<256x128xbf16>
    %cst_38 = arith.constant dense<0.000000e+00> : vector<256x256xf32>
    %48 = tpu.matmul %47, %4, %cst_38 {dimension_numbers = #tpu.dot_dimension_numbers<[1], [1], [0], [0], [0, 0, 1, 0], [], []>} : vector<256x128xbf16>, vector<256x128xbf16>, vector<256x256xf32> -> vector<256x256xf32>
    %c1_39 = arith.constant 1 : index
    %c0_40 = arith.constant 0 : index
    %c0_41 = arith.constant 0 : index
    %49 = vector.load %arg8[%c1_39, %c0_40, %c0_41] : memref<2x256x1xf32, #tpu.memory_space<vmem>>, vector<1x256x1xf32>
    %50 = vector.shape_cast %49 : vector<1x256x1xf32> to vector<256x1xf32>
    %cst_42 = arith.constant dense<0xFF800000> : vector<256xf32>
    %51 = vector.multi_reduction <maximumf>, %48, %cst_42 [1] : vector<256x256xf32> to vector<256xf32>
    %52 = vector.shape_cast %51 : vector<256xf32> to vector<256x1xf32>
    %53 = arith.maximumf %50, %52 : vector<256x1xf32>
    %54 = arith.subf %50, %53 : vector<256x1xf32>
    %55 = math.exp %54 : vector<256x1xf32>
    %56 = vector.broadcast %53 : vector<256x1xf32> to vector<256x256xf32>
    %57 = arith.subf %48, %56 : vector<256x256xf32>
    %58 = math.exp %57 : vector<256x256xf32>
    %c1_43 = arith.constant 1 : index
    %c0_44 = arith.constant 0 : index
    %c0_45 = arith.constant 0 : index
    %59 = vector.load %arg9[%c1_43, %c0_44, %c0_45] : memref<2x256x1xf32, #tpu.memory_space<vmem>>, vector<1x256x1xf32>
    %60 = vector.shape_cast %59 : vector<1x256x1xf32> to vector<256x1xf32>
    %61 = arith.mulf %55, %60 : vector<256x1xf32>
    %cst_46 = arith.constant dense<0.000000e+00> : vector<256xf32>
    %62 = vector.multi_reduction <add>, %58, %cst_46 [1] : vector<256x256xf32> to vector<256xf32>
    %63 = vector.shape_cast %62 : vector<256xf32> to vector<256x1xf32>
    %64 = arith.addf %61, %63 : vector<256x1xf32>
    %c1_47 = arith.constant 1 : index
    %c0_48 = arith.constant 0 : index
    %c0_49 = arith.constant 0 : index
    %65 = vector.load %arg9[%c1_47, %c0_48, %c0_49] : memref<2x256x1xf32, #tpu.memory_space<vmem>>, vector<1x256x1xf32>
    %66 = vector.shape_cast %65 : vector<1x256x1xf32> to vector<256x1xf32>
    %67 = vector.shape_cast %64 : vector<256x1xf32> to vector<1x256x1xf32>
    tpu.vector_store %arg9[%c1_47, %c0_48, %c0_49], %67 {strides = array<i32>} : memref<2x256x1xf32, #tpu.memory_space<vmem>>, vector<1x256x1xf32>,
    %c1_50 = arith.constant 1 : index
    %c0_51 = arith.constant 0 : index
    %c0_52 = arith.constant 0 : index
    %68 = vector.load %arg10[%c1_50, %c0_51, %c0_52] : memref<2x256x128xf32, #tpu.memory_space<vmem>>, vector<1x256x128xf32>
    %69 = vector.shape_cast %68 : vector<1x256x128xf32> to vector<256x128xf32>
    %70 = vector.broadcast %55 : vector<256x1xf32> to vector<256x128xf32>
    %71 = arith.mulf %70, %69 : vector<256x128xf32>
    %72 = arith.truncf %58 : vector<256x256xf32> to vector<256x256xbf16>
    %cst_53 = arith.constant dense<0.000000e+00> : vector<256x128xf32>
    %73 = tpu.matmul %72, %6, %cst_53 {dimension_numbers = #tpu.dot_dimension_numbers<[1], [0], [0], [1], [0, 0, 1, 1], [], []>} : vector<256x256xbf16>, vector<256x128xbf16>, vector<256x128xf32> -> vector<256x128xf32>
    %74 = arith.addf %71, %73 : vector<256x128xf32>
    %c1_54 = arith.constant 1 : index
    %c0_55 = arith.constant 0 : index
    %c0_56 = arith.constant 0 : index
    %75 = vector.load %arg10[%c1_54, %c0_55, %c0_56] : memref<2x256x128xf32, #tpu.memory_space<vmem>>, vector<1x256x128xf32>
    %76 = vector.shape_cast %75 : vector<1x256x128xf32> to vector<256x128xf32>
    %77 = vector.shape_cast %74 : vector<256x128xf32> to vector<1x256x128xf32>
    tpu.vector_store %arg10[%c1_54, %c0_55, %c0_56], %77 {strides = array<i32>} : memref<2x256x128xf32, #tpu.memory_space<vmem>>, vector<1x256x128xf32>,
    %c1_57 = arith.constant 1 : index
    %c0_58 = arith.constant 0 : index
    %c0_59 = arith.constant 0 : index
    %78 = vector.load %arg8[%c1_57, %c0_58, %c0_59] : memref<2x256x1xf32, #tpu.memory_space<vmem>>, vector<1x256x1xf32>
    %79 = vector.shape_cast %78 : vector<1x256x1xf32> to vector<256x1xf32>
    %80 = vector.shape_cast %53 : vector<256x1xf32> to vector<1x256x1xf32>
    tpu.vector_store %arg8[%c1_57, %c0_58, %c0_59], %80 {strides = array<i32>} : memref<2x256x1xf32, #tpu.memory_space<vmem>>, vector<1x256x1xf32>,
    %c1_i32 = arith.constant 1 : i32
    %81 = arith.cmpi eq, %arg3, %c1_i32 : i32
    %82 = arith.extui %81 : i1 to i32
    %c0_i32_60 = arith.constant 0 : i32
    %83 = arith.cmpi ne, %82, %c0_i32_60 : i32
    scf.if %83 {
      %c0_61 = arith.constant 0 : index
      %c0_62 = arith.constant 0 : index
      %c0_63 = arith.constant 0 : index
      %84 = vector.load %arg9[%c0_61, %c0_62, %c0_63] : memref<2x256x1xf32, #tpu.memory_space<vmem>>, vector<2x256x1xf32>
      %cst_64 = arith.constant 1.000000e-30 : f32
      %85 = vector.broadcast %cst_64 : f32 to vector<2x256x1xf32>
      %86 = arith.maximumf %84, %85 : vector<2x256x1xf32>
      %87 = tpu.reciprocal %86 {approx = true} : vector<2x256x1xf32> -> vector<2x256x1xf32>
      %c0_65 = arith.constant 0 : index
      %c0_66 = arith.constant 0 : index
      %c0_67 = arith.constant 0 : index
      %88 = vector.load %arg10[%c0_65, %c0_66, %c0_67] : memref<2x256x128xf32, #tpu.memory_space<vmem>>, vector<2x256x128xf32>
      %89 = vector.broadcast %87 : vector<2x256x1xf32> to vector<2x256x128xf32>
      %90 = arith.mulf %88, %89 : vector<2x256x128xf32>
      %91 = arith.truncf %90 : vector<2x256x128xf32> to vector<2x256x128xbf16>
      %c0_68 = arith.constant 0 : index
      %c0_69 = arith.constant 0 : index
      %c0_70 = arith.constant 0 : index
      %c0_71 = arith.constant 0 : index
      %92 = vector.load %arg7[%c0_68, %c0_69, %c0_70, %c0_71] : memref<1x2x256x128xbf16, #tpu.memory_space<vmem>>, vector<1x2x256x128xbf16>
      %93 = vector.shape_cast %92 : vector<1x2x256x128xbf16> to vector<2x256x128xbf16>
      %94 = vector.shape_cast %91 : vector<2x256x128xbf16> to vector<1x2x256x128xbf16>
      tpu.vector_store %arg7[%c0_68, %c0_69, %c0_70, %c0_71], %94 {strides = array<i32>} : memref<1x2x256x128xbf16, #tpu.memory_space<vmem>>, vector<1x2x256x128xbf16>,
    } else {
    }
    return
  }
  func.func @transform_0(%arg0: i32, %arg1: i32, %arg2: i32, %arg3: i32) -> (i32, i32, i32, i32) {
    %c0_i32 = arith.constant 0 : i32
    %c0_i32_0 = arith.constant 0 : i32
    return %arg0, %arg1, %arg2, %c0_i32 : i32, i32, i32, i32
  }
  func.func @transform_1(%arg0: i32, %arg1: i32, %arg2: i32, %arg3: i32) -> (i32, i32, i32, i32) {
    %c0_i32 = arith.constant 0 : i32
    %c0_i32_0 = arith.constant 0 : i32
    return %arg0, %arg1, %arg3, %c0_i32 : i32, i32, i32, i32
  }
  func.func @transform_2(%arg0: i32, %arg1: i32, %arg2: i32, %arg3: i32) -> (i32, i32, i32, i32) {
    %c0_i32 = arith.constant 0 : i32
    %c0_i32_0 = arith.constant 0 : i32
    return %arg0, %arg1, %arg3, %c0_i32 : i32, i32, i32, i32
  }
  func.func @transform_3(%arg0: i32, %arg1: i32, %arg2: i32, %arg3: i32) -> (i32, i32, i32, i32) {
    %c0_i32 = arith.constant 0 : i32
    %c0_i32_0 = arith.constant 0 : i32
    return %arg0, %arg1, %arg2, %c0_i32 : i32, i32, i32, i32
  }
}

</mosaic_0001>

<bundles_post_ra>
// kernel: tpu_custom_call.1
= control target key start
LH: loop header
LB: loop body
LE: loop exit
PB: predicated region body
PF: predicated region fallthrough
CT: control target
= control target key end

     0   :  { %s10067_s0 = inlined_call_operand.hbm [shape: bf16[2,4,512,128], index: 0, kind: input, shape index: {}]   ;;  %s10068_s1 = inlined_call_operand.hbm [shape: bf16[2,2,512,128], index: 1, kind: input, shape index: {}]   ;;  %s10069_s2 = inlined_call_operand.hbm [shape: bf16[2,2,512,128], index: 2, kind: input, shape index: {}]   ;;  %s10070_s3 = inlined_call_operand.hbm [shape: bf16[2,4,512,128], index: 3, kind: output, shape index: {}]  }
   0x1   :  { %10286 = sst [smem:[#allocation174_spill]] %s10070_s3 }
   0x2   :  { %8 = vsyncpa [#allocation6], 0 }
   0x3   :  { %10 = vsyncpa [#allocation6 + $0x1], 0 }
   0x4   :  { %11 = vsyncpa [#allocation9], 0 }
   0x5   :  { %13 = vsyncpa [#allocation9 + $0x1], 0 }
   0x6   :  { %14 = vsyncpa [#allocation7], 0 }
   0x7   :  { %16 = vsyncpa [#allocation7 + $0x1], 0  ;;  %s7141_s12 = smov 0   ;;  %s7143_s13 = smov 0  }
   0x8   :  { %s7145_s14 = smov 0   ;;  %s7147_s15 = smov 0  }
   0x9   :  { %s7149_s16 = smov 0   ;;  %s7151_s17 = smov 0  }
   0xa   :  { %s7153_s18 = smov 0   ;;  %s7155_s19 = smov 0  }
   0xb   :  { %s7157_s20 = smov 0   ;;  %s7159_s21 = smov 0  }
   0xc   :  { %s7161_s22 = smov 0   ;;  %s7163_s23 = smov 0  }
   0xd   :  { %s7165_s24 = smov 0   ;;  %s7167_s25 = smov 0  }
   0xe   :  { %s7169_s26 = smov 0  }
   0xf LB: > { %10287 = sst [smem:[#allocation20_spill]] %s7062_s17  ;;  %s7217_s27 = sadd.s32 4294967295, %s7098_s26   ;;  %s7098_s26 = sphi %s7169_s26, %s22_s26   ;;  %s7094_s25 = sphi %s7167_s25, %s10875_s25   ;;  %s7090_s24 = sphi %s7165_s24, %s10874_s24   ;;  %s7086_s23 = sphi %s7163_s23, %s10862_s23   ;;  %s7082_s22 = sphi %s7161_s22, %s10873_s22   ;;  %s7078_s21 = sphi %s7159_s21, %s10872_s21   ;;  %s7074_s20 = sphi %s7157_s20, %s10871_s20   ;;  %s7070_s19 = sphi %s7155_s19, %s10860_s19   ;;  %s7066_s18 = sphi %s7153_s18, %s10870_s18   ;;  %s7062_s17 = sphi %s7151_s17, %s10859_s17   ;;  %s7058_s16 = sphi %s7149_s16, %s10869_s16   ;;  %s7054_s15 = sphi %s7147_s15, %s10868_s15   ;;  %s7050_s14 = sphi %s7145_s14, %s10867_s14   ;;  %s7046_s13 = sphi %s7143_s13, %s10866_s13   ;;  %s7042_s12 = sphi %s7141_s12, %s10865_s12  }
  0x10   : > { %10288 = sst [smem:[#allocation21_spill]] %s7066_s18  ;;  %s5380_s28 = sadd.s32 4294967294, %s7098_s26  }
  0x11   : > { %10289 = sst [smem:[#allocation22_spill]] %s7070_s19  ;;  %s37_s29 = sadd.s32 1, %s7082_s22 }
  0x12   : > { %10290 = sst [smem:[#allocation23_spill]] %s7074_s20  ;;  %p38_p0 = scmp.ge.s32.totalorder %s37_s29, 2 }
  0x13   : > { %10291 = sst [smem:[#allocation24_spill]] %s7078_s21  ;;  %s40_s30 = sadd.s32 1, %s7086_s23 }
  0x14   : > { %10292 = sst [smem:[#allocation25_spill]] %s7086_s23  ;;  %s44_s4 = sadd.s32 1, %s7090_s24 }
  0x15   : > { %s48_s5 = sadd.s32 1, %s7094_s25  ;;  %s10877_s29 = smov (%p38_p0, %s37_s29), 0 }
  0x16   : > { %10293 = sst [smem:[#allocation26_spill]] %s10877_s29  ;;  %s10879_s30 = smov (!%p38_p0, %s40_s30), %s7086_s23 }
  0x17   : > { %p66_p1 = scmp.ne.s32.totalorder %s7062_s17, %s7058_s16  ;;  %p67_p2 = scmp.eq.s32.totalorder %s7098_s26, 0 }
  0x18   : > { %p42_p3 = scmp.ge.s32.totalorder %s10879_s30, 2  ;;  %p72_p4 = scmp.ne.s32.totalorder %s7058_s16, %s7054_s15 }
  0x19   : > { %p7237_p5 = por %p67_p2, %p66_p1  ;;  %p73_p6 = scmp.eq.s32.totalorder %s7217_s27, 0 }
  0x1a   : > { %s10881_s30 = smov (%p42_p3, %s10879_s30), 0  ;;  %s10883_s4 = smov (!%p42_p3, %s44_s4), %s7090_s24 }
  0x1b   : > { %10295 = sst [smem:[#allocation27_spill]] %s10881_s30  ;;  %s59_s7 = sadd.s32 1, %s7062_s17 }
  0x1c   : > { %p7251_p7 = por %p73_p6, %p72_p4  ;;  %p46_p8 = scmp.ge.s32.totalorder %s10883_s4, 2 }
  0x1d   : > { %s55_s9 = ssub.s32 %s7086_s23, %s10881_s30  ;;  %s85_s10 = ssub.s32 %s7082_s22, %s10877_s29 }
  0x1e   : > { %p96_p9 = scmp.ne.s32.totalorder %s7050_s14, %s7046_s13  ;;  %s10885_s4 = smov (%p46_p8, %s10883_s4), 0 }
  0x1f   : > { %10297 = sst [smem:[#allocation28_spill]] %s10885_s4  ;;  %s10887_s5 = smov (!%p46_p8, %s48_s5), %s7094_s25 }
  0x20   : > { %s53_s11 = ssub.s32 %s7090_s24, %s10885_s4  ;;  %p7268_p10 = por %p96_p9, %p67_p2 }
  0x21   : > { %p50_p11 = scmp.ge.s32.totalorder %s10887_s5, 2  ;;  %p102_p12 = scmp.ne.s32.totalorder %s7046_s13, %s7042_s12 }
  0x22   : > { %p160_p13 = scmp.eq.s32.totalorder %s7217_s27, 15  ;;  %p166_p0 = scmp.eq.s32.totalorder %s5380_s28, 15 }
  0x23   : > { %s10889_s5 = smov (%p50_p11, %s10887_s5), 0  ;;  %p7279_p3 = por %p102_p12, %p73_p6 }
  0x24   : > { %10299 = sst [smem:[#allocation29_spill]] %s10889_s5  ;;  %p7286_p8 = por %p160_p13, %p66_p1 }
  0x25   : > { %s10300_s30 = scalar_select %p7279_p3, 1, 0 }
  0x26   : > { %s10302_s4 = scalar_select %p7286_p8, 1, 0 }
  0x27   : > { %10301 = sst [smem:[#allocation30_spill]] %s10300_s30  ;;  %s52_s29 = ssub.s32 %s7094_s25, %s10889_s5 }
  0x28   : > { %p7295_p2 = por %p166_p0, %p72_p4  ;;  %s54_s12 = sor.u32 %s53_s11, %s52_s29 }
  0x29   : > { %s89_s28 = sadd.s32 1, %s7050_s14  ;;  %s56_s20 = sor.u32 %s55_s9, %s54_s12 }
  0x2a   : > { %s10303_s21 = scalar_select %p7295_p2, 1, 0 }
  0x2b   : > { %s86_s19 = sor.u32 %s85_s10, %s54_s12  ;;  %p57_p9 = scmp.eq.s32.totalorder %s56_s20, 0 }
  0x2c   : > { %10304 = sst [smem:[#allocation31_spill]] %s10303_s21  ;;  %p87_p6 = scmp.eq.s32.totalorder %s86_s19, 0 }
  0x2d   : > { %s7301_s18 = scalar_select %p57_p9, %s7062_s17, %s59_s7  }
  0x2e   : > { %s7304_s30 = scalar_select %p87_p6, %s7050_s14, %s89_s28  }
  0x2f   : > { %10305 = sst [smem:[#allocation32_spill]] %s7301_s18  ;;  %p5382_p1 = scmp.ge.s32.totalorder %s7098_s26, 16 }
  0x30   : > { %10306 = sst [smem:[#allocation33_spill]] %s7304_s30 }
  0x31   : > { %182 = sbr.rel (%p5382_p1) target bundleno = 124 (0x7c), region = 16 }
  0x38   : > { %s186_s29 = sand.u32 1, %s7062_s17   ;;  %s5385_s11 = sshll.u32 %s7086_s23, 5 }
  0x39   : > { %s5383_s9 = sshll.u32 %s186_s29, 8  ;;  %s5576_s20 = sshll.u32 %s7090_s24, 7 }
  0x3a   : > { %s197_s19 = sadd.s32 %s5576_s20, %s5385_s11  ;;  %s5387_s7 = sshll.u32 %s7094_s25, 8 }
  0x3b   : > { %s199_s10 = sadd.s32 %s5387_s7, %s197_s19  ;;  %s190_s12 = scalar_lea.vmem [#allocation5], %s5383_s9 }
  0x3c   : > { %s214_s28 = sshll.u32 %s190_s12, 4  ;;  %s5388_s5 = sshll.u32 %s199_s10, 6  ;;  %s215_s28 = int_to_ptr.vmem [resolvable:$true] %s214_s28 }
  0x3d   : > { %s6169_s18 = scalar_select %p7237_p5, [#allocation0], [#allocation16] }
  0x3e   : > { %s7100_s30 = smov 4096   ;;  %s7101_s23 = smov 2048  }
  0x3f   : > { %6170 = sst [smem:[#allocation13]] (%p7237_p5), %s7100_s30  ;;  %s7102_s17 = smov 32  }
  0x40   : > { %s206_s21 = sld [smem:[%s6169_s18]]   ;;  %s7103_s11 = smov 64  }
  0x41   : > { %6171 = sst [smem:[#allocation13 + $0x1]] (%p7237_p5), %s7101_s23  ;;  %s201_s19 = scalar_lea.hbm %s10067_s0, %s5388_s5 }
  0x42   : > { %6172 = sst [smem:[#allocation13 + $0x2]] (%p7237_p5), %s7102_s17  ;;  %s7104_s7 = smov 4  }
  0x43   : > { %6173 = sst [smem:[#allocation13 + $0x3]] (%p7237_p5), %s7103_s11  ;;  %s187_s10 = scalar_lea.sflag [#allocation6], %s186_s29 }
  0x44   : > { %6174 = sst [smem:[#allocation13 + $0x4]] (%p7237_p5), %s7103_s11  ;;  %s7105_s23 = smov [#allocation12]  }
  0x45   : > { %6175 = sst [smem:[#allocation13 + $0x5]] (%p7237_p5), %s7104_s7  ;;  %s237_s17 = sand.u32 1, %s7098_s26  }
  0x46   : > { %s5389_s18 = sshll.u32 %s206_s21, 26  ;;  %s239_s12 = sand.u32 1, %s7050_s14  }
  0x47   : > { %s5390_s30 = sadd.s32 134217728, %s5389_s18  ;;  %s7332_s5 = sshll.u32 %s239_s12, 7 }
  0x48   : > { %6176 = dma.general (%p7237_p5), %s201_s19, 4096, %s215_s28, %s187_s10, %s7105_s23, [#allocation13], %s5390_s30, 0  }
  0x49   : > { %s5392_s11 = sshll.u32 %s7082_s22, 5  ;;  %s5393_s9 = sshll.u32 %s7090_s24, 6 }
  0x4a   : > { %s5394_s20 = sshll.u32 %s7094_s25, 7  ;;  %s247_s21 = sadd.s32 %s5393_s9, %s5392_s11 }
  0x4b   : > { %s241_s7 = scalar_lea.vmem [#allocation8], %s7332_s5  ;;  %s7338_s18 = sadd.s32 %s5394_s20, %s247_s21 }
  0x4c   : > { %s252_s29 = sshll.u32 %s241_s7, 4  ;;  %s5395_s6 = sshll.u32 %s7338_s18, 6  ;;  %s7340_s29 = int_to_ptr.vmem [resolvable:$true] %s252_s29 }
  0x4d   : > { %s7348_s30 = scalar_lea.hbm %s10068_s1, %s5395_s6  ;;  %s7350_s10 = scalar_lea.sflag [#allocation9], %s237_s17 }
  0x4e   : > { %s6912_s23 = scalar_lea.hbm %s7348_s30, 2048  ;;  %s6916_s9 = scalar_lea.hbm %s10068_s1, 16384 }
  0x4f   : > { %p6913_p4 = scmp.ne.s32.totalorder %s7348_s30, %s6912_s23  ;;  %p6917_p12 = scmp.lt.u32.totalorder %s7348_s30, %s10068_s1 }
  0x50   : > { %p6918_p13 = scmp.lt.u32.totalorder %s6916_s9, %s6912_s23  ;;  %p6920_p9 = scmp.lt.u32.totalorder %s6912_s23, %s7348_s30 }
  0x51   : > { %p6914_p5 = pnand %p6913_p4, %p7268_p10 }
  0x52   : > { %p6919_p0 = por %p6918_p13, %p6917_p12 }
  0x53   : > { %p6915_p11 = pneg %p6914_p5 }
  0x54   : > { %p6921_p6 = por %p6920_p9, %p6919_p0 }
  0x56   : > { %p6922_p1 = pnand %p6921_p6, %p6915_p11 }
  0x58   : > { %6925 = shalt.err (!%p6922_p1)
}
  0x59   : > { %s6926_s17 = scalar_lea.vmem %s7340_s29, 2048  ;;  %s7106_s7 = smov [#allocation8]  }
  0x5a   : > { %p6927_p4 = scmp.ne.s32.totalorder %s7340_s29, %s6926_s17  ;;  %s6930_s28 = sshll.u32 %s7106_s7, 4  ;;  %s6931_s28 = int_to_ptr.vmem [resolvable:$false] %s6930_s28 }
  0x5b   : > { %s6932_s19 = scalar_lea.vmem %s6931_s28, 4096  ;;  %p6933_p8 = scmp.lt.s32.totalorder %s7340_s29, %s6931_s28 }
  0x5c   : > { %p6928_p5 = pnand %p6927_p4, %p7268_p10  ;;  %p6934_p3 = scmp.lt.s32.totalorder %s6932_s19, %s6926_s17 }
  0x5e   : > { %p6929_p2 = pneg %p6928_p5  ;;  %p6935_p12 = por %p6934_p3, %p6933_p8 }
  0x60   : > { %p6936_p13 = pnand %p6935_p12, %p6929_p2 }
  0x62   : > { %6939 = shalt.err (!%p6936_p13)
}
  0x63   : > { %s7107_s23 = smov 64   ;;  %s7108_s12 = smov 4  }
  0x64   : > { %6177 = dma.hbm_to_vmem [thread:$0]  (%p7268_p10), %s7348_s30, 2048, %s7340_s29, %s7350_s10, %s7107_s23, %s7107_s23, %s7108_s12  }
  0x65   : > { %s7382_s20 = scalar_lea.hbm %s10069_s2, %s5395_s6  ;;  %s266_s21 = scalar_lea.vmem [#allocation10], %s7332_s5 }
  0x66   : > { %s277_s17 = sshll.u32 %s266_s21, 4  ;;  %s6940_s7 = scalar_lea.hbm %s7382_s20, 2048  ;;  %s7385_s17 = int_to_ptr.vmem [resolvable:$true] %s277_s17 }
  0x67   : > { %p6941_p3 = scmp.ne.s32.totalorder %s7382_s20, %s6940_s7  ;;  %s6944_s30 = scalar_lea.hbm %s10069_s2, 16384 }
  0x68   : > { %p6945_p11 = scmp.lt.u32.totalorder %s7382_s20, %s10069_s2  ;;  %p6946_p0 = scmp.lt.u32.totalorder %s6944_s30, %s6940_s7 }
  0x69   : > { %p6942_p8 = pnand %p6941_p3, %p7268_p10  ;;  %p6948_p6 = scmp.lt.u32.totalorder %s6940_s7, %s7382_s20 }
  0x6a   : > { %p6947_p9 = por %p6946_p0, %p6945_p11 }
  0x6b   : > { %p6943_p2 = pneg %p6942_p8 }
  0x6c   : > { %p6949_p1 = por %p6948_p6, %p6947_p9 }
  0x6e   : > { %p6950_p4 = pnand %p6949_p1, %p6943_p2 }
  0x70   : > { %6953 = shalt.err (!%p6950_p4)
}
  0x71   : > { %s6954_s5 = scalar_lea.vmem %s7385_s17, 2048  ;;  %s7109_s19 = smov [#allocation10]  }
  0x72   : > { %p6955_p5 = scmp.ne.s32.totalorder %s7385_s17, %s6954_s5  ;;  %s6958_s11 = sshll.u32 %s7109_s19, 4  ;;  %s6959_s11 = int_to_ptr.vmem [resolvable:$false] %s6958_s11 }
  0x73   : > { %s6960_s9 = scalar_lea.vmem %s6959_s11, 4096  ;;  %p6961_p3 = scmp.lt.s32.totalorder %s7385_s17, %s6959_s11 }
  0x74   : > { %p6956_p12 = pnand %p6955_p5, %p7268_p10  ;;  %p6962_p8 = scmp.lt.s32.totalorder %s6960_s9, %s6954_s5 }
  0x76   : > { %p6957_p13 = pneg %p6956_p12  ;;  %p6963_p11 = por %p6962_p8, %p6961_p3 }
  0x78   : > { %p6964_p0 = pnand %p6963_p11, %p6957_p13 }
  0x7a   : > { %6967 = shalt.err (!%p6964_p0)
}
  0x7b   : > { %6178 = dma.hbm_to_vmem [thread:$0]  (%p7268_p10), %s7382_s20, 2048, %s7385_s17, %s7350_s10, %s7107_s23, %s7107_s23, %s7108_s12  }
  0x7c PF: > { %p5401_p2 = scmp.ge.s32.totalorder %s7098_s26, 1  ;;  %p285_p9 = scmp.lt.s32.totalorder %s7098_s26, 17 }
  0x7e   : > { %p286_p6 = pnand %p5401_p2, %p285_p9 }
  0x80   : > { %289 = sbr.rel (%p286_p6) target bundleno = 2204 (0x89c), region = 32 }
  0x87   : > { %s7415_s21 = sand.u32 1, %s7058_s16  }
  0x88   : > { %s5402_s3 = sshll.u32 %s7415_s21, 8  ;;  %s292_s7 = scalar_lea.sflag [#allocation6], %s7415_s21 }
  0x89   : > { %s7419_s29 = scalar_lea.vmem [#allocation5], %s5402_s3 }
  0x8a   : > { %7029 = dma.done.wait (%p7251_p7), %s292_s7, 4096  }
  0x8b   : > { %7031 = vsyncadd (%p7251_p7), %s292_s7, 4294963200  ;;  %s10307_s10 = sld [smem:[#allocation30_spill]]  ;;  %s300_s23 = sand.u32 1, %s7217_s27  }
  0x8c   : > { %s302_s12 = sand.u32 1, %s7046_s13   ;;  %s301_s17 = scalar_lea.sflag [#allocation9], %s300_s23 }
  0x8d   : > { %s5403_s20 = sshll.u32 %s302_s12, 7 }
  0x8e   : > { %s7427_s18 = scalar_lea.vmem [#allocation8], %s5403_s20 }
  0x91   : > { %p10308_p10 = scmp.ne.s32.totalorder %s10307_s10, 0 }
  0x93   : > { %7033 = dma.done.wait (%p10308_p10), %s301_s17, 4096  }
  0x94   : > { %7035 = vsyncadd (%p10308_p10), %s301_s17, 4294963200  ;;  %s7433_s30 = scalar_lea.vmem [#allocation10], %s5403_s20  ;;  %s7435_s28 = scalar_lea.vmem [#allocation11], %s5402_s3 }
  0x95   : > { %s10309_s8 = sld [smem:[#allocation21_spill]] }
  0x9b   : > { %p5406_p7 = scmp.ne.s32.totalorder %s10309_s8, 0 }
  0x9c   : > { %vm358_vm0 = vcmask (!%p5406_p7), 7168   ;;  %v7110_v0 = vmov (!%p5406_p7), -inf   ;;  %v7111_v1 = vmov (!%p5406_p7), 0.0  }
  0x9d   : > { %357 = sbr.rel (%p5406_p7) target bundleno = 253 (0xfd), region = 48  ;;  %359 = vst.msk [vmem:[#allocation2] sm:$0xff] (!%p5406_p7), %vm358_vm0, %v7110_v0  ;;  %360 = vst.msk [vmem:[#allocation2 + $0x8] sm:$0xff] (!%p5406_p7), %vm358_vm0, %v7110_v0 }
  0x9e   : > { %361 = vst.msk [vmem:[#allocation2 + $0x10] sm:$0xff] (!%p5406_p7), %vm358_vm0, %v7110_v0  ;;  %362 = vst.msk [vmem:[#allocation2 + $0x18] sm:$0xff] (!%p5406_p7), %vm358_vm0, %v7110_v0 }
  0x9f   : > { %363 = vst.msk [vmem:[#allocation2 + $0x20] sm:$0xff] (!%p5406_p7), %vm358_vm0, %v7110_v0  ;;  %364 = vst.msk [vmem:[#allocation2 + $0x28] sm:$0xff] (!%p5406_p7), %vm358_vm0, %v7110_v0 }
  0xa0   : > { %365 = vst.msk [vmem:[#allocation2 + $0x30] sm:$0xff] (!%p5406_p7), %vm358_vm0, %v7110_v0  ;;  %366 = vst.msk [vmem:[#allocation2 + $0x38] sm:$0xff] (!%p5406_p7), %vm358_vm0, %v7110_v0 }
  0xa1   : > { %367 = vst.msk [vmem:[#allocation2 + $0x40] sm:$0xff] (!%p5406_p7), %vm358_vm0, %v7110_v0  ;;  %368 = vst.msk [vmem:[#allocation2 + $0x48] sm:$0xff] (!%p5406_p7), %vm358_vm0, %v7110_v0 }
  0xa2   : > { %369 = vst.msk [vmem:[#allocation2 + $0x50] sm:$0xff] (!%p5406_p7), %vm358_vm0, %v7110_v0  ;;  %370 = vst.msk [vmem:[#allocation2 + $0x58] sm:$0xff] (!%p5406_p7), %vm358_vm0, %v7110_v0 }
  0xa3   : > { %371 = vst.msk [vmem:[#allocation2 + $0x60] sm:$0xff] (!%p5406_p7), %vm358_vm0, %v7110_v0  ;;  %372 = vst.msk [vmem:[#allocation2 + $0x68] sm:$0xff] (!%p5406_p7), %vm358_vm0, %v7110_v0 }
  0xa4   : > { %373 = vst.msk [vmem:[#allocation2 + $0x70] sm:$0xff] %vm358_vm0, %v7110_v0  ;;  %374 = vst.msk [vmem:[#allocation2 + $0x78] sm:$0xff] %vm358_vm0, %v7110_v0 }
  0xa5   : > { %375 = vst.msk [vmem:[#allocation2 + $0x80] sm:$0xff] %vm358_vm0, %v7110_v0  ;;  %376 = vst.msk [vmem:[#allocation2 + $0x88] sm:$0xff] %vm358_vm0, %v7110_v0 }
  0xa6   : > { %377 = vst.msk [vmem:[#allocation2 + $0x90] sm:$0xff] %vm358_vm0, %v7110_v0  ;;  %378 = vst.msk [vmem:[#allocation2 + $0x98] sm:$0xff] %vm358_vm0, %v7110_v0 }
  0xa7   : > { %379 = vst.msk [vmem:[#allocation2 + $0xa0] sm:$0xff] %vm358_vm0, %v7110_v0  ;;  %380 = vst.msk [vmem:[#allocation2 + $0xa8] sm:$0xff] %vm358_vm0, %v7110_v0 }
  0xa8   : > { %381 = vst.msk [vmem:[#allocation2 + $0xb0] sm:$0xff] %vm358_vm0, %v7110_v0  ;;  %382 = vst.msk [vmem:[#allocation2 + $0xb8] sm:$0xff] %vm358_vm0, %v7110_v0 }
  0xa9   : > { %383 = vst.msk [vmem:[#allocation2 + $0xc0] sm:$0xff] %vm358_vm0, %v7110_v0  ;;  %384 = vst.msk [vmem:[#allocation2 + $0xc8] sm:$0xff] %vm358_vm0, %v7110_v0 }
  0xaa   : > { %385 = vst.msk [vmem:[#allocation2 + $0xd0] sm:$0xff] %vm358_vm0, %v7110_v0  ;;  %386 = vst.msk [vmem:[#allocation2 + $0xd8] sm:$0xff] %vm358_vm0, %v7110_v0 }
  0xab   : > { %387 = vst.msk [vmem:[#allocation2 + $0xe0] sm:$0xff] %vm358_vm0, %v7110_v0  ;;  %388 = vst.msk [vmem:[#allocation2 + $0xe8] sm:$0xff] %vm358_vm0, %v7110_v0 }
  0xac   : > { %389 = vst.msk [vmem:[#allocation2 + $0xf0] sm:$0xff] %vm358_vm0, %v7110_v0  ;;  %390 = vst.msk [vmem:[#allocation2 + $0xf8] sm:$0xff] %vm358_vm0, %v7110_v0 }
  0xad   : > { %391 = vst.msk [vmem:[#allocation2 + $0x100] sm:$0xff] %vm358_vm0, %v7110_v0  ;;  %392 = vst.msk [vmem:[#allocation2 + $0x108] sm:$0xff] %vm358_vm0, %v7110_v0 }
  0xae   : > { %393 = vst.msk [vmem:[#allocation2 + $0x110] sm:$0xff] %vm358_vm0, %v7110_v0  ;;  %394 = vst.msk [vmem:[#allocation2 + $0x118] sm:$0xff] %vm358_vm0, %v7110_v0 }
  0xaf   : > { %395 = vst.msk [vmem:[#allocation2 + $0x120] sm:$0xff] %vm358_vm0, %v7110_v0  ;;  %396 = vst.msk [vmem:[#allocation2 + $0x128] sm:$0xff] %vm358_vm0, %v7110_v0 }
  0xb0   : > { %397 = vst.msk [vmem:[#allocation2 + $0x130] sm:$0xff] %vm358_vm0, %v7110_v0  ;;  %398 = vst.msk [vmem:[#allocation2 + $0x138] sm:$0xff] %vm358_vm0, %v7110_v0 }
  0xb1   : > { %399 = vst.msk [vmem:[#allocation2 + $0x140] sm:$0xff] %vm358_vm0, %v7110_v0  ;;  %400 = vst.msk [vmem:[#allocation2 + $0x148] sm:$0xff] %vm358_vm0, %v7110_v0 }
  0xb2   : > { %401 = vst.msk [vmem:[#allocation2 + $0x150] sm:$0xff] %vm358_vm0, %v7110_v0  ;;  %402 = vst.msk [vmem:[#allocation2 + $0x158] sm:$0xff] %vm358_vm0, %v7110_v0 }
  0xb3   : > { %403 = vst.msk [vmem:[#allocation2 + $0x160] sm:$0xff] %vm358_vm0, %v7110_v0  ;;  %404 = vst.msk [vmem:[#allocation2 + $0x168] sm:$0xff] %vm358_vm0, %v7110_v0 }
  0xb4   : > { %405 = vst.msk [vmem:[#allocation2 + $0x170] sm:$0xff] %vm358_vm0, %v7110_v0  ;;  %406 = vst.msk [vmem:[#allocation2 + $0x178] sm:$0xff] %vm358_vm0, %v7110_v0 }
  0xb5   : > { %407 = vst.msk [vmem:[#allocation2 + $0x180] sm:$0xff] %vm358_vm0, %v7110_v0  ;;  %408 = vst.msk [vmem:[#allocation2 + $0x188] sm:$0xff] %vm358_vm0, %v7110_v0 }
  0xb6   : > { %409 = vst.msk [vmem:[#allocation2 + $0x190] sm:$0xff] %vm358_vm0, %v7110_v0  ;;  %410 = vst.msk [vmem:[#allocation2 + $0x198] sm:$0xff] %vm358_vm0, %v7110_v0 }
  0xb7   : > { %411 = vst.msk [vmem:[#allocation2 + $0x1a0] sm:$0xff] %vm358_vm0, %v7110_v0  ;;  %412 = vst.msk [vmem:[#allocation2 + $0x1a8] sm:$0xff] %vm358_vm0, %v7110_v0 }
  0xb8   : > { %413 = vst.msk [vmem:[#allocation2 + $0x1b0] sm:$0xff] %vm358_vm0, %v7110_v0  ;;  %414 = vst.msk [vmem:[#allocation2 + $0x1b8] sm:$0xff] %vm358_vm0, %v7110_v0 }
  0xb9   : > { %415 = vst.msk [vmem:[#allocation2 + $0x1c0] sm:$0xff] %vm358_vm0, %v7110_v0  ;;  %416 = vst.msk [vmem:[#allocation2 + $0x1c8] sm:$0xff] %vm358_vm0, %v7110_v0 }
  0xba   : > { %417 = vst.msk [vmem:[#allocation2 + $0x1d0] sm:$0xff] %vm358_vm0, %v7110_v0  ;;  %418 = vst.msk [vmem:[#allocation2 + $0x1d8] sm:$0xff] %vm358_vm0, %v7110_v0 }
  0xbb   : > { %419 = vst.msk [vmem:[#allocation2 + $0x1e0] sm:$0xff] %vm358_vm0, %v7110_v0  ;;  %420 = vst.msk [vmem:[#allocation2 + $0x1e8] sm:$0xff] %vm358_vm0, %v7110_v0 }
  0xbc   : > { %421 = vst.msk [vmem:[#allocation2 + $0x1f0] sm:$0xff] %vm358_vm0, %v7110_v0  ;;  %422 = vst.msk [vmem:[#allocation2 + $0x1f8] sm:$0xff] %vm358_vm0, %v7110_v0 }
  0xbd   : > { %423 = vst.msk [vmem:[#allocation3] sm:$0xff] %vm358_vm0, %v7111_v1  ;;  %424 = vst.msk [vmem:[#allocation3 + $0x8] sm:$0xff] %vm358_vm0, %v7111_v1 }
  0xbe   : > { %425 = vst.msk [vmem:[#allocation3 + $0x10] sm:$0xff] %vm358_vm0, %v7111_v1  ;;  %426 = vst.msk [vmem:[#allocation3 + $0x18] sm:$0xff] %vm358_vm0, %v7111_v1 }
  0xbf   : > { %427 = vst.msk [vmem:[#allocation3 + $0x20] sm:$0xff] %vm358_vm0, %v7111_v1  ;;  %428 = vst.msk [vmem:[#allocation3 + $0x28] sm:$0xff] %vm358_vm0, %v7111_v1 }
  0xc0   : > { %429 = vst.msk [vmem:[#allocation3 + $0x30] sm:$0xff] %vm358_vm0, %v7111_v1  ;;  %430 = vst.msk [vmem:[#allocation3 + $0x38] sm:$0xff] %vm358_vm0, %v7111_v1 }
  0xc1   : > { %431 = vst.msk [vmem:[#allocation3 + $0x40] sm:$0xff] %vm358_vm0, %v7111_v1  ;;  %432 = vst.msk [vmem:[#allocation3 + $0x48] sm:$0xff] %vm358_vm0, %v7111_v1 }
  0xc2   : > { %433 = vst.msk [vmem:[#allocation3 + $0x50] sm:$0xff] %vm358_vm0, %v7111_v1  ;;  %434 = vst.msk [vmem:[#allocation3 + $0x58] sm:$0xff] %vm358_vm0, %v7111_v1 }
  0xc3   : > { %435 = vst.msk [vmem:[#allocation3 + $0x60] sm:$0xff] %vm358_vm0, %v7111_v1  ;;  %436 = vst.msk [vmem:[#allocation3 + $0x68] sm:$0xff] %vm358_vm0, %v7111_v1 }
  0xc4   : > { %437 = vst.msk [vmem:[#allocation3 + $0x70] sm:$0xff] %vm358_vm0, %v7111_v1  ;;  %438 = vst.msk [vmem:[#allocation3 + $0x78] sm:$0xff] %vm358_vm0, %v7111_v1 }
  0xc5   : > { %439 = vst.msk [vmem:[#allocation3 + $0x80] sm:$0xff] %vm358_vm0, %v7111_v1  ;;  %440 = vst.msk [vmem:[#allocation3 + $0x88] sm:$0xff] %vm358_vm0, %v7111_v1 }
  0xc6   : > { %441 = vst.msk [vmem:[#allocation3 + $0x90] sm:$0xff] %vm358_vm0, %v7111_v1  ;;  %442 = vst.msk [vmem:[#allocation3 + $0x98] sm:$0xff] %vm358_vm0, %v7111_v1 }
  0xc7   : > { %443 = vst.msk [vmem:[#allocation3 + $0xa0] sm:$0xff] %vm358_vm0, %v7111_v1  ;;  %444 = vst.msk [vmem:[#allocation3 + $0xa8] sm:$0xff] %vm358_vm0, %v7111_v1 }
  0xc8   : > { %445 = vst.msk [vmem:[#allocation3 + $0xb0] sm:$0xff] %vm358_vm0, %v7111_v1  ;;  %446 = vst.msk [vmem:[#allocation3 + $0xb8] sm:$0xff] %vm358_vm0, %v7111_v1 }
  0xc9   : > { %447 = vst.msk [vmem:[#allocation3 + $0xc0] sm:$0xff] %vm358_vm0, %v7111_v1  ;;  %448 = vst.msk [vmem:[#allocation3 + $0xc8] sm:$0xff] %vm358_vm0, %v7111_v1 }
  0xca   : > { %449 = vst.msk [vmem:[#allocation3 + $0xd0] sm:$0xff] %vm358_vm0, %v7111_v1  ;;  %450 = vst.msk [vmem:[#allocation3 + $0xd8] sm:$0xff] %vm358_vm0, %v7111_v1 }
  0xcb   : > { %451 = vst.msk [vmem:[#allocation3 + $0xe0] sm:$0xff] %vm358_vm0, %v7111_v1  ;;  %452 = vst.msk [vmem:[#allocation3 + $0xe8] sm:$0xff] %vm358_vm0, %v7111_v1 }
  0xcc   : > { %453 = vst.msk [vmem:[#allocation3 + $0xf0] sm:$0xff] %vm358_vm0, %v7111_v1  ;;  %454 = vst.msk [vmem:[#allocation3 + $0xf8] sm:$0xff] %vm358_vm0, %v7111_v1 }
  0xcd   : > { %455 = vst.msk [vmem:[#allocation3 + $0x100] sm:$0xff] %vm358_vm0, %v7111_v1  ;;  %456 = vst.msk [vmem:[#allocation3 + $0x108] sm:$0xff] %vm358_vm0, %v7111_v1 }
  0xce   : > { %457 = vst.msk [vmem:[#allocation3 + $0x110] sm:$0xff] %vm358_vm0, %v7111_v1  ;;  %458 = vst.msk [vmem:[#allocation3 + $0x118] sm:$0xff] %vm358_vm0, %v7111_v1 }
  0xcf   : > { %459 = vst.msk [vmem:[#allocation3 + $0x120] sm:$0xff] %vm358_vm0, %v7111_v1  ;;  %460 = vst.msk [vmem:[#allocation3 + $0x128] sm:$0xff] %vm358_vm0, %v7111_v1 }
  0xd0   : > { %461 = vst.msk [vmem:[#allocation3 + $0x130] sm:$0xff] %vm358_vm0, %v7111_v1  ;;  %462 = vst.msk [vmem:[#allocation3 + $0x138] sm:$0xff] %vm358_vm0, %v7111_v1 }
  0xd1   : > { %463 = vst.msk [vmem:[#allocation3 + $0x140] sm:$0xff] %vm358_vm0, %v7111_v1  ;;  %464 = vst.msk [vmem:[#allocation3 + $0x148] sm:$0xff] %vm358_vm0, %v7111_v1 }
  0xd2   : > { %465 = vst.msk [vmem:[#allocation3 + $0x150] sm:$0xff] %vm358_vm0, %v7111_v1  ;;  %466 = vst.msk [vmem:[#allocation3 + $0x158] sm:$0xff] %vm358_vm0, %v7111_v1 }
  0xd3   : > { %467 = vst.msk [vmem:[#allocation3 + $0x160] sm:$0xff] %vm358_vm0, %v7111_v1  ;;  %468 = vst.msk [vmem:[#allocation3 + $0x168] sm:$0xff] %vm358_vm0, %v7111_v1 }
  0xd4   : > { %469 = vst.msk [vmem:[#allocation3 + $0x170] sm:$0xff] %vm358_vm0, %v7111_v1  ;;  %470 = vst.msk [vmem:[#allocation3 + $0x178] sm:$0xff] %vm358_vm0, %v7111_v1 }
  0xd5   : > { %471 = vst.msk [vmem:[#allocation3 + $0x180] sm:$0xff] %vm358_vm0, %v7111_v1  ;;  %472 = vst.msk [vmem:[#allocation3 + $0x188] sm:$0xff] %vm358_vm0, %v7111_v1 }
  0xd6   : > { %473 = vst.msk [vmem:[#allocation3 + $0x190] sm:$0xff] %vm358_vm0, %v7111_v1  ;;  %474 = vst.msk [vmem:[#allocation3 + $0x198] sm:$0xff] %vm358_vm0, %v7111_v1 }
  0xd7   : > { %475 = vst.msk [vmem:[#allocation3 + $0x1a0] sm:$0xff] %vm358_vm0, %v7111_v1  ;;  %476 = vst.msk [vmem:[#allocation3 + $0x1a8] sm:$0xff] %vm358_vm0, %v7111_v1 }
  0xd8   : > { %477 = vst.msk [vmem:[#allocation3 + $0x1b0] sm:$0xff] %vm358_vm0, %v7111_v1  ;;  %478 = vst.msk [vmem:[#allocation3 + $0x1b8] sm:$0xff] %vm358_vm0, %v7111_v1 }
  0xd9   : > { %479 = vst.msk [vmem:[#allocation3 + $0x1c0] sm:$0xff] %vm358_vm0, %v7111_v1  ;;  %480 = vst.msk [vmem:[#allocation3 + $0x1c8] sm:$0xff] %vm358_vm0, %v7111_v1 }
  0xda   : > { %481 = vst.msk [vmem:[#allocation3 + $0x1d0] sm:$0xff] %vm358_vm0, %v7111_v1  ;;  %482 = vst.msk [vmem:[#allocation3 + $0x1d8] sm:$0xff] %vm358_vm0, %v7111_v1 }
  0xdb   : > { %483 = vst.msk [vmem:[#allocation3 + $0x1e0] sm:$0xff] %vm358_vm0, %v7111_v1  ;;  %484 = vst.msk [vmem:[#allocation3 + $0x1e8] sm:$0xff] %vm358_vm0, %v7111_v1 }
  0xdc   : > { %485 = vst.msk [vmem:[#allocation3 + $0x1f0] sm:$0xff] %vm358_vm0, %v7111_v1  ;;  %486 = vst.msk [vmem:[#allocation3 + $0x1f8] sm:$0xff] %vm358_vm0, %v7111_v1 }
  0xdd   : > { %487 = vst [vmem:[#allocation4] sm:$0xff] %v7111_v1  ;;  %488 = vst [vmem:[#allocation4 + $0x8] sm:$0xff] %v7111_v1 }
  0xde   : > { %489 = vst [vmem:[#allocation4 + $0x10] sm:$0xff] %v7111_v1  ;;  %490 = vst [vmem:[#allocation4 + $0x18] sm:$0xff] %v7111_v1 }
  0xdf   : > { %491 = vst [vmem:[#allocation4 + $0x20] sm:$0xff] %v7111_v1  ;;  %492 = vst [vmem:[#allocation4 + $0x28] sm:$0xff] %v7111_v1 }
  0xe0   : > { %493 = vst [vmem:[#allocation4 + $0x30] sm:$0xff] %v7111_v1  ;;  %494 = vst [vmem:[#allocation4 + $0x38] sm:$0xff] %v7111_v1 }
  0xe1   : > { %495 = vst [vmem:[#allocation4 + $0x40] sm:$0xff] %v7111_v1  ;;  %496 = vst [vmem:[#allocation4 + $0x48] sm:$0xff] %v7111_v1 }
  0xe2   : > { %497 = vst [vmem:[#allocation4 + $0x50] sm:$0xff] %v7111_v1  ;;  %498 = vst [vmem:[#allocation4 + $0x58] sm:$0xff] %v7111_v1 }
  0xe3   : > { %499 = vst [vmem:[#allocation4 + $0x60] sm:$0xff] %v7111_v1  ;;  %500 = vst [vmem:[#allocation4 + $0x68] sm:$0xff] %v7111_v1 }
  0xe4   : > { %501 = vst [vmem:[#allocation4 + $0x70] sm:$0xff] %v7111_v1  ;;  %502 = vst [vmem:[#allocation4 + $0x78] sm:$0xff] %v7111_v1 }
  0xe5   : > { %503 = vst [vmem:[#allocation4 + $0x80] sm:$0xff] %v7111_v1  ;;  %504 = vst [vmem:[#allocation4 + $0x88] sm:$0xff] %v7111_v1 }
  0xe6   : > { %505 = vst [vmem:[#allocation4 + $0x90] sm:$0xff] %v7111_v1  ;;  %506 = vst [vmem:[#allocation4 + $0x98] sm:$0xff] %v7111_v1 }
  0xe7   : > { %507 = vst [vmem:[#allocation4 + $0xa0] sm:$0xff] %v7111_v1  ;;  %508 = vst [vmem:[#allocation4 + $0xa8] sm:$0xff] %v7111_v1 }
  0xe8   : > { %509 = vst [vmem:[#allocation4 + $0xb0] sm:$0xff] %v7111_v1  ;;  %510 = vst [vmem:[#allocation4 + $0xb8] sm:$0xff] %v7111_v1 }
  0xe9   : > { %511 = vst [vmem:[#allocation4 + $0xc0] sm:$0xff] %v7111_v1  ;;  %512 = vst [vmem:[#allocation4 + $0xc8] sm:$0xff] %v7111_v1 }
  0xea   : > { %513 = vst [vmem:[#allocation4 + $0xd0] sm:$0xff] %v7111_v1  ;;  %514 = vst [vmem:[#allocation4 + $0xd8] sm:$0xff] %v7111_v1 }
  0xeb   : > { %515 = vst [vmem:[#allocation4 + $0xe0] sm:$0xff] %v7111_v1  ;;  %516 = vst [vmem:[#allocation4 + $0xe8] sm:$0xff] %v7111_v1 }
  0xec   : > { %517 = vst [vmem:[#allocation4 + $0xf0] sm:$0xff] %v7111_v1  ;;  %518 = vst [vmem:[#allocation4 + $0xf8] sm:$0xff] %v7111_v1 }
  0xed   : > { %519 = vst [vmem:[#allocation4 + $0x100] sm:$0xff] %v7111_v1  ;;  %520 = vst [vmem:[#allocation4 + $0x108] sm:$0xff] %v7111_v1 }
  0xee   : > { %521 = vst [vmem:[#allocation4 + $0x110] sm:$0xff] %v7111_v1  ;;  %522 = vst [vmem:[#allocation4 + $0x118] sm:$0xff] %v7111_v1 }
  0xef   : > { %523 = vst [vmem:[#allocation4 + $0x120] sm:$0xff] %v7111_v1  ;;  %524 = vst [vmem:[#allocation4 + $0x128] sm:$0xff] %v7111_v1 }
  0xf0   : > { %525 = vst [vmem:[#allocation4 + $0x130] sm:$0xff] %v7111_v1  ;;  %526 = vst [vmem:[#allocation4 + $0x138] sm:$0xff] %v7111_v1 }
  0xf1   : > { %527 = vst [vmem:[#allocation4 + $0x140] sm:$0xff] %v7111_v1  ;;  %528 = vst [vmem:[#allocation4 + $0x148] sm:$0xff] %v7111_v1 }
  0xf2   : > { %529 = vst [vmem:[#allocation4 + $0x150] sm:$0xff] %v7111_v1  ;;  %530 = vst [vmem:[#allocation4 + $0x158] sm:$0xff] %v7111_v1 }
  0xf3   : > { %531 = vst [vmem:[#allocation4 + $0x160] sm:$0xff] %v7111_v1  ;;  %532 = vst [vmem:[#allocation4 + $0x168] sm:$0xff] %v7111_v1 }
  0xf4   : > { %533 = vst [vmem:[#allocation4 + $0x170] sm:$0xff] %v7111_v1  ;;  %534 = vst [vmem:[#allocation4 + $0x178] sm:$0xff] %v7111_v1 }
  0xf5   : > { %535 = vst [vmem:[#allocation4 + $0x180] sm:$0xff] %v7111_v1  ;;  %536 = vst [vmem:[#allocation4 + $0x188] sm:$0xff] %v7111_v1 }
  0xf6   : > { %537 = vst [vmem:[#allocation4 + $0x190] sm:$0xff] %v7111_v1  ;;  %538 = vst [vmem:[#allocation4 + $0x198] sm:$0xff] %v7111_v1 }
  0xf7   : > { %539 = vst [vmem:[#allocation4 + $0x1a0] sm:$0xff] %v7111_v1  ;;  %540 = vst [vmem:[#allocation4 + $0x1a8] sm:$0xff] %v7111_v1 }
  0xf8   : > { %541 = vst [vmem:[#allocation4 + $0x1b0] sm:$0xff] %v7111_v1  ;;  %542 = vst [vmem:[#allocation4 + $0x1b8] sm:$0xff] %v7111_v1 }
  0xf9   : > { %543 = vst [vmem:[#allocation4 + $0x1c0] sm:$0xff] %v7111_v1  ;;  %544 = vst [vmem:[#allocation4 + $0x1c8] sm:$0xff] %v7111_v1 }
  0xfa   : > { %545 = vst [vmem:[#allocation4 + $0x1d0] sm:$0xff] %v7111_v1  ;;  %546 = vst [vmem:[#allocation4 + $0x1d8] sm:$0xff] %v7111_v1 }
  0xfb   : > { %547 = vst [vmem:[#allocation4 + $0x1e0] sm:$0xff] %v7111_v1  ;;  %548 = vst [vmem:[#allocation4 + $0x1e8] sm:$0xff] %v7111_v1 }
  0xfc   : > { %549 = vst [vmem:[#allocation4 + $0x1f0] sm:$0xff] %v7111_v1  ;;  %550 = vst [vmem:[#allocation4 + $0x1f8] sm:$0xff] %v7111_v1 }
  0xfd PF: > { %v7759_v2 = vld [vmem:[%s7427_s18 + $0x40] sm:$0xff]   ;;  %v6338_v4 = vld [vmem:[%s7427_s18 + $0x48] sm:$0xff]   ;;  %v6340_v6 = vld [vmem:[%s7427_s18 + $0x50] sm:$0xff]   ;;  %vm1864_vm1 = vcmask 7168   ;;  %s10848_s27 = sld [smem:[#allocation21_spill]] }
  0xfe   : > { %v6337_v3 = vld [vmem:[%s7427_s18] sm:$0xff]   ;;  %5833 = vmatprep.subr.bf16.mxu0 %v7759_v2  ;;  %v6339_v5 = vld [vmem:[%s7427_s18 + $0x8] sm:$0xff]   ;;  %v6341_v7 = vld [vmem:[%s7427_s18 + $0x10] sm:$0xff]  }
  0xff   : > { %5834 = vmatpush3.bf16.xpose.msra.mxu0 %v6337_v3  ;;  %v6342_v8 = vld [vmem:[%s7427_s18 + $0x58] sm:$0xff]   ;;  %v615_v9 = vld [vmem:[%s7419_s29] sm:$0xf]  ;;  %v616_v10 = vld [vmem:[%s7419_s29 + $0x4] sm:$0xf] }
 0x100   : > { %5835 = vmatprep.subr.bf16.mxu0 %v6338_v4  ;;  %v647_v11 = vmul.bf16 1035287989, %v615_v9  ;;  %v648_v12 = vmul.bf16 1035287989, %v616_v10  ;;  %v6343_v14 = vld [vmem:[%s7427_s18 + $0x18] sm:$0xff]   ;;  %v6344_v15 = vld [vmem:[%s7427_s18 + $0x60] sm:$0xff]  }
 0x101   : > { %v6345_v16 = vld [vmem:[%s7427_s18 + $0x20] sm:$0xff]   ;;  %v6346_v17 = vld [vmem:[%s7427_s18 + $0x68] sm:$0xff]   ;;  %v6348_v19 = vld [vmem:[%s7427_s18 + $0x70] sm:$0xff]  }
 0x102   : > { %v5407_v13 = vcombine.low %v647_v11, %v648_v12  ;;  %v6347_v18 = vld [vmem:[%s7427_s18 + $0x28] sm:$0xff]   ;;  %v6349_v20 = vld [vmem:[%s7427_s18 + $0x30] sm:$0xff]   ;;  %v6350_v21 = vld [vmem:[%s7427_s18 + $0x78] sm:$0xff]  }
 0x103   : > { %v6351_v22 = vld [vmem:[%s7427_s18 + $0x38] sm:$0xff]   ;;  %v617_v23 = vld [vmem:[%s7419_s29 + $0x8] sm:$0xf]  ;;  %v618_v24 = vld [vmem:[%s7419_s29 + $0xc] sm:$0xf]  ;;  %p5503_p1 = scmp.ne.s32.totalorder %s10848_s27, 1 }
 0x104   : > { %5849 = vmatprep.mubr.bf16.mxu0 %v5407_v13  ;;  %v649_v25 = vmul.bf16 1035287989, %v617_v23  ;;  %v650_v26 = vmul.bf16 1035287989, %v618_v24  ;;  %v619_v28 = vld [vmem:[%s7419_s29 + $0x10] sm:$0xf] }
 0x105   : > { %v620_v29 = vld [vmem:[%s7419_s29 + $0x14] sm:$0xf]  ;;  %v651_v30 = vmul.bf16 1035287989, %v619_v28  ;;  %v621_v33 = vld [vmem:[%s7419_s29 + $0x18] sm:$0xf] }
 0x106   : > { %v5408_v27 = vcombine.low %v649_v25, %v650_v26  ;;  %v652_v31 = vmul.bf16 1035287989, %v620_v29  ;;  %v622_v34 = vld [vmem:[%s7419_s29 + $0x1c] sm:$0xf]  ;;  %v653_v35 = vmul.bf16 1035287989, %v621_v33 }
 0x107   : > { %5836 = vmatpush3.bf16.xpose.msra.mxu0 %v6339_v5  ;;  %v654_v36 = vmul.bf16 1035287989, %v622_v34  ;;  %v623_v38 = vld [vmem:[%s7419_s29 + $0x20] sm:$0xf]  ;;  %v624_v39 = vld [vmem:[%s7419_s29 + $0x24] sm:$0xf] }
 0x108   : > { %5837 = vmatprep.subr.bf16.mxu0 %v6340_v6  ;;  %v5409_v32 = vcombine.low %v651_v30, %v652_v31  ;;  %v655_v40 = vmul.bf16 1035287989, %v623_v38  ;;  %v656_v41 = vmul.bf16 1035287989, %v624_v39  ;;  %v625_v43 = vld [vmem:[%s7419_s29 + $0x28] sm:$0xf] }
 0x109   : > { %v5410_v37 = vcombine.low %v653_v35, %v654_v36  ;;  %v626_v44 = vld [vmem:[%s7419_s29 + $0x2c] sm:$0xf]  ;;  %v657_v45 = vmul.bf16 1035287989, %v625_v43  ;;  %v627_v48 = vld [vmem:[%s7419_s29 + $0x30] sm:$0xf] }
 0x10a   : > { %v5411_v42 = vcombine.low %v655_v40, %v656_v41  ;;  %v658_v46 = vmul.bf16 1035287989, %v626_v44  ;;  %v628_v49 = vld [vmem:[%s7419_s29 + $0x34] sm:$0xf]  ;;  %v659_v50 = vmul.bf16 1035287989, %v627_v48 }
 0x10b   : > { %v660_v51 = vmul.bf16 1035287989, %v628_v49  ;;  %v629_v53 = vld [vmem:[%s7419_s29 + $0x38] sm:$0xf]  ;;  %v630_v54 = vld [vmem:[%s7419_s29 + $0x3c] sm:$0xf] }
 0x10c   : > { %v5412_v47 = vcombine.low %v657_v45, %v658_v46  ;;  %v661_v55 = vmul.bf16 1035287989, %v629_v53  ;;  %v662_v56 = vmul.bf16 1035287989, %v630_v54  ;;  %v631_v58 = vld [vmem:[%s7419_s29 + $0x40] sm:$0xf] }
 0x10d   : > { %v5413_v52 = vcombine.low %v659_v50, %v660_v51  ;;  %v632_v59 = vld [vmem:[%s7419_s29 + $0x44] sm:$0xf]  ;;  %v663_v60 = vmul.bf16 1035287989, %v631_v58  ;;  %v633_v63 = vld [vmem:[%s7419_s29 + $0x48] sm:$0xf] }
 0x10e   : > { %v5414_v57 = vcombine.low %v661_v55, %v662_v56  ;;  %v664_v61 = vmul.bf16 1035287989, %v632_v59  ;;  %v634_v0 = vld [vmem:[%s7419_s29 + $0x4c] sm:$0xf]  ;;  %v665_v1 = vmul.bf16 1035287989, %v633_v63 }
 0x10f   : > { %5838 = vmatpush3.bf16.xpose.msra.mxu0 %v6341_v7  ;;  %v666_v3 = vmul.bf16 1035287989, %v634_v0  ;;  %v635_v5 = vld [vmem:[%s7419_s29 + $0x50] sm:$0xf]  ;;  %v636_v6 = vld [vmem:[%s7419_s29 + $0x54] sm:$0xf] }
 0x110   : > { %5839 = vmatprep.subr.bf16.mxu0 %v6342_v8  ;;  %v5415_v62 = vcombine.low %v663_v60, %v664_v61  ;;  %v667_v7 = vmul.bf16 1035287989, %v635_v5  ;;  %v668_v8 = vmul.bf16 1035287989, %v636_v6  ;;  %v637_v10 = vld [vmem:[%s7419_s29 + $0x58] sm:$0xf] }
 0x111   : > { %v5416_v4 = vcombine.low %v665_v1, %v666_v3  ;;  %v638_v11 = vld [vmem:[%s7419_s29 + $0x5c] sm:$0xf]  ;;  %v669_v12 = vmul.bf16 1035287989, %v637_v10  ;;  %v643_v25 = vld [vmem:[%s7419_s29 + $0x70] sm:$0xf] }
 0x112   : > { %v5417_v9 = vcombine.low %v667_v7, %v668_v8  ;;  %v644_v26 = vld [vmem:[%s7419_s29 + $0x74] sm:$0xf]  ;;  %v645_v30 = vld [vmem:[%s7419_s29 + $0x78] sm:$0xf]  ;;  %v646_v31 = vld [vmem:[%s7419_s29 + $0x7c] sm:$0xf] }
 0x113   : > { %v676_v28 = vmul.bf16 1035287989, %v644_v26  ;;  %v678_v33 = vmul.bf16 1035287989, %v646_v31 }
 0x117   : > { %5840 = vmatpush3.bf16.xpose.msra.mxu0 %v6343_v14 }
 0x118   : > { %5841 = vmatprep.subr.bf16.mxu0 %v6344_v15  ;;  %v639_v15 = vld [vmem:[%s7419_s29 + $0x60] sm:$0xf] }
 0x11f   : > { %5842 = vmatpush3.bf16.xpose.msra.mxu0 %v6345_v16  ;;  %v640_v16 = vld [vmem:[%s7419_s29 + $0x64] sm:$0xf] }
 0x120   : > { %5843 = vmatprep.subr.bf16.mxu0 %v6346_v17  ;;  %v671_v17 = vmul.bf16 1035287989, %v639_v15 }
 0x127   : > { %5844 = vmatpush3.bf16.xpose.msra.mxu0 %v6347_v18  ;;  %v672_v18 = vmul.bf16 1035287989, %v640_v16 }
 0x128   : > { %5845 = vmatprep.subr.bf16.mxu0 %v6348_v19 }
 0x129   : > { %v5419_v19 = vcombine.low %v671_v17, %v672_v18 }
 0x12f   : > { %5846 = vmatpush3.bf16.xpose.msra.mxu0 %v6349_v20  ;;  %v641_v20 = vld [vmem:[%s7419_s29 + $0x68] sm:$0xf] }
 0x130   : > { %5847 = vmatprep.subr.bf16.mxu0 %v6350_v21  ;;  %v642_v21 = vld [vmem:[%s7419_s29 + $0x6c] sm:$0xf] }
 0x131   : > { %v674_v23 = vmul.bf16 1035287989, %v642_v21 }
 0x137   : > { %5848 = vmatpush3.bf16.xpose.msra.mxu0 %v6351_v22  ;;  %v673_v22 = vmul.bf16 1035287989, %v641_v20 }
 0x139   : > { %v5420_v24 = vcombine.low %v673_v22, %v674_v23 }
 0x13e   : > { %5850 = vmatmul.mubr.bf16.vlgmr.msra.gmra.mrb[0].mxu0 %v5407_v13  ;;  %v670_v13 = vmul.bf16 1035287989, %v638_v11 }
 0x13f   : > { %5851 = vmatprep.mubr.bf16.mxu0 %v5408_v27 }
 0x140   : > { %v5418_v14 = vcombine.low %v669_v12, %v670_v13 }
 0x146   : > { %5852 = vmatmul.mubr.bf16.gmra.mrb[4].mxu0 %v5408_v27  ;;  %v675_v27 = vmul.bf16 1035287989, %v643_v25 }
 0x147   : > { %5853 = vmatprep.mubr.bf16.mxu0 %v5409_v32 }
 0x148   : > { %v5421_v29 = vcombine.low %v675_v27, %v676_v28 }
 0x14e   : > { %5854 = vmatmul.mubr.bf16.gmra.mrb[8].mxu0 %v5409_v32  ;;  %v677_v32 = vmul.bf16 1035287989, %v645_v30 }
 0x14f   : > { %5855 = vmatprep.mubr.bf16.mxu0 %v5410_v37 }
 0x150   : > { %v5422_v34 = vcombine.low %v677_v32, %v678_v33 }
 0x156   : > { %5856 = vmatmul.mubr.bf16.gmra.mrb[12].mxu0 %v5410_v37 }
 0x157   : > { %5857 = vmatprep.mubr.bf16.mxu0 %v5411_v42 }
 0x15e   : > { %5858 = vmatmul.mubr.bf16.gmra.mrb[16].mxu0 %v5411_v42 }
 0x15f   : > { %5859 = vmatprep.mubr.bf16.mxu0 %v5412_v47 }
 0x166   : > { %5860 = vmatmul.mubr.bf16.gmra.mrb[20].mxu0 %v5412_v47 }
 0x167   : > { %5861 = vmatprep.mubr.bf16.mxu0 %v5413_v52 }
 0x16e   : > { %5862 = vmatmul.mubr.bf16.gmra.mrb[24].mxu0 %v5413_v52  ;;  %v7112_v52 = vmov 0  }
 0x16f   : > { %5863 = vmatprep.mubr.bf16.mxu0 %v5414_v57  ;;  %6334 = vset.pattern.permute.xlu0 %v7112_v52 }
 0x170   : > { %6335 = vset.pattern.permute.xlu1 %v7112_v52 }
 0x176   : > { %5864 = vmatmul.mubr.bf16.gmra.mrb[28].mxu0 %v5414_v57 }
 0x177   : > { %5865 = vmatprep.mubr.bf16.mxu0 %v5415_v62 }
 0x17e   : > { %5866 = vmatmul.mubr.bf16.gmra.mrb[32].mxu0 %v5415_v62 }
 0x17f   : > { %5867 = vmatprep.mubr.bf16.mxu0 %v5416_v4 }
 0x186   : > { %5868 = vmatmul.mubr.bf16.gmra.mrb[36].mxu0 %v5416_v4 }
 0x187   : > { %5869 = vmatprep.mubr.bf16.mxu0 %v5417_v9 }
 0x18e   : > { %5870 = vmatmul.mubr.bf16.gmra.mrb[40].mxu0 %v5417_v9 }
 0x18f   : > { %5871 = vmatprep.mubr.bf16.mxu0 %v5418_v14 }
 0x196   : > { %5872 = vmatmul.mubr.bf16.gmra.mrb[44].mxu0 %v5418_v14 }
 0x197   : > { %5873 = vmatprep.mubr.bf16.mxu0 %v5419_v19 }
 0x19e   : > { %5874 = vmatmul.mubr.bf16.gmra.mrb[48].mxu0 %v5419_v19 }
 0x19f   : > { %5875 = vmatprep.mubr.bf16.mxu0 %v5420_v24 }
 0x1a6   : > { %5876 = vmatmul.mubr.bf16.gmra.mrb[52].mxu0 %v5420_v24 }
 0x1a7   : > { %5877 = vmatprep.mubr.bf16.mxu0 %v5421_v29 }
 0x1ae   : > { %5878 = vmatmul.mubr.bf16.gmra.mrb[56].mxu0 %v5421_v29 }
 0x1af   : > { %5879 = vmatprep.mubr.bf16.mxu0 %v5422_v34 }
 0x1b6   : > { %5880 = vmatmul.mubr.bf16.gmra.mrb[60].mxu0 %v5422_v34 }
 0x211   : > { %v7809_v35 = vpop.f32.mrb[0].mxu0 }
 0x212   : > { %v7811_v36 = vpop.f32.mrb[1].mxu0 }
 0x213   : > { %v7813_v37 = vpop.f32.mrb[2].mxu0  ;;  %v1096_v38 = vmax.f32 %v7809_v35, %v7811_v36 }
 0x214   : > { %v7817_v39 = vpop.f32.mrb[3].mxu0 }
 0x215   : > { %1097 = vmax.xlane.f32.xlu0 %v1096_v38  ;;  %v1099_v40 = vmax.f32 %v7813_v37, %v7817_v39 }
 0x219   : > { %1100 = vmax.xlane.f32.xlu0 %v1099_v40  ;;  %v7821_v41 = vpop.f32.mrb[4].mxu0 }
 0x21a   : > { %v7823_v42 = vpop.f32.mrb[5].mxu0 }
 0x21b   : > { %v7825_v43 = vpop.f32.mrb[6].mxu0  ;;  %v1102_v44 = vmax.f32 %v7821_v41, %v7823_v42 }
 0x21c   : > { %v7829_v45 = vpop.f32.mrb[7].mxu0 }
 0x21d   : > { %1103 = vmax.xlane.f32.xlu1 %v1102_v44  ;;  %v1105_v46 = vmax.f32 %v7825_v43, %v7829_v45 }
 0x221   : > { %1106 = vmax.xlane.f32.xlu1 %v1105_v46  ;;  %v7833_v47 = vpop.f32.mrb[8].mxu0 }
 0x222   : > { %v7835_v48 = vpop.f32.mrb[9].mxu0 }
 0x223   : > { %v7837_v49 = vpop.f32.mrb[10].mxu0  ;;  %v1108_v50 = vmax.f32 %v7833_v47, %v7835_v48 }
 0x224   : > { %v7841_v51 = vpop.f32.mrb[11].mxu0 }
 0x225   : > { %1109 = vmax.xlane.f32.xlu0 %v1108_v50  ;;  %v1111_v53 = vmax.f32 %v7837_v49, %v7841_v51 }
 0x227   : > { %1112 = vmax.xlane.f32.xlu1 %v1111_v53 }
 0x229   : > { %v7845_v54 = vpop.f32.mrb[12].mxu0 }
 0x22a   : > { %v7847_v55 = vpop.f32.mrb[13].mxu0 }
 0x22b   : > { %v7849_v56 = vpop.f32.mrb[14].mxu0  ;;  %v1114_v57 = vmax.f32 %v7845_v54, %v7847_v55 }
 0x22c   : > { %v7853_v58 = vpop.f32.mrb[15].mxu0 }
 0x22d   : > { %1115 = vmax.xlane.f32.xlu0 %v1114_v57  ;;  %v1117_v59 = vmax.f32 %v7849_v56, %v7853_v58 }
 0x22f   : > { %1118 = vmax.xlane.f32.xlu1 %v1117_v59 }
 0x231   : > { %v7857_v60 = vpop.f32.mrb[16].mxu0 }
 0x232   : > { %v7859_v61 = vpop.f32.mrb[17].mxu0 }
 0x233   : > { %v7861_v62 = vpop.f32.mrb[18].mxu0  ;;  %v1120_v63 = vmax.f32 %v7857_v60, %v7859_v61 }
 0x234   : > { %v7865_v0 = vpop.f32.mrb[19].mxu0 }
 0x235   : > { %1121 = vmax.xlane.f32.xlu0 %v1120_v63  ;;  %v1123_v1 = vmax.f32 %v7861_v62, %v7865_v0 }
 0x237   : > { %1124 = vmax.xlane.f32.xlu1 %v1123_v1 }
 0x239   : > { %v7869_v3 = vpop.f32.mrb[20].mxu0 }
 0x23a   : > { %v7871_v4 = vpop.f32.mrb[21].mxu0 }
 0x23b   : > { %v7873_v5 = vpop.f32.mrb[22].mxu0  ;;  %v1126_v6 = vmax.f32 %v7869_v3, %v7871_v4 }
 0x23c   : > { %v7877_v7 = vpop.f32.mrb[23].mxu0 }
 0x23d   : > { %1127 = vmax.xlane.f32.xlu0 %v1126_v6  ;;  %v1129_v8 = vmax.f32 %v7873_v5, %v7877_v7 }
 0x23f   : > { %1130 = vmax.xlane.f32.xlu1 %v1129_v8 }
 0x241   : > { %v7881_v9 = vpop.f32.mrb[24].mxu0 }
 0x242   : > { %v7883_v10 = vpop.f32.mrb[25].mxu0 }
 0x243   : > { %v7885_v11 = vpop.f32.mrb[26].mxu0  ;;  %v1132_v12 = vmax.f32 %v7881_v9, %v7883_v10 }
 0x244   : > { %v7889_v13 = vpop.f32.mrb[27].mxu0 }
 0x245   : > { %1133 = vmax.xlane.f32.xlu0 %v1132_v12  ;;  %v1135_v14 = vmax.f32 %v7885_v11, %v7889_v13 }
 0x247   : > { %1136 = vmax.xlane.f32.xlu1 %v1135_v14 }
 0x249   : > { %v7893_v15 = vpop.f32.mrb[28].mxu0 }
 0x24a   : > { %v7895_v16 = vpop.f32.mrb[29].mxu0 }
 0x24b   : > { %v7897_v17 = vpop.f32.mrb[30].mxu0  ;;  %v1138_v18 = vmax.f32 %v7893_v15, %v7895_v16 }
 0x24c   : > { %v7901_v19 = vpop.f32.mrb[31].mxu0 }
 0x24d   : > { %1139 = vmax.xlane.f32.xlu0 %v1138_v18  ;;  %v1141_v20 = vmax.f32 %v7897_v17, %v7901_v19 }
 0x24f   : > { %1142 = vmax.xlane.f32.xlu1 %v1141_v20 }
 0x251   : > { %v7905_v21 = vpop.f32.mrb[32].mxu0 }
 0x252   : > { %v7907_v22 = vpop.f32.mrb[33].mxu0 }
 0x253   : > { %v7909_v23 = vpop.f32.mrb[34].mxu0  ;;  %v1144_v24 = vmax.f32 %v7905_v21, %v7907_v22 }
 0x254   : > { %v7913_v25 = vpop.f32.mrb[35].mxu0 }
 0x255   : > { %1145 = vmax.xlane.f32.xlu0 %v1144_v24  ;;  %v1147_v26 = vmax.f32 %v7909_v23, %v7913_v25 }
 0x257   : > { %1148 = vmax.xlane.f32.xlu1 %v1147_v26 }
 0x259   : > { %v7917_v27 = vpop.f32.mrb[36].mxu0 }
 0x25a   : > { %v7919_v28 = vpop.f32.mrb[37].mxu0 }
 0x25b   : > { %v7921_v29 = vpop.f32.mrb[38].mxu0  ;;  %v1150_v30 = vmax.f32 %v7917_v27, %v7919_v28 }
 0x25c   : > { %10310 = vst [vmem:[#allocation34_spill] sm:$0xff] %v7921_v29  ;;  %v7925_v31 = vpop.f32.mrb[39].mxu0 }
 0x25d   : > { %10311 = vst [vmem:[#allocation35_spill] sm:$0xff] %v7925_v31  ;;  %1151 = vmax.xlane.f32.xlu0 %v1150_v30  ;;  %v1153_v32 = vmax.f32 %v7921_v29, %v7925_v31 }
 0x25f   : > { %1154 = vmax.xlane.f32.xlu1 %v1153_v32 }
 0x261   : > { %v7929_v33 = vpop.f32.mrb[40].mxu0 }
 0x262   : > { %10312 = vst [vmem:[#allocation36_spill] sm:$0xff] %v7929_v33  ;;  %v7931_v34 = vpop.f32.mrb[41].mxu0 }
 0x263   : > { %10313 = vst [vmem:[#allocation37_spill] sm:$0xff] %v7931_v34  ;;  %v7933_v38 = vpop.f32.mrb[42].mxu0  ;;  %v1156_v40 = vmax.f32 %v7929_v33, %v7931_v34  ;;  %v6358_v34 = vld [vmem:[%s7433_s30 + $0x58] sm:$0xff]   ;;  %v8028_v33 = vld [vmem:[#allocation2 + $0x10] sm:$0xff] }
 0x264   : > { %v7937_v44 = vpop.f32.mrb[43].mxu0  ;;  %10334 = vst [vmem:[#allocation58_spill] sm:$0xff] %v8028_v33 }
 0x265   : > { %1157 = vmax.xlane.f32.xlu1 %v1156_v40  ;;  %v1159_v46 = vmax.f32 %v7933_v38, %v7937_v44 }
 0x267   : > { %1160 = vmax.xlane.f32.xlu0 %v1159_v46 }
 0x269   : > { %v7941_v50 = vpop.f32.mrb[44].mxu0 }
 0x26a   : > { %10314 = vst [vmem:[#allocation38_spill] sm:$0xff] %v7941_v50  ;;  %v7943_v52 = vpop.f32.mrb[45].mxu0 }
 0x26b   : > { %10315 = vst [vmem:[#allocation39_spill] sm:$0xff] %v7943_v52  ;;  %v7945_v53 = vpop.f32.mrb[46].mxu0  ;;  %v1162_v57 = vmax.f32 %v7941_v50, %v7943_v52  ;;  %v6355_v52 = vld [vmem:[%s7433_s30 + $0x8] sm:$0xff]  }
 0x26c   : > { %v7949_v59 = vpop.f32.mrb[47].mxu0 }
 0x26d   : > { %1163 = vmax.xlane.f32.xlu1 %v1162_v57  ;;  %v1165_v63 = vmax.f32 %v7945_v53, %v7949_v59 }
 0x26f   : > { %1166 = vmax.xlane.f32.xlu0 %v1165_v63 }
 0x271   : > { %v7953_v1 = vpop.f32.mrb[48].mxu0 }
 0x272   : > { %10316 = vst [vmem:[#allocation40_spill] sm:$0xff] %v7953_v1  ;;  %v7955_v6 = vpop.f32.mrb[49].mxu0 }
 0x273   : > { %10317 = vst [vmem:[#allocation41_spill] sm:$0xff] %v7955_v6  ;;  %v7957_v8 = vpop.f32.mrb[50].mxu0  ;;  %v1168_v12 = vmax.f32 %v7953_v1, %v7955_v6  ;;  %v8002_v1 = vld [vmem:[%s7433_s30 + $0x40] sm:$0xff]  }
 0x274   : > { %v7961_v14 = vpop.f32.mrb[51].mxu0  ;;  %5881 = vmatprep.subr.bf16.mxu1 %v8002_v1  ;;  %6041 = vmatprep.subr.bf16.mxu0 %v8002_v1  ;;  %v8009_v6 = vld [vmem:[#allocation2] sm:$0xff] }
 0x275   : > { %10318 = vst [vmem:[#allocation42_spill] sm:$0xff] %v7961_v14  ;;  %1169 = vmax.xlane.f32.xlu0 %v1168_v12  ;;  %v1171_v18 = vmax.f32 %v7957_v8, %v7961_v14  ;;  %10330 = vst [vmem:[#allocation54_spill] sm:$0xff] %v8009_v6 }
 0x277   : > { %1172 = vmax.xlane.f32.xlu1 %v1171_v18 }
 0x279   : > { %v7965_v20 = vpop.f32.mrb[52].mxu0 }
 0x27a   : > { %10319 = vst [vmem:[#allocation43_spill] sm:$0xff] %v7965_v20  ;;  %v7967_v24 = vpop.f32.mrb[53].mxu0 }
 0x27b   : > { %10320 = vst [vmem:[#allocation44_spill] sm:$0xff] %v7967_v24  ;;  %v7969_v26 = vpop.f32.mrb[54].mxu0  ;;  %v1174_v30 = vmax.f32 %v7965_v20, %v7967_v24 }
 0x27c   : > { %10321 = vst [vmem:[#allocation45_spill] sm:$0xff] %v7969_v26  ;;  %v7973_v32 = vpop.f32.mrb[55].mxu0 }
 0x27d   : > { %10322 = vst [vmem:[#allocation46_spill] sm:$0xff] %v7973_v32  ;;  %1175 = vmax.xlane.f32.xlu1 %v1174_v30  ;;  %v1177_v40 = vmax.f32 %v7969_v26, %v7973_v32  ;;  %v8040_v32 = vld [vmem:[#allocation2 + $0x18] sm:$0xff] }
 0x27e   : > { %10336 = vst [vmem:[#allocation60_spill] sm:$0xff] %v8040_v32 }
 0x27f   : > { %1178 = vmax.xlane.f32.xlu0 %v1177_v40 }
 0x281   : > { %v7977_v46 = vpop.f32.mrb[56].mxu0 }
 0x282   : > { %10323 = vst [vmem:[#allocation47_spill] sm:$0xff] %v7977_v46  ;;  %v7979_v57 = vpop.f32.mrb[57].mxu0 }
 0x283   : > { %10324 = vst [vmem:[#allocation48_spill] sm:$0xff] %v7979_v57  ;;  %v7981_v63 = vpop.f32.mrb[58].mxu0  ;;  %v1180_v12 = vmax.f32 %v7977_v46, %v7979_v57  ;;  %v6356_v46 = vld [vmem:[%s7433_s30 + $0x50] sm:$0xff]  }
 0x284   : > { %10325 = vst [vmem:[#allocation49_spill] sm:$0xff] %v7981_v63  ;;  %v7985_v18 = vpop.f32.mrb[59].mxu0 }
 0x285   : > { %10326 = vst [vmem:[#allocation50_spill] sm:$0xff] %v7985_v18  ;;  %v1183_v30 = vmax.f32 %v7981_v63, %v7985_v18  ;;  %1181 = vmax.xlane.f32.xlu0 %v1180_v12  ;;  %v6353_v12 = vld [vmem:[%s7433_s30] sm:$0xff]   ;;  %v6357_v18 = vld [vmem:[%s7433_s30 + $0x10] sm:$0xff]  }
 0x286   : > { %5882 = vmatpush3.bf16.msra.mxu1 %v6353_v12  ;;  %6042 = vmatpush3.bf16.msra.mxu0 %v6353_v12  ;;  %v8016_v12 = vld [vmem:[#allocation2 + $0x8] sm:$0xff] }
 0x287   : > { %1184 = vmax.xlane.f32.xlu1 %v1183_v30  ;;  %v6354_v30 = vld [vmem:[%s7433_s30 + $0x48] sm:$0xff]   ;;  %10332 = vst [vmem:[#allocation56_spill] sm:$0xff] %v8016_v12 }
 0x288   : > { %5883 = vmatprep.subr.bf16.mxu1 %v6354_v30  ;;  %6043 = vmatprep.subr.bf16.mxu0 %v6354_v30 }
 0x289   : > { %v7989_v40 = vpop.f32.mrb[60].mxu0 }
 0x28a   : > { %v7991_v24 = vpop.f32.mrb[61].mxu0  ;;  %5884 = vmatpush3.bf16.msra.mxu1 %v6355_v52  ;;  %6044 = vmatpush3.bf16.msra.mxu0 %v6355_v52 }
 0x28b   : > { %10327 = vst [vmem:[#allocation51_spill] sm:$0xff] %v7991_v24  ;;  %v7993_v20 = vpop.f32.mrb[62].mxu0  ;;  %5885 = vmatprep.subr.bf16.mxu1 %v6356_v46  ;;  %6045 = vmatprep.subr.bf16.mxu0 %v6356_v46  ;;  %v6359_v46 = vld [vmem:[%s7433_s30 + $0x18] sm:$0xff]  }
 0x28c   : > { %10328 = vst [vmem:[#allocation52_spill] sm:$0xff] %v7993_v20  ;;  %v7997_v57 = vpop.f32.mrb[63].mxu0 }
 0x28d   : > { %10329 = vst [vmem:[#allocation53_spill] sm:$0xff] %v7997_v57 }
 0x28e   : > { %5886 = vmatpush3.bf16.msra.mxu1 %v6357_v18  ;;  %6046 = vmatpush3.bf16.msra.mxu0 %v6357_v18 }
 0x28f   : > { %5887 = vmatprep.subr.bf16.mxu1 %v6358_v34  ;;  %6047 = vmatprep.subr.bf16.mxu0 %v6358_v34 }
 0x292   : > { %5888 = vmatpush3.bf16.msra.mxu1 %v6359_v46  ;;  %6048 = vmatpush3.bf16.msra.mxu0 %v6359_v46  ;;  %v6362_v46 = vld [vmem:[%s7433_s30 + $0x68] sm:$0xff]  }
 0x2a2   : > { %v1098_v50 = vpop.xlane.xlu0 %1097 }
 0x2a3   : > { %v8014_v63 = vmax.f32 %v8009_v6, %v1098_v50  ;;  %v6361_v6 = vld [vmem:[%s7433_s30 + $0x20] sm:$0xff]  }
 0x2a5   : > { %10331 = vst [vmem:[#allocation55_spill] sm:$0xff] %v8014_v63  ;;  %2474 = vst.msk [vmem:[#allocation2] sm:$0xff] %vm1864_vm1, %v8014_v63  ;;  %1322 = vperm.xlu0 %6334, %v8014_v63   ;;  %v6360_v63 = vld [vmem:[%s7433_s30 + $0x60] sm:$0xff]  }
 0x2a6   : > { %v1101_v52 = vpop.xlane.xlu0 %1100  ;;  %5889 = vmatprep.subr.bf16.mxu1 %v6360_v63  ;;  %6049 = vmatprep.subr.bf16.mxu0 %v6360_v63  ;;  %v8083_v63 = vld [vmem:[#allocation2 + $0x38] sm:$0xff] }
 0x2a7   : > { %v8025_v50 = vmax.f32 %v8016_v12, %v1101_v52  ;;  %5890 = vmatpush3.bf16.msra.mxu1 %v6361_v6  ;;  %6050 = vmatpush3.bf16.msra.mxu0 %v6361_v6  ;;  %v8052_v12 = vld [vmem:[#allocation2 + $0x20] sm:$0xff]  ;;  %v8059_v6 = vld [vmem:[#allocation2 + $0x28] sm:$0xff]  ;;  %10343 = vst [vmem:[#allocation67_spill] sm:$0xff] %v8083_v63 }
 0x2a8   : > { %10338 = vst [vmem:[#allocation62_spill] sm:$0xff] %v8052_v12  ;;  %5891 = vmatprep.subr.bf16.mxu1 %v6362_v46  ;;  %6051 = vmatprep.subr.bf16.mxu0 %v6362_v46  ;;  %10339 = vst [vmem:[#allocation63_spill] sm:$0xff] %v8059_v6  ;;  %v6365_v46 = vld [vmem:[%s7433_s30 + $0x30] sm:$0xff]  }
 0x2a9   : > { %10333 = vst [vmem:[#allocation57_spill] sm:$0xff] %v8025_v50  ;;  %2475 = vst.msk [vmem:[#allocation2 + $0x8] sm:$0xff] %vm1864_vm1, %v8025_v50  ;;  %1327 = vperm.xlu1 %6335, %v8025_v50   ;;  %v6363_v50 = vld [vmem:[%s7433_s30 + $0x28] sm:$0xff]  }
 0x2aa   : > { %v1104_v30 = vpop.xlane.xlu1 %1103 }
 0x2ab   : > { %v8037_v52 = vmax.f32 %v8028_v33, %v1104_v30  ;;  %5892 = vmatpush3.bf16.msra.mxu1 %v6363_v50  ;;  %6052 = vmatpush3.bf16.msra.mxu0 %v6363_v50  ;;  %v6366_v50 = vld [vmem:[%s7433_s30 + $0x78] sm:$0xff]  }
 0x2ad   : > { %10335 = vst [vmem:[#allocation59_spill] sm:$0xff] %v8037_v52  ;;  %2476 = vst.msk [vmem:[#allocation2 + $0x10] sm:$0xff] %vm1864_vm1, %v8037_v52  ;;  %1332 = vperm.xlu1 %6335, %v8037_v52  }
 0x2ae   : > { %v1107_v18 = vpop.xlane.xlu1 %1106 }
 0x2af   : > { %v8049_v30 = vmax.f32 %v8040_v32, %v1107_v18  ;;  %v6364_v18 = vld [vmem:[%s7433_s30 + $0x70] sm:$0xff]  }
 0x2b0   : > { %5893 = vmatprep.subr.bf16.mxu1 %v6364_v18  ;;  %6053 = vmatprep.subr.bf16.mxu0 %v6364_v18  ;;  %v6367_v18 = vld [vmem:[%s7433_s30 + $0x38] sm:$0xff]   ;;  %v8080_v32 = vld [vmem:[#allocation2 + $0x30] sm:$0xff] }
 0x2b1   : > { %10337 = vst [vmem:[#allocation61_spill] sm:$0xff] %v8049_v30  ;;  %2477 = vst.msk [vmem:[#allocation2 + $0x18] sm:$0xff] %vm1864_vm1, %v8049_v30  ;;  %1337 = vperm.xlu1 %6335, %v8049_v30   ;;  %5894 = vmatpush3.bf16.msra.mxu1 %v6365_v46 }
 0x2b2   : > { %v1110_v34 = vpop.xlane.xlu0 %1109  ;;  %6054 = vmatpush3.bf16.msra.mxu0 %v6365_v46  ;;  %10342 = vst [vmem:[#allocation66_spill] sm:$0xff] %v8080_v32  ;;  %5895 = vmatprep.subr.bf16.mxu1 %v6366_v50 }
 0x2b3   : > { %v8063_v52 = vmax.f32 %v8052_v12, %v1110_v34  ;;  %6055 = vmatprep.subr.bf16.mxu0 %v6366_v50  ;;  %v8180_v12 = vld [vmem:[#allocation2 + $0x88] sm:$0xff] }
 0x2b4   : > { %v1113_v33 = vpop.xlane.xlu1 %1112  ;;  %10361 = vst [vmem:[#allocation85_spill] sm:$0xff] %v8180_v12 }
 0x2b5   : > { %10340 = vst [vmem:[#allocation64_spill] sm:$0xff] %v8063_v52  ;;  %2478 = vst.msk [vmem:[#allocation2 + $0x20] sm:$0xff] %vm1864_vm1, %v8063_v52  ;;  %v8071_v30 = vmax.f32 %v8059_v6, %v1113_v33  ;;  %1342 = vperm.xlu0 %6334, %v8063_v52   ;;  %5896 = vmatpush3.bf16.msra.mxu1 %v6367_v18 }
 0x2b6   : > { %5993 = vmatprep.subr.bf16.mxu1 %v7759_v2  ;;  %6056 = vmatpush3.bf16.msra.mxu0 %v6367_v18  ;;  %v8101_v2 = vld [vmem:[#allocation2 + $0x40] sm:$0xff] }
 0x2b7   : > { %10341 = vst [vmem:[#allocation65_spill] sm:$0xff] %v8071_v30  ;;  %2479 = vst.msk [vmem:[#allocation2 + $0x28] sm:$0xff] %vm1864_vm1, %v8071_v30 }
 0x2b8   : > { %10346 = vst [vmem:[#allocation70_spill] sm:$0xff] %v8101_v2 }
 0x2b9   : > { %1347 = vperm.xlu0 %6334, %v8071_v30  }
 0x2ba   : > { %v1116_v33 = vpop.xlane.xlu0 %1115 }
 0x2bb   : > { %v8087_v46 = vmax.f32 %v8080_v32, %v1116_v33  ;;  %v8104_v33 = vld [vmem:[#allocation2 + $0x48] sm:$0xff]  ;;  %v8162_v32 = vld [vmem:[#allocation2 + $0x78] sm:$0xff] }
 0x2bc   : > { %v1119_v34 = vpop.xlane.xlu1 %1118  ;;  %10347 = vst [vmem:[#allocation71_spill] sm:$0xff] %v8104_v33  ;;  %10359 = vst [vmem:[#allocation83_spill] sm:$0xff] %v8162_v32 }
 0x2bd   : > { %10344 = vst [vmem:[#allocation68_spill] sm:$0xff] %v8087_v46  ;;  %2480 = vst.msk [vmem:[#allocation2 + $0x30] sm:$0xff] %vm1864_vm1, %v8087_v46  ;;  %v8094_v50 = vmax.f32 %v8083_v63, %v1119_v34  ;;  %1352 = vperm.xlu1 %6335, %v8087_v46   ;;  %v8124_v46 = vld [vmem:[#allocation2 + $0x58] sm:$0xff] }
 0x2be   : > { %10351 = vst [vmem:[#allocation75_spill] sm:$0xff] %v8124_v46 }
 0x2bf   : > { %10345 = vst [vmem:[#allocation69_spill] sm:$0xff] %v8094_v50  ;;  %2481 = vst.msk [vmem:[#allocation2 + $0x38] sm:$0xff] %vm1864_vm1, %v8094_v50 }
 0x2c1   : > { %1357 = vperm.xlu1 %6335, %v8094_v50  }
 0x2c2   : > { %v1122_v18 = vpop.xlane.xlu0 %1121 }
 0x2c3   : > { %v8107_v6 = vmax.f32 %v8101_v2, %v1122_v18  ;;  %v8121_v18 = vld [vmem:[#allocation2 + $0x50] sm:$0xff] }
 0x2c4   : > { %v1125_v34 = vpop.xlane.xlu1 %1124  ;;  %10350 = vst [vmem:[#allocation74_spill] sm:$0xff] %v8121_v18 }
 0x2c5   : > { %10348 = vst [vmem:[#allocation72_spill] sm:$0xff] %v8107_v6  ;;  %2482 = vst.msk [vmem:[#allocation2 + $0x40] sm:$0xff] %vm1864_vm1, %v8107_v6  ;;  %v8114_v30 = vmax.f32 %v8104_v33, %v1125_v34  ;;  %1362 = vperm.xlu0 %6334, %v8107_v6   ;;  %v8144_v6 = vld [vmem:[#allocation2 + $0x68] sm:$0xff] }
 0x2c6   : > { %10355 = vst [vmem:[#allocation79_spill] sm:$0xff] %v8144_v6 }
 0x2c7   : > { %10349 = vst [vmem:[#allocation73_spill] sm:$0xff] %v8114_v30  ;;  %2483 = vst.msk [vmem:[#allocation2 + $0x48] sm:$0xff] %vm1864_vm1, %v8114_v30 }
 0x2c9   : > { %1367 = vperm.xlu0 %6334, %v8114_v30  }
 0x2ca   : > { %v1128_v63 = vpop.xlane.xlu0 %1127 }
 0x2cb   : > { %v8127_v2 = vmax.f32 %v8121_v18, %v1128_v63  ;;  %v8141_v63 = vld [vmem:[#allocation2 + $0x60] sm:$0xff] }
 0x2cc   : > { %v1131_v34 = vpop.xlane.xlu1 %1130  ;;  %10354 = vst [vmem:[#allocation78_spill] sm:$0xff] %v8141_v63 }
 0x2cd   : > { %10352 = vst [vmem:[#allocation76_spill] sm:$0xff] %v8127_v2  ;;  %2484 = vst.msk [vmem:[#allocation2 + $0x50] sm:$0xff] %vm1864_vm1, %v8127_v2  ;;  %v8134_v50 = vmax.f32 %v8124_v46, %v1131_v34  ;;  %1372 = vperm.xlu1 %6335, %v8127_v2  }
 0x2cf   : > { %10353 = vst [vmem:[#allocation77_spill] sm:$0xff] %v8134_v50  ;;  %2485 = vst.msk [vmem:[#allocation2 + $0x58] sm:$0xff] %vm1864_vm1, %v8134_v50 }
 0x2d1   : > { %1377 = vperm.xlu1 %6335, %v8134_v50   ;;  %v8160_v50 = vld [vmem:[#allocation2 + $0x70] sm:$0xff] }
 0x2d2   : > { %v1134_v33 = vpop.xlane.xlu0 %1133  ;;  %10358 = vst [vmem:[#allocation82_spill] sm:$0xff] %v8160_v50 }
 0x2d3   : > { %v8147_v18 = vmax.f32 %v8141_v63, %v1134_v33 }
 0x2d4   : > { %v1137_v34 = vpop.xlane.xlu1 %1136 }
 0x2d5   : > { %10356 = vst [vmem:[#allocation80_spill] sm:$0xff] %v8147_v18  ;;  %2486 = vst.msk [vmem:[#allocation2 + $0x60] sm:$0xff] %vm1864_vm1, %v8147_v18  ;;  %v8154_v30 = vmax.f32 %v8144_v6, %v1137_v34  ;;  %v8178_v6 = vld [vmem:[#allocation2 + $0x80] sm:$0xff] }
 0x2d6   : > { %10360 = vst [vmem:[#allocation84_spill] sm:$0xff] %v8178_v6 }
 0x2d7   : > { %10357 = vst [vmem:[#allocation81_spill] sm:$0xff] %v8154_v30  ;;  %2487 = vst.msk [vmem:[#allocation2 + $0x68] sm:$0xff] %vm1864_vm1, %v8154_v30 }
 0x2da   : > { %v1140_v33 = vpop.xlane.xlu0 %1139 }
 0x2db   : > { %v8165_v52 = vmax.f32 %v8160_v50, %v1140_v33  ;;  %v8201_v50 = vld [vmem:[#allocation2 + $0x98] sm:$0xff] }
 0x2dc   : > { %v1143_v2 = vpop.xlane.xlu1 %1142  ;;  %10365 = vst [vmem:[#allocation88_spill] sm:$0xff] %v8201_v50 }
 0x2dd   : > { %2488 = vst.msk [vmem:[#allocation2 + $0x70] sm:$0xff] %vm1864_vm1, %v8165_v52  ;;  %v8172_v34 = vmax.f32 %v8162_v32, %v1143_v2  ;;  %v8199_v32 = vld [vmem:[#allocation2 + $0x90] sm:$0xff] }
 0x2de   : > { %10364 = vst [vmem:[#allocation87_spill] sm:$0xff] %v8199_v32 }
 0x2df   : > { %2489 = vst.msk [vmem:[#allocation2 + $0x78] sm:$0xff] %vm1864_vm1, %v8172_v34 }
 0x2e2   : > { %v1146_v33 = vpop.xlane.xlu0 %1145 }
 0x2e3   : > { %v8183_v26 = vmax.f32 %v8178_v6, %v1146_v33  ;;  %v10363_v33 = vmax.f32 %v7993_v20, %v7997_v57  ;;  %v8219_v57 = vld [vmem:[#allocation2 + $0xa8] sm:$0xff] }
 0x2e4   : > { %v1149_v63 = vpop.xlane.xlu1 %1148  ;;  %10367 = vst [vmem:[#allocation90_spill] sm:$0xff] %v8219_v57 }
 0x2e5   : > { %10362 = vst [vmem:[#allocation86_spill] sm:$0xff] %v8183_v26  ;;  %2490 = vst.msk [vmem:[#allocation2 + $0x80] sm:$0xff] %vm1864_vm1, %v8183_v26  ;;  %v8190_v2 = vmax.f32 %v8180_v12, %v1149_v63  ;;  %v8217_v12 = vld [vmem:[#allocation2 + $0xa0] sm:$0xff] }
 0x2e6   : > { %10366 = vst [vmem:[#allocation89_spill] sm:$0xff] %v8217_v12 }
 0x2e7   : > { %2491 = vst.msk [vmem:[#allocation2 + $0x88] sm:$0xff] %vm1864_vm1, %v8190_v2 }
 0x2e8   : > { %1190 = vmax.xlane.f32.xlu0 %v10363_v33 }
 0x2ea   : > { %v1152_v31 = vpop.xlane.xlu0 %1151 }
 0x2eb   : > { %v8204_v6 = vmax.f32 %v8199_v32, %v1152_v31  ;;  %v10368_v32 = vmax.f32 %v7989_v40, %v7991_v24  ;;  %v8240_v24 = vld [vmem:[#allocation2 + $0xb8] sm:$0xff] }
 0x2ec   : > { %v1155_v63 = vpop.xlane.xlu1 %1154  ;;  %10371 = vst [vmem:[#allocation93_spill] sm:$0xff] %v8240_v24 }
 0x2ed   : > { %2492 = vst.msk [vmem:[#allocation2 + $0x90] sm:$0xff] %vm1864_vm1, %v8204_v6  ;;  %v8211_v46 = vmax.f32 %v8201_v50, %v1155_v63 }
 0x2ef   : > { %2493 = vst.msk [vmem:[#allocation2 + $0x98] sm:$0xff] %vm1864_vm1, %v8211_v46 }
 0x2f2   : > { %v1158_v31 = vpop.xlane.xlu1 %1157 }
 0x2f3   : > { %v8222_v20 = vmax.f32 %v8217_v12, %v1158_v31  ;;  %v8238_v31 = vld [vmem:[#allocation2 + $0xb0] sm:$0xff]  ;;  %v8260_v12 = vld [vmem:[#allocation2 + $0xc8] sm:$0xff] }
 0x2f4   : > { %v1161_v29 = vpop.xlane.xlu0 %1160  ;;  %10370 = vst [vmem:[#allocation92_spill] sm:$0xff] %v8238_v31  ;;  %10375 = vst [vmem:[#allocation97_spill] sm:$0xff] %v8260_v12 }
 0x2f5   : > { %1187 = vmax.xlane.f32.xlu1 %v10368_v32  ;;  %2494 = vst.msk [vmem:[#allocation2 + $0xa0] sm:$0xff] %vm1864_vm1, %v8222_v20  ;;  %v8232_v33 = vmax.f32 %v8219_v57, %v1161_v29 }
 0x2f7   : > { %10369 = vst [vmem:[#allocation91_spill] sm:$0xff] %v8232_v33  ;;  %2495 = vst.msk [vmem:[#allocation2 + $0xa8] sm:$0xff] %vm1864_vm1, %v8232_v33 }
 0x2fa   : > { %v1164_v14 = vpop.xlane.xlu1 %1163 }
 0x2fb   : > { %v8243_v32 = vmax.f32 %v8238_v31, %v1164_v14  ;;  %v8257_v14 = vld [vmem:[#allocation2 + $0xc0] sm:$0xff] }
 0x2fc   : > { %v1167_v63 = vpop.xlane.xlu0 %1166  ;;  %10374 = vst [vmem:[#allocation96_spill] sm:$0xff] %v8257_v14 }
 0x2fd   : > { %10372 = vst [vmem:[#allocation94_spill] sm:$0xff] %v8243_v32  ;;  %2496 = vst.msk [vmem:[#allocation2 + $0xb0] sm:$0xff] %vm1864_vm1, %v8243_v32  ;;  %v8250_v29 = vmax.f32 %v8240_v24, %v1167_v63 }
 0x2fe   : > { %1382 = vperm.xlu0 %6334, %v8147_v18  }
 0x2ff   : > { %10373 = vst [vmem:[#allocation95_spill] sm:$0xff] %v8250_v29  ;;  %2497 = vst.msk [vmem:[#allocation2 + $0xb8] sm:$0xff] %vm1864_vm1, %v8250_v29 }
 0x302   : > { %1387 = vperm.xlu0 %6334, %v8154_v30   ;;  %v1170_v57 = vpop.xlane.xlu0 %1169  ;;  %v8304_v30 = vld [vmem:[#allocation2 + $0xe8] sm:$0xff] }
 0x303   : > { %v8263_v31 = vmax.f32 %v8257_v14, %v1170_v57  ;;  %v8278_v57 = vld [vmem:[#allocation2 + $0xd0] sm:$0xff]  ;;  %v8282_v14 = vld [vmem:[#allocation2 + $0xd8] sm:$0xff]  ;;  %10382 = vst [vmem:[#allocation104_spill] sm:$0xff] %v8304_v30 }
 0x304   : > { %v1173_v63 = vpop.xlane.xlu1 %1172  ;;  %10378 = vst [vmem:[#allocation100_spill] sm:$0xff] %v8278_v57  ;;  %10379 = vst [vmem:[#allocation101_spill] sm:$0xff] %v8282_v14 }
 0x305   : > { %10376 = vst [vmem:[#allocation98_spill] sm:$0xff] %v8263_v31  ;;  %2498 = vst.msk [vmem:[#allocation2 + $0xc0] sm:$0xff] %vm1864_vm1, %v8263_v31  ;;  %v8270_v50 = vmax.f32 %v8260_v12, %v1173_v63 }
 0x306   : > { %1402 = vperm.xlu1 %6335, %v8183_v26   ;;  %1392 = vperm.xlu0 %6334, %v8165_v52  }
 0x307   : > { %10377 = vst [vmem:[#allocation99_spill] sm:$0xff] %v8270_v50  ;;  %2499 = vst.msk [vmem:[#allocation2 + $0xc8] sm:$0xff] %vm1864_vm1, %v8270_v50 }
 0x30a   : > { %1427 = vperm.xlu1 %6335, %v8232_v33   ;;  %1397 = vperm.xlu0 %6334, %v8172_v34   ;;  %v1176_v18 = vpop.xlane.xlu1 %1175 }
 0x30b   : > { %v8285_v63 = vmax.f32 %v8278_v57, %v1176_v18  ;;  %v8300_v18 = vld [vmem:[#allocation2 + $0xe0] sm:$0xff] }
 0x30c   : > { %v1179_v26 = vpop.xlane.xlu0 %1178  ;;  %10381 = vst [vmem:[#allocation103_spill] sm:$0xff] %v8300_v18 }
 0x30d   : > { %2500 = vst.msk [vmem:[#allocation2 + $0xd0] sm:$0xff] %vm1864_vm1, %v8285_v63  ;;  %v8292_v24 = vmax.f32 %v8282_v14, %v1179_v26 }
 0x30e   : > { %1437 = vperm.xlu1 %6335, %v8250_v29   ;;  %1407 = vperm.xlu0 %6334, %v8190_v2  }
 0x30f   : > { %10380 = vst [vmem:[#allocation102_spill] sm:$0xff] %v8292_v24  ;;  %2501 = vst.msk [vmem:[#allocation2 + $0xd8] sm:$0xff] %vm1864_vm1, %v8292_v24 }
 0x312   : > { %1447 = vperm.xlu1 %6335, %v8270_v50   ;;  %1412 = vperm.xlu0 %6334, %v8204_v6   ;;  %v1182_v26 = vpop.xlane.xlu0 %1181 }
 0x313   : > { %v8307_v57 = vmax.f32 %v8300_v18, %v1182_v26 }
 0x314   : > { %v1185_v29 = vpop.xlane.xlu1 %1184 }
 0x315   : > { %v8310_v33 = vmax.f32 %v8304_v30, %v1185_v29  ;;  %2502 = vst.msk [vmem:[#allocation2 + $0xe0] sm:$0xff] %vm1864_vm1, %v8307_v57 }
 0x316   : > { %1457 = vperm.xlu1 %6335, %v8292_v24   ;;  %1417 = vperm.xlu0 %6334, %v8211_v46  }
 0x317   : > { %10383 = vst [vmem:[#allocation105_spill] sm:$0xff] %v8310_v33  ;;  %2503 = vst.msk [vmem:[#allocation2 + $0xe8] sm:$0xff] %vm1864_vm1, %v8310_v33 }
 0x31a   : > { %1467 = vperm.xlu1 %6335, %v8310_v33   ;;  %1422 = vperm.xlu0 %6334, %v8222_v20  }
 0x31e   : > { %1432 = vperm.xlu0 %6334, %v8243_v32  }
 0x322   : > { %1442 = vperm.xlu0 %6334, %v8263_v31  }
 0x324   : > { %v1323_v29 = vpop.permute.xlu0 %1322 }
 0x325   : > { %v1480_v26 = vsub.f32 %v7809_v35, %v1323_v29  ;;  %v1481_v12 = vsub.f32 %v7811_v36, %v1323_v29 }
 0x326   : > { %1452 = vperm.xlu0 %6334, %v8285_v63  }
 0x327   : > { %v1544_v24 = vmul.f32 1.442695, %v1480_v26  ;;  %v1546_v14 = vmul.f32 1.442695, %v1481_v12 }
 0x328   : > { %v1328_v30 = vpop.permute.xlu1 %1327 }
 0x329   : > { %6368 = vpow2.f32 %v1544_v24  ;;  %v1482_v50 = vsub.f32 %v7813_v37, %v1328_v30  ;;  %v1483_v33 = vsub.f32 %v7817_v39, %v1328_v30 }
 0x32a   : > { %6370 = vpow2.f32 %v1546_v14  ;;  %1462 = vperm.xlu0 %6334, %v8307_v57  }
 0x32b   : > { %v1548_v18 = vmul.f32 1.442695, %v1482_v50  ;;  %v1550_v31 = vmul.f32 1.442695, %v1483_v33 }
 0x32c   : > { %v1333_v32 = vpop.permute.xlu1 %1332 }
 0x32d   : > { %6372 = vpow2.f32 %v1548_v18  ;;  %v1484_v35 = vsub.f32 %v7821_v41, %v1333_v32  ;;  %v1485_v36 = vsub.f32 %v7823_v42, %v1333_v32 }
 0x32e   : > { %6374 = vpow2.f32 %v1550_v31 }
 0x32f   : > { %v1552_v29 = vmul.f32 1.442695, %v1484_v35  ;;  %v1554_v12 = vmul.f32 1.442695, %v1485_v36 }
 0x330   : > { %v1338_v26 = vpop.permute.xlu1 %1337 }
 0x331   : > { %6376 = vpow2.f32 %v1552_v29  ;;  %v1486_v37 = vsub.f32 %v7825_v43, %v1338_v26  ;;  %v1487_v39 = vsub.f32 %v7829_v45, %v1338_v26 }
 0x332   : > { %6378 = vpow2.f32 %v1554_v12 }
 0x333   : > { %v6369_v24 = vpop.eup %6368  ;;  %v1556_v30 = vmul.f32 1.442695, %v1486_v37  ;;  %v1558_v50 = vmul.f32 1.442695, %v1487_v39 }
 0x334   : > { %v6371_v33 = vpop.eup %6370  ;;  %v1343_v14 = vpop.permute.xlu0 %1342 }
 0x335   : > { %6380 = vpow2.f32 %v1556_v30  ;;  %v1488_v41 = vsub.f32 %v7833_v47, %v1343_v14  ;;  %v1489_v42 = vsub.f32 %v7835_v48, %v1343_v14  ;;  %v8338_v31 = vadd.f32 %v6371_v33, %v6369_v24 }
 0x336   : > { %6382 = vpow2.f32 %v1558_v50 }
 0x337   : > { %v6373_v32 = vpop.eup %6372  ;;  %v1560_v18 = vmul.f32 1.442695, %v1488_v41  ;;  %v1562_v35 = vmul.f32 1.442695, %v1489_v42 }
 0x338   : > { %v6375_v43 = vpop.eup %6374  ;;  %v1348_v36 = vpop.permute.xlu0 %1347  ;;  %v2121_v45 = vpack.c.bf16 %v6373_v32, %v6369_v24 }
 0x339   : > { %6384 = vpow2.f32 %v1560_v18  ;;  %v1490_v29 = vsub.f32 %v7837_v49, %v1348_v36  ;;  %v1491_v12 = vsub.f32 %v7841_v51, %v1348_v36  ;;  %v2122_v26 = vpack.c.bf16 %v6375_v43, %v6371_v33  ;;  %v6752_v49 = vld [vmem:[%s7427_s18] sm:$0xff]   ;;  %v6753_v33 = vld [vmem:[%s7427_s18 + $0x48] sm:$0xff]  }
 0x33a   : > { %6386 = vpow2.f32 %v1562_v35  ;;  %v8342_v47 = vadd.f32 %v6375_v43, %v6373_v32 }
 0x33b   : > { %v6377_v48 = vpop.eup %6376  ;;  %v1564_v37 = vmul.f32 1.442695, %v1490_v29  ;;  %v1566_v39 = vmul.f32 1.442695, %v1491_v12  ;;  %2281 = vmatprep.mubr.bf16.mxu1 %v2122_v26 }
 0x33c   : > { %v6379_v30 = vpop.eup %6378  ;;  %2282 = vmatmul.mubr.bf16.vlgmr.msra.gmra.mrb[0].mxu1 %v2121_v45  ;;  %v1353_v50 = vpop.permute.xlu1 %1352 }
 0x33d   : > { %6388 = vpow2.f32 %v1564_v37  ;;  %v1492_v24 = vsub.f32 %v7845_v54, %v1353_v50  ;;  %v1493_v14 = vsub.f32 %v7847_v55, %v1353_v50  ;;  %5994 = vmatpush3.bf16.xpose.msra.mxu1 %v6752_v49  ;;  %v8347_v51 = vadd.f32 %v6379_v30, %v6377_v48 }
 0x33e   : > { %6390 = vpow2.f32 %v1566_v39  ;;  %5995 = vmatprep.subr.bf16.mxu1 %v6753_v33 }
 0x33f   : > { %v6381_v41 = vpop.eup %6380  ;;  %v1568_v42 = vmul.f32 1.442695, %v1492_v24  ;;  %v1570_v32 = vmul.f32 1.442695, %v1493_v14 }
 0x340   : > { %v6383_v18 = vpop.eup %6382  ;;  %v1358_v35 = vpop.permute.xlu1 %1357  ;;  %v2123_v43 = vpack.c.bf16 %v6381_v41, %v6377_v48 }
 0x341   : > { %6392 = vpow2.f32 %v1568_v42  ;;  %v1494_v36 = vsub.f32 %v7849_v56, %v1358_v35  ;;  %v1495_v54 = vsub.f32 %v7853_v58, %v1358_v35  ;;  %v2124_v55 = vpack.c.bf16 %v6383_v18, %v6379_v30  ;;  %v6754_v58 = vld [vmem:[%s7427_s18 + $0x8] sm:$0xff]   ;;  %v6755_v30 = vld [vmem:[%s7427_s18 + $0x50] sm:$0xff]  }
 0x342   : > { %6394 = vpow2.f32 %v1570_v32  ;;  %v8352_v45 = vadd.f32 %v6383_v18, %v6381_v41 }
 0x343   : > { %v6385_v29 = vpop.eup %6384  ;;  %v1572_v12 = vmul.f32 1.442695, %v1494_v36  ;;  %v1574_v26 = vmul.f32 1.442695, %v1495_v54  ;;  %2289 = vmatprep.mubr.bf16.mxu1 %v2124_v55 }
 0x344   : > { %v6387_v37 = vpop.eup %6386  ;;  %2290 = vmatmul.mubr.bf16.gmra.mrb[4].mxu1 %v2123_v43  ;;  %v1363_v39 = vpop.permute.xlu0 %1362 }
 0x345   : > { %6396 = vpow2.f32 %v1572_v12  ;;  %v1496_v48 = vsub.f32 %v7857_v60, %v1363_v39  ;;  %v1497_v56 = vsub.f32 %v7859_v61, %v1363_v39  ;;  %v8356_v50 = vadd.f32 %v6387_v37, %v6385_v29  ;;  %5996 = vmatpush3.bf16.xpose.msra.mxu1 %v6754_v58 }
 0x346   : > { %6398 = vpow2.f32 %v1574_v26  ;;  %5997 = vmatprep.subr.bf16.mxu1 %v6755_v30  ;;  %v6757_v26 = vld [vmem:[%s7427_s18 + $0x58] sm:$0xff]  }
 0x347   : > { %v6389_v24 = vpop.eup %6388  ;;  %v1576_v14 = vmul.f32 1.442695, %v1496_v48  ;;  %v1578_v49 = vmul.f32 1.442695, %v1497_v56 }
 0x348   : > { %v6391_v33 = vpop.eup %6390  ;;  %v1368_v41 = vpop.permute.xlu0 %1367  ;;  %v2125_v42 = vpack.c.bf16 %v6389_v24, %v6385_v29 }
 0x349   : > { %6400 = vpow2.f32 %v1576_v14  ;;  %v1498_v32 = vsub.f32 %v7861_v62, %v1368_v41  ;;  %v1499_v60 = vsub.f32 %v7865_v0, %v1368_v41  ;;  %v2126_v61 = vpack.c.bf16 %v6391_v33, %v6387_v37  ;;  %v6756_v0 = vld [vmem:[%s7427_s18 + $0x10] sm:$0xff]  }
 0x34a   : > { %6402 = vpow2.f32 %v1578_v49  ;;  %v8362_v18 = vadd.f32 %v6391_v33, %v6389_v24 }
 0x34b   : > { %v6393_v35 = vpop.eup %6392  ;;  %v1580_v43 = vmul.f32 1.442695, %v1498_v32  ;;  %v1582_v36 = vmul.f32 1.442695, %v1499_v60  ;;  %2297 = vmatprep.mubr.bf16.mxu1 %v2126_v61  ;;  %v6758_v60 = vld [vmem:[%s7427_s18 + $0x18] sm:$0xff]  }
 0x34c   : > { %v6395_v54 = vpop.eup %6394  ;;  %2298 = vmatmul.mubr.bf16.gmra.mrb[8].mxu1 %v2125_v42  ;;  %v1373_v55 = vpop.permute.xlu1 %1372 }
 0x34d   : > { %6404 = vpow2.f32 %v1580_v43  ;;  %v1500_v29 = vsub.f32 %v7869_v3, %v1373_v55  ;;  %v1501_v62 = vsub.f32 %v7871_v4, %v1373_v55  ;;  %v8366_v12 = vadd.f32 %v6395_v54, %v6393_v35  ;;  %5998 = vmatpush3.bf16.xpose.msra.mxu1 %v6756_v0  ;;  %v6761_v0 = vld [vmem:[%s7427_s18 + $0x68] sm:$0xff]  }
 0x34e   : > { %6406 = vpow2.f32 %v1582_v36  ;;  %5999 = vmatprep.subr.bf16.mxu1 %v6757_v26 }
 0x34f   : > { %v6397_v37 = vpop.eup %6396  ;;  %v1584_v39 = vmul.f32 1.442695, %v1500_v29  ;;  %v1586_v48 = vmul.f32 1.442695, %v1501_v62  ;;  %v6760_v62 = vld [vmem:[%s7427_s18 + $0x20] sm:$0xff]  }
 0x350   : > { %v6399_v56 = vpop.eup %6398  ;;  %v1378_v58 = vpop.permute.xlu1 %1377  ;;  %v2127_v30 = vpack.c.bf16 %v6397_v37, %v6393_v35 }
 0x351   : > { %6408 = vpow2.f32 %v1584_v39  ;;  %v1502_v24 = vsub.f32 %v7873_v5, %v1378_v58  ;;  %v1503_v3 = vsub.f32 %v7877_v7, %v1378_v58  ;;  %v2128_v4 = vpack.c.bf16 %v6399_v56, %v6395_v54  ;;  %v6759_v5 = vld [vmem:[%s7427_s18 + $0x60] sm:$0xff]   ;;  %v6762_v58 = vld [vmem:[%s7427_s18 + $0x28] sm:$0xff]  }
 0x352   : > { %6410 = vpow2.f32 %v1586_v48  ;;  %v8372_v14 = vadd.f32 %v6399_v56, %v6397_v37 }
 0x353   : > { %v6401_v49 = vpop.eup %6400  ;;  %v1588_v33 = vmul.f32 1.442695, %v1502_v24  ;;  %v1590_v41 = vmul.f32 1.442695, %v1503_v3  ;;  %2305 = vmatprep.mubr.bf16.mxu1 %v2128_v4  ;;  %v6764_v24 = vld [vmem:[%s7427_s18 + $0x30] sm:$0xff]   ;;  %v6765_v3 = vld [vmem:[%s7427_s18 + $0x78] sm:$0xff]  }
 0x354   : > { %v6403_v42 = vpop.eup %6402  ;;  %2306 = vmatmul.mubr.bf16.gmra.mrb[12].mxu1 %v2127_v30  ;;  %v6763_v30 = vld [vmem:[%s7427_s18 + $0x70] sm:$0xff]   ;;  %v8390_v4 = vld [vmem:[#allocation2 + $0xf8] sm:$0xff] }
 0x355   : > { %6412 = vpow2.f32 %v1588_v33  ;;  %v8374_v32 = vadd.f32 %v6403_v42, %v6401_v49  ;;  %6000 = vmatpush3.bf16.xpose.msra.mxu1 %v6758_v60  ;;  %10384 = vst [vmem:[#allocation106_spill] sm:$0xff] %v8390_v4  ;;  %v6766_v33 = vld [vmem:[%s7427_s18 + $0x38] sm:$0xff]  }
 0x356   : > { %6414 = vpow2.f32 %v1590_v41  ;;  %6001 = vmatprep.subr.bf16.mxu1 %v6759_v5 }
 0x357   : > { %v6405_v7 = vpop.eup %6404 }
 0x358   : > { %v6407_v61 = vpop.eup %6406  ;;  %v2129_v35 = vpack.c.bf16 %v6405_v7, %v6401_v49 }
 0x359   : > { %v2130_v43 = vpack.c.bf16 %v6407_v61, %v6403_v42  ;;  %v8378_v36 = vadd.f32 %v6407_v61, %v6405_v7 }
 0x35b   : > { %v6409_v54 = vpop.eup %6408  ;;  %2313 = vmatprep.mubr.bf16.mxu1 %v2130_v43  ;;  %v8404_v43 = vld [vmem:[#allocation2 + $0xf0] sm:$0xff] }
 0x35c   : > { %v6411_v55 = vpop.eup %6410  ;;  %2314 = vmatmul.mubr.bf16.gmra.mrb[16].mxu1 %v2129_v35  ;;  %10386 = vst [vmem:[#allocation108_spill] sm:$0xff] %v8404_v43 }
 0x35d   : > { %v8380_v29 = vadd.f32 %v6411_v55, %v6409_v54  ;;  %6002 = vmatpush3.bf16.xpose.msra.mxu1 %v6760_v62 }
 0x35e   : > { %6003 = vmatprep.subr.bf16.mxu1 %v6761_v0 }
 0x35f   : > { %v6413_v26 = vpop.eup %6412 }
 0x360   : > { %v6415_v37 = vpop.eup %6414  ;;  %v2131_v39 = vpack.c.bf16 %v6413_v26, %v6409_v54 }
 0x361   : > { %v2132_v48 = vpack.c.bf16 %v6415_v37, %v6411_v55  ;;  %v8384_v56 = vadd.f32 %v6415_v37, %v6413_v26 }
 0x363   : > { %2321 = vmatprep.mubr.bf16.mxu1 %v2132_v48 }
 0x364   : > { %2322 = vmatmul.mubr.bf16.gmra.mrb[20].mxu1 %v2131_v39 }
 0x365   : > { %6004 = vmatpush3.bf16.xpose.msra.mxu1 %v6762_v58 }
 0x366   : > { %6005 = vmatprep.subr.bf16.mxu1 %v6763_v30 }
 0x36d   : > { %6006 = vmatpush3.bf16.xpose.msra.mxu1 %v6764_v24 }
 0x36e   : > { %6007 = vmatprep.subr.bf16.mxu1 %v6765_v3 }
 0x375   : > { %v1191_v49 = vpop.xlane.xlu0 %1190  ;;  %6008 = vmatpush3.bf16.xpose.msra.mxu1 %v6766_v33 }
 0x376   : > { %v8394_v41 = vmax.f32 %v8390_v4, %v1191_v49  ;;  %6153 = vmatprep.subr.bf16.mxu1 %v8002_v1 }
 0x378   : > { %10385 = vst [vmem:[#allocation107_spill] sm:$0xff] %v8394_v41  ;;  %2505 = vst.msk [vmem:[#allocation2 + $0xf8] sm:$0xff] %vm1864_vm1, %v8394_v41  ;;  %1477 = vperm.xlu1 %6335, %v8394_v41  }
 0x37d   : > { %v1383_v60 = vpop.permute.xlu0 %1382 }
 0x37e   : > { %v1504_v5 = vsub.f32 %v7881_v9, %v1383_v60  ;;  %v1505_v7 = vsub.f32 %v7883_v10, %v1383_v60  ;;  %v5474_v9 = vld [vmem:[%s7419_s29 + $0xcc] sm:$0xf] }
 0x380   : > { %v1592_v61 = vmul.f32 1.442695, %v1504_v5  ;;  %v1594_v35 = vmul.f32 1.442695, %v1505_v7 }
 0x381   : > { %v1388_v54 = vpop.permute.xlu0 %1387 }
 0x382   : > { %6416 = vpow2.f32 %v1592_v61  ;;  %v1506_v1 = vsub.f32 %v7885_v11, %v1388_v54  ;;  %v1507_v55 = vsub.f32 %v7889_v13, %v1388_v54  ;;  %v1188_v62 = vpop.xlane.xlu1 %1187 }
 0x383   : > { %6418 = vpow2.f32 %v1594_v35  ;;  %v8409_v0 = vmax.f32 %v8404_v43, %v1188_v62 }
 0x384   : > { %v1596_v26 = vmul.f32 1.442695, %v1506_v1  ;;  %v1598_v37 = vmul.f32 1.442695, %v1507_v55 }
 0x385   : > { %10387 = vst [vmem:[#allocation109_spill] sm:$0xff] %v8409_v0  ;;  %2504 = vst.msk [vmem:[#allocation2 + $0xf0] sm:$0xff] %vm1864_vm1, %v8409_v0  ;;  %1472 = vperm.xlu0 %6334, %v8409_v0   ;;  %v1393_v10 = vpop.permute.xlu0 %1392 }
 0x386   : > { %6420 = vpow2.f32 %v1596_v26  ;;  %v1508_v11 = vsub.f32 %v7893_v15, %v1393_v10  ;;  %v1509_v13 = vsub.f32 %v7895_v16, %v1393_v10  ;;  %v1403_v39 = vpop.permute.xlu1 %1402 }
 0x387   : > { %6422 = vpow2.f32 %v1598_v37  ;;  %v1512_v48 = vsub.f32 %v7905_v21, %v1403_v39  ;;  %v1513_v58 = vsub.f32 %v7907_v22, %v1403_v39 }
 0x388   : > { %v1600_v30 = vmul.f32 1.442695, %v1508_v11  ;;  %v1602_v24 = vmul.f32 1.442695, %v1509_v13 }
 0x389   : > { %v1608_v3 = vmul.f32 1.442695, %v1512_v48  ;;  %v1610_v49 = vmul.f32 1.442695, %v1513_v58  ;;  %v1398_v33 = vpop.permute.xlu0 %1397 }
 0x38a   : > { %6424 = vpow2.f32 %v1600_v30  ;;  %v1510_v60 = vsub.f32 %v7897_v17, %v1398_v33  ;;  %v1511_v5 = vsub.f32 %v7901_v19, %v1398_v33  ;;  %v1428_v7 = vpop.permute.xlu1 %1427 }
 0x38b   : > { %6426 = vpow2.f32 %v1602_v24  ;;  %v1522_v15 = vsub.f32 %v7933_v38, %v1428_v7  ;;  %v1523_v16 = vsub.f32 %v7937_v44, %v1428_v7 }
 0x38c   : > { %v6417_v61 = vpop.eup %6416  ;;  %6428 = vpow2.f32 %v1608_v3  ;;  %v1604_v21 = vmul.f32 1.442695, %v1510_v60  ;;  %v1606_v22 = vmul.f32 1.442695, %v1511_v5 }
 0x38d   : > { %v6419_v35 = vpop.eup %6418  ;;  %6430 = vpow2.f32 %v1610_v49  ;;  %v1628_v54 = vmul.f32 1.442695, %v1522_v15  ;;  %v1630_v1 = vmul.f32 1.442695, %v1523_v16  ;;  %v1408_v55 = vpop.permute.xlu0 %1407 }
 0x38e   : > { %6432 = vpow2.f32 %v1604_v21  ;;  %v1514_v17 = vsub.f32 %v7909_v23, %v1408_v55  ;;  %v1515_v19 = vsub.f32 %v7913_v25, %v1408_v55  ;;  %v1438_v62 = vpop.permute.xlu1 %1437  ;;  %v8426_v26 = vadd.f32 %v6419_v35, %v6417_v61  ;;  %v10389_v21 = vld [vmem:[#allocation34_spill] sm:$0xff] }
 0x38f   : > { %6434 = vpow2.f32 %v1606_v22  ;;  %v1526_v38 = vsub.f32 %v7945_v53, %v1438_v62  ;;  %v1527_v44 = vsub.f32 %v7949_v59, %v1438_v62  ;;  %v10388_v59 = vld [vmem:[#allocation42_spill] sm:$0xff]  ;;  %v10390_v22 = vld [vmem:[#allocation35_spill] sm:$0xff] }
 0x390   : > { %v6421_v37 = vpop.eup %6420  ;;  %6436 = vpow2.f32 %v1628_v54  ;;  %v1612_v10 = vmul.f32 1.442695, %v1514_v17  ;;  %v1614_v11 = vmul.f32 1.442695, %v1515_v19  ;;  %v10391_v17 = vld [vmem:[#allocation45_spill] sm:$0xff]  ;;  %v10392_v62 = vld [vmem:[#allocation46_spill] sm:$0xff] }
 0x391   : > { %v6423_v13 = vpop.eup %6422  ;;  %6438 = vpow2.f32 %v1630_v1  ;;  %v1636_v39 = vmul.f32 1.442695, %v1526_v38  ;;  %v1638_v48 = vmul.f32 1.442695, %v1527_v44  ;;  %v1413_v58 = vpop.permute.xlu0 %1412  ;;  %v2133_v23 = vpack.c.bf16 %v6421_v37, %v6417_v61 }
 0x392   : > { %6440 = vpow2.f32 %v1612_v10  ;;  %v1516_v25 = vsub.f32 %v7917_v27, %v1413_v58  ;;  %v1517_v30 = vsub.f32 %v7919_v28, %v1413_v58  ;;  %v1448_v24 = vpop.permute.xlu1 %1447  ;;  %v2134_v3 = vpack.c.bf16 %v6423_v13, %v6419_v35 }
 0x393   : > { %6442 = vpow2.f32 %v1614_v11  ;;  %v1530_v53 = vsub.f32 %v7957_v8, %v1448_v24  ;;  %v1531_v49 = vsub.f32 %v10388_v59, %v1448_v24  ;;  %v8434_v33 = vadd.f32 %v6423_v13, %v6421_v37 }
 0x394   : > { %v6425_v60 = vpop.eup %6424  ;;  %6444 = vpow2.f32 %v1636_v39  ;;  %v1616_v5 = vmul.f32 1.442695, %v1516_v25  ;;  %v1618_v7 = vmul.f32 1.442695, %v1517_v30  ;;  %2329 = vmatprep.mubr.bf16.mxu1 %v2134_v3  ;;  %v10393_v30 = vld [vmem:[#allocation36_spill] sm:$0xff]  ;;  %v10394_v3 = vld [vmem:[#allocation37_spill] sm:$0xff] }
 0x395   : > { %v6427_v15 = vpop.eup %6426  ;;  %6446 = vpow2.f32 %v1638_v48  ;;  %v1644_v16 = vmul.f32 1.442695, %v1530_v53  ;;  %v1646_v27 = vmul.f32 1.442695, %v1531_v49  ;;  %2330 = vmatmul.mubr.bf16.gmra.mrb[24].mxu1 %v2133_v23  ;;  %v1418_v28 = vpop.permute.xlu0 %1417 }
 0x396   : > { %v8436_v61 = vpop.eup %6428  ;;  %6448 = vpow2.f32 %v1616_v5  ;;  %v1518_v8 = vsub.f32 %v10389_v21, %v1418_v28  ;;  %v1519_v35 = vsub.f32 %v10390_v22, %v1418_v28  ;;  %v1458_v54 = vpop.permute.xlu1 %1457  ;;  %v8440_v1 = vadd.f32 %v6427_v15, %v6425_v60  ;;  %v10396_v28 = vld [vmem:[#allocation50_spill] sm:$0xff] }
 0x397   : > { %v6431_v55 = vpop.eup %6430  ;;  %6450 = vpow2.f32 %v1618_v7  ;;  %v1534_v19 = vsub.f32 %v10391_v17, %v1458_v54  ;;  %v1535_v38 = vsub.f32 %v10392_v62, %v1458_v54  ;;  %v10395_v7 = vld [vmem:[#allocation49_spill] sm:$0xff] }
 0x398   : > { %v6433_v44 = vpop.eup %6432  ;;  %6452 = vpow2.f32 %v1644_v16  ;;  %v1620_v37 = vmul.f32 1.442695, %v1518_v8  ;;  %v1622_v10 = vmul.f32 1.442695, %v1519_v35  ;;  %v8445_v11 = vadd.f32 %v6431_v55, %v8436_v61 }
 0x399   : > { %v6435_v13 = vpop.eup %6434  ;;  %6454 = vpow2.f32 %v1646_v27  ;;  %v1652_v39 = vmul.f32 1.442695, %v1534_v19  ;;  %v1654_v48 = vmul.f32 1.442695, %v1535_v38  ;;  %v1423_v58 = vpop.permute.xlu0 %1422  ;;  %v2135_v23 = vpack.c.bf16 %v6433_v44, %v6425_v60 }
 0x39a   : > { %v8447_v25 = vpop.eup %6436  ;;  %6456 = vpow2.f32 %v1620_v37  ;;  %v1520_v24 = vsub.f32 %v10393_v30, %v1423_v58  ;;  %v1521_v53 = vsub.f32 %v10394_v3, %v1423_v58  ;;  %v1468_v59 = vpop.permute.xlu1 %1467  ;;  %v2136_v49 = vpack.c.bf16 %v6435_v13, %v6427_v15 }
 0x39b   : > { %v8451_v5 = vpop.eup %6438  ;;  %6458 = vpow2.f32 %v1622_v10  ;;  %v1538_v16 = vsub.f32 %v10395_v7, %v1468_v59  ;;  %v1539_v27 = vsub.f32 %v10396_v28, %v1468_v59  ;;  %v8455_v21 = vadd.f32 %v6435_v13, %v6433_v44  ;;  %v10397_v44 = vld [vmem:[#allocation38_spill] sm:$0xff]  ;;  %v10398_v10 = vld [vmem:[#allocation39_spill] sm:$0xff] }
 0x39c   : > { %v6441_v8 = vpop.eup %6440  ;;  %6460 = vpow2.f32 %v1652_v39  ;;  %v1624_v60 = vmul.f32 1.442695, %v1520_v24  ;;  %v1626_v22 = vmul.f32 1.442695, %v1521_v53  ;;  %2337 = vmatprep.mubr.bf16.mxu1 %v2136_v49  ;;  %1737 = vadd.xlane.f32.xlu1 %v8338_v31  ;;  %v8460_v35 = vadd.f32 %v8451_v5, %v8447_v25  ;;  %v10399_v53 = vld [vmem:[#allocation40_spill] sm:$0xff]  ;;  %v10400_v49 = vld [vmem:[#allocation41_spill] sm:$0xff] }
 0x39d   : > { %v6443_v15 = vpop.eup %6442  ;;  %6462 = vpow2.f32 %v1654_v48  ;;  %v1660_v54 = vmul.f32 1.442695, %v1538_v16  ;;  %v1662_v17 = vmul.f32 1.442695, %v1539_v27  ;;  %2338 = vmatmul.mubr.bf16.gmra.mrb[28].mxu1 %v2135_v23  ;;  %v1433_v19 = vpop.permute.xlu0 %1432  ;;  %v2137_v62 = vpack.c.bf16 %v6441_v8, %v8436_v61 }
 0x39e   : > { %v8463_v38 = vpop.eup %6444  ;;  %6464 = vpow2.f32 %v1624_v60  ;;  %v1524_v37 = vsub.f32 %v10397_v44, %v1433_v19  ;;  %v1525_v13 = vsub.f32 %v10398_v10, %v1433_v19  ;;  %v2138_v31 = vpack.c.bf16 %v6443_v15, %v6431_v55  ;;  %v10401_v19 = vld [vmem:[#allocation43_spill] sm:$0xff] }
 0x39f   : > { %v8467_v39 = vpop.eup %6446  ;;  %6466 = vpow2.f32 %v1626_v22  ;;  %v8469_v58 = vadd.f32 %v6443_v15, %v6441_v8 }
 0x3a0   : > { %v6449_v48 = vpop.eup %6448  ;;  %6468 = vpow2.f32 %v1660_v54  ;;  %v1632_v30 = vmul.f32 1.442695, %v1524_v37  ;;  %v1634_v23 = vmul.f32 1.442695, %v1525_v13  ;;  %2345 = vmatprep.mubr.bf16.mxu1 %v2138_v31  ;;  %1743 = vadd.xlane.f32.xlu1 %v8347_v51  ;;  %v8474_v61 = vadd.f32 %v8467_v39, %v8463_v38  ;;  %v10402_v37 = vld [vmem:[#allocation44_spill] sm:$0xff] }
 0x3a1   : > { %v6451_v24 = vpop.eup %6450  ;;  %6470 = vpow2.f32 %v1662_v17  ;;  %v1443_v3 = vpop.permute.xlu0 %1442 }
 0x3a2   : > { %v8476_v55 = vpop.eup %6452  ;;  %6472 = vpow2.f32 %v1632_v30  ;;  %v1528_v59 = vsub.f32 %v10399_v53, %v1443_v3  ;;  %v1529_v7 = vsub.f32 %v10400_v49, %v1443_v3  ;;  %v8480_v16 = vadd.f32 %v6451_v24, %v6449_v48 }
 0x3a3   : > { %v8482_v28 = vpop.eup %6454  ;;  %6474 = vpow2.f32 %v1634_v23 }
 0x3a4   : > { %v6457_v51 = vpop.eup %6456  ;;  %v1640_v27 = vmul.f32 1.442695, %v1528_v59  ;;  %v1642_v8 = vmul.f32 1.442695, %v1529_v7  ;;  %1740 = vadd.xlane.f32.xlu0 %v8342_v47  ;;  %1749 = vadd.xlane.f32.xlu1 %v8356_v50  ;;  %v8488_v60 = vadd.f32 %v8482_v28, %v8476_v55  ;;  %v10403_v59 = vld [vmem:[#allocation47_spill] sm:$0xff]  ;;  %v10404_v7 = vld [vmem:[#allocation48_spill] sm:$0xff] }
 0x3a5   : > { %v6459_v22 = vpop.eup %6458  ;;  %2346 = vmatmul.mubr.bf16.gmra.mrb[32].mxu1 %v2137_v62  ;;  %v1453_v15 = vpop.permute.xlu0 %1452  ;;  %v2139_v54 = vpack.c.bf16 %v6457_v51, %v6449_v48 }
 0x3a6   : > { %v8490_v17 = vpop.eup %6460  ;;  %6476 = vpow2.f32 %v1640_v27  ;;  %v1532_v44 = vsub.f32 %v10401_v19, %v1453_v15  ;;  %v1533_v10 = vsub.f32 %v10402_v37, %v1453_v15  ;;  %v2140_v13 = vpack.c.bf16 %v6459_v22, %v6451_v24 }
 0x3a7   : > { %v8494_v31 = vpop.eup %6462  ;;  %6478 = vpow2.f32 %v1642_v8  ;;  %v8496_v47 = vadd.f32 %v6459_v22, %v6457_v51 }
 0x3a8   : > { %v6465_v50 = vpop.eup %6464  ;;  %v1648_v30 = vmul.f32 1.442695, %v1532_v44  ;;  %v1650_v23 = vmul.f32 1.442695, %v1533_v10  ;;  %2353 = vmatprep.mubr.bf16.mxu1 %v2140_v13  ;;  %1746 = vadd.xlane.f32.xlu0 %v8352_v45  ;;  %v8501_v62 = vadd.f32 %v8494_v31, %v8490_v17 }
 0x3a9   : > { %v6467_v48 = vpop.eup %6466  ;;  %1755 = vadd.xlane.f32.xlu1 %v8366_v12  ;;  %v1463_v3 = vpop.permute.xlu0 %1462  ;;  %v2141_v24 = vpack.c.bf16 %v8447_v25, %v6465_v50 }
 0x3aa   : > { %v8505_v53 = vpop.eup %6468  ;;  %6480 = vpow2.f32 %v1648_v30  ;;  %v1536_v49 = vsub.f32 %v10403_v59, %v1463_v3  ;;  %v1537_v51 = vsub.f32 %v10404_v7, %v1463_v3  ;;  %v2142_v27 = vpack.c.bf16 %v8451_v5, %v6467_v48  ;;  %v5455_v3 = vld [vmem:[%s7419_s29 + $0x80] sm:$0xf] }
 0x3ab   : > { %v6471_v45 = vpop.eup %6470  ;;  %6482 = vpow2.f32 %v1650_v23  ;;  %v1796_v8 = vadd.f32 %v6467_v48, %v6465_v50 }
 0x3ac   : > { %v6473_v22 = vpop.eup %6472  ;;  %v1656_v15 = vmul.f32 1.442695, %v1536_v49  ;;  %v1658_v19 = vmul.f32 1.442695, %v1537_v51  ;;  %1752 = vadd.xlane.f32.xlu0 %v8362_v18  ;;  %v1823_v12 = vadd.f32 %v6471_v45, %v8505_v53 }
 0x3ad   : > { %v6475_v25 = vpop.eup %6474  ;;  %1761 = vadd.xlane.f32.xlu1 %v8374_v32  ;;  %2354 = vmatmul.mubr.bf16.gmra.mrb[36].mxu1 %v2139_v54  ;;  %v2143_v44 = vpack.c.bf16 %v8463_v38, %v6473_v22 }
 0x3ae   : > { %6484 = vpow2.f32 %v1656_v15  ;;  %2361 = vmatprep.mubr.bf16.mxu1 %v2142_v27  ;;  %v2144_v5 = vpack.c.bf16 %v8467_v39, %v6475_v25  ;;  %v1802_v37 = vadd.f32 %v6475_v25, %v6473_v22 }
 0x3af   : > { %6486 = vpow2.f32 %v1658_v19 }
 0x3b0   : > { %v6477_v10 = vpop.eup %6476  ;;  %1758 = vadd.xlane.f32.xlu0 %v8372_v14 }
 0x3b1   : > { %v6479_v13 = vpop.eup %6478  ;;  %1767 = vadd.xlane.f32.xlu1 %v8380_v29  ;;  %v2145_v18 = vpack.c.bf16 %v8476_v55, %v6477_v10 }
 0x3b2   : > { %v2146_v50 = vpack.c.bf16 %v8482_v28, %v6479_v13  ;;  %v1808_v32 = vadd.f32 %v6479_v13, %v6477_v10  ;;  %v10411_v10 = vld [vmem:[#allocation55_spill] sm:$0xff] }
 0x3b4   : > { %v6481_v54 = vpop.eup %6480  ;;  %1764 = vadd.xlane.f32.xlu0 %v8378_v36 }
 0x3b5   : > { %v6483_v38 = vpop.eup %6482  ;;  %1770 = vadd.xlane.f32.xlu1 %v8384_v56  ;;  %2362 = vmatmul.mubr.bf16.gmra.mrb[40].mxu1 %v2141_v24  ;;  %v2147_v39 = vpack.c.bf16 %v8490_v17, %v6481_v54  ;;  %v5456_v24 = vld [vmem:[%s7419_s29 + $0x84] sm:$0xf] }
 0x3b6   : > { %2369 = vmatprep.mubr.bf16.mxu1 %v2144_v5  ;;  %v2148_v14 = vpack.c.bf16 %v8494_v31, %v6483_v38  ;;  %v1814_v30 = vadd.f32 %v6483_v38, %v6481_v54  ;;  %v2540_v51 = vmul.bf16 1035287989, %v5456_v24  ;;  %v5458_v5 = vld [vmem:[%s7419_s29 + $0x8c] sm:$0xf] }
 0x3b8   : > { %v6485_v23 = vpop.eup %6484  ;;  %1773 = vadd.xlane.f32.xlu0 %v8426_v26  ;;  %v10405_v26 = vld [vmem:[#allocation52_spill] sm:$0xff] }
 0x3b9   : > { %v6487_v29 = vpop.eup %6486  ;;  %1779 = vadd.xlane.f32.xlu1 %v8440_v1  ;;  %v2149_v55 = vpack.c.bf16 %v8505_v53, %v6485_v23  ;;  %v10406_v1 = vld [vmem:[#allocation53_spill] sm:$0xff] }
 0x3ba   : > { %v2150_v28 = vpack.c.bf16 %v6471_v45, %v6487_v29  ;;  %v1820_v36 = vadd.f32 %v6487_v29, %v6485_v23  ;;  %v10414_v23 = vld [vmem:[#allocation58_spill] sm:$0xff]  ;;  %v10415_v29 = vld [vmem:[#allocation59_spill] sm:$0xff] }
 0x3bc   : > { %1776 = vadd.xlane.f32.xlu0 %v8434_v33 }
 0x3bd   : > { %1785 = vadd.xlane.f32.xlu1 %v8445_v11  ;;  %2370 = vmatmul.mubr.bf16.gmra.mrb[44].mxu1 %v2143_v44  ;;  %v5457_v44 = vld [vmem:[%s7419_s29 + $0x88] sm:$0xf] }
 0x3be   : > { %2377 = vmatprep.mubr.bf16.mxu1 %v2146_v50 }
 0x3c0   : > { %1782 = vadd.xlane.f32.xlu0 %v8455_v21 }
 0x3c1   : > { %1791 = vadd.xlane.f32.xlu1 %v8480_v16  ;;  %v10407_v16 = vld [vmem:[#allocation51_spill] sm:$0xff] }
 0x3c4   : > { %1788 = vadd.xlane.f32.xlu0 %v8469_v58 }
 0x3c5   : > { %1797 = vadd.xlane.f32.xlu1 %v1796_v8  ;;  %2378 = vmatmul.mubr.bf16.gmra.mrb[48].mxu1 %v2145_v18 }
 0x3c6   : > { %2385 = vmatprep.mubr.bf16.mxu1 %v2148_v14  ;;  %v2542_v14 = vmul.bf16 1035287989, %v5458_v5 }
 0x3c8   : > { %1794 = vadd.xlane.f32.xlu0 %v8496_v47 }
 0x3c9   : > { %1803 = vadd.xlane.f32.xlu1 %v1802_v37  ;;  %v10410_v37 = vld [vmem:[#allocation54_spill] sm:$0xff] }
 0x3ca   : > { %v10412_v13 = vsub.f32 %v10410_v37, %v10411_v10  ;;  %v1672_v37 = vld [vmem:[#allocation3] sm:$0xff] }
 0x3cc   : > { %1800 = vadd.xlane.f32.xlu0 %v8460_v35  ;;  %v1256_v18 = vmul.f32 1.442695, %v10412_v13  ;;  %v6769_v13 = vld [vmem:[%s7433_s30 + $0x8] sm:$0xff]  }
 0x3cd   : > { %1809 = vadd.xlane.f32.xlu1 %v1808_v32  ;;  %2386 = vmatmul.mubr.bf16.gmra.mrb[52].mxu1 %v2147_v39  ;;  %v2541_v39 = vmul.bf16 1035287989, %v5457_v44 }
 0x3ce   : > { %2393 = vmatprep.mubr.bf16.mxu1 %v2150_v28 }
 0x3d0   : > { %1806 = vadd.xlane.f32.xlu0 %v8474_v61 }
 0x3d1   : > { %1815 = vadd.xlane.f32.xlu1 %v1814_v30 }
 0x3d4   : > { %1812 = vadd.xlane.f32.xlu0 %v8488_v60 }
 0x3d5   : > { %2394 = vmatmul.mubr.bf16.gmra.mrb[56].mxu1 %v2149_v55  ;;  %1821 = vadd.xlane.f32.xlu1 %v1820_v36  ;;  %v10416_v55 = vsub.f32 %v10414_v23, %v10415_v29  ;;  %v10435_v29 = vld [vmem:[#allocation63_spill] sm:$0xff] }
 0x3d7   : > { %v1260_v28 = vmul.f32 1.442695, %v10416_v55  ;;  %v10436_v55 = vld [vmem:[#allocation65_spill] sm:$0xff] }
 0x3d8   : > { %1818 = vadd.xlane.f32.xlu0 %v8501_v62 }
 0x3dc   : > { %1824 = vadd.xlane.f32.xlu0 %v1823_v12 }
 0x3f7   : > { %v1478_v56 = vpop.permute.xlu1 %1477 }
 0x3f8   : > { %v1542_v33 = vsub.f32 %v10405_v26, %v1478_v56  ;;  %v1543_v11 = vsub.f32 %v10406_v1, %v1478_v56  ;;  %v5488_v56 = vcombine.low %v2541_v39, %v2542_v14  ;;  %v10418_v26 = vld [vmem:[#allocation56_spill] sm:$0xff] }
 0x3f9   : > { %v10433_v39 = vld [vmem:[#allocation72_spill] sm:$0xff] }
 0x3fa   : > { %v1668_v21 = vmul.f32 1.442695, %v1542_v33  ;;  %v1670_v35 = vmul.f32 1.442695, %v1543_v11  ;;  %v10419_v33 = vld [vmem:[#allocation57_spill] sm:$0xff] }
 0x3fb   : > { %v10420_v1 = vsub.f32 %v10418_v26, %v10419_v33 }
 0x3fc   : > { %6488 = vpow2.f32 %v1668_v21  ;;  %v5459_v21 = vld [vmem:[%s7419_s29 + $0x90] sm:$0xf] }
 0x3fd   : > { %6490 = vpow2.f32 %v1670_v35  ;;  %v1258_v11 = vmul.f32 1.442695, %v10420_v1  ;;  %v5460_v35 = vld [vmem:[%s7419_s29 + $0x94] sm:$0xf] }
 0x3fe   : > { %v2544_v24 = vmul.bf16 1035287989, %v5460_v35 }
 0x404   : > { %v1473_v58 = vpop.permute.xlu0 %1472 }
 0x405   : > { %v1540_v61 = vsub.f32 %v7989_v40, %v1473_v58  ;;  %v1541_v60 = vsub.f32 %v10407_v16, %v1473_v58  ;;  %v2539_v40 = vmul.bf16 1035287989, %v5455_v3  ;;  %v10421_v58 = vld [vmem:[#allocation62_spill] sm:$0xff]  ;;  %v2543_v3 = vmul.bf16 1035287989, %v5459_v21 }
 0x406   : > { %v6489_v17 = vpop.eup %6488 }
 0x407   : > { %v6491_v31 = vpop.eup %6490  ;;  %v1664_v47 = vmul.f32 1.442695, %v1540_v61  ;;  %v1666_v62 = vmul.f32 1.442695, %v1541_v60  ;;  %v5487_v12 = vcombine.low %v2539_v40, %v2540_v51  ;;  %v10422_v61 = vld [vmem:[#allocation64_spill] sm:$0xff]  ;;  %v10426_v51 = vld [vmem:[#allocation61_spill] sm:$0xff]  ;;  %v5489_v10 = vcombine.low %v2543_v3, %v2544_v24 }
 0x408   : > { %v8540_v48 = vadd.f32 %v6491_v31, %v6489_v17  ;;  %v10423_v16 = vsub.f32 %v10421_v58, %v10422_v61  ;;  %v10425_v40 = vld [vmem:[#allocation60_spill] sm:$0xff]  ;;  %v6772_v3 = vld [vmem:[%s7433_s30 + $0x58] sm:$0xff]  }
 0x409   : > { %6492 = vpow2.f32 %v1664_v47  ;;  %v1674_v61 = vld [vmem:[#allocation3 + $0x10] sm:$0xff] }
 0x40a   : > { %6494 = vpow2.f32 %v1666_v62  ;;  %v1264_v60 = vmul.f32 1.442695, %v10423_v16 }
 0x40b   : > { %6496 = vpow2.f32 %v1256_v18  ;;  %v5461_v18 = vld [vmem:[%s7419_s29 + $0x98] sm:$0xf] }
 0x40c   : > { %6498 = vpow2.f32 %v1260_v28  ;;  %v10437_v28 = vsub.f32 %v10435_v29, %v10436_v55  ;;  %v2545_v16 = vmul.bf16 1035287989, %v5461_v18 }
 0x40d   : > { %6500 = vpow2.f32 %v1258_v11 }
 0x40e   : > { %6502 = vpow2.f32 %v1264_v60  ;;  %v1266_v26 = vmul.f32 1.442695, %v10437_v28 }
 0x40f   : > { %v5897_v53 = vpop.f32.mrb[0].mxu1 }
 0x410   : > { %v5898_v59 = vpop.f32.mrb[1].mxu1 }
 0x411   : > { %v8544_v49 = vadd.f32 %v5898_v59, %v5897_v53  ;;  %v5900_v7 = vpop.f32.mrb[2].mxu1  ;;  %v6767_v53 = vld [vmem:[%s7433_s30] sm:$0xff]  }
 0x412   : > { %v5901_v27 = vpop.f32.mrb[3].mxu1 }
 0x413   : > { %10408 = vst [vmem:[#allocation42_spill] sm:$0xff] %v8544_v49  ;;  %v6493_v45 = vpop.eup %6492  ;;  %v8546_v8 = vadd.f32 %v5901_v27, %v5900_v7  ;;  %v6768_v7 = vld [vmem:[%s7433_s30 + $0x48] sm:$0xff]   ;;  %v10427_v27 = vsub.f32 %v10425_v40, %v10426_v51 }
 0x414   : > { %v6495_v22 = vpop.eup %6494  ;;  %v2151_v15 = vpack.c.bf16 %v6489_v17, %v6493_v45 }
 0x415   : > { %10409 = vst [vmem:[#allocation34_spill] sm:$0xff] %v8546_v8  ;;  %v2152_v19 = vpack.c.bf16 %v6491_v31, %v6495_v22  ;;  %v8548_v25 = vadd.f32 %v6495_v22, %v6493_v45  ;;  %v1262_v45 = vmul.f32 1.442695, %v10427_v27  ;;  %v8582_v5 = vpop.eup %6496 }
 0x416   : > { %v1704_v1 = vmul.f32 %v8582_v5, %v1672_v37  ;;  %v8595_v11 = vpop.eup %6498  ;;  %v1676_v37 = vld [vmem:[#allocation3 + $0x20] sm:$0xff] }
 0x417   : > { %v5903_v50 = vpop.f32.mrb[4].mxu1  ;;  %2401 = vmatprep.mubr.bf16.mxu1 %v2152_v19  ;;  %v10430_v19 = vld [vmem:[#allocation68_spill] sm:$0xff]  ;;  %6504 = vpow2.f32 %v1262_v45  ;;  %v8603_v24 = vpop.eup %6500  ;;  %v1706_v51 = vmul.f32 %v8595_v11, %v1674_v61  ;;  %v10443_v45 = vld [vmem:[#allocation67_spill] sm:$0xff] }
 0x418   : > { %v5904_v32 = vpop.f32.mrb[5].mxu1  ;;  %2402 = vmatmul.mubr.bf16.gmra.mrb[60].mxu1 %v2151_v15  ;;  %v10429_v15 = vld [vmem:[#allocation66_spill] sm:$0xff]  ;;  %v8610_v27 = vpop.eup %6502 }
 0x419   : > { %v8555_v54 = vadd.f32 %v5904_v32, %v5903_v50  ;;  %v5906_v38 = vpop.f32.mrb[6].mxu1  ;;  %6009 = vmatprep.mubr.bf16.mxu1 %v5487_v12  ;;  %v5462_v50 = vld [vmem:[%s7419_s29 + $0x9c] sm:$0xf]  ;;  %v6770_v32 = vld [vmem:[%s7433_s30 + $0x50] sm:$0xff]   ;;  %v1708_v61 = vmul.f32 %v8610_v27, %v1676_v37  ;;  %v10454_v37 = vld [vmem:[#allocation82_spill] sm:$0xff] }
 0x41a   : > { %v5907_v30 = vpop.f32.mrb[7].mxu1  ;;  %v2546_v60 = vmul.bf16 1035287989, %v5462_v50  ;;  %v6773_v50 = vld [vmem:[%s7433_s30 + $0x18] sm:$0xff]  }
 0x41b   : > { %10413 = vst [vmem:[#allocation35_spill] sm:$0xff] %v8555_v54  ;;  %v8560_v36 = vadd.f32 %v5907_v30, %v5906_v38  ;;  %v10432_v38 = vld [vmem:[#allocation70_spill] sm:$0xff] }
 0x41c   : > { %v10434_v14 = vsub.f32 %v10432_v38, %v10433_v39  ;;  %v8615_v18 = vcombine.low %v2545_v16, %v2546_v60  ;;  %v5463_v38 = vld [vmem:[%s7419_s29 + $0xa0] sm:$0xf]  ;;  %v5464_v39 = vld [vmem:[%s7419_s29 + $0xa4] sm:$0xf] }
 0x41d   : > { %10417 = vst [vmem:[#allocation45_spill] sm:$0xff] %v8560_v36 }
 0x41e   : > { %v1272_v30 = vmul.f32 1.442695, %v10434_v14  ;;  %v6774_v14 = vld [vmem:[%s7433_s30 + $0x60] sm:$0xff]  }
 0x41f   : > { %v5909_v17 = vpop.f32.mrb[8].mxu1 }
 0x420   : > { %v5910_v31 = vpop.f32.mrb[9].mxu1  ;;  %6010 = vmatmul.mubr.bf16.vlgmr.msra.gmra.mrb[64].mxu1 %v5487_v12  ;;  %v10431_v12 = vsub.f32 %v10429_v15, %v10430_v19  ;;  %v10444_v15 = vld [vmem:[#allocation69_spill] sm:$0xff] }
 0x421   : > { %v8570_v47 = vadd.f32 %v5910_v31, %v5909_v17  ;;  %v5912_v62 = vpop.f32.mrb[10].mxu1  ;;  %6011 = vmatprep.mubr.bf16.mxu1 %v5488_v56  ;;  %6161 = vmatpush3.bf16.msra.mxu1 %v6767_v53  ;;  %v6771_v17 = vld [vmem:[%s7433_s30 + $0x10] sm:$0xff]   ;;  %v10440_v53 = vld [vmem:[#allocation74_spill] sm:$0xff]  ;;  %v10445_v19 = vsub.f32 %v10443_v45, %v10444_v15  ;;  %v8630_v60 = vpop.eup %6504 }
 0x422   : > { %v5913_v59 = vpop.f32.mrb[11].mxu1  ;;  %6154 = vmatprep.subr.bf16.mxu1 %v6768_v7  ;;  %v1268_v44 = vmul.f32 1.442695, %v10431_v12  ;;  %v1678_v15 = vld [vmem:[#allocation3 + $0x30] sm:$0xff] }
 0x423   : > { %10424 = vst [vmem:[#allocation46_spill] sm:$0xff] %v8570_v47  ;;  %v8577_v22 = vadd.f32 %v5913_v59, %v5912_v62  ;;  %v10441_v59 = vld [vmem:[#allocation76_spill] sm:$0xff]  ;;  %v1270_v12 = vmul.f32 1.442695, %v10445_v19  ;;  %v6776_v19 = vld [vmem:[%s7433_s30 + $0x68] sm:$0xff]  }
 0x424   : > { %6506 = vpow2.f32 %v1268_v44  ;;  %v10442_v7 = vsub.f32 %v10440_v53, %v10441_v59  ;;  %v2547_v53 = vmul.bf16 1035287989, %v5463_v38  ;;  %v2548_v59 = vmul.bf16 1035287989, %v5464_v39  ;;  %v10456_v39 = vld [vmem:[#allocation78_spill] sm:$0xff] }
 0x425   : > { %10428 = vst [vmem:[#allocation36_spill] sm:$0xff] %v8577_v22  ;;  %6162 = vmatpush3.bf16.msra.mxu1 %v6769_v13  ;;  %6508 = vpow2.f32 %v1272_v30  ;;  %v1673_v13 = vld [vmem:[#allocation3 + $0x8] sm:$0xff] }
 0x426   : > { %6155 = vmatprep.subr.bf16.mxu1 %v6770_v32  ;;  %v1276_v40 = vmul.f32 1.442695, %v10442_v7  ;;  %6510 = vpow2.f32 %v1266_v26  ;;  %v10446_v30 = vld [vmem:[#allocation75_spill] sm:$0xff]  ;;  %v1705_v16 = vmul.f32 %v8603_v24, %v1673_v13  ;;  %v6775_v7 = vld [vmem:[%s7433_s30 + $0x20] sm:$0xff]   ;;  %v10455_v13 = vsub.f32 %v10454_v37, %v8165_v52 }
 0x427   : > { %v5915_v23 = vpop.f32.mrb[12].mxu1  ;;  %v10449_v26 = vld [vmem:[#allocation71_spill] sm:$0xff]  ;;  %v8653_v52 = vcombine.low %v2547_v53, %v2548_v59  ;;  %v10462_v59 = vld [vmem:[#allocation84_spill] sm:$0xff] }
 0x428   : > { %v5916_v33 = vpop.f32.mrb[13].mxu1  ;;  %6012 = vmatmul.mubr.bf16.gmra.mrb[68].mxu1 %v5488_v56  ;;  %6512 = vpow2.f32 %v1276_v40 }
 0x429   : > { %v8597_v21 = vadd.f32 %v5916_v33, %v5915_v23  ;;  %v5918_v35 = vpop.f32.mrb[14].mxu1  ;;  %v1738_v58 = vpop.xlane.xlu1 %1737  ;;  %6013 = vmatprep.mubr.bf16.mxu1 %v5489_v10  ;;  %6163 = vmatpush3.bf16.msra.mxu1 %v6771_v17  ;;  %v10447_v23 = vld [vmem:[#allocation77_spill] sm:$0xff]  ;;  %6514 = vpow2.f32 %v1270_v12 }
 0x42a   : > { %v5919_v31 = vpop.f32.mrb[15].mxu1  ;;  %v1832_v62 = vadd.f32 %v1738_v58, %v1704_v1  ;;  %6156 = vmatprep.subr.bf16.mxu1 %v6772_v3  ;;  %v10448_v29 = vsub.f32 %v10446_v30, %v10447_v23  ;;  %v10450_v33 = vld [vmem:[#allocation73_spill] sm:$0xff] }
 0x42b   : > { %10438 = vst [vmem:[#allocation37_spill] sm:$0xff] %v8597_v21  ;;  %v8601_v56 = vadd.f32 %v5919_v31, %v5918_v35  ;;  %v10451_v1 = vsub.f32 %v10449_v26, %v10450_v33  ;;  %v1675_v3 = vld [vmem:[#allocation3 + $0x18] sm:$0xff] }
 0x42c   : > { %1865 = vst.msk [vmem:[#allocation3] sm:$0xff] %vm1864_vm1, %v1832_v62  ;;  %v1278_v55 = vmul.f32 1.442695, %v10448_v29 }
 0x42d   : > { %10439 = vst [vmem:[#allocation49_spill] sm:$0xff] %v8601_v56  ;;  %v1744_v44 = vpop.xlane.xlu1 %1743  ;;  %6164 = vmatpush3.bf16.msra.mxu1 %v6773_v50  ;;  %v1274_v35 = vmul.f32 1.442695, %v10451_v1  ;;  %v1284_v50 = vmul.f32 1.442695, %v10455_v13 }
 0x42e   : > { %v1834_v32 = vadd.f32 %v1744_v44, %v1706_v51  ;;  %6157 = vmatprep.subr.bf16.mxu1 %v6774_v14  ;;  %6516 = vpow2.f32 %v1278_v55  ;;  %v10457_v14 = vld [vmem:[#allocation80_spill] sm:$0xff]  ;;  %v1680_v55 = vld [vmem:[#allocation3 + $0x40] sm:$0xff]  ;;  %v5465_v1 = vld [vmem:[%s7419_s29 + $0xa8] sm:$0xf] }
 0x42f   : > { %v5921_v28 = vpop.f32.mrb[16].mxu1  ;;  %6518 = vpow2.f32 %v1274_v35  ;;  %v10458_v30 = vsub.f32 %v10456_v39, %v10457_v14  ;;  %v6779_v14 = vld [vmem:[%s7433_s30 + $0x30] sm:$0xff]  }
 0x430   : > { %1867 = vst.msk [vmem:[#allocation3 + $0x10] sm:$0xff] %vm1864_vm1, %v1834_v32  ;;  %v5922_v58 = vpop.f32.mrb[17].mxu1  ;;  %6014 = vmatmul.mubr.bf16.gmra.mrb[72].mxu1 %v5489_v10  ;;  %v8636_v10 = vpop.eup %6506  ;;  %v1707_v32 = vmul.f32 %v8630_v60, %v1675_v3  ;;  %v1677_v3 = vld [vmem:[#allocation3 + $0x28] sm:$0xff]  ;;  %6520 = vpow2.f32 %v1284_v50  ;;  %v2549_v50 = vmul.bf16 1035287989, %v5465_v1  ;;  %v1679_v1 = vld [vmem:[#allocation3 + $0x38] sm:$0xff] }
 0x431   : > { %v8632_v17 = vadd.f32 %v5922_v58, %v5921_v28  ;;  %v5924_v31 = vpop.f32.mrb[18].mxu1  ;;  %v1750_v62 = vpop.xlane.xlu1 %1749  ;;  %6015 = vmatprep.mubr.bf16.mxu1 %v8615_v18  ;;  %6165 = vmatpush3.bf16.msra.mxu1 %v6775_v7  ;;  %v1280_v23 = vmul.f32 1.442695, %v10458_v30  ;;  %v1710_v29 = vmul.f32 %v8636_v10, %v1678_v15  ;;  %v6777_v28 = vld [vmem:[%s7433_s30 + $0x28] sm:$0xff]  }
 0x432   : > { %v5925_v40 = vpop.f32.mrb[19].mxu1  ;;  %v1836_v51 = vadd.f32 %v1750_v62, %v1708_v61  ;;  %v1741_v45 = vpop.xlane.xlu0 %1740  ;;  %6158 = vmatprep.subr.bf16.mxu1 %v6776_v19  ;;  %v5466_v58 = vld [vmem:[%s7419_s29 + $0xac] sm:$0xf]  ;;  %v6778_v61 = vld [vmem:[%s7433_s30 + $0x70] sm:$0xff]  }
 0x433   : > { %10452 = vst [vmem:[#allocation50_spill] sm:$0xff] %v8632_v17  ;;  %v8639_v12 = vadd.f32 %v5925_v40, %v5924_v31  ;;  %v1833_v44 = vadd.f32 %v1741_v45, %v1705_v16  ;;  %v8646_v38 = vpop.eup %6508  ;;  %v10459_v7 = vld [vmem:[#allocation79_spill] sm:$0xff]  ;;  %v10460_v40 = vld [vmem:[#allocation81_spill] sm:$0xff]  ;;  %v10463_v45 = vld [vmem:[#allocation86_spill] sm:$0xff]  ;;  %6522 = vpow2.f32 %v1280_v23  ;;  %v2550_v39 = vmul.bf16 1035287989, %v5466_v58 }
 0x434   : > { %1869 = vst.msk [vmem:[#allocation3 + $0x20] sm:$0xff] %vm1864_vm1, %v1836_v51  ;;  %v8659_v35 = vpop.eup %6510  ;;  %v10461_v51 = vsub.f32 %v10459_v7, %v10460_v40  ;;  %v10464_v15 = vsub.f32 %v10462_v59, %v10463_v45  ;;  %v1712_v37 = vmul.f32 %v8646_v38, %v1680_v55  ;;  %v1682_v23 = vld [vmem:[#allocation3 + $0x50] sm:$0xff]  ;;  %v10467_v58 = vld [vmem:[#allocation87_spill] sm:$0xff] }
 0x435   : > { %10453 = vst [vmem:[#allocation38_spill] sm:$0xff] %v8639_v12  ;;  %1866 = vst.msk [vmem:[#allocation3 + $0x8] sm:$0xff] %vm1864_vm1, %v1833_v44  ;;  %6166 = vmatpush3.bf16.msra.mxu1 %v6777_v28  ;;  %v8675_v30 = vpop.eup %6512  ;;  %v1709_v55 = vmul.f32 %v8659_v35, %v1677_v3  ;;  %v6780_v28 = vld [vmem:[%s7433_s30 + $0x78] sm:$0xff]   ;;  %v10469_v40 = vld [vmem:[#allocation83_spill] sm:$0xff] }
 0x436   : > { %v1756_v26 = vpop.xlane.xlu1 %1755  ;;  %v1747_v33 = vpop.xlane.xlu0 %1746  ;;  %6159 = vmatprep.subr.bf16.mxu1 %v6778_v61  ;;  %v1282_v53 = vmul.f32 1.442695, %v10461_v51  ;;  %v1288_v19 = vmul.f32 1.442695, %v10464_v15  ;;  %v10470_v51 = vsub.f32 %v10469_v40, %v8172_v34  ;;  %v1714_v45 = vmul.f32 %v8675_v30, %v1682_v23  ;;  %v1683_v15 = vld [vmem:[#allocation3 + $0x58] sm:$0xff] }
 0x437   : > { %v1838_v16 = vadd.f32 %v1756_v26, %v1710_v29  ;;  %v1835_v31 = vadd.f32 %v1747_v33, %v1707_v32  ;;  %v5927_v62 = vpop.f32.mrb[20].mxu1  ;;  %v8679_v26 = vpop.eup %6514 }
 0x438   : > { %v5928_v44 = vpop.f32.mrb[21].mxu1  ;;  %6016 = vmatmul.mubr.bf16.gmra.mrb[76].mxu1 %v8615_v18  ;;  %6524 = vpow2.f32 %v1288_v19  ;;  %v8686_v3 = vpop.eup %6516  ;;  %v1286_v59 = vmul.f32 1.442695, %v10470_v51  ;;  %v6781_v19 = vld [vmem:[%s7433_s30 + $0x38] sm:$0xff]   ;;  %v10475_v51 = vld [vmem:[#allocation88_spill] sm:$0xff] }
 0x439   : > { %1871 = vst.msk [vmem:[#allocation3 + $0x30] sm:$0xff] %vm1864_vm1, %v1838_v16  ;;  %1868 = vst.msk [vmem:[#allocation3 + $0x18] sm:$0xff] %vm1864_vm1, %v1835_v31  ;;  %v8671_v13 = vadd.f32 %v5928_v44, %v5927_v62  ;;  %v5930_v32 = vpop.f32.mrb[22].mxu1  ;;  %6017 = vmatprep.mubr.bf16.mxu1 %v8653_v52  ;;  %6167 = vmatpush3.bf16.msra.mxu1 %v6779_v14  ;;  %v10468_v31 = vsub.f32 %v10467_v58, %v8204_v6  ;;  %6526 = vpow2.f32 %v1282_v53  ;;  %v5468_v14 = vld [vmem:[%s7419_s29 + $0xb4] sm:$0xf]  ;;  %v8698_v53 = vpop.eup %6518 }
 0x43a   : > { %v5931_v18 = vpop.f32.mrb[23].mxu1  ;;  %v1762_v29 = vpop.xlane.xlu1 %1761  ;;  %6160 = vmatprep.subr.bf16.mxu1 %v6780_v28  ;;  %v5492_v44 = vcombine.low %v2549_v50, %v2550_v39  ;;  %v1715_v39 = vmul.f32 %v8686_v3, %v1683_v15 }
 0x43b   : > { %10465 = vst [vmem:[#allocation39_spill] sm:$0xff] %v8671_v13  ;;  %v8681_v33 = vadd.f32 %v5931_v18, %v5930_v32  ;;  %v1840_v61 = vadd.f32 %v1762_v29, %v1712_v37  ;;  %v1753_v16 = vpop.xlane.xlu0 %1752  ;;  %v1292_v62 = vmul.f32 1.442695, %v10468_v31  ;;  %v1711_v37 = vmul.f32 %v8679_v26, %v1679_v1  ;;  %v5467_v32 = vld [vmem:[%s7419_s29 + $0xb0] sm:$0xf]  ;;  %v1681_v29 = vld [vmem:[#allocation3 + $0x48] sm:$0xff] }
 0x43c   : > { %v1837_v7 = vadd.f32 %v1753_v16, %v1709_v55  ;;  %v10471_v55 = vld [vmem:[#allocation89_spill] sm:$0xff]  ;;  %v2551_v58 = vmul.bf16 1035287989, %v5467_v32  ;;  %v2552_v31 = vmul.bf16 1035287989, %v5468_v14 }
 0x43d   : > { %10466 = vst [vmem:[#allocation40_spill] sm:$0xff] %v8681_v33  ;;  %1873 = vst.msk [vmem:[#allocation3 + $0x40] sm:$0xff] %vm1864_vm1, %v1840_v61  ;;  %6168 = vmatpush3.bf16.msra.mxu1 %v6781_v19  ;;  %6528 = vpow2.f32 %v1292_v62  ;;  %v10472_v23 = vsub.f32 %v10471_v55, %v8222_v20  ;;  %v10473_v61 = vld [vmem:[#allocation85_spill] sm:$0xff]  ;;  %v8709_v62 = vpop.eup %6520  ;;  %v1684_v19 = vld [vmem:[#allocation3 + $0x60] sm:$0xff] }
 0x43e   : > { %1870 = vst.msk [vmem:[#allocation3 + $0x28] sm:$0xff] %vm1864_vm1, %v1837_v7  ;;  %v1768_v6 = vpop.xlane.xlu1 %1767  ;;  %6530 = vpow2.f32 %v1286_v59  ;;  %v10474_v16 = vsub.f32 %v10473_v61, %v8190_v2  ;;  %v1713_v7 = vmul.f32 %v8698_v53, %v1681_v29  ;;  %v8713_v40 = vpop.eup %6522  ;;  %v10476_v59 = vsub.f32 %v10475_v51, %v8211_v46 }
 0x43f   : > { %v1842_v18 = vadd.f32 %v1768_v6, %v1714_v45  ;;  %v1759_v34 = vpop.xlane.xlu0 %1758  ;;  %v1296_v28 = vmul.f32 1.442695, %v10472_v23  ;;  %v10477_v6 = vld [vmem:[#allocation92_spill] sm:$0xff]  ;;  %v5493_v29 = vcombine.low %v2551_v58, %v2552_v31  ;;  %v1716_v23 = vmul.f32 %v8713_v40, %v1684_v19 }
 0x440   : > { %v1839_v50 = vadd.f32 %v1759_v34, %v1711_v37  ;;  %6018 = vmatmul.mubr.bf16.gmra.mrb[80].mxu1 %v8653_v52  ;;  %v1290_v1 = vmul.f32 1.442695, %v10474_v16  ;;  %v1686_v52 = vld [vmem:[#allocation3 + $0x70] sm:$0xff]  ;;  %v1294_v2 = vmul.f32 1.442695, %v10476_v59  ;;  %v10478_v37 = vld [vmem:[#allocation94_spill] sm:$0xff] }
 0x441   : > { %1875 = vst.msk [vmem:[#allocation3 + $0x50] sm:$0xff] %vm1864_vm1, %v1842_v18  ;;  %6019 = vmatprep.mubr.bf16.mxu1 %v5492_v44  ;;  %6532 = vpow2.f32 %v1296_v28  ;;  %v10479_v32 = vsub.f32 %v10477_v6, %v10478_v37  ;;  %v1718_v34 = vmul.f32 %v8709_v62, %v1686_v52  ;;  %v5469_v28 = vld [vmem:[%s7419_s29 + $0xb8] sm:$0xf]  ;;  %v10482_v52 = vld [vmem:[#allocation98_spill] sm:$0xff] }
 0x442   : > { %1872 = vst.msk [vmem:[#allocation3 + $0x38] sm:$0xff] %vm1864_vm1, %v1839_v50  ;;  %v1771_v20 = vpop.xlane.xlu1 %1770  ;;  %6534 = vpow2.f32 %v1290_v1  ;;  %v8723_v55 = vpop.eup %6524  ;;  %v1688_v50 = vld [vmem:[#allocation3 + $0x80] sm:$0xff] }
 0x443   : > { %v1843_v45 = vadd.f32 %v1771_v20, %v1715_v39  ;;  %v1765_v15 = vpop.xlane.xlu0 %1764  ;;  %v1300_v14 = vmul.f32 1.442695, %v10479_v32  ;;  %10480 = vst [vmem:[#allocation41_spill] sm:$0xff] %v8723_v55  ;;  %v5470_v39 = vld [vmem:[%s7419_s29 + $0xbc] sm:$0xf]  ;;  %v8729_v61 = vpop.eup %6526  ;;  %6536 = vpow2.f32 %v1294_v2  ;;  %v1685_v20 = vld [vmem:[#allocation3 + $0x68] sm:$0xff]  ;;  %v1720_v6 = vmul.f32 %v8723_v55, %v1688_v50 }
 0x444   : > { %v1841_v18 = vadd.f32 %v1765_v15, %v1713_v7  ;;  %v10481_v7 = vld [vmem:[#allocation96_spill] sm:$0xff]  ;;  %v10484_v59 = vld [vmem:[#allocation90_spill] sm:$0xff]  ;;  %v2553_v2 = vmul.bf16 1035287989, %v5469_v28  ;;  %v2554_v37 = vmul.bf16 1035287989, %v5470_v39 }
 0x445   : > { %1876 = vst.msk [vmem:[#allocation3 + $0x58] sm:$0xff] %vm1864_vm1, %v1843_v45  ;;  %6538 = vpow2.f32 %v1300_v14  ;;  %v10483_v58 = vsub.f32 %v10481_v7, %v10482_v52  ;;  %v10485_v45 = vld [vmem:[#allocation91_spill] sm:$0xff]  ;;  %v1687_v28 = vld [vmem:[#allocation3 + $0x78] sm:$0xff]  ;;  %v10491_v39 = vld [vmem:[#allocation100_spill] sm:$0xff] }
 0x446   : > { %1874 = vst.msk [vmem:[#allocation3 + $0x48] sm:$0xff] %vm1864_vm1, %v1841_v18  ;;  %v1780_v46 = vpop.xlane.xlu1 %1779  ;;  %v10486_v15 = vsub.f32 %v10484_v59, %v10485_v45  ;;  %v1717_v18 = vmul.f32 %v8729_v61, %v1685_v20  ;;  %v10492_v52 = vsub.f32 %v10491_v39, %v8285_v63  ;;  %v5494_v59 = vcombine.low %v2553_v2, %v2554_v37 }
 0x447   : > { %v1846_v16 = vadd.f32 %v1780_v46, %v1718_v34  ;;  %v1774_v1 = vpop.xlane.xlu0 %1773  ;;  %v1304_v31 = vmul.f32 1.442695, %v10483_v58  ;;  %v8739_v32 = vpop.eup %6528  ;;  %v1690_v34 = vld [vmem:[#allocation3 + $0x90] sm:$0xff]  ;;  %v10488_v46 = vld [vmem:[#allocation93_spill] sm:$0xff] }
 0x448   : > { %v1844_v51 = vadd.f32 %v1774_v1, %v1716_v23  ;;  %6020 = vmatmul.mubr.bf16.gmra.mrb[84].mxu1 %v5492_v44  ;;  %v1298_v19 = vmul.f32 1.442695, %v10486_v15  ;;  %10487 = vst [vmem:[#allocation43_spill] sm:$0xff] %v8739_v32  ;;  %v8743_v44 = vpop.eup %6530  ;;  %v10489_v23 = vld [vmem:[#allocation95_spill] sm:$0xff]  ;;  %v1308_v58 = vmul.f32 1.442695, %v10492_v52  ;;  %v1722_v20 = vmul.f32 %v8739_v32, %v1690_v34 }
 0x449   : > { %1879 = vst.msk [vmem:[#allocation3 + $0x70] sm:$0xff] %vm1864_vm1, %v1846_v16  ;;  %6021 = vmatprep.mubr.bf16.mxu1 %v5493_v29  ;;  %v10490_v1 = vsub.f32 %v10488_v46, %v10489_v23  ;;  %6540 = vpow2.f32 %v1304_v31  ;;  %v5471_v31 = vld [vmem:[%s7419_s29 + $0xc0] sm:$0xf]  ;;  %v5472_v46 = vld [vmem:[%s7419_s29 + $0xc4] sm:$0xf] }
 0x44a   : > { %1877 = vst.msk [vmem:[#allocation3 + $0x60] sm:$0xff] %vm1864_vm1, %v1844_v51  ;;  %v1786_v14 = vpop.xlane.xlu1 %1785  ;;  %6542 = vpow2.f32 %v1298_v19 }
 0x44b   : > { %v1302_v7 = vmul.f32 1.442695, %v10490_v1  ;;  %v1848_v16 = vadd.f32 %v1786_v14, %v1720_v6  ;;  %v1777_v50 = vpop.xlane.xlu0 %1776  ;;  %v8753_v45 = vpop.eup %6532  ;;  %v1719_v6 = vmul.f32 %v8743_v44, %v1687_v28  ;;  %v1692_v14 = vld [vmem:[#allocation3 + $0xa0] sm:$0xff]  ;;  %v10495_v1 = vld [vmem:[#allocation103_spill] sm:$0xff] }
 0x44c   : > { %v1845_v51 = vadd.f32 %v1777_v50, %v1717_v18  ;;  %10493 = vst [vmem:[#allocation44_spill] sm:$0xff] %v8753_v45  ;;  %v8759_v23 = vpop.eup %6534  ;;  %v1689_v18 = vld [vmem:[#allocation3 + $0x88] sm:$0xff]  ;;  %v10496_v2 = vsub.f32 %v10495_v1, %v8307_v57  ;;  %v10498_v50 = vld [vmem:[#allocation97_spill] sm:$0xff] }
 0x44d   : > { %1881 = vst.msk [vmem:[#allocation3 + $0x80] sm:$0xff] %vm1864_vm1, %v1848_v16  ;;  %10494 = vst [vmem:[#allocation47_spill] sm:$0xff] %v8759_v23  ;;  %6544 = vpow2.f32 %v1302_v7  ;;  %v8764_v16 = vpop.eup %6536  ;;  %v10499_v28 = vld [vmem:[#allocation99_spill] sm:$0xff]  ;;  %v1724_v7 = vmul.f32 %v8753_v45, %v1692_v14  ;;  %v1691_v1 = vld [vmem:[#allocation3 + $0x98] sm:$0xff] }
 0x44e   : > { %1878 = vst.msk [vmem:[#allocation3 + $0x68] sm:$0xff] %vm1864_vm1, %v1845_v51  ;;  %v1792_v15 = vpop.xlane.xlu1 %1791  ;;  %6546 = vpow2.f32 %v1308_v58  ;;  %v1312_v37 = vmul.f32 1.442695, %v10496_v2  ;;  %10497 = vst [vmem:[#allocation48_spill] sm:$0xff] %v8764_v16  ;;  %v10500_v39 = vsub.f32 %v10498_v50, %v10499_v28  ;;  %v2555_v51 = vmul.bf16 1035287989, %v5471_v31 }
 0x44f   : > { %v1850_v63 = vadd.f32 %v1792_v15, %v1722_v20  ;;  %v1783_v19 = vpop.xlane.xlu0 %1782  ;;  %v2556_v20 = vmul.bf16 1035287989, %v5472_v46  ;;  %v8771_v58 = vpop.eup %6538  ;;  %v1694_v15 = vld [vmem:[#allocation3 + $0xb0] sm:$0xff]  ;;  %v10502_v2 = vld [vmem:[#allocation101_spill] sm:$0xff] }
 0x450   : > { %v1847_v34 = vadd.f32 %v1783_v19, %v1719_v6  ;;  %6022 = vmatmul.mubr.bf16.gmra.mrb[88].mxu1 %v5493_v29  ;;  %v1306_v52 = vmul.f32 1.442695, %v10500_v39  ;;  %10501 = vst [vmem:[#allocation52_spill] sm:$0xff] %v8771_v58  ;;  %v1721_v29 = vmul.f32 %v8759_v23, %v1689_v18  ;;  %6548 = vpow2.f32 %v1312_v37 }
 0x451   : > { %1883 = vst.msk [vmem:[#allocation3 + $0x90] sm:$0xff] %vm1864_vm1, %v1850_v63  ;;  %6023 = vmatprep.mubr.bf16.mxu1 %v5494_v59  ;;  %v10503_v63 = vld [vmem:[#allocation102_spill] sm:$0xff]  ;;  %v1726_v46 = vmul.f32 %v8771_v58, %v1694_v15  ;;  %v1723_v39 = vmul.f32 %v8764_v16, %v1691_v1 }
 0x452   : > { %1880 = vst.msk [vmem:[#allocation3 + $0x78] sm:$0xff] %vm1864_vm1, %v1847_v34  ;;  %v1798_v57 = vpop.xlane.xlu1 %1797  ;;  %v10504_v50 = vsub.f32 %v10502_v2, %v10503_v63  ;;  %6550 = vpow2.f32 %v1306_v52  ;;  %v5495_v34 = vcombine.low %v2555_v51, %v2556_v20  ;;  %v1693_v52 = vld [vmem:[#allocation3 + $0xa8] sm:$0xff]  ;;  %v10508_v51 = vld [vmem:[#allocation104_spill] sm:$0xff]  ;;  %v10509_v20 = vld [vmem:[#allocation105_spill] sm:$0xff] }
 0x453   : > { %v1852_v6 = vadd.f32 %v1798_v57, %v1724_v7  ;;  %v1789_v19 = vpop.xlane.xlu0 %1788  ;;  %v8780_v28 = vpop.eup %6540  ;;  %v1696_v7 = vld [vmem:[#allocation3 + $0xc0] sm:$0xff]  ;;  %v5473_v57 = vld [vmem:[%s7419_s29 + $0xc8] sm:$0xf] }
 0x454   : > { %v1310_v14 = vmul.f32 1.442695, %v10504_v50  ;;  %v1849_v31 = vadd.f32 %v1789_v19, %v1721_v29  ;;  %10505 = vst [vmem:[#allocation53_spill] sm:$0xff] %v8780_v28  ;;  %v8786_v2 = vpop.eup %6542  ;;  %v10510_v19 = vsub.f32 %v10508_v51, %v10509_v20  ;;  %v1728_v1 = vmul.f32 %v8780_v28, %v1696_v7  ;;  %v5475_v20 = vld [vmem:[%s7419_s29 + $0xd0] sm:$0xf] }
 0x455   : > { %1885 = vst.msk [vmem:[#allocation3 + $0xa0] sm:$0xff] %vm1864_vm1, %v1852_v6  ;;  %10506 = vst [vmem:[#allocation51_spill] sm:$0xff] %v8786_v2  ;;  %v2557_v50 = vmul.bf16 1035287989, %v5473_v57 }
 0x456   : > { %1882 = vst.msk [vmem:[#allocation3 + $0x88] sm:$0xff] %vm1864_vm1, %v1849_v31  ;;  %v1804_v18 = vpop.xlane.xlu1 %1803  ;;  %6552 = vpow2.f32 %v1310_v14  ;;  %v1314_v63 = vmul.f32 1.442695, %v10510_v19  ;;  %v2558_v31 = vmul.bf16 1035287989, %v5474_v9 }
 0x457   : > { %v1854_v37 = vadd.f32 %v1804_v18, %v1726_v46  ;;  %v1795_v29 = vpop.xlane.xlu0 %1794  ;;  %v8788_v15 = vpop.eup %6544  ;;  %v1698_v46 = vld [vmem:[#allocation3 + $0xd0] sm:$0xff] }
 0x458   : > { %v1851_v6 = vadd.f32 %v1795_v29, %v1723_v39  ;;  %6024 = vmatmul.mubr.bf16.gmra.mrb[92].mxu1 %v5494_v59  ;;  %10507 = vst [vmem:[#allocation54_spill] sm:$0xff] %v8788_v15  ;;  %v8795_v42 = vpop.eup %6546  ;;  %v1725_v59 = vmul.f32 %v8786_v2, %v1693_v52  ;;  %v1695_v29 = vld [vmem:[#allocation3 + $0xb8] sm:$0xff]  ;;  %6554 = vpow2.f32 %v1314_v63  ;;  %v5496_v9 = vcombine.low %v2557_v50, %v2558_v31  ;;  %v1700_v52 = vld [vmem:[#allocation3 + $0xe0] sm:$0xff]  ;;  %v5476_v19 = vld [vmem:[%s7419_s29 + $0xd4] sm:$0xf] }
 0x459   : > { %1887 = vst.msk [vmem:[#allocation3 + $0xb0] sm:$0xff] %vm1864_vm1, %v1854_v37  ;;  %6025 = vmatprep.mubr.bf16.mxu1 %v5495_v34  ;;  %10511 = vst [vmem:[#allocation55_spill] sm:$0xff] %v8795_v42  ;;  %v1730_v7 = vmul.f32 %v8795_v42, %v1698_v46  ;;  %v1697_v63 = vld [vmem:[#allocation3 + $0xc8] sm:$0xff]  ;;  %v2559_v31 = vmul.bf16 1035287989, %v5475_v20 }
 0x45a   : > { %1884 = vst.msk [vmem:[#allocation3 + $0x98] sm:$0xff] %vm1864_vm1, %v1851_v6  ;;  %v1810_v14 = vpop.xlane.xlu1 %1809  ;;  %v8801_v57 = vpop.eup %6548  ;;  %v1727_v6 = vmul.f32 %v8788_v15, %v1695_v29  ;;  %v2560_v46 = vmul.bf16 1035287989, %v5476_v19  ;;  %v5477_v20 = vld [vmem:[%s7419_s29 + $0xd8] sm:$0xf] }
 0x45b   : > { %v1856_v18 = vadd.f32 %v1810_v14, %v1728_v1  ;;  %v1801_v39 = vpop.xlane.xlu0 %1800  ;;  %10512 = vst [vmem:[#allocation58_spill] sm:$0xff] %v8801_v57  ;;  %v1732_v50 = vmul.f32 %v8801_v57, %v1700_v52  ;;  %v5478_v19 = vld [vmem:[%s7419_s29 + $0xdc] sm:$0xf] }
 0x45c   : > { %v1853_v51 = vadd.f32 %v1801_v39, %v1725_v59  ;;  %v8807_v1 = vpop.eup %6550 }
 0x45d   : > { %1889 = vst.msk [vmem:[#allocation3 + $0xc0] sm:$0xff] %vm1864_vm1, %v1856_v18  ;;  %10513 = vst [vmem:[#allocation59_spill] sm:$0xff] %v8807_v1 }
 0x45e   : > { %1886 = vst.msk [vmem:[#allocation3 + $0xa8] sm:$0xff] %vm1864_vm1, %v1853_v51  ;;  %v1816_v37 = vpop.xlane.xlu1 %1815  ;;  %v1729_v51 = vmul.f32 %v8807_v1, %v1697_v63 }
 0x45f   : > { %v1858_v14 = vadd.f32 %v1816_v37, %v1730_v7  ;;  %v1807_v59 = vpop.xlane.xlu0 %1806 }
 0x460   : > { %v1855_v39 = vadd.f32 %v1807_v59, %v1727_v6  ;;  %6026 = vmatmul.mubr.bf16.gmra.mrb[96].mxu1 %v5495_v34  ;;  %v8811_v18 = vpop.eup %6552  ;;  %v1699_v6 = vld [vmem:[#allocation3 + $0xd8] sm:$0xff] }
 0x461   : > { %1891 = vst.msk [vmem:[#allocation3 + $0xd0] sm:$0xff] %vm1864_vm1, %v1858_v14  ;;  %6027 = vmatprep.mubr.bf16.mxu1 %v5496_v9  ;;  %10514 = vst [vmem:[#allocation56_spill] sm:$0xff] %v8811_v18  ;;  %v5497_v14 = vcombine.low %v2559_v31, %v2560_v46  ;;  %v1731_v52 = vmul.f32 %v8811_v18, %v1699_v6 }
 0x462   : > { %1888 = vst.msk [vmem:[#allocation3 + $0xb8] sm:$0xff] %vm1864_vm1, %v1855_v39  ;;  %v1822_v29 = vpop.xlane.xlu1 %1821  ;;  %v8820_v59 = vpop.eup %6554  ;;  %v1701_v39 = vld [vmem:[#allocation3 + $0xe8] sm:$0xff] }
 0x463   : > { %v1860_v7 = vadd.f32 %v1822_v29, %v1732_v50  ;;  %v1813_v37 = vpop.xlane.xlu0 %1812  ;;  %10515 = vst [vmem:[#allocation57_spill] sm:$0xff] %v8820_v59  ;;  %v2561_v50 = vmul.bf16 1035287989, %v5477_v20  ;;  %v2562_v29 = vmul.bf16 1035287989, %v5478_v19 }
 0x464   : > { %v1857_v34 = vadd.f32 %v1813_v37, %v1729_v51  ;;  %v1733_v51 = vmul.f32 %v8820_v59, %v1701_v39 }
 0x465   : > { %1893 = vst.msk [vmem:[#allocation3 + $0xe0] sm:$0xff] %vm1864_vm1, %v1860_v7 }
 0x466   : > { %1890 = vst.msk [vmem:[#allocation3 + $0xc8] sm:$0xff] %vm1864_vm1, %v1857_v34 }
 0x467   : > { %v1819_v13 = vpop.xlane.xlu0 %1818 }
 0x468   : > { %v1859_v33 = vadd.f32 %v1819_v13, %v1731_v52  ;;  %v5933_v17 = vpop.f32.mrb[24].mxu1  ;;  %6028 = vmatmul.mubr.bf16.gmra.mrb[100].mxu1 %v5496_v9  ;;  %v5498_v13 = vcombine.low %v2561_v50, %v2562_v29  ;;  %v5479_v9 = vld [vmem:[%s7419_s29 + $0xe0] sm:$0xf]  ;;  %v5480_v52 = vld [vmem:[%s7419_s29 + $0xe4] sm:$0xf] }
 0x469   : > { %v5934_v63 = vpop.f32.mrb[25].mxu1  ;;  %6029 = vmatprep.mubr.bf16.mxu1 %v5497_v14  ;;  %v2564_v19 = vmul.bf16 1035287989, %v5480_v52  ;;  %v5481_v29 = vld [vmem:[%s7419_s29 + $0xe8] sm:$0xf] }
 0x46a   : > { %1892 = vst.msk [vmem:[#allocation3 + $0xd8] sm:$0xff] %vm1864_vm1, %v1859_v33  ;;  %v8823_v31 = vadd.f32 %v5934_v63, %v5933_v17  ;;  %v5936_v46 = vpop.f32.mrb[26].mxu1  ;;  %v2563_v17 = vmul.bf16 1035287989, %v5479_v9 }
 0x46b   : > { %v1825_v7 = vpop.xlane.xlu0 %1824  ;;  %v5937_v37 = vpop.f32.mrb[27].mxu1 }
 0x46c   : > { %10516 = vst [vmem:[#allocation62_spill] sm:$0xff] %v8823_v31  ;;  %v1861_v6 = vadd.f32 %v1825_v7, %v1733_v51  ;;  %v8826_v34 = vadd.f32 %v5937_v37, %v5936_v46  ;;  %v5499_v50 = vcombine.low %v2563_v17, %v2564_v19  ;;  %v5482_v51 = vld [vmem:[%s7419_s29 + $0xec] sm:$0xf] }
 0x46e   : > { %10517 = vst [vmem:[#allocation64_spill] sm:$0xff] %v8826_v34  ;;  %1894 = vst.msk [vmem:[#allocation3 + $0xe8] sm:$0xff] %vm1864_vm1, %v1861_v6  ;;  %v2566_v6 = vmul.bf16 1035287989, %v5482_v51 }
 0x470   : > { %v5939_v20 = vpop.f32.mrb[28].mxu1  ;;  %6030 = vmatmul.mubr.bf16.gmra.mrb[104].mxu1 %v5497_v14  ;;  %v2565_v14 = vmul.bf16 1035287989, %v5481_v29 }
 0x471   : > { %v5940_v33 = vpop.f32.mrb[29].mxu1  ;;  %6031 = vmatprep.mubr.bf16.mxu1 %v5498_v13 }
 0x472   : > { %v8831_v63 = vadd.f32 %v5940_v33, %v5939_v20  ;;  %v5942_v39 = vpop.f32.mrb[30].mxu1  ;;  %v5483_v33 = vld [vmem:[%s7419_s29 + $0xf0] sm:$0xf] }
 0x473   : > { %v5943_v31 = vpop.f32.mrb[31].mxu1 }
 0x474   : > { %10518 = vst [vmem:[#allocation60_spill] sm:$0xff] %v8831_v63  ;;  %v8833_v46 = vadd.f32 %v5943_v31, %v5942_v39  ;;  %v5500_v31 = vcombine.low %v2565_v14, %v2566_v6  ;;  %v5484_v39 = vld [vmem:[%s7419_s29 + $0xf4] sm:$0xf] }
 0x475   : > { %v2568_v63 = vmul.bf16 1035287989, %v5484_v39 }
 0x476   : > { %10519 = vst [vmem:[#allocation61_spill] sm:$0xff] %v8833_v46 }
 0x478   : > { %v5945_v7 = vpop.f32.mrb[32].mxu1  ;;  %6032 = vmatmul.mubr.bf16.gmra.mrb[108].mxu1 %v5498_v13  ;;  %v2567_v13 = vmul.bf16 1035287989, %v5483_v33 }
 0x479   : > { %v5946_v37 = vpop.f32.mrb[33].mxu1  ;;  %6033 = vmatprep.mubr.bf16.mxu1 %v5499_v50 }
 0x47a   : > { %v8837_v34 = vadd.f32 %v5946_v37, %v5945_v7  ;;  %v5948_v9 = vpop.f32.mrb[34].mxu1  ;;  %v5501_v37 = vcombine.low %v2567_v13, %v2568_v63 }
 0x47b   : > { %v5949_v52 = vpop.f32.mrb[35].mxu1 }
 0x47c   : > { %10520 = vst [vmem:[#allocation66_spill] sm:$0xff] %v8837_v34  ;;  %v8839_v20 = vadd.f32 %v5949_v52, %v5948_v9  ;;  %v5485_v34 = vld [vmem:[%s7419_s29 + $0xf8] sm:$0xf]  ;;  %v5486_v9 = vld [vmem:[%s7419_s29 + $0xfc] sm:$0xf] }
 0x47d   : > { %v2569_v6 = vmul.bf16 1035287989, %v5485_v34 }
 0x47e   : > { %10521 = vst [vmem:[#allocation68_spill] sm:$0xff] %v8839_v20  ;;  %v2570_v20 = vmul.bf16 1035287989, %v5486_v9 }
 0x480   : > { %v5951_v17 = vpop.f32.mrb[36].mxu1  ;;  %6034 = vmatmul.mubr.bf16.gmra.mrb[112].mxu1 %v5499_v50 }
 0x481   : > { %v5952_v19 = vpop.f32.mrb[37].mxu1  ;;  %6035 = vmatprep.mubr.bf16.mxu1 %v5500_v31 }
 0x482   : > { %v8843_v46 = vadd.f32 %v5952_v19, %v5951_v17  ;;  %v5954_v29 = vpop.f32.mrb[38].mxu1  ;;  %v5502_v17 = vcombine.low %v2569_v6, %v2570_v20 }
 0x483   : > { %v5955_v51 = vpop.f32.mrb[39].mxu1 }
 0x484   : > { %10522 = vst [vmem:[#allocation70_spill] sm:$0xff] %v8843_v46  ;;  %v8845_v7 = vadd.f32 %v5955_v51, %v5954_v29 }
 0x486   : > { %10523 = vst [vmem:[#allocation72_spill] sm:$0xff] %v8845_v7 }
 0x488   : > { %v5957_v52 = vpop.f32.mrb[40].mxu1  ;;  %6036 = vmatmul.mubr.bf16.gmra.mrb[116].mxu1 %v5500_v31 }
 0x489   : > { %v5958_v14 = vpop.f32.mrb[41].mxu1  ;;  %6037 = vmatprep.mubr.bf16.mxu1 %v5501_v37 }
 0x48a   : > { %v8849_v50 = vadd.f32 %v5958_v14, %v5957_v52  ;;  %v5960_v12 = vpop.f32.mrb[42].mxu1 }
 0x48b   : > { %v5961_v33 = vpop.f32.mrb[43].mxu1 }
 0x48c   : > { %10524 = vst [vmem:[#allocation63_spill] sm:$0xff] %v8849_v50  ;;  %v8851_v39 = vadd.f32 %v5961_v33, %v5960_v12 }
 0x48e   : > { %10525 = vst [vmem:[#allocation65_spill] sm:$0xff] %v8851_v39 }
 0x490   : > { %v5963_v19 = vpop.f32.mrb[44].mxu1  ;;  %6038 = vmatmul.mubr.bf16.gmra.mrb[120].mxu1 %v5501_v37 }
 0x491   : > { %v5964_v29 = vpop.f32.mrb[45].mxu1  ;;  %6039 = vmatprep.mubr.bf16.mxu1 %v5502_v17 }
 0x492   : > { %v8853_v63 = vadd.f32 %v5964_v29, %v5963_v19  ;;  %v5966_v13 = vpop.f32.mrb[46].mxu1 }
 0x493   : > { %v5967_v51 = vpop.f32.mrb[47].mxu1 }
 0x494   : > { %10526 = vst [vmem:[#allocation74_spill] sm:$0xff] %v8853_v63  ;;  %v8855_v31 = vadd.f32 %v5967_v51, %v5966_v13 }
 0x496   : > { %10527 = vst [vmem:[#allocation76_spill] sm:$0xff] %v8855_v31 }
 0x498   : > { %v5969_v46 = vpop.f32.mrb[48].mxu1  ;;  %6040 = vmatmul.mubr.bf16.gmra.mrb[124].mxu1 %v5502_v17 }
 0x499   : > { %v5970_v34 = vpop.f32.mrb[49].mxu1 }
 0x49a   : > { %v8857_v9 = vadd.f32 %v5970_v34, %v5969_v46  ;;  %v5972_v52 = vpop.f32.mrb[50].mxu1 }
 0x49b   : > { %v5973_v14 = vpop.f32.mrb[51].mxu1 }
 0x49c   : > { %10528 = vst [vmem:[#allocation67_spill] sm:$0xff] %v8857_v9  ;;  %v8859_v12 = vadd.f32 %v5973_v14, %v5972_v52 }
 0x49e   : > { %10529 = vst [vmem:[#allocation69_spill] sm:$0xff] %v8859_v12 }
 0x4a0   : > { %v5975_v20 = vpop.f32.mrb[52].mxu1 }
 0x4a1   : > { %v5976_v6 = vpop.f32.mrb[53].mxu1 }
 0x4a2   : > { %v8861_v37 = vadd.f32 %v5976_v6, %v5975_v20  ;;  %v5978_v33 = vpop.f32.mrb[54].mxu1 }
 0x4a3   : > { %v5979_v19 = vpop.f32.mrb[55].mxu1 }
 0x4a4   : > { %10530 = vst [vmem:[#allocation75_spill] sm:$0xff] %v8861_v37  ;;  %v8863_v29 = vadd.f32 %v5979_v19, %v5978_v33 }
 0x4a6   : > { %10531 = vst [vmem:[#allocation77_spill] sm:$0xff] %v8863_v29 }
 0x4a8   : > { %v5981_v63 = vpop.f32.mrb[56].mxu1 }
 0x4a9   : > { %v5982_v13 = vpop.f32.mrb[57].mxu1 }
 0x4aa   : > { %v8865_v51 = vadd.f32 %v5982_v13, %v5981_v63  ;;  %v5984_v17 = vpop.f32.mrb[58].mxu1 }
 0x4ab   : > { %v5985_v31 = vpop.f32.mrb[59].mxu1 }
 0x4ac   : > { %10532 = vst [vmem:[#allocation71_spill] sm:$0xff] %v8865_v51  ;;  %v8867_v46 = vadd.f32 %v5985_v31, %v5984_v17 }
 0x4ae   : > { %10533 = vst [vmem:[#allocation73_spill] sm:$0xff] %v8867_v46 }
 0x4eb   : > { %v5987_v34 = vpop.f32.mrb[60].mxu1 }
 0x4ec   : > { %v5988_v9 = vpop.f32.mrb[61].mxu1 }
 0x4ed   : > { %v8869_v52 = vadd.f32 %v5988_v9, %v5987_v34  ;;  %v5990_v14 = vpop.f32.mrb[62].mxu1 }
 0x4ee   : > { %v5991_v12 = vpop.f32.mrb[63].mxu1 }
 0x4ef   : > { %10534 = vst [vmem:[#allocation82_spill] sm:$0xff] %v8869_v52  ;;  %v8871_v20 = vadd.f32 %v5991_v12, %v5990_v14 }
 0x4f1   : > { %10535 = vst [vmem:[#allocation78_spill] sm:$0xff] %v8871_v20 }
 0x4f3   : > { %v8873_v6 = vpop.f32.mrb[64].mxu1 }
 0x4f4   : > { %v8875_v33 = vpop.f32.mrb[65].mxu1 }
 0x4f5   : > { %v2893_v63 = vmax.f32 %v8873_v6, %v8875_v33  ;;  %v8879_v19 = vpop.f32.mrb[66].mxu1 }
 0x4f6   : > { %v8881_v13 = vpop.f32.mrb[67].mxu1 }
 0x4f7   : > { %2894 = vmax.xlane.f32.xlu0 %v2893_v63  ;;  %v2896_v31 = vmax.f32 %v8879_v19, %v8881_v13 }
 0x4f9   : > { %2897 = vmax.xlane.f32.xlu1 %v2896_v31 }
 0x4fb   : > { %v8885_v9 = vpop.f32.mrb[68].mxu1 }
 0x4fc   : > { %v8887_v12 = vpop.f32.mrb[69].mxu1 }
 0x4fd   : > { %v2899_v17 = vmax.f32 %v8885_v9, %v8887_v12  ;;  %v8891_v34 = vpop.f32.mrb[70].mxu1 }
 0x4fe   : > { %v8893_v14 = vpop.f32.mrb[71].mxu1 }
 0x4ff   : > { %v2902_v52 = vmax.f32 %v8891_v34, %v8893_v14  ;;  %2900 = vmax.xlane.f32.xlu0 %v2899_v17 }
 0x503   : > { %2903 = vmax.xlane.f32.xlu0 %v2902_v52  ;;  %v8897_v63 = vpop.f32.mrb[72].mxu1 }
 0x504   : > { %v8899_v20 = vpop.f32.mrb[73].mxu1 }
 0x505   : > { %v8901_v31 = vpop.f32.mrb[74].mxu1  ;;  %v2905_v51 = vmax.f32 %v8897_v63, %v8899_v20 }
 0x506   : > { %v8905_v46 = vpop.f32.mrb[75].mxu1 }
 0x507   : > { %v2908_v37 = vmax.f32 %v8901_v31, %v8905_v46  ;;  %2906 = vmax.xlane.f32.xlu1 %v2905_v51 }
 0x509   : > { %2909 = vmax.xlane.f32.xlu0 %v2908_v37 }
 0x50b   : > { %v8909_v29 = vpop.f32.mrb[76].mxu1 }
 0x50c   : > { %v8911_v17 = vpop.f32.mrb[77].mxu1 }
 0x50d   : > { %v8913_v52 = vpop.f32.mrb[78].mxu1  ;;  %v2911_v50 = vmax.f32 %v8909_v29, %v8911_v17 }
 0x50e   : > { %v8917_v39 = vpop.f32.mrb[79].mxu1 }
 0x50f   : > { %v2914_v7 = vmax.f32 %v8913_v52, %v8917_v39  ;;  %2912 = vmax.xlane.f32.xlu1 %v2911_v50 }
 0x511   : > { %2915 = vmax.xlane.f32.xlu0 %v2914_v7 }
 0x513   : > { %v8921_v21 = vpop.f32.mrb[80].mxu1 }
 0x514   : > { %v8923_v51 = vpop.f32.mrb[81].mxu1 }
 0x515   : > { %v2917_v37 = vmax.f32 %v8921_v21, %v8923_v51  ;;  %v8927_v56 = vpop.f32.mrb[82].mxu1 }
 0x516   : > { %v8929_v47 = vpop.f32.mrb[83].mxu1 }
 0x517   : > { %2918 = vmax.xlane.f32.xlu0 %v2917_v37  ;;  %v2920_v22 = vmax.f32 %v8927_v56, %v8929_v47 }
 0x519   : > { %2921 = vmax.xlane.f32.xlu1 %v2920_v22 }
 0x51b   : > { %v8933_v8 = vpop.f32.mrb[84].mxu1 }
 0x51c   : > { %v8935_v50 = vpop.f32.mrb[85].mxu1 }
 0x51d   : > { %v2923_v7 = vmax.f32 %v8933_v8, %v8935_v50  ;;  %v8939_v36 = vpop.f32.mrb[86].mxu1 }
 0x51e   : > { %v8941_v54 = vpop.f32.mrb[87].mxu1 }
 0x51f   : > { %v2926_v49 = vmax.f32 %v8939_v36, %v8941_v54  ;;  %2924 = vmax.xlane.f32.xlu0 %v2923_v7 }
 0x521   : > { %2927 = vmax.xlane.f32.xlu1 %v2926_v49 }
 0x523   : > { %v8945_v37 = vpop.f32.mrb[88].mxu1 }
 0x524   : > { %v8947_v57 = vpop.f32.mrb[89].mxu1 }
 0x525   : > { %v2929_v22 = vmax.f32 %v8945_v37, %v8947_v57  ;;  %v8951_v59 = vpop.f32.mrb[90].mxu1 }
 0x526   : > { %v8953_v42 = vpop.f32.mrb[91].mxu1 }
 0x527   : > { %v2932_v18 = vmax.f32 %v8951_v59, %v8953_v42  ;;  %2930 = vmax.xlane.f32.xlu0 %v2929_v22 }
 0x529   : > { %2933 = vmax.xlane.f32.xlu1 %v2932_v18 }
 0x52b   : > { %v8957_v28 = vpop.f32.mrb[92].mxu1 }
 0x52c   : > { %10536 = vst [vmem:[#allocation80_spill] sm:$0xff] %v8957_v28  ;;  %v8959_v7 = vpop.f32.mrb[93].mxu1 }
 0x52d   : > { %10537 = vst [vmem:[#allocation79_spill] sm:$0xff] %v8959_v7  ;;  %v2935_v49 = vmax.f32 %v8957_v28, %v8959_v7  ;;  %v8963_v1 = vpop.f32.mrb[94].mxu1  ;;  %v9340_v7 = vld [vmem:[#allocation2 + $0x1e8] sm:$0xff] }
 0x52e   : > { %10538 = vst [vmem:[#allocation81_spill] sm:$0xff] %v8963_v1  ;;  %v8965_v0 = vpop.f32.mrb[95].mxu1  ;;  %10623 = vst [vmem:[#allocation171_spill] sm:$0xff] %v9340_v7 }
 0x52f   : > { %10539 = vst [vmem:[#allocation84_spill] sm:$0xff] %v8965_v0  ;;  %v2938_v43 = vmax.f32 %v8963_v1, %v8965_v0  ;;  %2936 = vmax.xlane.f32.xlu0 %v2935_v49 }
 0x531   : > { %2939 = vmax.xlane.f32.xlu1 %v2938_v43 }
 0x533   : > { %v8969_v58 = vpop.f32.mrb[96].mxu1 }
 0x534   : > { %10540 = vst [vmem:[#allocation86_spill] sm:$0xff] %v8969_v58  ;;  %v8971_v22 = vpop.f32.mrb[97].mxu1 }
 0x535   : > { %10541 = vst [vmem:[#allocation87_spill] sm:$0xff] %v8971_v22  ;;  %v2941_v18 = vmax.f32 %v8969_v58, %v8971_v22  ;;  %v8975_v15 = vpop.f32.mrb[98].mxu1 }
 0x536   : > { %10542 = vst [vmem:[#allocation83_spill] sm:$0xff] %v8975_v15  ;;  %v8977_v45 = vpop.f32.mrb[99].mxu1 }
 0x537   : > { %10543 = vst [vmem:[#allocation89_spill] sm:$0xff] %v8977_v45  ;;  %v2944_v41 = vmax.f32 %v8975_v15, %v8977_v45  ;;  %2942 = vmax.xlane.f32.xlu0 %v2941_v18 }
 0x539   : > { %2945 = vmax.xlane.f32.xlu1 %v2944_v41 }
 0x53b   : > { %v8981_v4 = vpop.f32.mrb[100].mxu1 }
 0x53c   : > { %10544 = vst [vmem:[#allocation85_spill] sm:$0xff] %v8981_v4  ;;  %v8983_v49 = vpop.f32.mrb[101].mxu1 }
 0x53d   : > { %10545 = vst [vmem:[#allocation88_spill] sm:$0xff] %v8983_v49  ;;  %v2947_v43 = vmax.f32 %v8981_v4, %v8983_v49  ;;  %v8987_v2 = vpop.f32.mrb[102].mxu1 }
 0x53e   : > { %10546 = vst [vmem:[#allocation92_spill] sm:$0xff] %v8987_v2  ;;  %v8989_v32 = vpop.f32.mrb[103].mxu1 }
 0x53f   : > { %10547 = vst [vmem:[#allocation94_spill] sm:$0xff] %v8989_v32  ;;  %v2950_v22 = vmax.f32 %v8987_v2, %v8989_v32  ;;  %2948 = vmax.xlane.f32.xlu0 %v2947_v43 }
 0x541   : > { %2951 = vmax.xlane.f32.xlu1 %v2950_v22 }
 0x543   : > { %v8993_v58 = vpop.f32.mrb[104].mxu1 }
 0x544   : > { %10548 = vst [vmem:[#allocation96_spill] sm:$0xff] %v8993_v58  ;;  %v8995_v18 = vpop.f32.mrb[105].mxu1 }
 0x545   : > { %10549 = vst [vmem:[#allocation98_spill] sm:$0xff] %v8995_v18  ;;  %v2953_v41 = vmax.f32 %v8993_v58, %v8995_v18  ;;  %v8999_v45 = vpop.f32.mrb[106].mxu1 }
 0x546   : > { %10550 = vst [vmem:[#allocation90_spill] sm:$0xff] %v8999_v45  ;;  %v9001_v15 = vpop.f32.mrb[107].mxu1 }
 0x547   : > { %10551 = vst [vmem:[#allocation91_spill] sm:$0xff] %v9001_v15  ;;  %v2956_v49 = vmax.f32 %v8999_v45, %v9001_v15  ;;  %2954 = vmax.xlane.f32.xlu1 %v2953_v41 }
 0x549   : > { %2957 = vmax.xlane.f32.xlu0 %v2956_v49 }
 0x54b   : > { %v9005_v4 = vpop.f32.mrb[108].mxu1 }
 0x54c   : > { %10552 = vst [vmem:[#allocation93_spill] sm:$0xff] %v9005_v4  ;;  %v9007_v43 = vpop.f32.mrb[109].mxu1 }
 0x54d   : > { %10553 = vst [vmem:[#allocation95_spill] sm:$0xff] %v9007_v43  ;;  %v2959_v22 = vmax.f32 %v9005_v4, %v9007_v43  ;;  %v9011_v32 = vpop.f32.mrb[110].mxu1 }
 0x54e   : > { %10554 = vst [vmem:[#allocation100_spill] sm:$0xff] %v9011_v32  ;;  %v9013_v2 = vpop.f32.mrb[111].mxu1 }
 0x54f   : > { %10555 = vst [vmem:[#allocation103_spill] sm:$0xff] %v9013_v2  ;;  %v2962_v18 = vmax.f32 %v9011_v32, %v9013_v2  ;;  %2960 = vmax.xlane.f32.xlu1 %v2959_v22 }
 0x551   : > { %2963 = vmax.xlane.f32.xlu0 %v2962_v18 }
 0x553   : > { %v9017_v58 = vpop.f32.mrb[112].mxu1 }
 0x554   : > { %10556 = vst [vmem:[#allocation97_spill] sm:$0xff] %v9017_v58  ;;  %v9019_v41 = vpop.f32.mrb[113].mxu1 }
 0x555   : > { %10557 = vst [vmem:[#allocation99_spill] sm:$0xff] %v9019_v41  ;;  %v2965_v49 = vmax.f32 %v9017_v58, %v9019_v41  ;;  %v9023_v15 = vpop.f32.mrb[114].mxu1 }
 0x556   : > { %10558 = vst [vmem:[#allocation101_spill] sm:$0xff] %v9023_v15  ;;  %v9025_v45 = vpop.f32.mrb[115].mxu1 }
 0x557   : > { %10559 = vst [vmem:[#allocation102_spill] sm:$0xff] %v9025_v45  ;;  %v2968_v43 = vmax.f32 %v9023_v15, %v9025_v45  ;;  %2966 = vmax.xlane.f32.xlu1 %v2965_v49 }
 0x559   : > { %2969 = vmax.xlane.f32.xlu0 %v2968_v43 }
 0x55b   : > { %v9029_v4 = vpop.f32.mrb[116].mxu1 }
 0x55c   : > { %10560 = vst [vmem:[#allocation104_spill] sm:$0xff] %v9029_v4  ;;  %v9031_v22 = vpop.f32.mrb[117].mxu1 }
 0x55d   : > { %10561 = vst [vmem:[#allocation105_spill] sm:$0xff] %v9031_v22  ;;  %v2971_v18 = vmax.f32 %v9029_v4, %v9031_v22  ;;  %v9035_v2 = vpop.f32.mrb[118].mxu1 }
 0x55e   : > { %10562 = vst [vmem:[#allocation110_spill] sm:$0xff] %v9035_v2  ;;  %v9037_v32 = vpop.f32.mrb[119].mxu1 }
 0x55f   : > { %10563 = vst [vmem:[#allocation111_spill] sm:$0xff] %v9037_v32  ;;  %v2974_v41 = vmax.f32 %v9035_v2, %v9037_v32  ;;  %2972 = vmax.xlane.f32.xlu1 %v2971_v18 }
 0x561   : > { %2975 = vmax.xlane.f32.xlu0 %v2974_v41 }
 0x563   : > { %v9041_v58 = vpop.f32.mrb[120].mxu1 }
 0x564   : > { %10564 = vst [vmem:[#allocation112_spill] sm:$0xff] %v9041_v58  ;;  %v9043_v49 = vpop.f32.mrb[121].mxu1 }
 0x565   : > { %10565 = vst [vmem:[#allocation113_spill] sm:$0xff] %v9043_v49  ;;  %v2977_v43 = vmax.f32 %v9041_v58, %v9043_v49  ;;  %v9047_v45 = vpop.f32.mrb[122].mxu1  ;;  %v9065_v58 = vld [vmem:[#allocation2 + $0x100] sm:$0xff] }
 0x566   : > { %10566 = vst [vmem:[#allocation114_spill] sm:$0xff] %v9047_v45  ;;  %v9049_v15 = vpop.f32.mrb[123].mxu1  ;;  %10572 = vst [vmem:[#allocation120_spill] sm:$0xff] %v9065_v58 }
 0x567   : > { %10567 = vst [vmem:[#allocation115_spill] sm:$0xff] %v9049_v15  ;;  %v2980_v22 = vmax.f32 %v9047_v45, %v9049_v15  ;;  %2978 = vmax.xlane.f32.xlu0 %v2977_v43 }
 0x569   : > { %2981 = vmax.xlane.f32.xlu1 %v2980_v22  ;;  %v9067_v22 = vld [vmem:[#allocation2 + $0x108] sm:$0xff] }
 0x56a   : > { %10573 = vst [vmem:[#allocation121_spill] sm:$0xff] %v9067_v22 }
 0x56b   : > { %v9053_v4 = vpop.f32.mrb[124].mxu1 }
 0x56c   : > { %10568 = vst [vmem:[#allocation116_spill] sm:$0xff] %v9053_v4  ;;  %v9055_v18 = vpop.f32.mrb[125].mxu1 }
 0x56d   : > { %10569 = vst [vmem:[#allocation117_spill] sm:$0xff] %v9055_v18  ;;  %v2983_v41 = vmax.f32 %v9053_v4, %v9055_v18  ;;  %v9059_v32 = vpop.f32.mrb[126].mxu1 }
 0x56e   : > { %10570 = vst [vmem:[#allocation118_spill] sm:$0xff] %v9059_v32  ;;  %v9061_v2 = vpop.f32.mrb[127].mxu1 }
 0x56f   : > { %10571 = vst [vmem:[#allocation119_spill] sm:$0xff] %v9061_v2  ;;  %2984 = vmax.xlane.f32.xlu0 %v2983_v41  ;;  %v2986_v49 = vmax.f32 %v9059_v32, %v9061_v2  ;;  %v9090_v32 = vld [vmem:[#allocation2 + $0x118] sm:$0xff] }
 0x570   : > { %10578 = vst [vmem:[#allocation126_spill] sm:$0xff] %v9090_v32 }
 0x571   : > { %2987 = vmax.xlane.f32.xlu1 %v2986_v49 }
 0x584   : > { %v2895_v43 = vpop.xlane.xlu0 %2894 }
 0x585   : > { %v9070_v15 = vmax.f32 %v9065_v58, %v2895_v43  ;;  %v9085_v43 = vld [vmem:[#allocation2 + $0x110] sm:$0xff] }
 0x586   : > { %v2898_v45 = vpop.xlane.xlu1 %2897  ;;  %10576 = vst [vmem:[#allocation124_spill] sm:$0xff] %v9085_v43 }
 0x587   : > { %10574 = vst [vmem:[#allocation122_spill] sm:$0xff] %v9070_v15  ;;  %4176 = vst.msk [vmem:[#allocation2 + $0x100] sm:$0xff] %vm1864_vm1, %v9070_v15  ;;  %v9077_v41 = vmax.f32 %v9067_v22, %v2898_v45  ;;  %3119 = vperm.xlu0 %6334, %v9070_v15   ;;  %v9100_v15 = vld [vmem:[#allocation2 + $0x120] sm:$0xff] }
 0x588   : > { %10580 = vst [vmem:[#allocation128_spill] sm:$0xff] %v9100_v15 }
 0x589   : > { %10575 = vst [vmem:[#allocation123_spill] sm:$0xff] %v9077_v41  ;;  %4177 = vst.msk [vmem:[#allocation2 + $0x108] sm:$0xff] %vm1864_vm1, %v9077_v41  ;;  %3124 = vperm.xlu1 %6335, %v9077_v41   ;;  %v9266_v41 = vld [vmem:[#allocation2 + $0x1a8] sm:$0xff] }
 0x58a   : > { %10613 = vst [vmem:[#allocation161_spill] sm:$0xff] %v9266_v41 }
 0x58c   : > { %v2901_v2 = vpop.xlane.xlu0 %2900 }
 0x58d   : > { %v9088_v18 = vmax.f32 %v9085_v43, %v2901_v2  ;;  %v9107_v43 = vld [vmem:[#allocation2 + $0x128] sm:$0xff] }
 0x58e   : > { %10581 = vst [vmem:[#allocation129_spill] sm:$0xff] %v9107_v43 }
 0x58f   : > { %10577 = vst [vmem:[#allocation125_spill] sm:$0xff] %v9088_v18  ;;  %4178 = vst.msk [vmem:[#allocation2 + $0x110] sm:$0xff] %vm1864_vm1, %v9088_v18  ;;  %3129 = vperm.xlu0 %6334, %v9088_v18  }
 0x590   : > { %v2904_v49 = vpop.xlane.xlu0 %2903 }
 0x591   : > { %v9098_v4 = vmax.f32 %v9090_v32, %v2904_v49  ;;  %v9127_v49 = vld [vmem:[#allocation2 + $0x138] sm:$0xff] }
 0x592   : > { %10585 = vst [vmem:[#allocation133_spill] sm:$0xff] %v9127_v49 }
 0x593   : > { %10579 = vst [vmem:[#allocation127_spill] sm:$0xff] %v9098_v4  ;;  %4179 = vst.msk [vmem:[#allocation2 + $0x118] sm:$0xff] %vm1864_vm1, %v9098_v4  ;;  %3134 = vperm.xlu1 %6335, %v9098_v4  }
 0x594   : > { %v2907_v45 = vpop.xlane.xlu1 %2906 }
 0x595   : > { %v9110_v58 = vmax.f32 %v9100_v15, %v2907_v45  ;;  %v9125_v45 = vld [vmem:[#allocation2 + $0x130] sm:$0xff] }
 0x596   : > { %v2910_v18 = vpop.xlane.xlu0 %2909  ;;  %10584 = vst [vmem:[#allocation132_spill] sm:$0xff] %v9125_v45 }
 0x597   : > { %10582 = vst [vmem:[#allocation130_spill] sm:$0xff] %v9110_v58  ;;  %4180 = vst.msk [vmem:[#allocation2 + $0x120] sm:$0xff] %vm1864_vm1, %v9110_v58  ;;  %v9117_v2 = vmax.f32 %v9107_v43, %v2910_v18  ;;  %3139 = vperm.xlu0 %6334, %v9110_v58   ;;  %v9147_v58 = vld [vmem:[#allocation2 + $0x148] sm:$0xff] }
 0x598   : > { %10589 = vst [vmem:[#allocation137_spill] sm:$0xff] %v9147_v58 }
 0x599   : > { %10583 = vst [vmem:[#allocation131_spill] sm:$0xff] %v9117_v2  ;;  %4181 = vst.msk [vmem:[#allocation2 + $0x128] sm:$0xff] %vm1864_vm1, %v9117_v2  ;;  %3144 = vperm.xlu1 %6335, %v9117_v2  }
 0x59c   : > { %v2913_v32 = vpop.xlane.xlu1 %2912 }
 0x59d   : > { %v9130_v15 = vmax.f32 %v9125_v45, %v2913_v32  ;;  %v9145_v32 = vld [vmem:[#allocation2 + $0x140] sm:$0xff] }
 0x59e   : > { %v2916_v18 = vpop.xlane.xlu0 %2915  ;;  %10588 = vst [vmem:[#allocation136_spill] sm:$0xff] %v9145_v32 }
 0x59f   : > { %10586 = vst [vmem:[#allocation134_spill] sm:$0xff] %v9130_v15  ;;  %4182 = vst.msk [vmem:[#allocation2 + $0x130] sm:$0xff] %vm1864_vm1, %v9130_v15  ;;  %v9137_v4 = vmax.f32 %v9127_v49, %v2916_v18  ;;  %3149 = vperm.xlu0 %6334, %v9130_v15   ;;  %v9167_v15 = vld [vmem:[#allocation2 + $0x158] sm:$0xff] }
 0x5a0   : > { %10593 = vst [vmem:[#allocation141_spill] sm:$0xff] %v9167_v15 }
 0x5a1   : > { %10587 = vst [vmem:[#allocation135_spill] sm:$0xff] %v9137_v4  ;;  %4183 = vst.msk [vmem:[#allocation2 + $0x138] sm:$0xff] %vm1864_vm1, %v9137_v4  ;;  %3154 = vperm.xlu1 %6335, %v9137_v4  }
 0x5a4   : > { %v2919_v43 = vpop.xlane.xlu0 %2918 }
 0x5a5   : > { %v9150_v45 = vmax.f32 %v9145_v32, %v2919_v43  ;;  %v9165_v43 = vld [vmem:[#allocation2 + $0x150] sm:$0xff] }
 0x5a6   : > { %v2922_v18 = vpop.xlane.xlu1 %2921  ;;  %10592 = vst [vmem:[#allocation140_spill] sm:$0xff] %v9165_v43 }
 0x5a7   : > { %10590 = vst [vmem:[#allocation138_spill] sm:$0xff] %v9150_v45  ;;  %4184 = vst.msk [vmem:[#allocation2 + $0x140] sm:$0xff] %vm1864_vm1, %v9150_v45  ;;  %v9157_v2 = vmax.f32 %v9147_v58, %v2922_v18  ;;  %3159 = vperm.xlu0 %6334, %v9150_v45   ;;  %v9187_v45 = vld [vmem:[#allocation2 + $0x168] sm:$0xff] }
 0x5a8   : > { %10597 = vst [vmem:[#allocation145_spill] sm:$0xff] %v9187_v45 }
 0x5a9   : > { %10591 = vst [vmem:[#allocation139_spill] sm:$0xff] %v9157_v2  ;;  %4185 = vst.msk [vmem:[#allocation2 + $0x148] sm:$0xff] %vm1864_vm1, %v9157_v2  ;;  %3164 = vperm.xlu1 %6335, %v9157_v2  }
 0x5ac   : > { %v2925_v49 = vpop.xlane.xlu0 %2924 }
 0x5ad   : > { %v9170_v32 = vmax.f32 %v9165_v43, %v2925_v49  ;;  %v9185_v49 = vld [vmem:[#allocation2 + $0x160] sm:$0xff] }
 0x5ae   : > { %v2928_v18 = vpop.xlane.xlu1 %2927  ;;  %10596 = vst [vmem:[#allocation144_spill] sm:$0xff] %v9185_v49 }
 0x5af   : > { %10594 = vst [vmem:[#allocation142_spill] sm:$0xff] %v9170_v32  ;;  %4186 = vst.msk [vmem:[#allocation2 + $0x150] sm:$0xff] %vm1864_vm1, %v9170_v32  ;;  %v9177_v4 = vmax.f32 %v9167_v15, %v2928_v18  ;;  %3169 = vperm.xlu1 %6335, %v9170_v32   ;;  %v9207_v32 = vld [vmem:[#allocation2 + $0x178] sm:$0xff] }
 0x5b0   : > { %10601 = vst [vmem:[#allocation149_spill] sm:$0xff] %v9207_v32 }
 0x5b1   : > { %10595 = vst [vmem:[#allocation143_spill] sm:$0xff] %v9177_v4  ;;  %4187 = vst.msk [vmem:[#allocation2 + $0x158] sm:$0xff] %vm1864_vm1, %v9177_v4  ;;  %3174 = vperm.xlu0 %6334, %v9177_v4  }
 0x5b4   : > { %v2931_v58 = vpop.xlane.xlu0 %2930 }
 0x5b5   : > { %v9190_v43 = vmax.f32 %v9185_v49, %v2931_v58  ;;  %v9205_v58 = vld [vmem:[#allocation2 + $0x170] sm:$0xff] }
 0x5b6   : > { %v2934_v18 = vpop.xlane.xlu1 %2933  ;;  %10600 = vst [vmem:[#allocation148_spill] sm:$0xff] %v9205_v58 }
 0x5b7   : > { %10598 = vst [vmem:[#allocation146_spill] sm:$0xff] %v9190_v43  ;;  %4188 = vst.msk [vmem:[#allocation2 + $0x160] sm:$0xff] %vm1864_vm1, %v9190_v43  ;;  %v9197_v2 = vmax.f32 %v9187_v45, %v2934_v18  ;;  %3179 = vperm.xlu1 %6335, %v9190_v43   ;;  %v9227_v43 = vld [vmem:[#allocation2 + $0x188] sm:$0xff] }
 0x5b8   : > { %10605 = vst [vmem:[#allocation153_spill] sm:$0xff] %v9227_v43 }
 0x5b9   : > { %10599 = vst [vmem:[#allocation147_spill] sm:$0xff] %v9197_v2  ;;  %4189 = vst.msk [vmem:[#allocation2 + $0x168] sm:$0xff] %vm1864_vm1, %v9197_v2  ;;  %3184 = vperm.xlu0 %6334, %v9197_v2  }
 0x5bc   : > { %v2937_v15 = vpop.xlane.xlu0 %2936 }
 0x5bd   : > { %v9210_v49 = vmax.f32 %v9205_v58, %v2937_v15  ;;  %v9225_v15 = vld [vmem:[#allocation2 + $0x180] sm:$0xff] }
 0x5be   : > { %v2940_v18 = vpop.xlane.xlu1 %2939  ;;  %10604 = vst [vmem:[#allocation152_spill] sm:$0xff] %v9225_v15 }
 0x5bf   : > { %10602 = vst [vmem:[#allocation150_spill] sm:$0xff] %v9210_v49  ;;  %4190 = vst.msk [vmem:[#allocation2 + $0x170] sm:$0xff] %vm1864_vm1, %v9210_v49  ;;  %v9217_v4 = vmax.f32 %v9207_v32, %v2940_v18  ;;  %3189 = vperm.xlu1 %6335, %v9210_v49   ;;  %v9247_v49 = vld [vmem:[#allocation2 + $0x198] sm:$0xff] }
 0x5c0   : > { %10609 = vst [vmem:[#allocation157_spill] sm:$0xff] %v9247_v49 }
 0x5c1   : > { %10603 = vst [vmem:[#allocation151_spill] sm:$0xff] %v9217_v4  ;;  %4191 = vst.msk [vmem:[#allocation2 + $0x178] sm:$0xff] %vm1864_vm1, %v9217_v4  ;;  %3194 = vperm.xlu0 %6334, %v9217_v4  }
 0x5c4   : > { %v2943_v45 = vpop.xlane.xlu0 %2942 }
 0x5c5   : > { %v9230_v58 = vmax.f32 %v9225_v15, %v2943_v45  ;;  %v9245_v45 = vld [vmem:[#allocation2 + $0x190] sm:$0xff] }
 0x5c6   : > { %v2946_v18 = vpop.xlane.xlu1 %2945  ;;  %10608 = vst [vmem:[#allocation156_spill] sm:$0xff] %v9245_v45 }
 0x5c7   : > { %10606 = vst [vmem:[#allocation154_spill] sm:$0xff] %v9230_v58  ;;  %4192 = vst.msk [vmem:[#allocation2 + $0x180] sm:$0xff] %vm1864_vm1, %v9230_v58  ;;  %v9237_v2 = vmax.f32 %v9227_v43, %v2946_v18  ;;  %3199 = vperm.xlu1 %6335, %v9230_v58  }
 0x5c9   : > { %10607 = vst [vmem:[#allocation155_spill] sm:$0xff] %v9237_v2  ;;  %4193 = vst.msk [vmem:[#allocation2 + $0x188] sm:$0xff] %vm1864_vm1, %v9237_v2  ;;  %3204 = vperm.xlu0 %6334, %v9237_v2  }
 0x5cc   : > { %v2949_v32 = vpop.xlane.xlu0 %2948 }
 0x5cd   : > { %v9250_v15 = vmax.f32 %v9245_v45, %v2949_v32  ;;  %v9264_v32 = vld [vmem:[#allocation2 + $0x1a0] sm:$0xff] }
 0x5ce   : > { %v2952_v18 = vpop.xlane.xlu1 %2951  ;;  %10612 = vst [vmem:[#allocation160_spill] sm:$0xff] %v9264_v32 }
 0x5cf   : > { %10610 = vst [vmem:[#allocation158_spill] sm:$0xff] %v9250_v15  ;;  %4194 = vst.msk [vmem:[#allocation2 + $0x190] sm:$0xff] %vm1864_vm1, %v9250_v15  ;;  %v9257_v4 = vmax.f32 %v9247_v49, %v2952_v18  ;;  %v9285_v49 = vld [vmem:[#allocation2 + $0x1b8] sm:$0xff] }
 0x5d0   : > { %10617 = vst [vmem:[#allocation165_spill] sm:$0xff] %v9285_v49 }
 0x5d1   : > { %10611 = vst [vmem:[#allocation159_spill] sm:$0xff] %v9257_v4  ;;  %4195 = vst.msk [vmem:[#allocation2 + $0x198] sm:$0xff] %vm1864_vm1, %v9257_v4  ;;  %3214 = vperm.xlu0 %6334, %v9257_v4  }
 0x5d4   : > { %v2955_v43 = vpop.xlane.xlu1 %2954 }
 0x5d5   : > { %v9269_v58 = vmax.f32 %v9264_v32, %v2955_v43  ;;  %v9283_v43 = vld [vmem:[#allocation2 + $0x1b0] sm:$0xff] }
 0x5d6   : > { %v2958_v45 = vpop.xlane.xlu0 %2957  ;;  %10616 = vst [vmem:[#allocation164_spill] sm:$0xff] %v9283_v43 }
 0x5d7   : > { %10614 = vst [vmem:[#allocation162_spill] sm:$0xff] %v9269_v58  ;;  %4196 = vst.msk [vmem:[#allocation2 + $0x1a0] sm:$0xff] %vm1864_vm1, %v9269_v58  ;;  %v9276_v2 = vmax.f32 %v9266_v41, %v2958_v45  ;;  %v9301_v41 = vld [vmem:[#allocation2 + $0x1c0] sm:$0xff] }
 0x5d8   : > { %10618 = vst [vmem:[#allocation166_spill] sm:$0xff] %v9301_v41 }
 0x5d9   : > { %10615 = vst [vmem:[#allocation163_spill] sm:$0xff] %v9276_v2  ;;  %4197 = vst.msk [vmem:[#allocation2 + $0x1a8] sm:$0xff] %vm1864_vm1, %v9276_v2  ;;  %3224 = vperm.xlu0 %6334, %v9276_v2   ;;  %v9360_v2 = vld [vmem:[#allocation2 + $0x1f8] sm:$0xff] }
 0x5da   : > { %10625 = vst [vmem:[#allocation173_spill] sm:$0xff] %v9360_v2 }
 0x5dc   : > { %v2961_v22 = vpop.xlane.xlu1 %2960 }
 0x5dd   : > { %v9288_v18 = vmax.f32 %v9283_v43, %v2961_v22  ;;  %v9303_v22 = vld [vmem:[#allocation2 + $0x1c8] sm:$0xff] }
 0x5de   : > { %v2964_v32 = vpop.xlane.xlu0 %2963  ;;  %10619 = vst [vmem:[#allocation167_spill] sm:$0xff] %v9303_v22 }
 0x5df   : > { %v9291_v45 = vmax.f32 %v9285_v49, %v2964_v32  ;;  %4198 = vst.msk [vmem:[#allocation2 + $0x1b0] sm:$0xff] %vm1864_vm1, %v9288_v18  ;;  %v9319_v49 = vld [vmem:[#allocation2 + $0x1d0] sm:$0xff] }
 0x5e0   : > { %10620 = vst [vmem:[#allocation168_spill] sm:$0xff] %v9319_v49 }
 0x5e1   : > { %4199 = vst.msk [vmem:[#allocation2 + $0x1b8] sm:$0xff] %vm1864_vm1, %v9291_v45 }
 0x5e4   : > { %v2967_v0 = vpop.xlane.xlu1 %2966 }
 0x5e5   : > { %v9306_v32 = vmax.f32 %v9301_v41, %v2967_v0  ;;  %v9322_v0 = vld [vmem:[#allocation2 + $0x1d8] sm:$0xff] }
 0x5e6   : > { %v2970_v1 = vpop.xlane.xlu0 %2969  ;;  %10621 = vst [vmem:[#allocation169_spill] sm:$0xff] %v9322_v0 }
 0x5e7   : > { %v9309_v4 = vmax.f32 %v9303_v22, %v2970_v1  ;;  %4200 = vst.msk [vmem:[#allocation2 + $0x1c0] sm:$0xff] %vm1864_vm1, %v9306_v32 }
 0x5e9   : > { %4201 = vst.msk [vmem:[#allocation2 + $0x1c8] sm:$0xff] %vm1864_vm1, %v9309_v4 }
 0x5eb   : > { %1827 = vadd.xlane.f32.xlu1 %v8548_v25  ;;  %v9338_v25 = vld [vmem:[#allocation2 + $0x1e0] sm:$0xff] }
 0x5ec   : > { %v2973_v1 = vpop.xlane.xlu1 %2972  ;;  %10622 = vst [vmem:[#allocation170_spill] sm:$0xff] %v9338_v25 }
 0x5ed   : > { %v9325_v16 = vmax.f32 %v9319_v49, %v2973_v1 }
 0x5ee   : > { %v2976_v43 = vpop.xlane.xlu0 %2975 }
 0x5ef   : > { %v9328_v41 = vmax.f32 %v9322_v0, %v2976_v43  ;;  %4202 = vst.msk [vmem:[#allocation2 + $0x1d0] sm:$0xff] %vm1864_vm1, %v9325_v16 }
 0x5f1   : > { %4203 = vst.msk [vmem:[#allocation2 + $0x1d8] sm:$0xff] %vm1864_vm1, %v9328_v41 }
 0x5f4   : > { %v2979_v1 = vpop.xlane.xlu0 %2978 }
 0x5f5   : > { %v9343_v43 = vmax.f32 %v9338_v25, %v2979_v1  ;;  %v9357_v1 = vld [vmem:[#allocation2 + $0x1f0] sm:$0xff] }
 0x5f6   : > { %v2982_v28 = vpop.xlane.xlu1 %2981  ;;  %10624 = vst [vmem:[#allocation172_spill] sm:$0xff] %v9357_v1 }
 0x5f7   : > { %4204 = vst.msk [vmem:[#allocation2 + $0x1e0] sm:$0xff] %vm1864_vm1, %v9343_v43  ;;  %v9350_v22 = vmax.f32 %v9340_v7, %v2982_v28 }
 0x5f8   : > { %1830 = vadd.xlane.f32.xlu0 %v8540_v48 }
 0x5f9   : > { %4205 = vst.msk [vmem:[#allocation2 + $0x1e8] sm:$0xff] %vm1864_vm1, %v9350_v22 }
 0x5fc   : > { %3209 = vperm.xlu1 %6335, %v9250_v15   ;;  %v2985_v0 = vpop.xlane.xlu0 %2984 }
 0x5fd   : > { %v9363_v25 = vmax.f32 %v9357_v1, %v2985_v0 }
 0x5fe   : > { %v2988_v28 = vpop.xlane.xlu1 %2987 }
 0x5ff   : > { %4206 = vst.msk [vmem:[#allocation2 + $0x1f0] sm:$0xff] %vm1864_vm1, %v9363_v25  ;;  %v9370_v49 = vmax.f32 %v9360_v2, %v2988_v28 }
 0x600   : > { %3219 = vperm.xlu1 %6335, %v9269_v58  }
 0x601   : > { %4207 = vst.msk [vmem:[#allocation2 + $0x1f8] sm:$0xff] %vm1864_vm1, %v9370_v49 }
 0x604   : > { %3229 = vperm.xlu1 %6335, %v9288_v18  }
 0x606   : > { %v3120_v0 = vpop.permute.xlu0 %3119 }
 0x607   : > { %v3277_v15 = vsub.f32 %v8873_v6, %v3120_v0  ;;  %v3278_v48 = vsub.f32 %v8875_v33, %v3120_v0 }
 0x608   : > { %v3125_v1 = vpop.permute.xlu1 %3124  ;;  %3239 = vperm.xlu1 %6335, %v9306_v32  }
 0x609   : > { %v3341_v28 = vmul.f32 1.442695, %v3277_v15  ;;  %v3343_v55 = vmul.f32 1.442695, %v3278_v48  ;;  %v3279_v58 = vsub.f32 %v8879_v19, %v3125_v1  ;;  %v3280_v23 = vsub.f32 %v8881_v13, %v3125_v1 }
 0x60b   : > { %6556 = vpow2.f32 %v3341_v28  ;;  %v3345_v7 = vmul.f32 1.442695, %v3279_v58  ;;  %v3347_v2 = vmul.f32 1.442695, %v3280_v23 }
 0x60c   : > { %6558 = vpow2.f32 %v3343_v55  ;;  %3249 = vperm.xlu1 %6335, %v9325_v16  }
 0x60d   : > { %6560 = vpow2.f32 %v3345_v7 }
 0x60e   : > { %6562 = vpow2.f32 %v3347_v2  ;;  %3234 = vperm.xlu0 %6334, %v9291_v45   ;;  %v3130_v6 = vpop.permute.xlu0 %3129 }
 0x60f   : > { %v3281_v33 = vsub.f32 %v8885_v9, %v3130_v6  ;;  %v3282_v15 = vsub.f32 %v8887_v12, %v3130_v6 }
 0x610   : > { %3259 = vperm.xlu1 %6335, %v9343_v43  }
 0x611   : > { %v3349_v19 = vmul.f32 1.442695, %v3281_v33  ;;  %v3351_v48 = vmul.f32 1.442695, %v3282_v15 }
 0x612   : > { %v3135_v13 = vpop.permute.xlu1 %3134  ;;  %3244 = vperm.xlu0 %6334, %v9309_v4  }
 0x613   : > { %6564 = vpow2.f32 %v3349_v19  ;;  %v3283_v55 = vsub.f32 %v8891_v34, %v3135_v13  ;;  %v3284_v23 = vsub.f32 %v8893_v14, %v3135_v13 }
 0x614   : > { %6566 = vpow2.f32 %v3351_v48  ;;  %1931 = vperm.xlu1 %6335, %v8582_v5  }
 0x615   : > { %v6557_v7 = vpop.eup %6556  ;;  %v3353_v2 = vmul.f32 1.442695, %v3283_v55  ;;  %v3355_v9 = vmul.f32 1.442695, %v3284_v23 }
 0x616   : > { %v6559_v58 = vpop.eup %6558  ;;  %3264 = vperm.xlu0 %6334, %v9350_v22   ;;  %v3140_v12 = vpop.permute.xlu0 %3139 }
 0x617   : > { %v6561_v1 = vpop.eup %6560  ;;  %6568 = vpow2.f32 %v3353_v2  ;;  %v3285_v0 = vsub.f32 %v8897_v63, %v3140_v12  ;;  %v3286_v28 = vsub.f32 %v8899_v20, %v3140_v12  ;;  %v9395_v6 = vadd.f32 %v6559_v58, %v6557_v7 }
 0x618   : > { %v6563_v34 = vpop.eup %6562  ;;  %6570 = vpow2.f32 %v3355_v9  ;;  %v3145_v14 = vpop.permute.xlu1 %3144  ;;  %3269 = vperm.xlu1 %6335, %v9363_v25   ;;  %v3919_v5 = vpack.c.bf16 %v6561_v1, %v6557_v7 }
 0x619   : > { %v3357_v33 = vmul.f32 1.442695, %v3285_v0  ;;  %v3359_v15 = vmul.f32 1.442695, %v3286_v28  ;;  %v3287_v19 = vsub.f32 %v8901_v31, %v3145_v14  ;;  %v3288_v48 = vsub.f32 %v8905_v46, %v3145_v14 }
 0x61a   : > { %3254 = vperm.xlu0 %6334, %v9328_v41   ;;  %v3920_v13 = vpack.c.bf16 %v6563_v34, %v6559_v58  ;;  %v9401_v63 = vadd.f32 %v6563_v34, %v6561_v1 }
 0x61b   : > { %6572 = vpow2.f32 %v3357_v33  ;;  %v3361_v20 = vmul.f32 1.442695, %v3287_v19  ;;  %v3363_v55 = vmul.f32 1.442695, %v3288_v48 }
 0x61c   : > { %6574 = vpow2.f32 %v3359_v15  ;;  %3983 = vmatprep.mubr.bf16.mxu0 %v3920_v13  ;;  %1941 = vperm.xlu1 %6335, %v8595_v11  }
 0x61d   : > { %v6565_v23 = vpop.eup %6564  ;;  %6576 = vpow2.f32 %v3361_v20  ;;  %3984 = vmatmul.mubr.bf16.vlgmr.msra.gmra.mrb[64].mxu0 %v3919_v5 }
 0x61e   : > { %v6567_v7 = vpop.eup %6566  ;;  %6578 = vpow2.f32 %v3363_v55  ;;  %3274 = vperm.xlu0 %6334, %v9370_v49   ;;  %v3150_v46 = vpop.permute.xlu0 %3149 }
 0x61f   : > { %v3289_v31 = vsub.f32 %v8909_v29, %v3150_v46  ;;  %v3290_v2 = vsub.f32 %v8911_v17, %v3150_v46  ;;  %v9407_v9 = vadd.f32 %v6567_v7, %v6565_v23 }
 0x620   : > { %v3155_v58 = vpop.permute.xlu1 %3154  ;;  %1946 = vperm.xlu1 %6335, %v8630_v60  }
 0x621   : > { %v6569_v12 = vpop.eup %6568  ;;  %v3365_v1 = vmul.f32 1.442695, %v3289_v31  ;;  %v3367_v11 = vmul.f32 1.442695, %v3290_v2  ;;  %v3291_v0 = vsub.f32 %v8913_v52, %v3155_v58  ;;  %v3292_v28 = vsub.f32 %v8917_v39, %v3155_v58 }
 0x622   : > { %v6571_v34 = vpop.eup %6570  ;;  %1936 = vperm.xlu0 %6334, %v8603_v24   ;;  %v3921_v14 = vpack.c.bf16 %v6569_v12, %v6565_v23 }
 0x623   : > { %6580 = vpow2.f32 %v3365_v1  ;;  %v3369_v29 = vmul.f32 1.442695, %v3291_v0  ;;  %v3371_v5 = vmul.f32 1.442695, %v3292_v28  ;;  %v3922_v17 = vpack.c.bf16 %v6571_v34, %v6567_v7 }
 0x624   : > { %6582 = vpow2.f32 %v3367_v11  ;;  %1956 = vperm.xlu1 %6335, %v8659_v35   ;;  %v9414_v33 = vadd.f32 %v6571_v34, %v6569_v12 }
 0x625   : > { %v6573_v60 = vpop.eup %6572  ;;  %6584 = vpow2.f32 %v3369_v29  ;;  %3991 = vmatprep.mubr.bf16.mxu0 %v3922_v17 }
 0x626   : > { %v6575_v15 = vpop.eup %6574  ;;  %6586 = vpow2.f32 %v3371_v5  ;;  %3992 = vmatmul.mubr.bf16.gmra.mrb[68].mxu0 %v3921_v14  ;;  %1951 = vperm.xlu0 %6334, %v8610_v27   ;;  %v3160_v39 = vpop.permute.xlu0 %3159 }
 0x627   : > { %v6577_v24 = vpop.eup %6576  ;;  %v3293_v52 = vsub.f32 %v8921_v21, %v3160_v39  ;;  %v3294_v19 = vsub.f32 %v8923_v51, %v3160_v39  ;;  %v9419_v48 = vadd.f32 %v6575_v15, %v6573_v60 }
 0x628   : > { %v6579_v13 = vpop.eup %6578  ;;  %v3165_v35 = vpop.permute.xlu1 %3164  ;;  %1966 = vperm.xlu1 %6335, %v8679_v26   ;;  %v3923_v20 = vpack.c.bf16 %v6577_v24, %v6573_v60 }
 0x629   : > { %v3373_v55 = vmul.f32 1.442695, %v3293_v52  ;;  %v3375_v23 = vmul.f32 1.442695, %v3294_v19  ;;  %v3295_v7 = vsub.f32 %v8927_v56, %v3165_v35  ;;  %v3296_v46 = vsub.f32 %v8929_v47, %v3165_v35 }
 0x62a   : > { %1961 = vperm.xlu0 %6334, %v8636_v10   ;;  %v3924_v27 = vpack.c.bf16 %v6579_v13, %v6575_v15  ;;  %v9425_v31 = vadd.f32 %v6579_v13, %v6577_v24 }
 0x62b   : > { %6588 = vpow2.f32 %v3373_v55  ;;  %v3377_v21 = vmul.f32 1.442695, %v3295_v7  ;;  %v3379_v51 = vmul.f32 1.442695, %v3296_v46  ;;  %v10629_v46 = vld [vmem:[#allocation79_spill] sm:$0xff] }
 0x62c   : > { %6590 = vpow2.f32 %v3375_v23  ;;  %3999 = vmatprep.mubr.bf16.mxu0 %v3924_v27  ;;  %1976 = vperm.xlu1 %6335, %v8698_v53   ;;  %v10627_v23 = vld [vmem:[#allocation41_spill] sm:$0xff] }
 0x62d   : > { %v6581_v26 = vpop.eup %6580  ;;  %6592 = vpow2.f32 %v3377_v21 }
 0x62e   : > { %v6583_v2 = vpop.eup %6582  ;;  %6594 = vpow2.f32 %v3379_v51  ;;  %4000 = vmatmul.mubr.bf16.gmra.mrb[72].mxu0 %v3923_v20  ;;  %v3170_v56 = vpop.permute.xlu1 %3169  ;;  %1971 = vperm.xlu0 %6334, %v8646_v38   ;;  %v10626_v20 = vld [vmem:[#allocation47_spill] sm:$0xff] }
 0x62f   : > { %v6585_v47 = vpop.eup %6584  ;;  %v3297_v10 = vsub.f32 %v8933_v8, %v3170_v56  ;;  %v3298_v58 = vsub.f32 %v8935_v50, %v3170_v56  ;;  %v9431_v12 = vadd.f32 %v6583_v2, %v6581_v26 }
 0x630   : > { %v6587_v1 = vpop.eup %6586  ;;  %1986 = vperm.xlu1 %6335, %v8686_v3   ;;  %v3175_v11 = vpop.permute.xlu0 %3174  ;;  %v3925_v53 = vpack.c.bf16 %v6585_v47, %v6581_v26  ;;  %v10630_v26 = vld [vmem:[#allocation48_spill] sm:$0xff] }
 0x631   : > { %v3381_v0 = vmul.f32 1.442695, %v3297_v10  ;;  %v3383_v28 = vmul.f32 1.442695, %v3298_v58  ;;  %v3299_v34 = vsub.f32 %v8939_v36, %v3175_v11  ;;  %v3300_v14 = vsub.f32 %v8941_v54, %v3175_v11  ;;  %v10631_v58 = vld [vmem:[#allocation81_spill] sm:$0xff]  ;;  %v10632_v11 = vld [vmem:[#allocation84_spill] sm:$0xff] }
 0x632   : > { %1981 = vperm.xlu0 %6334, %v8675_v30   ;;  %v3926_v38 = vpack.c.bf16 %v6587_v1, %v6583_v2  ;;  %v9437_v29 = vadd.f32 %v6587_v1, %v6585_v47 }
 0x633   : > { %6596 = vpow2.f32 %v3381_v0  ;;  %v3385_v8 = vmul.f32 1.442695, %v3299_v34  ;;  %v3387_v50 = vmul.f32 1.442695, %v3300_v14  ;;  %v10633_v0 = vld [vmem:[#allocation43_spill] sm:$0xff] }
 0x634   : > { %6598 = vpow2.f32 %v3383_v28  ;;  %4007 = vmatprep.mubr.bf16.mxu0 %v3926_v38  ;;  %1996 = vperm.xlu1 %6335, %v8729_v61  }
 0x635   : > { %v6589_v3 = vpop.eup %6588  ;;  %6600 = vpow2.f32 %v3385_v8  ;;  %v10634_v8 = vld [vmem:[#allocation51_spill] sm:$0xff] }
 0x636   : > { %v6591_v5 = vpop.eup %6590  ;;  %6602 = vpow2.f32 %v3387_v50  ;;  %4008 = vmatmul.mubr.bf16.gmra.mrb[76].mxu0 %v3925_v53  ;;  %v3180_v36 = vpop.permute.xlu1 %3179  ;;  %1991 = vperm.xlu0 %6334, %v8713_v40  }
 0x637   : > { %v6593_v54 = vpop.eup %6592  ;;  %v3301_v30 = vsub.f32 %v8945_v37, %v3180_v36  ;;  %v3302_v17 = vsub.f32 %v8947_v57, %v3180_v36  ;;  %v9443_v60 = vadd.f32 %v6591_v5, %v6589_v3  ;;  %v10636_v36 = vld [vmem:[#allocation107_spill] sm:$0xff] }
 0x638   : > { %v6595_v15 = vpop.eup %6594  ;;  %2006 = vperm.xlu1 %6335, %v8743_v44   ;;  %v3185_v39 = vpop.permute.xlu0 %3184  ;;  %v3927_v61 = vpack.c.bf16 %v6593_v54, %v6589_v3 }
 0x639   : > { %v3389_v24 = vmul.f32 1.442695, %v3301_v30  ;;  %v3391_v52 = vmul.f32 1.442695, %v3302_v17  ;;  %v3303_v19 = vsub.f32 %v8951_v59, %v3185_v39  ;;  %v3304_v13 = vsub.f32 %v8953_v42, %v3185_v39 }
 0x63a   : > { %2001 = vperm.xlu0 %6334, %v8709_v62   ;;  %v3928_v40 = vpack.c.bf16 %v6595_v15, %v6591_v5  ;;  %v9449_v35 = vadd.f32 %v6595_v15, %v6593_v54  ;;  %v10628_v62 = vld [vmem:[#allocation80_spill] sm:$0xff]  ;;  %v10635_v5 = vld [vmem:[#allocation106_spill] sm:$0xff] }
 0x63b   : > { %6604 = vpow2.f32 %v3389_v24  ;;  %v3393_v57 = vmul.f32 1.442695, %v3303_v19  ;;  %v3395_v37 = vmul.f32 1.442695, %v3304_v13  ;;  %v10637_v54 = vsub.f32 %v10635_v5, %v10636_v36  ;;  %v10638_v15 = vld [vmem:[#allocation44_spill] sm:$0xff] }
 0x63c   : > { %6606 = vpow2.f32 %v3391_v52  ;;  %4015 = vmatprep.mubr.bf16.mxu0 %v3928_v40  ;;  %2016 = vperm.xlu1 %6335, %v10626_v20   ;;  %v10640_v52 = vld [vmem:[#allocation87_spill] sm:$0xff] }
 0x63d   : > { %v6597_v44 = vpop.eup %6596  ;;  %6608 = vpow2.f32 %v3393_v57  ;;  %v1318_v30 = vmul.f32 1.442695, %v10637_v54  ;;  %v10641_v57 = vld [vmem:[#allocation54_spill] sm:$0xff] }
 0x63e   : > { %v6599_v55 = vpop.eup %6598  ;;  %6610 = vpow2.f32 %v3395_v37  ;;  %4016 = vmatmul.mubr.bf16.gmra.mrb[80].mxu0 %v3927_v61  ;;  %v3190_v59 = vpop.permute.xlu1 %3189  ;;  %2011 = vperm.xlu0 %6334, %v10627_v23   ;;  %v10639_v61 = vld [vmem:[#allocation86_spill] sm:$0xff] }
 0x63f   : > { %v6601_v42 = vpop.eup %6600  ;;  %v3305_v7 = vsub.f32 %v10628_v62, %v3190_v59  ;;  %v3306_v27 = vsub.f32 %v10629_v46, %v3190_v59  ;;  %v9455_v21 = vadd.f32 %v6599_v55, %v6597_v44  ;;  %v10642_v59 = vld [vmem:[#allocation83_spill] sm:$0xff] }
 0x640   : > { %v6603_v51 = vpop.eup %6602  ;;  %2026 = vperm.xlu1 %6335, %v10630_v26   ;;  %v3195_v2 = vpop.permute.xlu0 %3194  ;;  %v3929_v56 = vpack.c.bf16 %v6601_v42, %v6597_v44  ;;  %v10646_v26 = vld [vmem:[#allocation109_spill] sm:$0xff] }
 0x641   : > { %v3397_v47 = vmul.f32 1.442695, %v3305_v7  ;;  %v3399_v10 = vmul.f32 1.442695, %v3306_v27  ;;  %v3307_v1 = vsub.f32 %v10631_v58, %v3195_v2  ;;  %v3308_v53 = vsub.f32 %v10632_v11, %v3195_v2  ;;  %v10644_v7 = vld [vmem:[#allocation52_spill] sm:$0xff]  ;;  %v10648_v58 = vld [vmem:[#allocation121_spill] sm:$0xff] }
 0x642   : > { %2021 = vperm.xlu0 %6334, %v10633_v0   ;;  %v3930_v28 = vpack.c.bf16 %v6603_v51, %v6599_v55  ;;  %v9461_v34 = vadd.f32 %v6603_v51, %v6601_v42  ;;  %v10643_v42 = vld [vmem:[#allocation89_spill] sm:$0xff]  ;;  %v10645_v51 = vld [vmem:[#allocation108_spill] sm:$0xff]  ;;  %v10651_v0 = vld [vmem:[#allocation59_spill] sm:$0xff] }
 0x643   : > { %6612 = vpow2.f32 %v3397_v47  ;;  %v3401_v14 = vmul.f32 1.442695, %v3307_v1  ;;  %v3403_v38 = vmul.f32 1.442695, %v3308_v53  ;;  %v10647_v2 = vsub.f32 %v10645_v51, %v10646_v26  ;;  %v10649_v1 = vld [vmem:[#allocation123_spill] sm:$0xff] }
 0x644   : > { %6614 = vpow2.f32 %v3399_v10  ;;  %4023 = vmatprep.mubr.bf16.mxu0 %v3930_v28  ;;  %2036 = vperm.xlu1 %6335, %v10634_v8   ;;  %v10650_v11 = vsub.f32 %v10648_v58, %v10649_v1  ;;  %v10669_v58 = vld [vmem:[#allocation57_spill] sm:$0xff] }
 0x645   : > { %v6605_v50 = vpop.eup %6604  ;;  %6616 = vpow2.f32 %v3401_v14 }
 0x646   : > { %v6607_v3 = vpop.eup %6606  ;;  %6618 = vpow2.f32 %v3403_v38  ;;  %4024 = vmatmul.mubr.bf16.gmra.mrb[84].mxu0 %v3929_v56  ;;  %v3200_v17 = vpop.permute.xlu1 %3199  ;;  %2031 = vperm.xlu0 %6334, %v10638_v15   ;;  %v1316_v56 = vmul.f32 1.442695, %v10647_v2  ;;  %v3055_v53 = vmul.f32 1.442695, %v10650_v11  ;;  %v10652_v38 = vld [vmem:[#allocation53_spill] sm:$0xff]  ;;  %v10657_v15 = vld [vmem:[#allocation127_spill] sm:$0xff] }
 0x647   : > { %v6609_v39 = vpop.eup %6608  ;;  %v3309_v24 = vsub.f32 %v10639_v61, %v3200_v17  ;;  %v3310_v19 = vsub.f32 %v10640_v52, %v3200_v17  ;;  %v9470_v13 = vadd.f32 %v6607_v3, %v6605_v50  ;;  %6620 = vpow2.f32 %v1318_v30  ;;  %v10656_v17 = vld [vmem:[#allocation126_spill] sm:$0xff]  ;;  %v10666_v2 = vld [vmem:[#allocation129_spill] sm:$0xff] }
 0x648   : > { %v6611_v40 = vpop.eup %6610  ;;  %2046 = vperm.xlu1 %6335, %v10641_v57   ;;  %v3205_v37 = vpop.permute.xlu0 %3204  ;;  %v3931_v20 = vpack.c.bf16 %v6609_v39, %v6605_v50  ;;  %v10653_v50 = vld [vmem:[#allocation120_spill] sm:$0xff] }
 0x649   : > { %v3405_v44 = vmul.f32 1.442695, %v3309_v24  ;;  %v3407_v55 = vmul.f32 1.442695, %v3310_v19  ;;  %v3311_v23 = vsub.f32 %v10642_v59, %v3205_v37  ;;  %v3312_v62 = vsub.f32 %v10643_v42, %v3205_v37  ;;  %v10659_v24 = vld [vmem:[#allocation56_spill] sm:$0xff]  ;;  %v10661_v37 = vld [vmem:[#allocation94_spill] sm:$0xff] }
 0x64a   : > { %2041 = vperm.xlu0 %6334, %v10644_v7   ;;  %v3932_v46 = vpack.c.bf16 %v6611_v40, %v6607_v3  ;;  %v9476_v27 = vadd.f32 %v6611_v40, %v6609_v39  ;;  %v10654_v3 = vld [vmem:[#allocation122_spill] sm:$0xff]  ;;  %v10658_v39 = vsub.f32 %v10656_v17, %v10657_v15  ;;  %v10660_v40 = vld [vmem:[#allocation92_spill] sm:$0xff]  ;;  %v10662_v59 = vld [vmem:[#allocation55_spill] sm:$0xff] }
 0x64b   : > { %6622 = vpow2.f32 %v3405_v44  ;;  %v3409_v47 = vmul.f32 1.442695, %v3311_v23  ;;  %v3411_v10 = vmul.f32 1.442695, %v3312_v62  ;;  %v10655_v5 = vsub.f32 %v10653_v50, %v10654_v3  ;;  %v10663_v23 = vld [vmem:[#allocation124_spill] sm:$0xff]  ;;  %v10664_v42 = vld [vmem:[#allocation125_spill] sm:$0xff] }
 0x64c   : > { %6624 = vpow2.f32 %v3407_v55  ;;  %4031 = vmatprep.mubr.bf16.mxu0 %v3932_v46  ;;  %2056 = vperm.xlu1 %6335, %v10651_v0   ;;  %v3059_v61 = vmul.f32 1.442695, %v10658_v39  ;;  %v10665_v62 = vsub.f32 %v10663_v23, %v10664_v42 }
 0x64d   : > { %v6613_v28 = vpop.eup %6612  ;;  %6626 = vpow2.f32 %v3409_v47  ;;  %v3053_v36 = vmul.f32 1.442695, %v10655_v5  ;;  %v10674_v5 = vld [vmem:[#allocation133_spill] sm:$0xff] }
 0x64e   : > { %v6615_v14 = vpop.eup %6614  ;;  %6628 = vpow2.f32 %v3411_v10  ;;  %4032 = vmatmul.mubr.bf16.gmra.mrb[88].mxu0 %v3931_v20  ;;  %2051 = vperm.xlu0 %6334, %v10652_v38   ;;  %v3057_v7 = vmul.f32 1.442695, %v10665_v62 }
 0x64f   : > { %v6617_v8 = vpop.eup %6616  ;;  %6630 = vpow2.f32 %v1316_v56  ;;  %v9489_v54 = vadd.f32 %v6615_v14, %v6613_v28  ;;  %v10667_v56 = vld [vmem:[#allocation131_spill] sm:$0xff] }
 0x650   : > { %v6619_v30 = vpop.eup %6618  ;;  %6632 = vpow2.f32 %v3055_v53  ;;  %2066 = vperm.xlu1 %6335, %v10659_v24   ;;  %v3215_v52 = vpop.permute.xlu0 %3214  ;;  %v3933_v19 = vpack.c.bf16 %v6617_v8, %v6613_v28  ;;  %v10668_v47 = vsub.f32 %v10666_v2, %v10667_v56  ;;  %v10670_v53 = vld [vmem:[#allocation58_spill] sm:$0xff]  ;;  %v10671_v28 = vld [vmem:[#allocation128_spill] sm:$0xff]  ;;  %v10683_v2 = vld [vmem:[#allocation139_spill] sm:$0xff] }
 0x651   : > { %v3315_v57 = vsub.f32 %v10660_v40, %v3215_v52  ;;  %v3316_v20 = vsub.f32 %v10661_v37, %v3215_v52  ;;  %v3934_v44 = vpack.c.bf16 %v6619_v30, %v6615_v14  ;;  %v9497_v55 = vadd.f32 %v6619_v30, %v6617_v8  ;;  %v9503_v26 = vpop.eup %6620  ;;  %v10672_v14 = vld [vmem:[#allocation130_spill] sm:$0xff] }
 0x652   : > { %2061 = vperm.xlu0 %6334, %v10662_v59   ;;  %6634 = vpow2.f32 %v3053_v36  ;;  %v3063_v10 = vmul.f32 1.442695, %v10668_v47  ;;  %v10673_v38 = vsub.f32 %v10671_v28, %v10672_v14  ;;  %v10675_v36 = vld [vmem:[#allocation135_spill] sm:$0xff]  ;;  %v10677_v24 = vld [vmem:[#allocation90_spill] sm:$0xff] }
 0x653   : > { %v3417_v46 = vmul.f32 1.442695, %v3315_v57  ;;  %v3419_v51 = vmul.f32 1.442695, %v3316_v20  ;;  %4039 = vmatprep.mubr.bf16.mxu0 %v3934_v44  ;;  %6636 = vpow2.f32 %v3059_v61  ;;  %v10676_v30 = vsub.f32 %v10674_v5, %v10675_v36  ;;  %v10679_v44 = vld [vmem:[#allocation132_spill] sm:$0xff]  ;;  %v10680_v59 = vld [vmem:[#allocation134_spill] sm:$0xff] }
 0x654   : > { %2076 = vperm.xlu1 %6335, %v10669_v58   ;;  %v3061_v8 = vmul.f32 1.442695, %v10673_v38  ;;  %v10681_v23 = vsub.f32 %v10679_v44, %v10680_v59  ;;  %v10688_v38 = vld [vmem:[#allocation141_spill] sm:$0xff] }
 0x655   : > { %v6623_v1 = vpop.eup %6622  ;;  %6638 = vpow2.f32 %v3417_v46  ;;  %v3067_v17 = vmul.f32 1.442695, %v10676_v30 }
 0x656   : > { %v6625_v11 = vpop.eup %6624  ;;  %6640 = vpow2.f32 %v3419_v51  ;;  %4040 = vmatmul.mubr.bf16.gmra.mrb[92].mxu0 %v3933_v19  ;;  %2071 = vperm.xlu0 %6334, %v10670_v53   ;;  %v10678_v19 = vld [vmem:[#allocation91_spill] sm:$0xff]  ;;  %v3065_v42 = vmul.f32 1.442695, %v10681_v23  ;;  %v10682_v51 = vld [vmem:[#allocation137_spill] sm:$0xff] }
 0x657   : > { %v6627_v0 = vpop.eup %6626  ;;  %6642 = vpow2.f32 %v3057_v7  ;;  %v9513_v50 = vadd.f32 %v6625_v11, %v6623_v1  ;;  %v10684_v56 = vsub.f32 %v10682_v51, %v10683_v2 }
 0x658   : > { %v6629_v3 = vpop.eup %6628  ;;  %6644 = vpow2.f32 %v3063_v10  ;;  %2086 = vperm.xlu1 %6335, %v9503_v26   ;;  %v3225_v15 = vpop.permute.xlu0 %3224  ;;  %v3935_v39 = vpack.c.bf16 %v6627_v0, %v6623_v1  ;;  %v10685_v1 = vld [vmem:[#allocation136_spill] sm:$0xff] }
 0x659   : > { %v9519_v61 = vpop.eup %6630  ;;  %v3319_v52 = vsub.f32 %v10677_v24, %v3225_v15  ;;  %v3320_v40 = vsub.f32 %v10678_v19, %v3225_v15  ;;  %v3936_v57 = vpack.c.bf16 %v6629_v3, %v6625_v11  ;;  %v9523_v37 = vadd.f32 %v6629_v3, %v6627_v0  ;;  %v10686_v11 = vld [vmem:[#allocation138_spill] sm:$0xff]  ;;  %v10694_v19 = vld [vmem:[#allocation145_spill] sm:$0xff] }
 0x65a   : > { %v9525_v20 = vpop.eup %6632  ;;  %2081 = vperm.xlu0 %6334, %v9519_v61   ;;  %6646 = vpow2.f32 %v3061_v8  ;;  %v3071_v47 = vmul.f32 1.442695, %v10684_v56  ;;  %v10687_v53 = vsub.f32 %v10685_v1, %v10686_v11  ;;  %v10689_v8 = vld [vmem:[#allocation143_spill] sm:$0xff]  ;;  %v10692_v15 = vld [vmem:[#allocation142_spill] sm:$0xff] }
 0x65b   : > { %v3425_v62 = vmul.f32 1.442695, %v3319_v52  ;;  %v3427_v7 = vmul.f32 1.442695, %v3320_v40  ;;  %4047 = vmatprep.mubr.bf16.mxu0 %v3936_v57  ;;  %6648 = vpow2.f32 %v3067_v17  ;;  %v10690_v3 = vsub.f32 %v10688_v38, %v10689_v8  ;;  %v10691_v17 = vld [vmem:[#allocation140_spill] sm:$0xff]  ;;  %v10695_v40 = vld [vmem:[#allocation147_spill] sm:$0xff] }
 0x65c   : > { %3734 = vperm.xlu1 %6335, %v9525_v20   ;;  %v9532_v46 = vpop.eup %6634  ;;  %v3069_v0 = vmul.f32 1.442695, %v10687_v53  ;;  %v10696_v57 = vsub.f32 %v10694_v19, %v10695_v40  ;;  %v10703_v1 = vld [vmem:[#allocation151_spill] sm:$0xff]  ;;  %v10706_v8 = vld [vmem:[#allocation148_spill] sm:$0xff] }
 0x65d   : > { %6650 = vpow2.f32 %v3425_v62  ;;  %v9537_v10 = vpop.eup %6636  ;;  %v3075_v5 = vmul.f32 1.442695, %v10690_v3  ;;  %v10699_v62 = vld [vmem:[#allocation146_spill] sm:$0xff] }
 0x65e   : > { %6652 = vpow2.f32 %v3427_v7  ;;  %4048 = vmatmul.mubr.bf16.gmra.mrb[96].mxu0 %v3935_v39  ;;  %3729 = vperm.xlu0 %6334, %v9532_v46   ;;  %v10693_v39 = vsub.f32 %v10691_v17, %v10692_v15  ;;  %v3079_v44 = vmul.f32 1.442695, %v10696_v57  ;;  %v10707_v3 = vld [vmem:[#allocation150_spill] sm:$0xff] }
 0x65f   : > { %v9540_v58 = vpop.eup %6638  ;;  %6654 = vpow2.f32 %v3065_v42  ;;  %v10698_v42 = vld [vmem:[#allocation144_spill] sm:$0xff] }
 0x660   : > { %v9545_v28 = vpop.eup %6640  ;;  %3744 = vperm.xlu1 %6335, %v9537_v10   ;;  %6656 = vpow2.f32 %v3071_v47  ;;  %v3073_v24 = vmul.f32 1.442695, %v10693_v39  ;;  %v10700_v7 = vsub.f32 %v10698_v42, %v10699_v62  ;;  %v10702_v47 = vld [vmem:[#allocation149_spill] sm:$0xff]  ;;  %v10715_v42 = vld [vmem:[#allocation154_spill] sm:$0xff] }
 0x661   : > { %v9548_v14 = vpop.eup %6642  ;;  %v9555_v36 = vadd.f32 %v9545_v28, %v9540_v58  ;;  %6658 = vpow2.f32 %v3069_v0  ;;  %v10704_v11 = vsub.f32 %v10702_v47, %v10703_v1  ;;  %v10710_v39 = vld [vmem:[#allocation153_spill] sm:$0xff]  ;;  %v10719_v1 = vld [vmem:[#allocation159_spill] sm:$0xff] }
 0x662   : > { %v9557_v30 = vpop.eup %6644  ;;  %3739 = vperm.xlu0 %6334, %v9548_v14   ;;  %6660 = vpow2.f32 %v3075_v5  ;;  %v3077_v51 = vmul.f32 1.442695, %v10700_v7  ;;  %v10708_v5 = vsub.f32 %v10706_v8, %v10707_v3  ;;  %v10718_v47 = vld [vmem:[#allocation157_spill] sm:$0xff]  ;;  %v10722_v3 = vld [vmem:[#allocation156_spill] sm:$0xff] }
 0x663   : > { %6662 = vpow2.f32 %v3073_v24  ;;  %v3083_v53 = vmul.f32 1.442695, %v10704_v11  ;;  %v10711_v24 = vld [vmem:[#allocation155_spill] sm:$0xff]  ;;  %v10720_v11 = vsub.f32 %v10718_v47, %v10719_v1  ;;  %v10731_v1 = vld [vmem:[#allocation162_spill] sm:$0xff] }
 0x664   : > { %3754 = vperm.xlu1 %6335, %v9557_v30   ;;  %v9564_v52 = vpop.eup %6646  ;;  %6664 = vpow2.f32 %v3079_v44  ;;  %v3081_v17 = vmul.f32 1.442695, %v10708_v5  ;;  %v10712_v19 = vsub.f32 %v10710_v39, %v10711_v24  ;;  %v10714_v44 = vld [vmem:[#allocation152_spill] sm:$0xff]  ;;  %v10723_v5 = vld [vmem:[#allocation158_spill] sm:$0xff] }
 0x665   : > { %v9569_v59 = vpop.eup %6648  ;;  %6666 = vpow2.f32 %v3077_v51  ;;  %v10716_v62 = vsub.f32 %v10714_v44, %v10715_v42  ;;  %v1702_v24 = vld [vmem:[#allocation3 + $0xf0] sm:$0xff]  ;;  %v10727_v44 = vld [vmem:[#allocation163_spill] sm:$0xff] }
 0x666   : > { %10697 = vst [vmem:[#allocation47_spill] sm:$0xff] %v9569_v59  ;;  %3749 = vperm.xlu0 %6334, %v9564_v52   ;;  %6668 = vpow2.f32 %v3083_v53  ;;  %v3087_v40 = vmul.f32 1.442695, %v10712_v19  ;;  %v3091_v53 = vmul.f32 1.442695, %v10720_v11 }
 0x667   : > { %v9572_v23 = vpop.eup %6650  ;;  %6670 = vpow2.f32 %v3081_v17  ;;  %v3085_v7 = vmul.f32 1.442695, %v10716_v62  ;;  %v10724_v17 = vsub.f32 %v10722_v3, %v10723_v5  ;;  %v1734_v5 = vmul.f32 %v9519_v61, %v1702_v24  ;;  %v10739_v24 = vld [vmem:[#allocation167_spill] sm:$0xff] }
 0x668   : > { %v9577_v2 = vpop.eup %6652  ;;  %3764 = vperm.xlu1 %6335, %v9569_v59   ;;  %6672 = vpow2.f32 %v3087_v40  ;;  %v10726_v40 = vld [vmem:[#allocation161_spill] sm:$0xff]  ;;  %v10793_v59 = vld [vmem:[#allocation46_spill] sm:$0xff] }
 0x669   : > { %v9580_v56 = vpop.eup %6654  ;;  %v9587_v0 = vadd.f32 %v9577_v2, %v9572_v23  ;;  %6674 = vpow2.f32 %v3085_v7  ;;  %v3089_v39 = vmul.f32 1.442695, %v10724_v17  ;;  %v10728_v42 = vsub.f32 %v10726_v40, %v10727_v44  ;;  %v10730_v7 = vld [vmem:[#allocation160_spill] sm:$0xff] }
 0x66a   : > { %10701 = vst [vmem:[#allocation41_spill] sm:$0xff] %v9580_v56  ;;  %3759 = vperm.xlu0 %6334, %v9580_v56   ;;  %v9590_v38 = vpop.eup %6656  ;;  %6676 = vpow2.f32 %v3091_v53  ;;  %v10732_v11 = vsub.f32 %v10730_v7, %v10731_v1  ;;  %v10734_v53 = vld [vmem:[#allocation165_spill] sm:$0xff]  ;;  %v10737_v7 = vld [vmem:[#allocation164_spill] sm:$0xff] }
 0x66b   : > { %10705 = vst [vmem:[#allocation80_spill] sm:$0xff] %v9590_v38  ;;  %v9596_v15 = vpop.eup %6658  ;;  %v3095_v62 = vmul.f32 1.442695, %v10728_v42  ;;  %6678 = vpow2.f32 %v3089_v39  ;;  %v10735_v40 = vsub.f32 %v10734_v53, %v9291_v45  ;;  %v10738_v1 = vsub.f32 %v10737_v7, %v9288_v18  ;;  %v10743_v53 = vld [vmem:[#allocation88_spill] sm:$0xff] }
 0x66c   : > { %3774 = vperm.xlu1 %6335, %v9590_v38   ;;  %10709 = vst [vmem:[#allocation79_spill] sm:$0xff] %v9596_v15  ;;  %v9602_v57 = vpop.eup %6660  ;;  %v3093_v3 = vmul.f32 1.442695, %v10732_v11  ;;  %v10740_v11 = vsub.f32 %v10739_v24, %v9309_v4  ;;  %v10747_v24 = vld [vmem:[#allocation169_spill] sm:$0xff] }
 0x66d   : > { %10713 = vst [vmem:[#allocation48_spill] sm:$0xff] %v9602_v57  ;;  %v9608_v51 = vpop.eup %6662  ;;  %6680 = vpow2.f32 %v3095_v62  ;;  %v3099_v44 = vmul.f32 1.442695, %v10735_v40  ;;  %v3097_v61 = vmul.f32 1.442695, %v10738_v1  ;;  %v10745_v40 = vld [vmem:[#allocation166_spill] sm:$0xff] }
 0x66e   : > { %3769 = vperm.xlu0 %6334, %v9596_v15   ;;  %10717 = vst [vmem:[#allocation81_spill] sm:$0xff] %v9608_v51  ;;  %v9614_v8 = vpop.eup %6664  ;;  %6682 = vpow2.f32 %v3093_v3  ;;  %v3103_v62 = vmul.f32 1.442695, %v10740_v11  ;;  %v10748_v11 = vsub.f32 %v10747_v24, %v9328_v41 }
 0x66f   : > { %10721 = vst [vmem:[#allocation84_spill] sm:$0xff] %v9614_v8  ;;  %v9620_v19 = vpop.eup %6666  ;;  %6684 = vpow2.f32 %v3099_v44 }
 0x670   : > { %3784 = vperm.xlu1 %6335, %v9602_v57   ;;  %10725 = vst [vmem:[#allocation43_spill] sm:$0xff] %v9620_v19  ;;  %v9626_v47 = vpop.eup %6668  ;;  %6686 = vpow2.f32 %v3097_v61  ;;  %v3107_v44 = vmul.f32 1.442695, %v10748_v11  ;;  %v10751_v61 = vld [vmem:[#allocation98_spill] sm:$0xff] }
 0x671   : > { %10729 = vst [vmem:[#allocation51_spill] sm:$0xff] %v9626_v47  ;;  %6688 = vpow2.f32 %v3103_v62  ;;  %v10753_v62 = vld [vmem:[#allocation168_spill] sm:$0xff] }
 0x672   : > { %3779 = vperm.xlu0 %6334, %v9608_v51   ;;  %v10754_v41 = vsub.f32 %v10753_v62, %v9325_v16 }
 0x674   : > { %3794 = vperm.xlu1 %6335, %v9614_v8   ;;  %v9633_v8 = vpop.eup %6670 }
 0x675   : > { %10733 = vst [vmem:[#allocation106_spill] sm:$0xff] %v9633_v8  ;;  %v9639_v39 = vpop.eup %6672 }
 0x676   : > { %3789 = vperm.xlu0 %6334, %v9620_v19   ;;  %10736 = vst [vmem:[#allocation107_spill] sm:$0xff] %v9639_v39  ;;  %v9649_v45 = vpop.eup %6674 }
 0x677   : > { %10741 = vst [vmem:[#allocation44_spill] sm:$0xff] %v9649_v45  ;;  %v9654_v18 = vpop.eup %6676 }
 0x678   : > { %v1828_v17 = vpop.xlane.xlu1 %1827  ;;  %3804 = vperm.xlu1 %6335, %v9626_v47   ;;  %10744 = vst [vmem:[#allocation86_spill] sm:$0xff] %v9654_v18 }
 0x679   : > { %v1862_v42 = vadd.f32 %v1828_v17, %v1734_v5  ;;  %v10742_v5 = vld [vmem:[#allocation85_spill] sm:$0xff] }
 0x67a   : > { %3799 = vperm.xlu0 %6334, %v9633_v8   ;;  %v1703_v8 = vld [vmem:[#allocation3 + $0xf8] sm:$0xff] }
 0x67b   : > { %1895 = vst.msk [vmem:[#allocation3 + $0xf0] sm:$0xff] %vm1864_vm1, %v1862_v42  ;;  %v10746_v42 = vsub.f32 %v10745_v40, %v9306_v32 }
 0x67c   : > { %v3210_v47 = vpop.permute.xlu1 %3209  ;;  %3814 = vperm.xlu1 %6335, %v9639_v39  }
 0x67d   : > { %v3313_v17 = vsub.f32 %v10742_v5, %v3210_v47  ;;  %v3314_v3 = vsub.f32 %v10743_v53, %v3210_v47  ;;  %v3101_v4 = vmul.f32 1.442695, %v10746_v42  ;;  %v9663_v47 = vpop.eup %6678  ;;  %v10750_v5 = vld [vmem:[#allocation96_spill] sm:$0xff]  ;;  %v10755_v42 = vld [vmem:[#allocation171_spill] sm:$0xff] }
 0x67e   : > { %3809 = vperm.xlu0 %6334, %v9649_v45   ;;  %10749 = vst [vmem:[#allocation87_spill] sm:$0xff] %v9663_v47  ;;  %v9668_v32 = vpop.eup %6680 }
 0x67f   : > { %v3413_v7 = vmul.f32 1.442695, %v3313_v17  ;;  %v3415_v1 = vmul.f32 1.442695, %v3314_v3  ;;  %10752 = vst [vmem:[#allocation54_spill] sm:$0xff] %v9668_v32 }
 0x680   : > { %v3220_v39 = vpop.permute.xlu1 %3219  ;;  %3824 = vperm.xlu1 %6335, %v9654_v18   ;;  %v3105_v17 = vmul.f32 1.442695, %v10754_v41 }
 0x681   : > { %6690 = vpow2.f32 %v3413_v7  ;;  %v3317_v53 = vsub.f32 %v10750_v5, %v3220_v39  ;;  %v3318_v45 = vsub.f32 %v10751_v61, %v3220_v39  ;;  %v10756_v7 = vsub.f32 %v10755_v42, %v9350_v22  ;;  %v10759_v61 = vld [vmem:[#allocation95_spill] sm:$0xff]  ;;  %v10761_v22 = vld [vmem:[#allocation170_spill] sm:$0xff] }
 0x682   : > { %6692 = vpow2.f32 %v3415_v1  ;;  %3819 = vperm.xlu0 %6334, %v9663_v47   ;;  %v1735_v39 = vmul.f32 %v9503_v26, %v1703_v8  ;;  %v9678_v1 = vpop.eup %6682 }
 0x683   : > { %6694 = vpow2.f32 %v3101_v4  ;;  %v3421_v3 = vmul.f32 1.442695, %v3317_v53  ;;  %v3423_v40 = vmul.f32 1.442695, %v3318_v45  ;;  %v3111_v24 = vmul.f32 1.442695, %v10756_v7 }
 0x684   : > { %6696 = vpow2.f32 %v3107_v44  ;;  %v3230_v11 = vpop.permute.xlu1 %3229  ;;  %3834 = vperm.xlu1 %6335, %v9668_v32   ;;  %10757 = vst [vmem:[#allocation83_spill] sm:$0xff] %v9678_v1  ;;  %v10758_v4 = vld [vmem:[#allocation93_spill] sm:$0xff]  ;;  %v9683_v44 = vpop.eup %6684  ;;  %v10762_v53 = vsub.f32 %v10761_v22, %v9343_v43 }
 0x685   : > { %6698 = vpow2.f32 %v3421_v3  ;;  %v3321_v5 = vsub.f32 %v10758_v4, %v3230_v11  ;;  %v3322_v16 = vsub.f32 %v10759_v61, %v3230_v11  ;;  %v1831_v62 = vpop.xlane.xlu0 %1830  ;;  %10760 = vst [vmem:[#allocation89_spill] sm:$0xff] %v9683_v44  ;;  %v9690_v42 = vpop.eup %6686  ;;  %v10765_v11 = vld [vmem:[#allocation99_spill] sm:$0xff] }
 0x686   : > { %6700 = vpow2.f32 %v3423_v40  ;;  %v1863_v45 = vadd.f32 %v1831_v62, %v1735_v39  ;;  %3829 = vperm.xlu0 %6334, %v9678_v1   ;;  %v3109_v41 = vmul.f32 1.442695, %v10762_v53  ;;  %10763 = vst [vmem:[#allocation52_spill] sm:$0xff] %v9690_v42  ;;  %v10764_v40 = vld [vmem:[#allocation97_spill] sm:$0xff] }
 0x687   : > { %6702 = vpow2.f32 %v3105_v17  ;;  %v3429_v26 = vmul.f32 1.442695, %v3321_v5  ;;  %v3431_v8 = vmul.f32 1.442695, %v3322_v16  ;;  %v9694_v17 = vpop.eup %6688  ;;  %v10769_v53 = vld [vmem:[#allocation105_spill] sm:$0xff] }
 0x688   : > { %6704 = vpow2.f32 %v3111_v24  ;;  %1896 = vst.msk [vmem:[#allocation3 + $0xf8] sm:$0xff] %vm1864_vm1, %v1863_v45  ;;  %v3240_v3 = vpop.permute.xlu1 %3239  ;;  %3844 = vperm.xlu1 %6335, %v9683_v44   ;;  %10766 = vst [vmem:[#allocation108_spill] sm:$0xff] %v9694_v17  ;;  %v10768_v45 = vld [vmem:[#allocation104_spill] sm:$0xff] }
 0x689   : > { %6706 = vpow2.f32 %v3429_v26  ;;  %v3325_v7 = vsub.f32 %v10764_v40, %v3240_v3  ;;  %v3326_v39 = vsub.f32 %v10765_v11, %v3240_v3  ;;  %v10772_v11 = vld [vmem:[#allocation103_spill] sm:$0xff] }
 0x68a   : > { %6708 = vpow2.f32 %v3431_v8  ;;  %3839 = vperm.xlu0 %6334, %v9690_v42  }
 0x68b   : > { %v6691_v43 = vpop.eup %6690  ;;  %6710 = vpow2.f32 %v3109_v41  ;;  %v3437_v24 = vmul.f32 1.442695, %v3325_v7  ;;  %v3439_v4 = vmul.f32 1.442695, %v3326_v39  ;;  %v10771_v41 = vld [vmem:[#allocation100_spill] sm:$0xff] }
 0x68c   : > { %v6693_v5 = vpop.eup %6692  ;;  %v3250_v61 = vpop.permute.xlu1 %3249  ;;  %3854 = vperm.xlu1 %6335, %v9694_v17   ;;  %v3937_v16 = vpack.c.bf16 %v9540_v58, %v6691_v43 }
 0x68d   : > { %v9699_v62 = vpop.eup %6694  ;;  %6712 = vpow2.f32 %v3437_v24  ;;  %v3329_v22 = vsub.f32 %v10768_v45, %v3250_v61  ;;  %v3330_v26 = vsub.f32 %v10769_v53, %v3250_v61  ;;  %v3235_v8 = vpop.permute.xlu0 %3234  ;;  %v3938_v3 = vpack.c.bf16 %v9545_v28, %v6693_v5 }
 0x68e   : > { %10767 = vst [vmem:[#allocation109_spill] sm:$0xff] %v9699_v62  ;;  %v9704_v40 = vpop.eup %6696  ;;  %6714 = vpow2.f32 %v3439_v4  ;;  %v3323_v7 = vsub.f32 %v10771_v41, %v3235_v8  ;;  %v3324_v39 = vsub.f32 %v10772_v11, %v3235_v8  ;;  %3849 = vperm.xlu0 %6334, %v9699_v62   ;;  %v9709_v58 = vadd.f32 %v6693_v5, %v6691_v43  ;;  %v10774_v8 = vld [vmem:[#allocation112_spill] sm:$0xff]  ;;  %v10775_v43 = vld [vmem:[#allocation113_spill] sm:$0xff] }
 0x68f   : > { %10770 = vst [vmem:[#allocation121_spill] sm:$0xff] %v9704_v40  ;;  %v6699_v17 = vpop.eup %6698  ;;  %v3445_v24 = vmul.f32 1.442695, %v3329_v22  ;;  %v3447_v42 = vmul.f32 1.442695, %v3330_v26  ;;  %4055 = vmatprep.mubr.bf16.mxu0 %v3938_v3  ;;  %v10777_v3 = vld [vmem:[#allocation101_spill] sm:$0xff] }
 0x690   : > { %v6701_v45 = vpop.eup %6700  ;;  %v3433_v61 = vmul.f32 1.442695, %v3323_v7  ;;  %v3435_v53 = vmul.f32 1.442695, %v3324_v39  ;;  %4056 = vmatmul.mubr.bf16.gmra.mrb[100].mxu0 %v3937_v16  ;;  %v3260_v28 = vpop.permute.xlu1 %3259  ;;  %3864 = vperm.xlu1 %6335, %v9704_v40   ;;  %v3939_v4 = vpack.c.bf16 %v9572_v23, %v6699_v17  ;;  %v10778_v7 = vld [vmem:[#allocation102_spill] sm:$0xff] }
 0x691   : > { %v9713_v41 = vpop.eup %6702  ;;  %6716 = vpow2.f32 %v3445_v24  ;;  %v3333_v11 = vsub.f32 %v10774_v8, %v3260_v28  ;;  %v3334_v5 = vsub.f32 %v10775_v43, %v3260_v28  ;;  %v3245_v62 = vpop.permute.xlu0 %3244  ;;  %v3940_v22 = vpack.c.bf16 %v9577_v2, %v6701_v45  ;;  %v1897_v23 = vld [vmem:[#allocation4] sm:$0xff] }
 0x692   : > { %10773 = vst [vmem:[#allocation123_spill] sm:$0xff] %v9713_v41  ;;  %v9718_v26 = vpop.eup %6704  ;;  %6718 = vpow2.f32 %v3447_v42  ;;  %v3327_v16 = vsub.f32 %v10777_v3, %v3245_v62  ;;  %v3328_v39 = vsub.f32 %v10778_v7, %v3245_v62  ;;  %3859 = vperm.xlu0 %6334, %v9713_v41   ;;  %v9723_v40 = vadd.f32 %v6701_v45, %v6699_v17 }
 0x693   : > { %10776 = vst [vmem:[#allocation59_spill] sm:$0xff] %v9718_v26  ;;  %v9725_v24 = vpop.eup %6706  ;;  %6720 = vpow2.f32 %v3433_v61  ;;  %v3453_v8 = vmul.f32 1.442695, %v3333_v11  ;;  %v3455_v28 = vmul.f32 1.442695, %v3334_v5  ;;  %4063 = vmatprep.mubr.bf16.mxu0 %v3940_v22  ;;  %v10780_v61 = vld [vmem:[#allocation114_spill] sm:$0xff] }
 0x694   : > { %v9727_v43 = vpop.eup %6708  ;;  %6722 = vpow2.f32 %v3435_v53  ;;  %v3441_v2 = vmul.f32 1.442695, %v3327_v16  ;;  %v3443_v42 = vmul.f32 1.442695, %v3328_v39  ;;  %v1932_v44 = vpop.permute.xlu1 %1931  ;;  %3874 = vperm.xlu1 %6335, %v9718_v26   ;;  %v10781_v5 = vld [vmem:[#allocation115_spill] sm:$0xff]  ;;  %v10782_v16 = vld [vmem:[#allocation42_spill] sm:$0xff] }
 0x695   : > { %v9730_v62 = vpop.eup %6710  ;;  %6724 = vpow2.f32 %v3453_v8  ;;  %v2089_v3 = vmul.f32 %v1932_v44, %v1897_v23  ;;  %v3265_v17 = vpop.permute.xlu0 %3264  ;;  %v9734_v45 = vadd.f32 %v9727_v43, %v9725_v24 }
 0x696   : > { %10779 = vst [vmem:[#allocation53_spill] sm:$0xff] %v9730_v62  ;;  %6726 = vpow2.f32 %v3455_v28  ;;  %v3335_v11 = vsub.f32 %v10780_v61, %v3265_v17  ;;  %v3336_v22 = vsub.f32 %v10781_v5, %v3265_v17  ;;  %3869 = vperm.xlu0 %6334, %v9730_v62   ;;  %v10783_v28 = vld [vmem:[#allocation116_spill] sm:$0xff]  ;;  %v10784_v61 = vld [vmem:[#allocation117_spill] sm:$0xff] }
 0x697   : > { %v9739_v53 = vpop.eup %6712  ;;  %6728 = vpow2.f32 %v3441_v2  ;;  %v2410_v7 = vadd.f32 %v10782_v16, %v2089_v3  ;;  %v10785_v2 = vld [vmem:[#allocation110_spill] sm:$0xff]  ;;  %v10786_v16 = vld [vmem:[#allocation111_spill] sm:$0xff] }
 0x698   : > { %v9742_v39 = vpop.eup %6714  ;;  %6730 = vpow2.f32 %v3443_v42  ;;  %v3457_v44 = vmul.f32 1.442695, %v3335_v11  ;;  %v3459_v23 = vmul.f32 1.442695, %v3336_v22  ;;  %4064 = vmatmul.mubr.bf16.gmra.mrb[104].mxu0 %v3939_v4  ;;  %v3270_v8 = vpop.permute.xlu1 %3269  ;;  %v1899_v42 = vld [vmem:[#allocation4 + $0x10] sm:$0xff] }
 0x699   : > { %2442 = vst [vmem:[#allocation4] sm:$0xff] %v2410_v7  ;;  %v3337_v26 = vsub.f32 %v10783_v28, %v3270_v8  ;;  %v3338_v41 = vsub.f32 %v10784_v61, %v3270_v8  ;;  %v3255_v17 = vpop.permute.xlu0 %3254  ;;  %v9748_v5 = vadd.f32 %v9742_v39, %v9739_v53 }
 0x69a   : > { %6732 = vpow2.f32 %v3457_v44  ;;  %v3331_v3 = vsub.f32 %v10785_v2, %v3255_v17  ;;  %v3332_v62 = vsub.f32 %v10786_v16, %v3255_v17  ;;  %v10787_v2 = vld [vmem:[#allocation118_spill] sm:$0xff] }
 0x69b   : > { %v9752_v11 = vpop.eup %6716  ;;  %6734 = vpow2.f32 %v3459_v23  ;;  %v3461_v4 = vmul.f32 1.442695, %v3337_v26  ;;  %v3463_v22 = vmul.f32 1.442695, %v3338_v41  ;;  %v10788_v23 = vld [vmem:[#allocation119_spill] sm:$0xff]  ;;  %v1900_v41 = vld [vmem:[#allocation4 + $0x18] sm:$0xff] }
 0x69c   : > { %v9754_v7 = vpop.eup %6718  ;;  %v3449_v28 = vmul.f32 1.442695, %v3331_v3  ;;  %v3451_v8 = vmul.f32 1.442695, %v3332_v62  ;;  %v1942_v61 = vpop.permute.xlu1 %1941  ;;  %v10789_v62 = vld [vmem:[#allocation35_spill] sm:$0xff] }
 0x69d   : > { %v6721_v1 = vpop.eup %6720  ;;  %6736 = vpow2.f32 %v3461_v4  ;;  %v2091_v32 = vmul.f32 %v1942_v61, %v1899_v42  ;;  %v3275_v47 = vpop.permute.xlu0 %3274  ;;  %v9758_v44 = vadd.f32 %v9754_v7, %v9752_v11  ;;  %v1898_v4 = vld [vmem:[#allocation4 + $0x8] sm:$0xff] }
 0x69e   : > { %v6723_v17 = vpop.eup %6722  ;;  %6738 = vpow2.f32 %v3463_v22  ;;  %v3339_v16 = vsub.f32 %v10787_v2, %v3275_v47  ;;  %v3340_v26 = vsub.f32 %v10788_v23, %v3275_v47  ;;  %v3941_v18 = vpack.c.bf16 %v6721_v1, %v9725_v24 }
 0x69f   : > { %v6725_v3 = vpop.eup %6724  ;;  %6740 = vpow2.f32 %v3449_v28  ;;  %v2412_v19 = vadd.f32 %v10789_v62, %v2091_v32  ;;  %v3942_v42 = vpack.c.bf16 %v6723_v17, %v9727_v43  ;;  %v9765_v61 = vadd.f32 %v6723_v17, %v6721_v1  ;;  %v1902_v43 = vld [vmem:[#allocation4 + $0x28] sm:$0xff]  ;;  %v10790_v17 = vld [vmem:[#allocation45_spill] sm:$0xff] }
 0x6a0   : > { %v6727_v51 = vpop.eup %6726  ;;  %6742 = vpow2.f32 %v3451_v8  ;;  %v3465_v57 = vmul.f32 1.442695, %v3339_v16  ;;  %v3467_v22 = vmul.f32 1.442695, %v3340_v26  ;;  %v1947_v15 = vpop.permute.xlu1 %1946  ;;  %v1901_v26 = vld [vmem:[#allocation4 + $0x20] sm:$0xff] }
 0x6a1   : > { %v6729_v2 = vpop.eup %6728  ;;  %2444 = vst [vmem:[#allocation4 + $0x10] sm:$0xff] %v2412_v19  ;;  %4071 = vmatprep.mubr.bf16.mxu0 %v3942_v42  ;;  %v2092_v47 = vmul.f32 %v1947_v15, %v1900_v41  ;;  %v1937_v23 = vpop.permute.xlu0 %1936  ;;  %v9767_v24 = vadd.f32 %v6727_v51, %v6725_v3  ;;  %v10791_v15 = vld [vmem:[#allocation34_spill] sm:$0xff] }
 0x6a2   : > { %v6731_v28 = vpop.eup %6730  ;;  %6744 = vpow2.f32 %v3465_v57  ;;  %4072 = vmatmul.mubr.bf16.gmra.mrb[108].mxu0 %v3941_v18  ;;  %v2090_v32 = vmul.f32 %v1937_v23, %v1898_v4  ;;  %v3943_v1 = vpack.c.bf16 %v6729_v2, %v9739_v53  ;;  %v1904_v23 = vld [vmem:[#allocation4 + $0x38] sm:$0xff] }
 0x6a3   : > { %6746 = vpow2.f32 %v3467_v22  ;;  %v2413_v8 = vadd.f32 %v10790_v17, %v2092_v47  ;;  %v3944_v16 = vpack.c.bf16 %v6731_v28, %v9742_v39  ;;  %v9772_v62 = vadd.f32 %v6731_v28, %v6729_v2  ;;  %v10792_v17 = vld [vmem:[#allocation36_spill] sm:$0xff] }
 0x6a4   : > { %v6733_v19 = vpop.eup %6732  ;;  %v2411_v41 = vadd.f32 %v10791_v15, %v2090_v32  ;;  %v1957_v42 = vpop.permute.xlu1 %1956  ;;  %v1903_v28 = vld [vmem:[#allocation4 + $0x30] sm:$0xff] }
 0x6a5   : > { %v6735_v38 = vpop.eup %6734  ;;  %2445 = vst [vmem:[#allocation4 + $0x18] sm:$0xff] %v2413_v8  ;;  %4079 = vmatprep.mubr.bf16.mxu0 %v3944_v16  ;;  %v2094_v57 = vmul.f32 %v1957_v42, %v1902_v43  ;;  %v1952_v18 = vpop.permute.xlu0 %1951  ;;  %v3947_v4 = vpack.c.bf16 %v6733_v19, %v6725_v3 }
 0x6a6   : > { %2443 = vst [vmem:[#allocation4 + $0x8] sm:$0xff] %v2411_v41  ;;  %v2093_v53 = vmul.f32 %v1952_v18, %v1901_v26  ;;  %v3948_v22 = vpack.c.bf16 %v6735_v38, %v6727_v51  ;;  %v9775_v47 = vadd.f32 %v6735_v38, %v6733_v19  ;;  %v1906_v26 = vld [vmem:[#allocation4 + $0x48] sm:$0xff]  ;;  %v10794_v41 = vld [vmem:[#allocation49_spill] sm:$0xff] }
 0x6a7   : > { %v6737_v39 = vpop.eup %6736  ;;  %v2415_v2 = vadd.f32 %v10792_v17, %v2094_v57  ;;  %v1905_v57 = vld [vmem:[#allocation4 + $0x40] sm:$0xff] }
 0x6a8   : > { %v6739_v56 = vpop.eup %6738  ;;  %v2414_v32 = vadd.f32 %v10793_v59, %v2093_v53  ;;  %4095 = vmatprep.mubr.bf16.mxu1 %v3948_v22  ;;  %v1967_v15 = vpop.permute.xlu1 %1966  ;;  %v10795_v22 = vld [vmem:[#allocation37_spill] sm:$0xff] }
 0x6a9   : > { %v6741_v8 = vpop.eup %6740  ;;  %2447 = vst [vmem:[#allocation4 + $0x28] sm:$0xff] %v2415_v2  ;;  %v2096_v43 = vmul.f32 %v1967_v15, %v1904_v23  ;;  %4096 = vmatmul.mubr.bf16.vlgmr.msra.gmra.mrb[128].mxu1 %v3947_v4  ;;  %v1962_v3 = vpop.permute.xlu0 %1961  ;;  %v9779_v16 = vadd.f32 %v6739_v56, %v6737_v39  ;;  %v1908_v15 = vld [vmem:[#allocation4 + $0x58] sm:$0xff] }
 0x6aa   : > { %v6743_v51 = vpop.eup %6742  ;;  %2446 = vst [vmem:[#allocation4 + $0x20] sm:$0xff] %v2414_v32  ;;  %4080 = vmatmul.mubr.bf16.gmra.mrb[112].mxu0 %v3943_v1  ;;  %v2095_v38 = vmul.f32 %v1962_v3, %v1903_v28  ;;  %v3945_v19 = vpack.c.bf16 %v6741_v8, %v9752_v11 }
 0x6ab   : > { %v2417_v42 = vadd.f32 %v10794_v41, %v2096_v43  ;;  %v3946_v59 = vpack.c.bf16 %v6743_v51, %v9754_v7  ;;  %v9784_v18 = vadd.f32 %v6743_v51, %v6741_v8  ;;  %v10796_v7 = vld [vmem:[#allocation38_spill] sm:$0xff]  ;;  %v1907_v8 = vld [vmem:[#allocation4 + $0x50] sm:$0xff] }
 0x6ac   : > { %v6745_v53 = vpop.eup %6744  ;;  %v2416_v4 = vadd.f32 %v10795_v22, %v2095_v38  ;;  %v1977_v23 = vpop.permute.xlu1 %1976  ;;  %v10797_v51 = vld [vmem:[#allocation50_spill] sm:$0xff] }
 0x6ad   : > { %v6747_v17 = vpop.eup %6746  ;;  %2449 = vst [vmem:[#allocation4 + $0x38] sm:$0xff] %v2417_v42  ;;  %4087 = vmatprep.mubr.bf16.mxu0 %v3946_v59  ;;  %v2098_v2 = vmul.f32 %v1977_v23, %v1906_v26  ;;  %v1972_v1 = vpop.permute.xlu0 %1971  ;;  %v3949_v28 = vpack.c.bf16 %v6745_v53, %v6737_v39  ;;  %v1910_v26 = vld [vmem:[#allocation4 + $0x68] sm:$0xff]  ;;  %v10798_v59 = vld [vmem:[#allocation40_spill] sm:$0xff] }
 0x6ae   : > { %2448 = vst [vmem:[#allocation4 + $0x30] sm:$0xff] %v2416_v4  ;;  %v2097_v32 = vmul.f32 %v1972_v1, %v1905_v57  ;;  %v3950_v11 = vpack.c.bf16 %v6747_v17, %v6739_v56  ;;  %v9787_v43 = vadd.f32 %v6747_v17, %v6745_v53  ;;  %v1909_v57 = vld [vmem:[#allocation4 + $0x60] sm:$0xff]  ;;  %v10799_v53 = vld [vmem:[#allocation39_spill] sm:$0xff] }
 0x6af   : > { %v2419_v3 = vadd.f32 %v10796_v7, %v2098_v2 }
 0x6b0   : > { %v2418_v41 = vadd.f32 %v10797_v51, %v2097_v32  ;;  %4103 = vmatprep.mubr.bf16.mxu1 %v3950_v11  ;;  %v1987_v38 = vpop.permute.xlu1 %1986  ;;  %v1912_v32 = vld [vmem:[#allocation4 + $0x78] sm:$0xff] }
 0x6b1   : > { %2451 = vst [vmem:[#allocation4 + $0x48] sm:$0xff] %v2419_v3  ;;  %v2100_v22 = vmul.f32 %v1987_v38, %v1908_v15  ;;  %4104 = vmatmul.mubr.bf16.gmra.mrb[132].mxu1 %v3949_v28  ;;  %v1982_v42 = vpop.permute.xlu0 %1981  ;;  %v10800_v28 = vld [vmem:[#allocation64_spill] sm:$0xff]  ;;  %v10802_v38 = vld [vmem:[#allocation61_spill] sm:$0xff] }
 0x6b2   : > { %2450 = vst [vmem:[#allocation4 + $0x40] sm:$0xff] %v2418_v41  ;;  %4088 = vmatmul.mubr.bf16.gmra.mrb[116].mxu0 %v3945_v19  ;;  %v2099_v39 = vmul.f32 %v1982_v42, %v1907_v8  ;;  %v1911_v15 = vld [vmem:[#allocation4 + $0x70] sm:$0xff]  ;;  %v10801_v19 = vld [vmem:[#allocation62_spill] sm:$0xff] }
 0x6b3   : > { %v2421_v56 = vadd.f32 %v10798_v59, %v2100_v22  ;;  %v1913_v42 = vld [vmem:[#allocation4 + $0x80] sm:$0xff] }
 0x6b4   : > { %v2420_v4 = vadd.f32 %v10799_v53, %v2099_v39  ;;  %v1997_v23 = vpop.permute.xlu1 %1996  ;;  %v10803_v39 = vld [vmem:[#allocation60_spill] sm:$0xff] }
 0x6b5   : > { %2453 = vst [vmem:[#allocation4 + $0x58] sm:$0xff] %v2421_v56  ;;  %v2102_v17 = vmul.f32 %v1997_v23, %v1910_v26  ;;  %3538 = vadd.xlane.f32.xlu0 %v9401_v63  ;;  %v1992_v2 = vpop.permute.xlu0 %1991  ;;  %v1914_v63 = vld [vmem:[#allocation4 + $0x88] sm:$0xff]  ;;  %v10804_v53 = vld [vmem:[#allocation68_spill] sm:$0xff] }
 0x6b6   : > { %2452 = vst [vmem:[#allocation4 + $0x50] sm:$0xff] %v2420_v4  ;;  %v2101_v1 = vmul.f32 %v1992_v2, %v1909_v57  ;;  %v1915_v23 = vld [vmem:[#allocation4 + $0x90] sm:$0xff] }
 0x6b7   : > { %v2423_v11 = vadd.f32 %v10800_v28, %v2102_v17  ;;  %v10805_v17 = vld [vmem:[#allocation66_spill] sm:$0xff] }
 0x6b8   : > { %v2422_v7 = vadd.f32 %v10801_v19, %v2101_v1  ;;  %v2007_v3 = vpop.permute.xlu1 %2006  ;;  %3535 = vadd.xlane.f32.xlu1 %v9395_v6  ;;  %v1917_v19 = vld [vmem:[#allocation4 + $0xa0] sm:$0xff] }
 0x6b9   : > { %2455 = vst [vmem:[#allocation4 + $0x68] sm:$0xff] %v2423_v11  ;;  %v2104_v8 = vmul.f32 %v2007_v3, %v1912_v32  ;;  %3544 = vadd.xlane.f32.xlu0 %v9414_v33  ;;  %v2002_v51 = vpop.permute.xlu0 %2001  ;;  %v1916_v33 = vld [vmem:[#allocation4 + $0x98] sm:$0xff]  ;;  %v10806_v11 = vld [vmem:[#allocation72_spill] sm:$0xff] }
 0x6ba   : > { %2454 = vst [vmem:[#allocation4 + $0x60] sm:$0xff] %v2422_v7  ;;  %v2103_v41 = vmul.f32 %v2002_v51, %v1911_v15  ;;  %v10807_v7 = vld [vmem:[#allocation70_spill] sm:$0xff] }
 0x6bb   : > { %v2425_v22 = vadd.f32 %v10802_v38, %v2104_v8 }
 0x6bc   : > { %v2424_v26 = vadd.f32 %v10803_v39, %v2103_v41  ;;  %v2017_v59 = vpop.permute.xlu1 %2016  ;;  %3541 = vadd.xlane.f32.xlu1 %v9407_v9 }
 0x6bd   : > { %2457 = vst [vmem:[#allocation4 + $0x78] sm:$0xff] %v2425_v22  ;;  %v2106_v56 = vmul.f32 %v2017_v59, %v1914_v63  ;;  %3550 = vadd.xlane.f32.xlu0 %v9425_v31  ;;  %v2012_v6 = vpop.permute.xlu0 %2011  ;;  %v1918_v31 = vld [vmem:[#allocation4 + $0xa8] sm:$0xff]  ;;  %v10808_v63 = vld [vmem:[#allocation65_spill] sm:$0xff]  ;;  %v1919_v22 = vld [vmem:[#allocation4 + $0xb0] sm:$0xff] }
 0x6be   : > { %2456 = vst [vmem:[#allocation4 + $0x70] sm:$0xff] %v2424_v26  ;;  %v2105_v57 = vmul.f32 %v2012_v6, %v1913_v42  ;;  %v10809_v42 = vld [vmem:[#allocation63_spill] sm:$0xff]  ;;  %v10810_v6 = vld [vmem:[#allocation76_spill] sm:$0xff] }
 0x6bf   : > { %v2427_v4 = vadd.f32 %v10804_v53, %v2106_v56  ;;  %v10811_v53 = vld [vmem:[#allocation74_spill] sm:$0xff] }
 0x6c0   : > { %v2426_v2 = vadd.f32 %v10805_v17, %v2105_v57  ;;  %v2027_v1 = vpop.permute.xlu1 %2026  ;;  %3547 = vadd.xlane.f32.xlu1 %v9419_v48 }
 0x6c1   : > { %2459 = vst [vmem:[#allocation4 + $0x88] sm:$0xff] %v2427_v4  ;;  %v2108_v32 = vmul.f32 %v2027_v1, %v1916_v33  ;;  %3556 = vadd.xlane.f32.xlu0 %v9437_v29  ;;  %v2022_v9 = vpop.permute.xlu0 %2021  ;;  %v1920_v29 = vld [vmem:[#allocation4 + $0xb8] sm:$0xff]  ;;  %v1921_v33 = vld [vmem:[#allocation4 + $0xc0] sm:$0xff] }
 0x6c2   : > { %2458 = vst [vmem:[#allocation4 + $0x80] sm:$0xff] %v2426_v2  ;;  %v2107_v28 = vmul.f32 %v2022_v9, %v1915_v23  ;;  %v10812_v1 = vld [vmem:[#allocation69_spill] sm:$0xff]  ;;  %v1923_v9 = vld [vmem:[#allocation4 + $0xd0] sm:$0xff] }
 0x6c3   : > { %v2429_v15 = vadd.f32 %v10806_v11, %v2108_v32 }
 0x6c4   : > { %v2428_v3 = vadd.f32 %v10807_v7, %v2107_v28  ;;  %v2037_v8 = vpop.permute.xlu1 %2036  ;;  %3553 = vadd.xlane.f32.xlu1 %v9431_v12  ;;  %v10813_v28 = vld [vmem:[#allocation67_spill] sm:$0xff]  ;;  %v10814_v7 = vld [vmem:[#allocation77_spill] sm:$0xff] }
 0x6c5   : > { %2461 = vst [vmem:[#allocation4 + $0x98] sm:$0xff] %v2429_v15  ;;  %v2110_v51 = vmul.f32 %v2037_v8, %v1918_v31  ;;  %3562 = vadd.xlane.f32.xlu0 %v9449_v35  ;;  %v2032_v48 = vpop.permute.xlu0 %2031  ;;  %v1922_v35 = vld [vmem:[#allocation4 + $0xc8] sm:$0xff]  ;;  %v1925_v8 = vld [vmem:[#allocation4 + $0xe0] sm:$0xff] }
 0x6c6   : > { %2460 = vst [vmem:[#allocation4 + $0x90] sm:$0xff] %v2428_v3  ;;  %v2109_v41 = vmul.f32 %v2032_v48, %v1917_v19 }
 0x6c7   : > { %v2431_v38 = vadd.f32 %v10808_v63, %v2110_v51  ;;  %v10815_v51 = vld [vmem:[#allocation75_spill] sm:$0xff] }
 0x6c8   : > { %v2430_v39 = vadd.f32 %v10809_v42, %v2109_v41  ;;  %v2047_v26 = vpop.permute.xlu1 %2046  ;;  %3559 = vadd.xlane.f32.xlu1 %v9443_v60  ;;  %v1927_v42 = vld [vmem:[#allocation4 + $0xf0] sm:$0xff] }
 0x6c9   : > { %2463 = vst [vmem:[#allocation4 + $0xa8] sm:$0xff] %v2431_v38  ;;  %v2112_v59 = vmul.f32 %v2047_v26, %v1920_v29  ;;  %3568 = vadd.xlane.f32.xlu0 %v9461_v34  ;;  %v2042_v12 = vpop.permute.xlu0 %2041  ;;  %v1924_v34 = vld [vmem:[#allocation4 + $0xd8] sm:$0xff] }
 0x6ca   : > { %2462 = vst [vmem:[#allocation4 + $0xa0] sm:$0xff] %v2430_v39  ;;  %v2111_v56 = vmul.f32 %v2042_v12, %v1919_v22  ;;  %v10816_v38 = vld [vmem:[#allocation73_spill] sm:$0xff]  ;;  %v10817_v39 = vld [vmem:[#allocation71_spill] sm:$0xff] }
 0x6cb   : > { %v2433_v57 = vadd.f32 %v10810_v6, %v2112_v59  ;;  %v10819_v6 = vld [vmem:[#allocation82_spill] sm:$0xff] }
 0x6cc   : > { %v2432_v4 = vadd.f32 %v10811_v53, %v2111_v56  ;;  %v2057_v23 = vpop.permute.xlu1 %2056  ;;  %3565 = vadd.xlane.f32.xlu1 %v9455_v21 }
 0x6cd   : > { %2465 = vst [vmem:[#allocation4 + $0xb8] sm:$0xff] %v2433_v57  ;;  %v2114_v17 = vmul.f32 %v2057_v23, %v1922_v35  ;;  %3574 = vadd.xlane.f32.xlu0 %v9476_v27  ;;  %v2052_v60 = vpop.permute.xlu0 %2051  ;;  %v1926_v27 = vld [vmem:[#allocation4 + $0xe8] sm:$0xff] }
 0x6ce   : > { %2464 = vst [vmem:[#allocation4 + $0xb0] sm:$0xff] %v2432_v4  ;;  %v2113_v2 = vmul.f32 %v2052_v60, %v1921_v33 }
 0x6cf   : > { %v2435_v32 = vadd.f32 %v10812_v1, %v2114_v17 }
 0x6d0   : > { %v2434_v31 = vadd.f32 %v10813_v28, %v2113_v2  ;;  %v2067_v11 = vpop.permute.xlu1 %2066  ;;  %3571 = vadd.xlane.f32.xlu1 %v9470_v13 }
 0x6d1   : > { %2467 = vst [vmem:[#allocation4 + $0xc8] sm:$0xff] %v2435_v32  ;;  %v2116_v15 = vmul.f32 %v2067_v11, %v1924_v34  ;;  %3580 = vadd.xlane.f32.xlu0 %v9497_v55  ;;  %v2062_v21 = vpop.permute.xlu0 %2061  ;;  %v1928_v55 = vld [vmem:[#allocation4 + $0xf8] sm:$0xff]  ;;  %v10822_v34 = vld [vmem:[#allocation172_spill] sm:$0xff] }
 0x6d2   : > { %2466 = vst [vmem:[#allocation4 + $0xc0] sm:$0xff] %v2434_v31  ;;  %v2115_v19 = vmul.f32 %v2062_v21, %v1923_v9  ;;  %v3697_v32 = vld [vmem:[#allocation4 + $0x110] sm:$0xff]  ;;  %v3698_v31 = vld [vmem:[#allocation4 + $0x118] sm:$0xff] }
 0x6d3   : > { %v2437_v3 = vadd.f32 %v10814_v7, %v2116_v15 }
 0x6d4   : > { %v2436_v48 = vadd.f32 %v10815_v51, %v2115_v19  ;;  %v2077_v41 = vpop.permute.xlu1 %2076  ;;  %3577 = vadd.xlane.f32.xlu1 %v9489_v54  ;;  %v3699_v51 = vld [vmem:[#allocation4 + $0x120] sm:$0xff] }
 0x6d5   : > { %2469 = vst [vmem:[#allocation4 + $0xd8] sm:$0xff] %v2437_v3  ;;  %v2118_v29 = vmul.f32 %v2077_v41, %v1926_v27  ;;  %3586 = vadd.xlane.f32.xlu0 %v9523_v37  ;;  %v2072_v13 = vpop.permute.xlu0 %2071  ;;  %v10818_v37 = vld [vmem:[#allocation78_spill] sm:$0xff]  ;;  %v3700_v41 = vld [vmem:[#allocation4 + $0x128] sm:$0xff] }
 0x6d6   : > { %2468 = vst [vmem:[#allocation4 + $0xd0] sm:$0xff] %v2436_v48  ;;  %v2117_v63 = vmul.f32 %v2072_v13, %v1925_v8 }
 0x6d7   : > { %v2439_v22 = vadd.f32 %v10816_v38, %v2118_v29 }
 0x6d8   : > { %v2438_v26 = vadd.f32 %v10817_v39, %v2117_v63  ;;  %v2087_v59 = vpop.permute.xlu1 %2086  ;;  %3583 = vadd.xlane.f32.xlu1 %v9513_v50 }
 0x6d9   : > { %2471 = vst [vmem:[#allocation4 + $0xe8] sm:$0xff] %v2439_v22  ;;  %v2120_v12 = vmul.f32 %v2087_v59, %v1928_v55  ;;  %3592 = vadd.xlane.f32.xlu0 %v9555_v36  ;;  %v2082_v54 = vpop.permute.xlu0 %2081 }
 0x6da   : > { %2470 = vst [vmem:[#allocation4 + $0xe0] sm:$0xff] %v2438_v26  ;;  %v2119_v56 = vmul.f32 %v2082_v54, %v1927_v42 }
 0x6db   : > { %v2441_v35 = vadd.f32 %v10818_v37, %v2120_v12  ;;  %v3701_v37 = vld [vmem:[#allocation4 + $0x130] sm:$0xff] }
 0x6dc   : > { %v2440_v57 = vadd.f32 %v10819_v6, %v2119_v56  ;;  %3589 = vadd.xlane.f32.xlu1 %v9709_v58  ;;  %v3735_v36 = vpop.permute.xlu1 %3734 }
 0x6dd   : > { %2473 = vst [vmem:[#allocation4 + $0xf8] sm:$0xff] %v2441_v35  ;;  %3598 = vadd.xlane.f32.xlu0 %v9587_v0  ;;  %v3730_v50 = vpop.permute.xlu0 %3729  ;;  %v3695_v0 = vld [vmem:[#allocation4 + $0x100] sm:$0xff] }
 0x6de   : > { %2472 = vst [vmem:[#allocation4 + $0xf0] sm:$0xff] %v2440_v57  ;;  %v3702_v57 = vld [vmem:[#allocation4 + $0x138] sm:$0xff] }
 0x6e0   : > { %3595 = vadd.xlane.f32.xlu1 %v9723_v40  ;;  %v3696_v40 = vld [vmem:[#allocation4 + $0x108] sm:$0xff]  ;;  %v3745_v53 = vpop.permute.xlu1 %3744 }
 0x6e1   : > { %3604 = vadd.xlane.f32.xlu0 %v9765_v61  ;;  %v3740_v58 = vpop.permute.xlu0 %3739  ;;  %v3888_v4 = vmul.f32 %v3735_v36, %v3696_v40  ;;  %v3890_v27 = vmul.f32 %v3745_v53, %v3698_v31  ;;  %v3705_v31 = vld [vmem:[#allocation4 + $0x150] sm:$0xff] }
 0x6e2   : > { %v3889_v15 = vmul.f32 %v3740_v58, %v3697_v32 }
 0x6e4   : > { %3601 = vadd.xlane.f32.xlu1 %v9734_v45  ;;  %v3887_v45 = vmul.f32 %v3730_v50, %v3695_v0  ;;  %v3755_v9 = vpop.permute.xlu1 %3754 }
 0x6e5   : > { %3610 = vadd.xlane.f32.xlu0 %v9772_v62  ;;  %v3750_v2 = vpop.permute.xlu0 %3749  ;;  %v3892_v39 = vmul.f32 %v3755_v9, %v3700_v41  ;;  %v3707_v41 = vld [vmem:[#allocation4 + $0x160] sm:$0xff] }
 0x6e6   : > { %v3891_v63 = vmul.f32 %v3750_v2, %v3699_v51 }
 0x6e8   : > { %3607 = vadd.xlane.f32.xlu1 %v9748_v5  ;;  %v3765_v8 = vpop.permute.xlu1 %3764 }
 0x6e9   : > { %3616 = vadd.xlane.f32.xlu0 %v9784_v18 }
 0x6ec   : > { %3613 = vadd.xlane.f32.xlu1 %v9758_v44  ;;  %v3775_v26 = vpop.permute.xlu1 %3774 }
 0x6ed   : > { %3622 = vadd.xlane.f32.xlu0 %v9775_v47  ;;  %v10820_v47 = vld [vmem:[#allocation173_spill] sm:$0xff] }
 0x6ee   : > { %v10821_v17 = vsub.f32 %v10820_v47, %v9370_v49  ;;  %v3760_v49 = vpop.permute.xlu0 %3759 }
 0x6ef   : > { %v3893_v36 = vmul.f32 %v3760_v49, %v3701_v37 }
 0x6f0   : > { %v6057_v33 = vpop.f32.mrb[64].mxu0  ;;  %3619 = vadd.xlane.f32.xlu1 %v9767_v24  ;;  %v3115_v60 = vmul.f32 1.442695, %v10821_v17  ;;  %v3785_v0 = vpop.permute.xlu1 %3784 }
 0x6f1   : > { %v6058_v61 = vpop.f32.mrb[65].mxu0  ;;  %3628 = vadd.xlane.f32.xlu0 %v9787_v43  ;;  %v10823_v43 = vsub.f32 %v10822_v34, %v9363_v25 }
 0x6f2   : > { %v6059_v62 = vadd.f32 %v6058_v61, %v6057_v33  ;;  %v6060_v5 = vpop.f32.mrb[66].mxu0  ;;  %6748 = vpow2.f32 %v3115_v60  ;;  %v3770_v29 = vpop.permute.xlu0 %3769  ;;  %v3894_v61 = vmul.f32 %v3765_v8, %v3702_v57  ;;  %v3709_v57 = vld [vmem:[#allocation4 + $0x170] sm:$0xff] }
 0x6f3   : > { %v6061_v18 = vpop.f32.mrb[67].mxu0  ;;  %v3113_v1 = vmul.f32 1.442695, %v10823_v43 }
 0x6f4   : > { %v4112_v23 = vadd.f32 %v6059_v62, %v3887_v45  ;;  %v6062_v44 = vadd.f32 %v6061_v18, %v6060_v5  ;;  %3625 = vadd.xlane.f32.xlu1 %v9779_v16  ;;  %v3703_v18 = vld [vmem:[#allocation4 + $0x140] sm:$0xff] }
 0x6f5   : > { %6750 = vpow2.f32 %v3113_v1  ;;  %v3895_v17 = vmul.f32 %v3770_v29, %v3703_v18 }
 0x6f6   : > { %4144 = vst [vmem:[#allocation4 + $0x100] sm:$0xff] %v4112_v23  ;;  %v4113_v24 = vadd.f32 %v6062_v44, %v3888_v4  ;;  %v3780_v35 = vpop.permute.xlu0 %3779  ;;  %v3795_v4 = vpop.permute.xlu1 %3794  ;;  %v3704_v44 = vld [vmem:[#allocation4 + $0x148] sm:$0xff] }
 0x6f7   : > { %v3896_v43 = vmul.f32 %v3775_v26, %v3704_v44  ;;  %v3897_v49 = vmul.f32 %v3780_v35, %v3705_v31  ;;  %v3711_v44 = vld [vmem:[#allocation4 + $0x180] sm:$0xff] }
 0x6f8   : > { %4145 = vst [vmem:[#allocation4 + $0x108] sm:$0xff] %v4113_v24 }
 0x6f9   : > { %v6063_v28 = vpop.f32.mrb[68].mxu0 }
 0x6fa   : > { %v6064_v11 = vpop.f32.mrb[69].mxu0  ;;  %v3790_v5 = vpop.permute.xlu0 %3789 }
 0x6fb   : > { %v6065_v16 = vadd.f32 %v6064_v11, %v6063_v28  ;;  %v6066_v21 = vpop.f32.mrb[70].mxu0  ;;  %v3805_v9 = vpop.permute.xlu1 %3804 }
 0x6fc   : > { %v6067_v19 = vpop.f32.mrb[71].mxu0  ;;  %v9851_v22 = vpop.eup %6748 }
 0x6fd   : > { %v4114_v7 = vadd.f32 %v6065_v16, %v3889_v15  ;;  %v6068_v3 = vadd.f32 %v6067_v19, %v6066_v21  ;;  %v3706_v15 = vld [vmem:[#allocation4 + $0x158] sm:$0xff] }
 0x6fe   : > { %v3800_v24 = vpop.permute.xlu0 %3799 }
 0x6ff   : > { %4146 = vst [vmem:[#allocation4 + $0x110] sm:$0xff] %v4114_v7  ;;  %v4115_v25 = vadd.f32 %v6068_v3, %v3890_v27  ;;  %v9854_v54 = vpop.eup %6750  ;;  %v3898_v3 = vmul.f32 %v3785_v0, %v3706_v15  ;;  %v3815_v8 = vpop.permute.xlu1 %3814  ;;  %v3710_v0 = vld [vmem:[#allocation4 + $0x178] sm:$0xff] }
 0x701   : > { %4147 = vst [vmem:[#allocation4 + $0x118] sm:$0xff] %v4115_v25  ;;  %v6069_v48 = vpop.f32.mrb[72].mxu0 }
 0x702   : > { %v6070_v13 = vpop.f32.mrb[73].mxu0  ;;  %v3810_v16 = vpop.permute.xlu0 %3809 }
 0x703   : > { %v6071_v55 = vadd.f32 %v6070_v13, %v6069_v48  ;;  %v6072_v38 = vpop.f32.mrb[74].mxu0 }
 0x704   : > { %v6073_v42 = vpop.f32.mrb[75].mxu0 }
 0x705   : > { %v4116_v59 = vadd.f32 %v6071_v55, %v3891_v63  ;;  %v6074_v12 = vadd.f32 %v6073_v42, %v6072_v38  ;;  %3884 = vperm.xlu1 %6335, %v9851_v22   ;;  %v3708_v63 = vld [vmem:[#allocation4 + $0x168] sm:$0xff]  ;;  %v3899_v38 = vmul.f32 %v3790_v5, %v3707_v41  ;;  %v9859_v42 = vpop.permute.xlu1 %3824  ;;  %v3902_v5 = vmul.f32 %v3805_v9, %v3710_v0 }
 0x706   : > { %v9857_v29 = vpop.permute.xlu0 %3819 }
 0x707   : > { %4148 = vst [vmem:[#allocation4 + $0x120] sm:$0xff] %v4116_v59  ;;  %v4117_v56 = vadd.f32 %v6074_v12, %v3892_v39  ;;  %3879 = vperm.xlu0 %6334, %v9854_v54   ;;  %v3900_v12 = vmul.f32 %v3795_v4, %v3708_v63 }
 0x709   : > { %4149 = vst [vmem:[#allocation4 + $0x128] sm:$0xff] %v4117_v56  ;;  %v6075_v6 = vpop.f32.mrb[76].mxu0 }
 0x70a   : > { %v6076_v50 = vpop.f32.mrb[77].mxu0  ;;  %v9861_v35 = vpop.permute.xlu0 %3829 }
 0x70b   : > { %v6077_v58 = vadd.f32 %v6076_v50, %v6075_v6  ;;  %v6078_v33 = vpop.f32.mrb[78].mxu0  ;;  %v9863_v50 = vpop.permute.xlu1 %3834 }
 0x70c   : > { %v6079_v40 = vpop.f32.mrb[79].mxu0 }
 0x70d   : > { %v4118_v45 = vadd.f32 %v6077_v58, %v3893_v36  ;;  %v6080_v62 = vadd.f32 %v6079_v40, %v6078_v33  ;;  %v3901_v33 = vmul.f32 %v3800_v24, %v3709_v57  ;;  %v3903_v24 = vmul.f32 %v3810_v16, %v3711_v44 }
 0x70f   : > { %4150 = vst [vmem:[#allocation4 + $0x130] sm:$0xff] %v4118_v45  ;;  %v4119_v53 = vadd.f32 %v6080_v62, %v3894_v61  ;;  %v9865_v45 = vpop.permute.xlu0 %3839  ;;  %v9867_v4 = vpop.permute.xlu1 %3844 }
 0x711   : > { %4151 = vst [vmem:[#allocation4 + $0x138] sm:$0xff] %v4119_v53  ;;  %v6081_v23 = vpop.f32.mrb[80].mxu0 }
 0x712   : > { %v6082_v47 = vpop.f32.mrb[81].mxu0 }
 0x713   : > { %v6083_v60 = vadd.f32 %v6082_v47, %v6081_v23  ;;  %v6084_v2 = vpop.f32.mrb[82].mxu0 }
 0x714   : > { %v6085_v34 = vpop.f32.mrb[83].mxu0 }
 0x715   : > { %v4120_v1 = vadd.f32 %v6083_v60, %v3895_v17  ;;  %v6086_v32 = vadd.f32 %v6085_v34, %v6084_v2  ;;  %v3712_v17 = vld [vmem:[#allocation4 + $0x188] sm:$0xff]  ;;  %v9869_v60 = vpop.permute.xlu0 %3849 }
 0x717   : > { %4152 = vst [vmem:[#allocation4 + $0x140] sm:$0xff] %v4120_v1  ;;  %v4121_v28 = vadd.f32 %v6086_v32, %v3896_v43  ;;  %v3904_v32 = vmul.f32 %v3815_v8, %v3712_v17  ;;  %v3473_v8 = vld [vmem:[#allocation3 + $0x118] sm:$0xff] }
 0x718   : > { %v3505_v41 = vmul.f32 %v9537_v10, %v3473_v8  ;;  %v10830_v8 = vld [vmem:[#allocation84_spill] sm:$0xff] }
 0x719   : > { %4153 = vst [vmem:[#allocation4 + $0x148] sm:$0xff] %v4121_v28  ;;  %v6087_v11 = vpop.f32.mrb[84].mxu0  ;;  %v9871_v28 = vpop.permute.xlu1 %3854 }
 0x71a   : > { %v6088_v21 = vpop.f32.mrb[85].mxu0  ;;  %v9873_v15 = vpop.permute.xlu0 %3859 }
 0x71b   : > { %v6089_v19 = vadd.f32 %v6088_v21, %v6087_v11  ;;  %v6090_v27 = vpop.f32.mrb[86].mxu0 }
 0x71c   : > { %v6091_v7 = vpop.f32.mrb[87].mxu0 }
 0x71d   : > { %v4122_v25 = vadd.f32 %v6089_v19, %v3897_v49  ;;  %v6092_v51 = vadd.f32 %v6091_v7, %v6090_v27  ;;  %v9875_v21 = vpop.permute.xlu1 %3864  ;;  %v3471_v19 = vld [vmem:[#allocation3 + $0x108] sm:$0xff]  ;;  %v3470_v7 = vld [vmem:[#allocation3 + $0x100] sm:$0xff] }
 0x71e   : > { %v9877_v49 = vpop.permute.xlu0 %3869  ;;  %v3503_v16 = vmul.f32 %v9525_v20, %v3471_v19 }
 0x71f   : > { %4154 = vst [vmem:[#allocation4 + $0x150] sm:$0xff] %v4122_v25  ;;  %v4123_v48 = vadd.f32 %v6092_v51, %v3898_v3  ;;  %v3502_v51 = vmul.f32 %v9532_v46, %v3470_v7  ;;  %v3474_v46 = vld [vmem:[#allocation3 + $0x120] sm:$0xff] }
 0x720   : > { %v3506_v10 = vmul.f32 %v9564_v52, %v3474_v46  ;;  %v3478_v52 = vld [vmem:[#allocation3 + $0x140] sm:$0xff] }
 0x721   : > { %4155 = vst [vmem:[#allocation4 + $0x158] sm:$0xff] %v4123_v48  ;;  %v6093_v13 = vpop.f32.mrb[88].mxu0  ;;  %v9879_v27 = vpop.permute.xlu1 %3874 }
 0x722   : > { %v6094_v55 = vpop.f32.mrb[89].mxu0 }
 0x723   : > { %v6095_v39 = vadd.f32 %v6094_v55, %v6093_v13  ;;  %v6096_v26 = vpop.f32.mrb[90].mxu0  ;;  %v3472_v13 = vld [vmem:[#allocation3 + $0x110] sm:$0xff] }
 0x724   : > { %v6097_v59 = vpop.f32.mrb[91].mxu0  ;;  %v3504_v20 = vmul.f32 %v9548_v14, %v3472_v13  ;;  %v3476_v14 = vld [vmem:[#allocation3 + $0x130] sm:$0xff]  ;;  %v3485_v13 = vld [vmem:[#allocation3 + $0x178] sm:$0xff] }
 0x725   : > { %v4124_v56 = vadd.f32 %v6095_v39, %v3899_v38  ;;  %v6098_v37 = vadd.f32 %v6097_v59, %v6096_v26  ;;  %v3475_v38 = vld [vmem:[#allocation3 + $0x128] sm:$0xff] }
 0x726   : > { %v3507_v59 = vmul.f32 %v9557_v30, %v3475_v38  ;;  %v10825_v30 = vld [vmem:[#allocation41_spill] sm:$0xff] }
 0x727   : > { %4156 = vst [vmem:[#allocation4 + $0x160] sm:$0xff] %v4124_v56  ;;  %v4125_v6 = vadd.f32 %v6098_v37, %v3900_v12  ;;  %v3477_v37 = vld [vmem:[#allocation3 + $0x138] sm:$0xff] }
 0x729   : > { %4157 = vst [vmem:[#allocation4 + $0x168] sm:$0xff] %v4125_v6  ;;  %v6099_v36 = vpop.f32.mrb[92].mxu0 }
 0x72a   : > { %v6100_v58 = vpop.f32.mrb[93].mxu0 }
 0x72b   : > { %v6101_v40 = vadd.f32 %v6100_v58, %v6099_v36  ;;  %v6102_v61 = vpop.f32.mrb[94].mxu0  ;;  %v10824_v36 = vld [vmem:[#allocation47_spill] sm:$0xff] }
 0x72c   : > { %v6103_v62 = vpop.f32.mrb[95].mxu0  ;;  %v3509_v0 = vmul.f32 %v10824_v36, %v3477_v37  ;;  %v10834_v36 = vld [vmem:[#allocation107_spill] sm:$0xff] }
 0x72d   : > { %v4126_v53 = vadd.f32 %v6101_v40, %v3901_v33  ;;  %v6104_v18 = vadd.f32 %v6103_v62, %v6102_v61  ;;  %v3479_v40 = vld [vmem:[#allocation3 + $0x148] sm:$0xff]  ;;  %v3508_v62 = vmul.f32 %v10825_v30, %v3476_v14  ;;  %v3486_v14 = vld [vmem:[#allocation3 + $0x180] sm:$0xff] }
 0x72f   : > { %4158 = vst [vmem:[#allocation4 + $0x170] sm:$0xff] %v4126_v53  ;;  %v4127_v23 = vadd.f32 %v6104_v18, %v3902_v5  ;;  %v10826_v53 = vld [vmem:[#allocation80_spill] sm:$0xff] }
 0x730   : > { %v3511_v18 = vmul.f32 %v10826_v53, %v3479_v40 }
 0x731   : > { %4159 = vst [vmem:[#allocation4 + $0x178] sm:$0xff] %v4127_v23  ;;  %v6105_v47 = vpop.f32.mrb[96].mxu0 }
 0x732   : > { %v6106_v2 = vpop.f32.mrb[97].mxu0 }
 0x733   : > { %v6107_v34 = vadd.f32 %v6106_v2, %v6105_v47  ;;  %v6108_v43 = vpop.f32.mrb[98].mxu0  ;;  %v3481_v47 = vld [vmem:[#allocation3 + $0x158] sm:$0xff]  ;;  %v10827_v2 = vld [vmem:[#allocation79_spill] sm:$0xff] }
 0x734   : > { %v6109_v1 = vpop.f32.mrb[99].mxu0 }
 0x735   : > { %v4128_v9 = vadd.f32 %v6107_v34, %v3903_v24  ;;  %v6110_v31 = vadd.f32 %v6109_v1, %v6108_v43  ;;  %v3510_v24 = vmul.f32 %v10827_v2, %v3478_v52  ;;  %v10828_v43 = vld [vmem:[#allocation48_spill] sm:$0xff]  ;;  %v10836_v2 = vld [vmem:[#allocation86_spill] sm:$0xff] }
 0x736   : > { %v3513_v1 = vmul.f32 %v10828_v43, %v3481_v47 }
 0x737   : > { %4160 = vst [vmem:[#allocation4 + $0x180] sm:$0xff] %v4128_v9  ;;  %v4129_v11 = vadd.f32 %v6110_v31, %v3904_v32  ;;  %v3480_v32 = vld [vmem:[#allocation3 + $0x150] sm:$0xff] }
 0x739   : > { %4161 = vst [vmem:[#allocation4 + $0x188] sm:$0xff] %v4129_v11  ;;  %v3483_v11 = vld [vmem:[#allocation3 + $0x168] sm:$0xff] }
 0x742   : > { %v3539_v3 = vpop.xlane.xlu0 %3538 }
 0x743   : > { %v3631_v25 = vadd.f32 %v3539_v3, %v3503_v16  ;;  %v10829_v16 = vld [vmem:[#allocation81_spill] sm:$0xff] }
 0x744   : > { %v3512_v7 = vmul.f32 %v10829_v16, %v3480_v32 }
 0x745   : > { %3663 = vst.msk [vmem:[#allocation3 + $0x108] sm:$0xff] %vm1864_vm1, %v3631_v25  ;;  %v3536_v48 = vpop.xlane.xlu1 %3535  ;;  %v3515_v25 = vmul.f32 %v10830_v8, %v3483_v11 }
 0x746   : > { %v3630_v63 = vadd.f32 %v3536_v48, %v3502_v51  ;;  %v3545_v55 = vpop.xlane.xlu0 %3544  ;;  %v3482_v51 = vld [vmem:[#allocation3 + $0x160] sm:$0xff] }
 0x747   : > { %v3633_v39 = vadd.f32 %v3545_v55, %v3505_v41  ;;  %v10831_v55 = vld [vmem:[#allocation43_spill] sm:$0xff] }
 0x748   : > { %3662 = vst.msk [vmem:[#allocation3 + $0x100] sm:$0xff] %vm1864_vm1, %v3630_v63  ;;  %v3514_v38 = vmul.f32 %v10831_v55, %v3482_v51  ;;  %v3493_v55 = vld [vmem:[#allocation3 + $0x1b8] sm:$0xff] }
 0x749   : > { %3665 = vst.msk [vmem:[#allocation3 + $0x118] sm:$0xff] %vm1864_vm1, %v3633_v39  ;;  %v3542_v26 = vpop.xlane.xlu1 %3541 }
 0x74a   : > { %v3632_v12 = vadd.f32 %v3542_v26, %v3504_v20  ;;  %v3551_v56 = vpop.xlane.xlu0 %3550  ;;  %v10832_v20 = vld [vmem:[#allocation51_spill] sm:$0xff] }
 0x74b   : > { %v3635_v6 = vadd.f32 %v3551_v56, %v3507_v59  ;;  %v3517_v26 = vmul.f32 %v10832_v20, %v3485_v13  ;;  %v3484_v59 = vld [vmem:[#allocation3 + $0x170] sm:$0xff]  ;;  %v3487_v56 = vld [vmem:[#allocation3 + $0x188] sm:$0xff] }
 0x74c   : > { %3664 = vst.msk [vmem:[#allocation3 + $0x110] sm:$0xff] %vm1864_vm1, %v3632_v12 }
 0x74d   : > { %3667 = vst.msk [vmem:[#allocation3 + $0x128] sm:$0xff] %vm1864_vm1, %v3635_v6  ;;  %v3548_v57 = vpop.xlane.xlu1 %3547  ;;  %v10833_v6 = vld [vmem:[#allocation106_spill] sm:$0xff] }
 0x74e   : > { %v3634_v58 = vadd.f32 %v3548_v57, %v3506_v10  ;;  %v3557_v33 = vpop.xlane.xlu0 %3556  ;;  %v3516_v10 = vmul.f32 %v10833_v6, %v3484_v59  ;;  %v10840_v6 = vld [vmem:[#allocation89_spill] sm:$0xff] }
 0x74f   : > { %v3637_v61 = vadd.f32 %v3557_v33, %v3509_v0  ;;  %v3519_v0 = vmul.f32 %v10834_v36, %v3487_v56 }
 0x750   : > { %3666 = vst.msk [vmem:[#allocation3 + $0x120] sm:$0xff] %vm1864_vm1, %v3634_v58  ;;  %v3713_v58 = vld [vmem:[#allocation4 + $0x190] sm:$0xff] }
 0x751   : > { %3669 = vst.msk [vmem:[#allocation3 + $0x138] sm:$0xff] %vm1864_vm1, %v3637_v61  ;;  %v3554_v5 = vpop.xlane.xlu1 %3553  ;;  %v3489_v61 = vld [vmem:[#allocation3 + $0x198] sm:$0xff] }
 0x752   : > { %v3636_v23 = vadd.f32 %v3554_v5, %v3508_v62  ;;  %v3563_v44 = vpop.xlane.xlu0 %3562  ;;  %v3714_v5 = vld [vmem:[#allocation4 + $0x198] sm:$0xff] }
 0x753   : > { %v3639_v17 = vadd.f32 %v3563_v44, %v3511_v18  ;;  %v10835_v18 = vld [vmem:[#allocation44_spill] sm:$0xff] }
 0x754   : > { %3668 = vst.msk [vmem:[#allocation3 + $0x130] sm:$0xff] %vm1864_vm1, %v3636_v23  ;;  %v3518_v52 = vmul.f32 %v10835_v18, %v3486_v14  ;;  %v3905_v23 = vmul.f32 %v9857_v29, %v3713_v58  ;;  %v10837_v29 = vld [vmem:[#allocation87_spill] sm:$0xff]  ;;  %v10842_v18 = vld [vmem:[#allocation108_spill] sm:$0xff] }
 0x755   : > { %3671 = vst.msk [vmem:[#allocation3 + $0x148] sm:$0xff] %vm1864_vm1, %v3639_v17  ;;  %v3560_v34 = vpop.xlane.xlu1 %3559  ;;  %v3495_v58 = vld [vmem:[#allocation3 + $0x1c8] sm:$0xff] }
 0x756   : > { %v3638_v9 = vadd.f32 %v3560_v34, %v3510_v24  ;;  %v3569_v31 = vpop.xlane.xlu0 %3568  ;;  %v3521_v24 = vmul.f32 %v10836_v2, %v3489_v61  ;;  %v3488_v34 = vld [vmem:[#allocation3 + $0x190] sm:$0xff] }
 0x757   : > { %v3641_v19 = vadd.f32 %v3569_v31, %v3513_v1  ;;  %v3906_v31 = vmul.f32 %v9859_v42, %v3714_v5  ;;  %v3717_v2 = vld [vmem:[#allocation4 + $0x1b0] sm:$0xff] }
 0x758   : > { %3670 = vst.msk [vmem:[#allocation3 + $0x140] sm:$0xff] %vm1864_vm1, %v3638_v9  ;;  %v3491_v9 = vld [vmem:[#allocation3 + $0x1a8] sm:$0xff] }
 0x759   : > { %3673 = vst.msk [vmem:[#allocation3 + $0x158] sm:$0xff] %vm1864_vm1, %v3641_v19  ;;  %v3566_v3 = vpop.xlane.xlu1 %3565 }
 0x75a   : > { %v3640_v48 = vadd.f32 %v3566_v3, %v3512_v7  ;;  %v3575_v41 = vpop.xlane.xlu0 %3574  ;;  %v3520_v7 = vmul.f32 %v10837_v29, %v3488_v34 }
 0x75b   : > { %v3643_v63 = vadd.f32 %v3575_v41, %v3515_v25  ;;  %v10838_v25 = vld [vmem:[#allocation54_spill] sm:$0xff] }
 0x75c   : > { %3672 = vst.msk [vmem:[#allocation3 + $0x150] sm:$0xff] %vm1864_vm1, %v3640_v48  ;;  %v3523_v51 = vmul.f32 %v10838_v25, %v3491_v9  ;;  %v3490_v48 = vld [vmem:[#allocation3 + $0x1a0] sm:$0xff] }
 0x75d   : > { %3675 = vst.msk [vmem:[#allocation3 + $0x168] sm:$0xff] %vm1864_vm1, %v3643_v63  ;;  %v3572_v39 = vpop.xlane.xlu1 %3571  ;;  %v3715_v41 = vld [vmem:[#allocation4 + $0x1a0] sm:$0xff] }
 0x75e   : > { %v3642_v46 = vadd.f32 %v3572_v39, %v3514_v38  ;;  %v3581_v12 = vpop.xlane.xlu0 %3580  ;;  %v3716_v39 = vld [vmem:[#allocation4 + $0x1a8] sm:$0xff] }
 0x75f   : > { %v3645_v37 = vadd.f32 %v3581_v12, %v3517_v26  ;;  %v10839_v26 = vld [vmem:[#allocation83_spill] sm:$0xff] }
 0x760   : > { %3674 = vst.msk [vmem:[#allocation3 + $0x160] sm:$0xff] %vm1864_vm1, %v3642_v46  ;;  %v3522_v59 = vmul.f32 %v10839_v26, %v3490_v48  ;;  %v3907_v46 = vmul.f32 %v9861_v35, %v3715_v41  ;;  %v10841_v35 = vld [vmem:[#allocation52_spill] sm:$0xff]  ;;  %v10845_v41 = vld [vmem:[#allocation123_spill] sm:$0xff] }
 0x761   : > { %3677 = vst.msk [vmem:[#allocation3 + $0x178] sm:$0xff] %vm1864_vm1, %v3645_v37  ;;  %v3578_v57 = vpop.xlane.xlu1 %3577 }
 0x762   : > { %v3644_v33 = vadd.f32 %v3578_v57, %v3516_v10  ;;  %v3587_v40 = vpop.xlane.xlu0 %3586  ;;  %v3525_v10 = vmul.f32 %v10840_v6, %v3493_v55  ;;  %v3492_v57 = vld [vmem:[#allocation3 + $0x1b0] sm:$0xff] }
 0x763   : > { %v6111_v30 = vpop.f32.mrb[100].mxu0  ;;  %v3647_v62 = vadd.f32 %v3587_v40, %v3519_v0 }
 0x764   : > { %3676 = vst.msk [vmem:[#allocation3 + $0x170] sm:$0xff] %vm1864_vm1, %v3644_v33  ;;  %v6112_v53 = vpop.f32.mrb[101].mxu0  ;;  %v3908_v33 = vmul.f32 %v9863_v50, %v3716_v39  ;;  %v10846_v39 = vld [vmem:[#allocation59_spill] sm:$0xff] }
 0x765   : > { %3679 = vst.msk [vmem:[#allocation3 + $0x188] sm:$0xff] %vm1864_vm1, %v3647_v62  ;;  %v6113_v44 = vadd.f32 %v6112_v53, %v6111_v30  ;;  %v6114_v47 = vpop.f32.mrb[102].mxu0  ;;  %v3584_v17 = vpop.xlane.xlu1 %3583  ;;  %v3524_v62 = vmul.f32 %v10841_v35, %v3492_v57 }
 0x766   : > { %v3646_v43 = vadd.f32 %v3584_v17, %v3518_v52  ;;  %v6115_v1 = vpop.f32.mrb[103].mxu0  ;;  %v3593_v32 = vpop.xlane.xlu0 %3592  ;;  %v3527_v52 = vmul.f32 %v10842_v18, %v3495_v58  ;;  %v3497_v17 = vld [vmem:[#allocation3 + $0x1d8] sm:$0xff]  ;;  %v3500_v58 = vld [vmem:[#allocation3 + $0x1f0] sm:$0xff] }
 0x767   : > { %v4130_v11 = vadd.f32 %v6113_v44, %v3905_v23  ;;  %v6116_v19 = vadd.f32 %v6115_v1, %v6114_v47  ;;  %v3649_v16 = vadd.f32 %v3593_v32, %v3521_v24  ;;  %v3494_v23 = vld [vmem:[#allocation3 + $0x1c0] sm:$0xff]  ;;  %v10843_v24 = vld [vmem:[#allocation109_spill] sm:$0xff] }
 0x768   : > { %3678 = vst.msk [vmem:[#allocation3 + $0x180] sm:$0xff] %vm1864_vm1, %v3646_v43  ;;  %v3526_v34 = vmul.f32 %v10843_v24, %v3494_v23  ;;  %v10844_v32 = vld [vmem:[#allocation121_spill] sm:$0xff] }
 0x769   : > { %4162 = vst [vmem:[#allocation4 + $0x190] sm:$0xff] %v4130_v11  ;;  %v4131_v3 = vadd.f32 %v6116_v19, %v3906_v31  ;;  %3681 = vst.msk [vmem:[#allocation3 + $0x198] sm:$0xff] %vm1864_vm1, %v3649_v16  ;;  %v3590_v8 = vpop.xlane.xlu1 %3589  ;;  %v3529_v9 = vmul.f32 %v10844_v32, %v3497_v17  ;;  %v3496_v31 = vld [vmem:[#allocation3 + $0x1d0] sm:$0xff]  ;;  %v3718_v11 = vld [vmem:[#allocation4 + $0x1b8] sm:$0xff] }
 0x76a   : > { %v3648_v13 = vadd.f32 %v3590_v8, %v3520_v7  ;;  %v3599_v63 = vpop.xlane.xlu0 %3598  ;;  %v3499_v7 = vld [vmem:[#allocation3 + $0x1e8] sm:$0xff] }
 0x76b   : > { %4163 = vst [vmem:[#allocation4 + $0x198] sm:$0xff] %v4131_v3  ;;  %v6117_v42 = vpop.f32.mrb[104].mxu0  ;;  %v3651_v38 = vadd.f32 %v3599_v63, %v3523_v51  ;;  %v3909_v3 = vmul.f32 %v9865_v45, %v3717_v2  ;;  %v3910_v63 = vmul.f32 %v9867_v4, %v3718_v11  ;;  %v3498_v45 = vld [vmem:[#allocation3 + $0x1e0] sm:$0xff]  ;;  %v3532_v2 = vmul.f32 %v9854_v54, %v3500_v58  ;;  %v3721_v11 = vld [vmem:[#allocation4 + $0x1d0] sm:$0xff]  ;;  %v3726_v54 = vld [vmem:[#allocation4 + $0x1f8] sm:$0xff] }
 0x76c   : > { %3680 = vst.msk [vmem:[#allocation3 + $0x190] sm:$0xff] %vm1864_vm1, %v3648_v13  ;;  %v6118_v20 = vpop.f32.mrb[105].mxu0  ;;  %v3528_v13 = vmul.f32 %v10845_v41, %v3496_v31 }
 0x76d   : > { %3683 = vst.msk [vmem:[#allocation3 + $0x1a8] sm:$0xff] %vm1864_vm1, %v3651_v38  ;;  %v6119_v12 = vadd.f32 %v6118_v20, %v6117_v42  ;;  %v6120_v56 = vpop.f32.mrb[106].mxu0  ;;  %v3596_v37 = vpop.xlane.xlu1 %3595  ;;  %v3531_v20 = vmul.f32 %v10846_v39, %v3499_v7 }
 0x76e   : > { %v3650_v36 = vadd.f32 %v3596_v37, %v3522_v59  ;;  %v6121_v0 = vpop.f32.mrb[107].mxu0  ;;  %v3605_v14 = vpop.xlane.xlu0 %3604  ;;  %v3719_v37 = vld [vmem:[#allocation4 + $0x1c0] sm:$0xff] }
 0x76f   : > { %v4132_v40 = vadd.f32 %v6119_v12, %v3907_v46  ;;  %v6122_v61 = vadd.f32 %v6121_v0, %v6120_v56  ;;  %v3653_v30 = vadd.f32 %v3605_v14, %v3525_v10  ;;  %v3723_v46 = vld [vmem:[#allocation4 + $0x1e0] sm:$0xff]  ;;  %v3720_v10 = vld [vmem:[#allocation4 + $0x1c8] sm:$0xff]  ;;  %v3501_v14 = vld [vmem:[#allocation3 + $0x1f8] sm:$0xff] }
 0x770   : > { %3682 = vst.msk [vmem:[#allocation3 + $0x1a0] sm:$0xff] %vm1864_vm1, %v3650_v36  ;;  %v10847_v36 = vld [vmem:[#allocation53_spill] sm:$0xff]  ;;  %v3912_v23 = vmul.f32 %v9871_v28, %v3720_v10 }
 0x771   : > { %4164 = vst [vmem:[#allocation4 + $0x1a0] sm:$0xff] %v4132_v40  ;;  %v4133_v5 = vadd.f32 %v6122_v61, %v3908_v33  ;;  %3685 = vst.msk [vmem:[#allocation3 + $0x1b8] sm:$0xff] %vm1864_vm1, %v3653_v30  ;;  %v3602_v53 = vpop.xlane.xlu1 %3601  ;;  %v3530_v0 = vmul.f32 %v10847_v36, %v3498_v45  ;;  %v3724_v33 = vld [vmem:[#allocation4 + $0x1e8] sm:$0xff]  ;;  %v3915_v40 = vmul.f32 %v9877_v49, %v3723_v46 }
 0x772   : > { %v3652_v44 = vadd.f32 %v3602_v53, %v3524_v62  ;;  %v3611_v47 = vpop.xlane.xlu0 %3610  ;;  %v3911_v62 = vmul.f32 %v9869_v60, %v3719_v37  ;;  %v3916_v49 = vmul.f32 %v9879_v27, %v3724_v33  ;;  %v4215_v37 = vld [vmem:[#allocation3 + $0x18] sm:$0xff] (!%p5503_p1)  ;;  %v4217_v36 = vld [vmem:[#allocation3 + $0x28] sm:$0xff] (!%p5503_p1) }
 0x773   : > { %4165 = vst [vmem:[#allocation4 + $0x1a8] sm:$0xff] %v4133_v5  ;;  %v3655_v50 = vadd.f32 %v3611_v47, %v3527_v52  ;;  %v4281_v58 = vmax.f32 (!%p5503_p1), %v4217_v36, 1e-30 }
 0x774   : > { %3684 = vst.msk [vmem:[#allocation3 + $0x1b0] sm:$0xff] %vm1864_vm1, %v3652_v44 }
 0x775   : > { %3687 = vst.msk [vmem:[#allocation3 + $0x1c8] sm:$0xff] %vm1864_vm1, %v3655_v50  ;;  %v6123_v43 = vpop.f32.mrb[108].mxu0  ;;  %v3608_v1 = vpop.xlane.xlu1 %3607  ;;  %v3533_v50 = vmul.f32 %v9851_v22, %v3501_v14  ;;  %v4216_v14 = vld [vmem:[#allocation3 + $0x20] sm:$0xff] (!%p5503_p1) }
 0x776   : > { %v6124_v19 = vpop.f32.mrb[109].mxu0  ;;  %v3654_v16 = vadd.f32 %v3608_v1, %v3526_v34  ;;  %v3617_v29 = vpop.xlane.xlu0 %3616  ;;  %v4280_v33 = vmax.f32 (!%p5503_p1), %v4216_v14, 1e-30 }
 0x777   : > { %v6125_v8 = vadd.f32 %v6124_v19, %v6123_v43  ;;  %v6126_v25 = vpop.f32.mrb[110].mxu0  ;;  %v3657_v51 = vadd.f32 %v3617_v29, %v3529_v9 }
 0x778   : > { %3686 = vst.msk [vmem:[#allocation3 + $0x1c0] sm:$0xff] %vm1864_vm1, %v3654_v16  ;;  %v6127_v48 = vpop.f32.mrb[111].mxu0  ;;  %v3722_v16 = vld [vmem:[#allocation4 + $0x1d8] sm:$0xff] }
 0x779   : > { %v4134_v55 = vadd.f32 %v6125_v8, %v3909_v3  ;;  %v6128_v42 = vadd.f32 %v6127_v48, %v6126_v25  ;;  %3689 = vst.msk [vmem:[#allocation3 + $0x1d8] sm:$0xff] %vm1864_vm1, %v3657_v51  ;;  %v3614_v38 = vpop.xlane.xlu1 %3613  ;;  %v3913_v8 = vmul.f32 %v9873_v15, %v3721_v11  ;;  %v4214_v15 = vld [vmem:[#allocation3 + $0x10] sm:$0xff] (!%p5503_p1) }
 0x77a   : > { %v3656_v26 = vadd.f32 %v3614_v38, %v3528_v13  ;;  %v3623_v59 = vpop.xlane.xlu0 %3622  ;;  %v3725_v13 = vld [vmem:[#allocation4 + $0x1f0] sm:$0xff] }
 0x77b   : > { %4166 = vst [vmem:[#allocation4 + $0x1b0] sm:$0xff] %v4134_v55  ;;  %v4135_v12 = vadd.f32 %v6128_v42, %v3910_v63  ;;  %v3659_v56 = vadd.f32 %v3623_v59, %v3531_v20  ;;  %v3914_v42 = vmul.f32 %v9875_v21, %v3722_v16  ;;  %v4278_v21 = vmax.f32 (!%p5503_p1), %v4214_v15, 1e-30  ;;  %v4228_v16 = vld [vmem:[#allocation3 + $0x80] sm:$0xff] (!%p5503_p1) }
 0x77c   : > { %3688 = vst.msk [vmem:[#allocation3 + $0x1d0] sm:$0xff] %vm1864_vm1, %v3656_v26  ;;  %v6141_v6 = vpop.f32.mrb[128].mxu1 }
 0x77d   : > { %4167 = vst [vmem:[#allocation4 + $0x1b8] sm:$0xff] %v4135_v12  ;;  %3691 = vst.msk [vmem:[#allocation3 + $0x1e8] sm:$0xff] %vm1864_vm1, %v3659_v56  ;;  %v6129_v4 = vpop.f32.mrb[112].mxu0  ;;  %v6142_v57 = vpop.f32.mrb[129].mxu1  ;;  %v4212_v56 = vld [vmem:[#allocation3] sm:$0xff] (!%p5503_p1)  ;;  %6784 = vrcp.f32 (!%p5503_p1), %v4278_v21 }
 0x77e   : > { %v6130_v61 = vpop.f32.mrb[113].mxu0  ;;  %v6143_v30 = vadd.f32 %v6142_v57, %v6141_v6  ;;  %v3620_v35 = vpop.xlane.xlu1 %3619  ;;  %v7113_v6 = vmov (!%p5503_p1), 0   ;;  %v4276_v10 = vmax.f32 (!%p5503_p1), %v4212_v56, 1e-30  ;;  %v4213_v57 = vld [vmem:[#allocation3 + $0x8] sm:$0xff] (!%p5503_p1) }
 0x77f   : > { %v6131_v5 = vadd.f32 %v6130_v61, %v6129_v4  ;;  %v3658_v53 = vadd.f32 %v3620_v35, %v3530_v0  ;;  %v6132_v18 = vpop.f32.mrb[114].mxu0  ;;  %v6144_v52 = vpop.f32.mrb[130].mxu1  ;;  %6783 = vset.pattern.permute.xlu1 (!%p5503_p1), %v7113_v6  ;;  %6782 = vset.pattern.permute.xlu0 (!%p5503_p1), %v7113_v6  ;;  %v4279_v4 = vmax.f32 (!%p5503_p1), %v4215_v37, 1e-30  ;;  %v4277_v0 = vmax.f32 (!%p5503_p1), %v4213_v57, 1e-30 }
 0x780   : > { %v4140_v44 = vadd.f32 %v6143_v30, %v3915_v40  ;;  %v6133_v47 = vpop.f32.mrb[115].mxu0  ;;  %v6145_v17 = vpop.f32.mrb[131].mxu1  ;;  %6786 = vrcp.f32 (!%p5503_p1), %v4276_v10  ;;  %v4219_v40 = vld [vmem:[#allocation3 + $0x38] sm:$0xff] (!%p5503_p1)  ;;  %v4218_v61 = vld [vmem:[#allocation3 + $0x30] sm:$0xff] (!%p5503_p1)  ;;  %v4237_v56 = vld [vmem:[#allocation3 + $0xc8] sm:$0xff] (!%p5503_p1) }
 0x781   : > { %v4136_v24 = vadd.f32 %v6131_v5, %v3911_v62  ;;  %3690 = vst.msk [vmem:[#allocation3 + $0x1e0] sm:$0xff] %vm1864_vm1, %v3658_v53  ;;  %v6134_v34 = vadd.f32 %v6133_v47, %v6132_v18  ;;  %v6146_v60 = vadd.f32 %v6145_v17, %v6144_v52  ;;  %v3629_v43 = vpop.xlane.xlu0 %3628  ;;  %6788 = vrcp.f32 (!%p5503_p1), %v4279_v4  ;;  %v4221_v62 = vld [vmem:[#allocation3 + $0x48] sm:$0xff] (!%p5503_p1)  ;;  %v4220_v5 = vld [vmem:[#allocation3 + $0x40] sm:$0xff] (!%p5503_p1)  ;;  %v4222_v17 = vld [vmem:[#allocation3 + $0x50] sm:$0xff] (!%p5503_p1) }
 0x782   : > { %4172 = vst [vmem:[#allocation4 + $0x1e0] sm:$0xff] %v4140_v44  ;;  %v3661_v1 = vadd.f32 %v3629_v43, %v3533_v50  ;;  %v3626_v32 = vpop.xlane.xlu1 %3625  ;;  %6790 = vrcp.f32 (!%p5503_p1), %v4277_v0  ;;  %v4283_v30 = vmax.f32 (!%p5503_p1), %v4219_v40, 1e-30  ;;  %v4282_v35 = vmax.f32 (!%p5503_p1), %v4218_v61, 1e-30  ;;  %v4223_v44 = vld [vmem:[#allocation3 + $0x58] sm:$0xff] (!%p5503_p1) }
 0x783   : > { %4168 = vst [vmem:[#allocation4 + $0x1c0] sm:$0xff] %v4136_v24  ;;  %v4137_v28 = vadd.f32 %v6134_v34, %v3912_v23  ;;  %v4141_v9 = vadd.f32 %v6146_v60, %v3916_v49  ;;  %v3660_v31 = vadd.f32 %v3626_v32, %v3532_v2  ;;  %6792 = vrcp.f32 (!%p5503_p1), %v4281_v58  ;;  %v4225_v24 = vld [vmem:[#allocation3 + $0x68] sm:$0xff] (!%p5503_p1)  ;;  %v4224_v60 = vld [vmem:[#allocation3 + $0x60] sm:$0xff] (!%p5503_p1)  ;;  %v4239_v57 = vld [vmem:[#allocation3 + $0xd8] sm:$0xff] (!%p5503_p1) }
 0x784   : > { %3693 = vst.msk [vmem:[#allocation3 + $0x1f8] sm:$0xff] %vm1864_vm1, %v3661_v1  ;;  %v6147_v22 = vpop.f32.mrb[132].mxu1  ;;  %6794 = vrcp.f32 (!%p5503_p1), %v4280_v33  ;;  %v4285_v18 = vmax.f32 (!%p5503_p1), %v4221_v62, 1e-30  ;;  %v4284_v23 = vmax.f32 (!%p5503_p1), %v4220_v5, 1e-30 }
 0x785   : > { %4169 = vst [vmem:[#allocation4 + $0x1c8] sm:$0xff] %v4137_v28  ;;  %4173 = vst [vmem:[#allocation4 + $0x1e8] sm:$0xff] %v4141_v9  ;;  %v6135_v27 = vpop.f32.mrb[116].mxu0  ;;  %v6148_v19 = vpop.f32.mrb[133].mxu1  ;;  %6796 = vrcp.f32 (!%p5503_p1), %v4283_v30  ;;  %v4287_v2 = vmax.f32 (!%p5503_p1), %v4223_v44, 1e-30 }
 0x786   : > { %3692 = vst.msk [vmem:[#allocation3 + $0x1f0] sm:$0xff] %vm1864_vm1, %v3660_v31  ;;  %v6136_v29 = vpop.f32.mrb[117].mxu0  ;;  %v6149_v7 = vadd.f32 %v6148_v19, %v6147_v22  ;;  %v3885_v3 = vpop.permute.xlu1 %3884  ;;  %6798 = vrcp.f32 (!%p5503_p1), %v4282_v35  ;;  %v4286_v49 = vmax.f32 (!%p5503_p1), %v4222_v17, 1e-30  ;;  %v4289_v1 = vmax.f32 (!%p5503_p1), %v4225_v24, 1e-30 }
 0x787   : > { %v6137_v25 = vadd.f32 %v6136_v29, %v6135_v27  ;;  %v3918_v51 = vmul.f32 %v3885_v3, %v3726_v54  ;;  %v6138_v48 = vpop.f32.mrb[118].mxu0  ;;  %v6150_v41 = vpop.f32.mrb[134].mxu1  ;;  %6800 = vrcp.f32 (!%p5503_p1), %v4285_v18  ;;  %v4288_v32 = vmax.f32 (!%p5503_p1), %v4224_v60, 1e-30  ;;  %v4227_v28 = vld [vmem:[#allocation3 + $0x78] sm:$0xff] (!%p5503_p1)  ;;  %v4226_v31 = vld [vmem:[#allocation3 + $0x70] sm:$0xff] (!%p5503_p1) }
 0x788   : > { %v6139_v63 = vpop.f32.mrb[119].mxu0  ;;  %v6151_v55 = vpop.f32.mrb[135].mxu1  ;;  %4211 = sbr.rel (%p5503_p1) target bundleno = 2188 (0x88c), region = 52  ;;  %6802 = vrcp.f32 (!%p5503_p1), %v4284_v23  ;;  %v4291_v22 = vmax.f32 (!%p5503_p1), %v4227_v28, 1e-30  ;;  %v4229_v27 = vld [vmem:[#allocation3 + $0x88] sm:$0xff] (!%p5503_p1) }
 0x789   : > { %v4138_v38 = vadd.f32 %v6137_v25, %v3913_v8  ;;  %v6140_v39 = vadd.f32 %v6139_v63, %v6138_v48  ;;  %v6152_v20 = vadd.f32 %v6151_v55, %v6150_v41  ;;  %v3880_v26 = vpop.permute.xlu0 %3879  ;;  %v6785_v53 = vpop.eup (!%p5503_p1), %6784  ;;  %6804 = vrcp.f32 (!%p5503_p1), %v4287_v2  ;;  %v4231_v8 = vld [vmem:[#allocation3 + $0x98] sm:$0xff] (!%p5503_p1)  ;;  %v4233_v63 = vld [vmem:[#allocation3 + $0xa8] sm:$0xff] (!%p5503_p1)  ;;  %v4236_v6 = vld [vmem:[#allocation3 + $0xc0] sm:$0xff] (!%p5503_p1) }
 0x78a   : > { %v3917_v59 = vmul.f32 %v3880_v26, %v3725_v13  ;;  %v6787_v52 = vpop.eup (!%p5503_p1), %6786  ;;  %4480 = vperm.xlu1 (!%p5503_p1), %6783, %v6785_v53   ;;  %6806 = vrcp.f32 (!%p5503_p1), %v4286_v49  ;;  %v4290_v54 = vmax.f32 (!%p5503_p1), %v4226_v31, 1e-30  ;;  %v4292_v3 = vmax.f32 (!%p5503_p1), %v4228_v16, 1e-30  ;;  %v4235_v26 = vld [vmem:[#allocation3 + $0xb8] sm:$0xff] (!%p5503_p1)  ;;  %v4238_v0 = vld [vmem:[#allocation3 + $0xd0] sm:$0xff] (!%p5503_p1) }
 0x78b   : > { %4170 = vst [vmem:[#allocation4 + $0x1d0] sm:$0xff] %v4138_v38  ;;  %v4139_v45 = vadd.f32 %v6140_v39, %v3914_v42  ;;  %v4143_v46 = vadd.f32 %v6152_v20, %v3918_v51  ;;  %v6789_v47 = vpop.eup (!%p5503_p1), %6788  ;;  %4470 = vperm.xlu0 (!%p5503_p1), %6782, %v6787_v52   ;;  %6808 = vrcp.f32 (!%p5503_p1), %v4289_v1  ;;  %v4230_v51 = vld [vmem:[#allocation3 + $0x90] sm:$0xff] (!%p5503_p1)  ;;  %v4295_v41 = vmax.f32 (!%p5503_p1), %v4231_v8, 1e-30  ;;  %v4232_v42 = vld [vmem:[#allocation3 + $0xa0] sm:$0xff] (!%p5503_p1)  ;;  %v4241_v40 = vld [vmem:[#allocation3 + $0xe8] sm:$0xff] (!%p5503_p1) }
 0x78c   : > { %v4142_v12 = vadd.f32 %v6149_v7, %v3917_v59  ;;  %v6791_v50 = vpop.eup (!%p5503_p1), %6790  ;;  %6810 = vrcp.f32 (!%p5503_p1), %v4288_v32  ;;  %v4293_v7 = vmax.f32 (!%p5503_p1), %v4229_v27, 1e-30  ;;  %v4294_v13 = vmax.f32 (!%p5503_p1), %v4230_v51, 1e-30  ;;  %v4240_v30 = vld [vmem:[#allocation3 + $0xe0] sm:$0xff] (!%p5503_p1)  ;;  %v4243_v53 = vld [vmem:[#allocation3 + $0xf8] sm:$0xff] (!%p5503_p1) }
 0x78d   : > { %4171 = vst [vmem:[#allocation4 + $0x1d8] sm:$0xff] %v4139_v45  ;;  %4175 = vst [vmem:[#allocation4 + $0x1f8] sm:$0xff] %v4143_v46  ;;  %v6793_v34 = vpop.eup (!%p5503_p1), %6792  ;;  %6812 = vrcp.f32 (!%p5503_p1), %v4291_v22  ;;  %v4297_v39 = vmax.f32 (!%p5503_p1), %v4233_v63, 1e-30  ;;  %v4296_v20 = vmax.f32 (!%p5503_p1), %v4232_v42, 1e-30 }
 0x78e   : > { %4174 = vst [vmem:[#allocation4 + $0x1f0] sm:$0xff] %v4142_v12  ;;  %4485 = vperm.xlu1 (!%p5503_p1), %6783, %v6789_v47   ;;  %v6795_v43 = vpop.eup (!%p5503_p1), %6794  ;;  %6814 = vrcp.f32 (!%p5503_p1), %v4290_v54  ;;  %v4234_v45 = vld [vmem:[#allocation3 + $0xb0] sm:$0xff] (!%p5503_p1)  ;;  %v4299_v12 = vmax.f32 (!%p5503_p1), %v4235_v26, 1e-30  ;;  %v4301_v10 = vmax.f32 (!%p5503_p1), %v4237_v56, 1e-30 }
 0x78f   : > { %4475 = vperm.xlu0 %6782, %v6791_v50   ;;  %v6797_v9 = vpop.eup %6796  ;;  %6816 = vrcp.f32 %v4293_v7  ;;  %v4298_v15 = vmax.f32 %v4234_v45, 1e-30  ;;  %v4300_v4 = vmax.f32 %v4236_v6, 1e-30  ;;  %v4303_v58 = vmax.f32 %v4239_v57, 1e-30 }
 0x790   : > { %v6799_v11 = vpop.eup %6798  ;;  %6818 = vrcp.f32 %v4292_v3  ;;  %v4302_v33 = vmax.f32 %v4238_v0, 1e-30  ;;  %v4305_v62 = vmax.f32 %v4241_v40, 1e-30  ;;  %v4304_v5 = vmax.f32 %v4240_v30, 1e-30 }
 0x791   : > { %v6801_v19 = vpop.eup %6800  ;;  %6820 = vrcp.f32 %v4295_v41  ;;  %v4242_v52 = vld [vmem:[#allocation3 + $0xf0] sm:$0xff]  ;;  %v4307_v44 = vmax.f32 %v4243_v53, 1e-30  ;;  %v4245_v17 = vld [vmem:[#allocation3 + $0x108] sm:$0xff]  ;;  %v4244_v2 = vld [vmem:[#allocation3 + $0x100] sm:$0xff] }
 0x792   : > { %4495 = vperm.xlu1 %6783, %v6793_v34   ;;  %v6803_v29 = vpop.eup %6802  ;;  %6822 = vrcp.f32 %v4294_v13  ;;  %v4306_v47 = vmax.f32 %v4242_v52, 1e-30  ;;  %v4309_v24 = vmax.f32 %v4245_v17, 1e-30  ;;  %v4308_v34 = vmax.f32 %v4244_v2, 1e-30 }
 0x793   : > { %4490 = vperm.xlu0 %6782, %v6795_v43   ;;  %v6805_v25 = vpop.eup %6804  ;;  %6824 = vrcp.f32 %v4297_v39  ;;  %v4247_v60 = vld [vmem:[#allocation3 + $0x118] sm:$0xff]  ;;  %v4246_v1 = vld [vmem:[#allocation3 + $0x110] sm:$0xff]  ;;  %v4249_v31 = vld [vmem:[#allocation3 + $0x128] sm:$0xff] }
 0x794   : > { %v6807_v48 = vpop.eup %6806  ;;  %6826 = vrcp.f32 %v4296_v20  ;;  %v4311_v28 = vmax.f32 %v4247_v60, 1e-30  ;;  %v4248_v22 = vld [vmem:[#allocation3 + $0x120] sm:$0xff]  ;;  %v4313_v27 = vmax.f32 %v4249_v31, 1e-30  ;;  %v4251_v16 = vld [vmem:[#allocation3 + $0x138] sm:$0xff] }
 0x795   : > { %v6809_v55 = vpop.eup %6808  ;;  %6828 = vrcp.f32 %v4299_v12  ;;  %v4250_v7 = vld [vmem:[#allocation3 + $0x130] sm:$0xff]  ;;  %v4315_v8 = vmax.f32 %v4251_v16, 1e-30  ;;  %v4253_v51 = vld [vmem:[#allocation3 + $0x148] sm:$0xff]  ;;  %v4252_v41 = vld [vmem:[#allocation3 + $0x140] sm:$0xff] }
 0x796   : > { %4505 = vperm.xlu1 %6783, %v6797_v9   ;;  %v6811_v38 = vpop.eup %6810  ;;  %6830 = vrcp.f32 %v4298_v15  ;;  %v4310_v9 = vmax.f32 %v4246_v1, 1e-30  ;;  %v4317_v63 = vmax.f32 %v4253_v51, 1e-30  ;;  %v4255_v42 = vld [vmem:[#allocation3 + $0x158] sm:$0xff]  ;;  %v4254_v39 = vld [vmem:[#allocation3 + $0x150] sm:$0xff] }
 0x797   : > { %4500 = vperm.xlu0 %6782, %v6799_v11   ;;  %v6813_v59 = vpop.eup %6812  ;;  %6832 = vrcp.f32 %v4301_v10  ;;  %v4319_v26 = vmax.f32 %v4255_v42, 1e-30  ;;  %v4257_v45 = vld [vmem:[#allocation3 + $0x168] sm:$0xff]  ;;  %v4256_v12 = vld [vmem:[#allocation3 + $0x160] sm:$0xff]  ;;  %v4259_v6 = vld [vmem:[#allocation3 + $0x178] sm:$0xff] }
 0x798   : > { %v6815_v46 = vpop.eup %6814  ;;  %6834 = vrcp.f32 %v4300_v4  ;;  %v4321_v56 = vmax.f32 %v4257_v45, 1e-30  ;;  %v4258_v10 = vld [vmem:[#allocation3 + $0x170] sm:$0xff]  ;;  %v4323_v57 = vmax.f32 %v4259_v6, 1e-30  ;;  %v4261_v0 = vld [vmem:[#allocation3 + $0x188] sm:$0xff] }
 0x799   : > { %v6817_v37 = vpop.eup %6816  ;;  %6836 = vrcp.f32 %v4303_v58  ;;  %v4260_v58 = vld [vmem:[#allocation3 + $0x180] sm:$0xff]  ;;  %v4325_v40 = vmax.f32 %v4261_v0, 1e-30  ;;  %v4263_v30 = vld [vmem:[#allocation3 + $0x198] sm:$0xff]  ;;  %v4265_v52 = vld [vmem:[#allocation3 + $0x1a8] sm:$0xff] }
 0x79a   : > { %4515 = vperm.xlu1 %6783, %v6801_v19   ;;  %v6819_v21 = vpop.eup %6818  ;;  %6838 = vrcp.f32 %v4302_v33  ;;  %v4312_v19 = vmax.f32 %v4248_v22, 1e-30  ;;  %v4327_v53 = vmax.f32 %v4263_v30, 1e-30  ;;  %v4329_v17 = vmax.f32 %v4265_v52, 1e-30 }
 0x79b   : > { %4510 = vperm.xlu0 %6782, %v6803_v29   ;;  %v6821_v36 = vpop.eup %6820  ;;  %6840 = vrcp.f32 %v4305_v62  ;;  %v4262_v62 = vld [vmem:[#allocation3 + $0x190] sm:$0xff]  ;;  %v4267_v2 = vld [vmem:[#allocation3 + $0x1b8] sm:$0xff]  ;;  %v4269_v1 = vld [vmem:[#allocation3 + $0x1c8] sm:$0xff] }
 0x79c   : > { %v6823_v14 = vpop.eup %6822  ;;  %6842 = vrcp.f32 %v4304_v5  ;;  %v4331_v60 = vmax.f32 %v4267_v2, 1e-30  ;;  %v4333_v31 = vmax.f32 %v4269_v1, 1e-30  ;;  %v4271_v22 = vld [vmem:[#allocation3 + $0x1d8] sm:$0xff]  ;;  %v4406_v6 = vld [vmem:[#allocation4 + $0x10] sm:$0xff] }
 0x79d   : > { %v6825_v61 = vpop.eup %6824  ;;  %6844 = vrcp.f32 %v4307_v44  ;;  %v4264_v44 = vld [vmem:[#allocation3 + $0x1a0] sm:$0xff]  ;;  %v4335_v16 = vmax.f32 %v4271_v22, 1e-30  ;;  %v4411_v52 = vld [vmem:[#allocation4 + $0x38] sm:$0xff] }
 0x79e   : > { %4525 = vperm.xlu1 %6783, %v6805_v25   ;;  %v6827_v35 = vpop.eup %6826  ;;  %6846 = vrcp.f32 %v4306_v47  ;;  %v4314_v25 = vmax.f32 %v4250_v7, 1e-30  ;;  %v4273_v7 = vld [vmem:[#allocation3 + $0x1e8] sm:$0xff]  ;;  %v4408_v30 = vld [vmem:[#allocation4 + $0x20] sm:$0xff] }
 0x79f   : > { %4520 = vperm.xlu0 %6782, %v6807_v48   ;;  %v6829_v18 = vpop.eup %6828  ;;  %6848 = vrcp.f32 %v4309_v24  ;;  %v4266_v24 = vld [vmem:[#allocation3 + $0x1b0] sm:$0xff]  ;;  %v4337_v51 = vmax.f32 %v4273_v7, 1e-30 }
 0x7a0   : > { %v6831_v23 = vpop.eup %6830  ;;  %6850 = vrcp.f32 %v4308_v34 }
 0x7a1   : > { %v6833_v50 = vpop.eup %6832  ;;  %6852 = vrcp.f32 %v4311_v28  ;;  %v4268_v28 = vld [vmem:[#allocation3 + $0x1c0] sm:$0xff] }
 0x7a2   : > { %4535 = vperm.xlu1 %6783, %v6809_v55   ;;  %v6835_v49 = vpop.eup %6834  ;;  %6854 = vrcp.f32 %v4310_v9  ;;  %v4316_v55 = vmax.f32 %v4252_v41, 1e-30  ;;  %v4275_v41 = vld [vmem:[#allocation3 + $0x1f8] sm:$0xff] }
 0x7a3   : > { %4530 = vperm.xlu0 %6782, %v6811_v38   ;;  %v6837_v43 = vpop.eup %6836  ;;  %6856 = vrcp.f32 %v4313_v27  ;;  %v4270_v27 = vld [vmem:[#allocation3 + $0x1d0] sm:$0xff]  ;;  %v4339_v42 = vmax.f32 %v4275_v41, 1e-30 }
 0x7a4   : > { %v6839_v32 = vpop.eup %6838  ;;  %6858 = vrcp.f32 %v4312_v19 }
 0x7a5   : > { %v6841_v11 = vpop.eup %6840  ;;  %6860 = vrcp.f32 %v4315_v8  ;;  %v4272_v8 = vld [vmem:[#allocation3 + $0x1e0] sm:$0xff] }
 0x7a6   : > { %4545 = vperm.xlu1 %6783, %v6813_v59   ;;  %v6843_v54 = vpop.eup %6842  ;;  %6862 = vrcp.f32 %v4314_v25  ;;  %v4318_v59 = vmax.f32 %v4254_v39, 1e-30 }
 0x7a7   : > { %4540 = vperm.xlu0 %6782, %v6815_v46   ;;  %v6845_v29 = vpop.eup %6844  ;;  %6864 = vrcp.f32 %v4317_v63  ;;  %v4274_v63 = vld [vmem:[#allocation3 + $0x1f0] sm:$0xff] }
 0x7a8   : > { %v6847_v3 = vpop.eup %6846  ;;  %6866 = vrcp.f32 %v4316_v55 }
 0x7a9   : > { %v6849_v48 = vpop.eup %6848  ;;  %6868 = vrcp.f32 %v4319_v26 }
 0x7aa   : > { %4555 = vperm.xlu1 %6783, %v6817_v37   ;;  %v6851_v13 = vpop.eup %6850  ;;  %6870 = vrcp.f32 %v4318_v59  ;;  %v4320_v37 = vmax.f32 %v4256_v12, 1e-30 }
 0x7ab   : > { %4550 = vperm.xlu0 %6782, %v6819_v21   ;;  %v6853_v38 = vpop.eup %6852  ;;  %6872 = vrcp.f32 %v4321_v56 }
 0x7ac   : > { %v6855_v20 = vpop.eup %6854  ;;  %6874 = vrcp.f32 %v4320_v37 }
 0x7ad   : > { %v6857_v46 = vpop.eup %6856  ;;  %6876 = vrcp.f32 %v4323_v57 }
 0x7ae   : > { %4565 = vperm.xlu1 %6783, %v6821_v36   ;;  %v6859_v15 = vpop.eup %6858  ;;  %v4322_v36 = vmax.f32 %v4258_v10, 1e-30  ;;  %v4404_v10 = vld [vmem:[#allocation4] sm:$0xff] }
 0x7af   : > { %4560 = vperm.xlu0 %6782, %v6823_v14   ;;  %v6861_v21 = vpop.eup %6860 }
 0x7b0   : > { %v6863_v4 = vpop.eup %6862  ;;  %6878 = vrcp.f32 %v4322_v36 }
 0x7b1   : > { %v6865_v14 = vpop.eup %6864  ;;  %6880 = vrcp.f32 %v4325_v40  ;;  %v4409_v40 = vld [vmem:[#allocation4 + $0x28] sm:$0xff] }
 0x7b2   : > { %4575 = vperm.xlu1 %6783, %v6825_v61   ;;  %v6867_v33 = vpop.eup %6866  ;;  %v4324_v61 = vmax.f32 %v4260_v58, 1e-30 }
 0x7b3   : > { %4570 = vperm.xlu0 %6782, %v6827_v35   ;;  %v6869_v35 = vpop.eup %6868 }
 0x7b4   : > { %v6871_v5 = vpop.eup %6870  ;;  %6882 = vrcp.f32 %v4324_v61 }
 0x7b5   : > { %6884 = vrcp.f32 %v4327_v53 }
 0x7b6   : > { %4585 = vperm.xlu1 %6783, %v6829_v18   ;;  %v4326_v18 = vmax.f32 %v4262_v62, 1e-30 }
 0x7b7   : > { %4580 = vperm.xlu0 %6782, %v6831_v23   ;;  %v6873_v23 = vpop.eup %6872 }
 0x7b8   : > { %v6875_v47 = vpop.eup %6874  ;;  %6886 = vrcp.f32 %v4326_v18 }
 0x7b9   : > { %6888 = vrcp.f32 %v4329_v17 }
 0x7ba   : > { %4595 = vperm.xlu1 %6783, %v6833_v50   ;;  %v4328_v50 = vmax.f32 %v4264_v44, 1e-30 }
 0x7bb   : > { %4590 = vperm.xlu0 %6782, %v6835_v49   ;;  %v6877_v49 = vpop.eup %6876 }
 0x7bc   : > { %v6879_v34 = vpop.eup %6878  ;;  %6890 = vrcp.f32 %v4328_v50 }
 0x7bd   : > { %6892 = vrcp.f32 %v4331_v60 }
 0x7be   : > { %4605 = vperm.xlu1 %6783, %v6837_v43   ;;  %v4330_v43 = vmax.f32 %v4266_v24, 1e-30  ;;  %v4412_v24 = vld [vmem:[#allocation4 + $0x40] sm:$0xff] }
 0x7bf   : > { %4600 = vperm.xlu0 %6782, %v6839_v32   ;;  %v6881_v32 = vpop.eup %6880 }
 0x7c0   : > { %v6883_v9 = vpop.eup %6882  ;;  %6894 = vrcp.f32 %v4330_v43 }
 0x7c1   : > { %6896 = vrcp.f32 %v4333_v31 }
 0x7c2   : > { %4615 = vperm.xlu1 %6783, %v6841_v11   ;;  %v4332_v11 = vmax.f32 %v4268_v28, 1e-30  ;;  %v4415_v28 = vld [vmem:[#allocation4 + $0x58] sm:$0xff] }
 0x7c3   : > { %4610 = vperm.xlu0 %6782, %v6843_v54   ;;  %v6885_v54 = vpop.eup %6884 }
 0x7c4   : > { %v6887_v19 = vpop.eup %6886  ;;  %6898 = vrcp.f32 %v4332_v11 }
 0x7c5   : > { %6900 = vrcp.f32 %v4335_v16  ;;  %v4416_v16 = vld [vmem:[#allocation4 + $0x60] sm:$0xff] }
 0x7c6   : > { %4625 = vperm.xlu1 %6783, %v6845_v29   ;;  %v4334_v29 = vmax.f32 %v4270_v27, 1e-30 }
 0x7c7   : > { %4620 = vperm.xlu0 %6782, %v6847_v3   ;;  %v6889_v3 = vpop.eup %6888 }
 0x7c8   : > { %v6891_v25 = vpop.eup %6890  ;;  %6902 = vrcp.f32 %v4334_v29 }
 0x7c9   : > { %6904 = vrcp.f32 %v4337_v51  ;;  %v4419_v51 = vld [vmem:[#allocation4 + $0x78] sm:$0xff] }
 0x7ca   : > { %4635 = vperm.xlu1 %6783, %v6849_v48   ;;  %v4336_v48 = vmax.f32 %v4272_v8, 1e-30 }
 0x7cb   : > { %4630 = vperm.xlu0 %6782, %v6851_v13   ;;  %v6893_v13 = vpop.eup %6892 }
 0x7cc   : > { %v6895_v55 = vpop.eup %6894  ;;  %6906 = vrcp.f32 %v4336_v48  ;;  %v4418_v48 = vld [vmem:[#allocation4 + $0x70] sm:$0xff] }
 0x7cd   : > { %v6897_v39 = vpop.eup %6896  ;;  %6908 = vrcp.f32 %v4339_v42 }
 0x7ce   : > { %4645 = vperm.xlu1 %6783, %v6853_v38   ;;  %v4338_v38 = vmax.f32 %v4274_v63, 1e-30 }
 0x7cf   : > { %4640 = vperm.xlu0 %6782, %v6855_v20   ;;  %v6899_v20 = vpop.eup %6898 }
 0x7d0   : > { %6910 = vrcp.f32 %v4338_v38  ;;  %v6901_v26 = vpop.eup %6900  ;;  %v4421_v38 = vld [vmem:[#allocation4 + $0x88] sm:$0xff] }
 0x7d2   : > { %4655 = vperm.xlu1 %6783, %v6857_v46   ;;  %v6903_v59 = vpop.eup %6902 }
 0x7d3   : > { %4650 = vperm.xlu0 %6782, %v6859_v15   ;;  %v6905_v45 = vpop.eup %6904 }
 0x7d6   : > { %4665 = vperm.xlu1 %6783, %v6861_v21   ;;  %v6907_v46 = vpop.eup %6906  ;;  %v4407_v21 = vld [vmem:[#allocation4 + $0x18] sm:$0xff] }
 0x7d7   : > { %4660 = vperm.xlu0 %6782, %v6863_v4   ;;  %v6909_v12 = vpop.eup %6908  ;;  %v4405_v4 = vld [vmem:[#allocation4 + $0x8] sm:$0xff] }
 0x7da   : > { %4675 = vperm.xlu1 %6783, %v6865_v14   ;;  %v6911_v15 = vpop.eup %6910 }
 0x7db   : > { %4670 = vperm.xlu0 %6782, %v6867_v33  }
 0x7de   : > { %4685 = vperm.xlu1 %6783, %v6869_v35  }
 0x7df   : > { %4680 = vperm.xlu0 %6782, %v6871_v5  }
 0x7e2   : > { %4695 = vperm.xlu1 %6783, %v6873_v23   ;;  %v4410_v23 = vld [vmem:[#allocation4 + $0x30] sm:$0xff] }
 0x7e3   : > { %4690 = vperm.xlu0 %6782, %v6875_v47  }
 0x7e6   : > { %4705 = vperm.xlu1 %6783, %v6877_v49   ;;  %v4413_v49 = vld [vmem:[#allocation4 + $0x48] sm:$0xff] }
 0x7e7   : > { %4700 = vperm.xlu0 %6782, %v6879_v34  }
 0x7ea   : > { %4715 = vperm.xlu1 %6783, %v6881_v32  }
 0x7eb   : > { %4710 = vperm.xlu0 %6782, %v6883_v9   ;;  %v4414_v9 = vld [vmem:[#allocation4 + $0x50] sm:$0xff] }
 0x7ee   : > { %4725 = vperm.xlu1 %6783, %v6885_v54  }
 0x7ef   : > { %4720 = vperm.xlu0 %6782, %v6887_v19   ;;  %v4417_v19 = vld [vmem:[#allocation4 + $0x68] sm:$0xff] }
 0x7f2   : > { %4735 = vperm.xlu1 %6783, %v6889_v3  }
 0x7f3   : > { %4730 = vperm.xlu0 %6782, %v6891_v25  }
 0x7f6   : > { %4745 = vperm.xlu1 %6783, %v6893_v13  }
 0x7f7   : > { %4740 = vperm.xlu0 %6782, %v6895_v55  }
 0x7fa   : > { %4755 = vperm.xlu1 %6783, %v6897_v39   ;;  %v4420_v39 = vld [vmem:[#allocation4 + $0x80] sm:$0xff] }
 0x7fb   : > { %4750 = vperm.xlu0 %6782, %v6899_v20  }
 0x7fe   : > { %4765 = vperm.xlu1 %6783, %v6901_v26  }
 0x7ff   : > { %4760 = vperm.xlu0 %6782, %v6903_v59  }
 0x802   : > { %4775 = vperm.xlu1 %6783, %v6905_v45  }
 0x803   : > { %4770 = vperm.xlu0 %6782, %v6907_v46  }
 0x806   : > { %4785 = vperm.xlu1 %6783, %v6909_v12   ;;  %v4423_v12 = vld [vmem:[#allocation4 + $0x98] sm:$0xff] }
 0x807   : > { %4780 = vperm.xlu0 %6782, %v6911_v15   ;;  %v4422_v15 = vld [vmem:[#allocation4 + $0x90] sm:$0xff] }
 0x809   : > { %v4481_v56 = vpop.permute.xlu1 %4480 }
 0x80a   : > { %v4471_v37 = vpop.permute.xlu0 %4470  ;;  %v4790_v36 = vmul.f32 %v4481_v56, %v4406_v6 }
 0x80b   : > { %v4788_v58 = vmul.f32 %v4471_v37, %v4404_v10 }
 0x80d   : > { %v4486_v57 = vpop.permute.xlu1 %4485 }
 0x80e   : > { %v4791_v0 = vmul.f32 %v4486_v57, %v4407_v21  ;;  %v4476_v14 = vpop.permute.xlu0 %4475  ;;  %v4424_v57 = vld [vmem:[#allocation4 + $0xa0] sm:$0xff] }
 0x80f   : > { %v4789_v33 = vmul.f32 %v4476_v14, %v4405_v4  ;;  %v4425_v4 = vld [vmem:[#allocation4 + $0xa8] sm:$0xff] }
 0x810   : > { %v5650_v61 = vpack.c.bf16 %v4791_v0, %v4790_v36 }
 0x811   : > { %v5645_v35 = vpack.c.bf16 %v4789_v33, %v4788_v58  ;;  %v4496_v62 = vpop.permute.xlu1 %4495 }
 0x812   : > { %5802 = vst [vmem:[%s7435_s28 + $0x8] sm:$0xff] %v5650_v61   ;;  %v4793_v5 = vmul.f32 %v4496_v62, %v4409_v40  ;;  %v4491_v53 = vpop.permute.xlu0 %4490  ;;  %v4427_v40 = vld [vmem:[#allocation4 + $0xb8] sm:$0xff]  ;;  %v4426_v61 = vld [vmem:[#allocation4 + $0xb0] sm:$0xff] }
 0x813   : > { %5646 = vst [vmem:[%s7435_s28] sm:$0xff] %v5645_v35   ;;  %v4792_v18 = vmul.f32 %v4491_v53, %v4408_v30 }
 0x815   : > { %v5655_v44 = vpack.c.bf16 %v4793_v5, %v4792_v18  ;;  %v4506_v47 = vpop.permute.xlu1 %4505  ;;  %v4429_v18 = vld [vmem:[#allocation4 + $0xc8] sm:$0xff] }
 0x816   : > { %v4795_v17 = vmul.f32 %v4506_v47, %v4411_v52  ;;  %v4501_v50 = vpop.permute.xlu0 %4500  ;;  %v4428_v52 = vld [vmem:[#allocation4 + $0xc0] sm:$0xff] }
 0x817   : > { %5803 = vst [vmem:[%s7435_s28 + $0x10] sm:$0xff] %v5655_v44   ;;  %v4794_v2 = vmul.f32 %v4501_v50, %v4410_v23 }
 0x819   : > { %v5660_v34 = vpack.c.bf16 %v4795_v17, %v4794_v2  ;;  %v4516_v60 = vpop.permute.xlu1 %4515  ;;  %v4431_v2 = vld [vmem:[#allocation4 + $0xd8] sm:$0xff] }
 0x81a   : > { %v4797_v43 = vmul.f32 %v4516_v60, %v4413_v49  ;;  %v4511_v1 = vpop.permute.xlu0 %4510  ;;  %v4430_v49 = vld [vmem:[#allocation4 + $0xd0] sm:$0xff] }
 0x81b   : > { %5804 = vst [vmem:[%s7435_s28 + $0x18] sm:$0xff] %v5660_v34   ;;  %v4796_v32 = vmul.f32 %v4511_v1, %v4412_v24 }
 0x81d   : > { %v5665_v31 = vpack.c.bf16 %v4797_v43, %v4796_v32  ;;  %v4526_v11 = vpop.permute.xlu1 %4525  ;;  %v4433_v32 = vld [vmem:[#allocation4 + $0xe8] sm:$0xff] }
 0x81e   : > { %v4799_v22 = vmul.f32 %v4526_v11, %v4415_v28  ;;  %v4521_v54 = vpop.permute.xlu0 %4520  ;;  %v4432_v28 = vld [vmem:[#allocation4 + $0xe0] sm:$0xff] }
 0x81f   : > { %5805 = vst [vmem:[%s7435_s28 + $0x20] sm:$0xff] %v5665_v31   ;;  %v4798_v27 = vmul.f32 %v4521_v54, %v4414_v9 }
 0x821   : > { %v5670_v29 = vpack.c.bf16 %v4799_v22, %v4798_v27  ;;  %v4536_v7 = vpop.permute.xlu1 %4535  ;;  %v4435_v27 = vld [vmem:[#allocation4 + $0xf8] sm:$0xff] }
 0x822   : > { %v4801_v3 = vmul.f32 %v4536_v7, %v4417_v19  ;;  %v4531_v8 = vpop.permute.xlu0 %4530  ;;  %v4434_v19 = vld [vmem:[#allocation4 + $0xf0] sm:$0xff] }
 0x823   : > { %5806 = vst [vmem:[%s7435_s28 + $0x28] sm:$0xff] %v5670_v29   ;;  %v4800_v25 = vmul.f32 %v4531_v8, %v4416_v16 }
 0x825   : > { %v5675_v41 = vpack.c.bf16 %v4801_v3, %v4800_v25  ;;  %v4546_v13 = vpop.permute.xlu1 %4545  ;;  %v4437_v25 = vld [vmem:[#allocation4 + $0x108] sm:$0xff] }
 0x826   : > { %v4803_v63 = vmul.f32 %v4546_v13, %v4419_v51  ;;  %v4541_v55 = vpop.permute.xlu0 %4540  ;;  %v4436_v51 = vld [vmem:[#allocation4 + $0x100] sm:$0xff] }
 0x827   : > { %5807 = vst [vmem:[%s7435_s28 + $0x30] sm:$0xff] %v5675_v41   ;;  %v4802_v42 = vmul.f32 %v4541_v55, %v4418_v48 }
 0x829   : > { %v5680_v20 = vpack.c.bf16 %v4803_v63, %v4802_v42  ;;  %v4556_v26 = vpop.permute.xlu1 %4555  ;;  %v4439_v42 = vld [vmem:[#allocation4 + $0x118] sm:$0xff] }
 0x82a   : > { %v4805_v59 = vmul.f32 %v4556_v26, %v4421_v38  ;;  %v4551_v45 = vpop.permute.xlu0 %4550  ;;  %v4438_v38 = vld [vmem:[#allocation4 + $0x110] sm:$0xff] }
 0x82b   : > { %5808 = vst [vmem:[%s7435_s28 + $0x38] sm:$0xff] %v5680_v20   ;;  %v4804_v46 = vmul.f32 %v4551_v45, %v4420_v39 }
 0x82d   : > { %v5685_v56 = vpack.c.bf16 %v4805_v59, %v4804_v46  ;;  %v4566_v37 = vpop.permute.xlu1 %4565  ;;  %v4441_v46 = vld [vmem:[#allocation4 + $0x128] sm:$0xff] }
 0x82e   : > { %v4807_v6 = vmul.f32 %v4566_v37, %v4423_v12  ;;  %v4561_v21 = vpop.permute.xlu0 %4560  ;;  %v4440_v12 = vld [vmem:[#allocation4 + $0x120] sm:$0xff] }
 0x82f   : > { %5809 = vst [vmem:[%s7435_s28 + $0x40] sm:$0xff] %v5685_v56   ;;  %v4806_v10 = vmul.f32 %v4561_v21, %v4422_v15 }
 0x831   : > { %v5690_v36 = vpack.c.bf16 %v4807_v6, %v4806_v10  ;;  %v4576_v0 = vpop.permute.xlu1 %4575  ;;  %v4443_v10 = vld [vmem:[#allocation4 + $0x138] sm:$0xff] }
 0x832   : > { %v4809_v14 = vmul.f32 %v4576_v0, %v4425_v4  ;;  %v4571_v58 = vpop.permute.xlu0 %4570  ;;  %v4442_v4 = vld [vmem:[#allocation4 + $0x130] sm:$0xff] }
 0x833   : > { %5810 = vst [vmem:[%s7435_s28 + $0x48] sm:$0xff] %v5690_v36   ;;  %v4808_v33 = vmul.f32 %v4571_v58, %v4424_v57 }
 0x835   : > { %v5695_v30 = vpack.c.bf16 %v4809_v14, %v4808_v33  ;;  %v4586_v35 = vpop.permute.xlu1 %4585  ;;  %v4445_v33 = vld [vmem:[#allocation4 + $0x148] sm:$0xff] }
 0x836   : > { %v4811_v62 = vmul.f32 %v4586_v35, %v4427_v40  ;;  %v4581_v5 = vpop.permute.xlu0 %4580  ;;  %v4444_v40 = vld [vmem:[#allocation4 + $0x140] sm:$0xff] }
 0x837   : > { %5811 = vst [vmem:[%s7435_s28 + $0x50] sm:$0xff] %v5695_v30   ;;  %v4810_v53 = vmul.f32 %v4581_v5, %v4426_v61 }
 0x839   : > { %v5700_v23 = vpack.c.bf16 %v4811_v62, %v4810_v53  ;;  %v4596_v44 = vpop.permute.xlu1 %4595  ;;  %v4447_v53 = vld [vmem:[#allocation4 + $0x158] sm:$0xff] }
 0x83a   : > { %v4813_v47 = vmul.f32 %v4596_v44, %v4429_v18  ;;  %v4591_v17 = vpop.permute.xlu0 %4590  ;;  %v4446_v18 = vld [vmem:[#allocation4 + $0x150] sm:$0xff] }
 0x83b   : > { %5812 = vst [vmem:[%s7435_s28 + $0x58] sm:$0xff] %v5700_v23   ;;  %v4812_v50 = vmul.f32 %v4591_v17, %v4428_v52 }
 0x83d   : > { %v5705_v24 = vpack.c.bf16 %v4813_v47, %v4812_v50  ;;  %v4606_v34 = vpop.permute.xlu1 %4605  ;;  %v4449_v50 = vld [vmem:[#allocation4 + $0x168] sm:$0xff] }
 0x83e   : > { %v4815_v60 = vmul.f32 %v4606_v34, %v4431_v2  ;;  %v4601_v43 = vpop.permute.xlu0 %4600  ;;  %v4448_v2 = vld [vmem:[#allocation4 + $0x160] sm:$0xff] }
 0x83f   : > { %5813 = vst [vmem:[%s7435_s28 + $0x60] sm:$0xff] %v5705_v24   ;;  %v4814_v1 = vmul.f32 %v4601_v43, %v4430_v49 }
 0x841   : > { %v5710_v9 = vpack.c.bf16 %v4815_v60, %v4814_v1  ;;  %v4616_v31 = vpop.permute.xlu1 %4615  ;;  %v4451_v1 = vld [vmem:[#allocation4 + $0x178] sm:$0xff] }
 0x842   : > { %v4817_v11 = vmul.f32 %v4616_v31, %v4433_v32  ;;  %v4611_v22 = vpop.permute.xlu0 %4610  ;;  %v4450_v32 = vld [vmem:[#allocation4 + $0x170] sm:$0xff] }
 0x843   : > { %5814 = vst [vmem:[%s7435_s28 + $0x68] sm:$0xff] %v5710_v9   ;;  %v4816_v54 = vmul.f32 %v4611_v22, %v4432_v28 }
 0x845   : > { %v5715_v16 = vpack.c.bf16 %v4817_v11, %v4816_v54  ;;  %v4626_v29 = vpop.permute.xlu1 %4625  ;;  %v4453_v54 = vld [vmem:[#allocation4 + $0x188] sm:$0xff] }
 0x846   : > { %v4819_v7 = vmul.f32 %v4626_v29, %v4435_v27  ;;  %v4621_v3 = vpop.permute.xlu0 %4620  ;;  %v4452_v27 = vld [vmem:[#allocation4 + $0x180] sm:$0xff] }
 0x847   : > { %5815 = vst [vmem:[%s7435_s28 + $0x70] sm:$0xff] %v5715_v16   ;;  %v4818_v8 = vmul.f32 %v4621_v3, %v4434_v19 }
 0x849   : > { %v5720_v48 = vpack.c.bf16 %v4819_v7, %v4818_v8  ;;  %v4636_v41 = vpop.permute.xlu1 %4635  ;;  %v4455_v8 = vld [vmem:[#allocation4 + $0x198] sm:$0xff] }
 0x84a   : > { %v4821_v13 = vmul.f32 %v4636_v41, %v4437_v25  ;;  %v4631_v63 = vpop.permute.xlu0 %4630  ;;  %v4454_v25 = vld [vmem:[#allocation4 + $0x190] sm:$0xff] }
 0x84b   : > { %5816 = vst [vmem:[%s7435_s28 + $0x78] sm:$0xff] %v5720_v48   ;;  %v4820_v55 = vmul.f32 %v4631_v63, %v4436_v51 }
 0x84d   : > { %v5725_v39 = vpack.c.bf16 %v4821_v13, %v4820_v55  ;;  %v4646_v20 = vpop.permute.xlu1 %4645  ;;  %v4457_v55 = vld [vmem:[#allocation4 + $0x1a8] sm:$0xff] }
 0x84e   : > { %v4823_v26 = vmul.f32 %v4646_v20, %v4439_v42  ;;  %v4641_v59 = vpop.permute.xlu0 %4640  ;;  %v4456_v42 = vld [vmem:[#allocation4 + $0x1a0] sm:$0xff] }
 0x84f   : > { %5817 = vst [vmem:[%s7435_s28 + $0x80] sm:$0xff] %v5725_v39   ;;  %v4822_v45 = vmul.f32 %v4641_v59, %v4438_v38 }
 0x851   : > { %v5730_v15 = vpack.c.bf16 %v4823_v26, %v4822_v45  ;;  %v4656_v56 = vpop.permute.xlu1 %4655  ;;  %v4459_v45 = vld [vmem:[#allocation4 + $0x1b8] sm:$0xff] }
 0x852   : > { %v4825_v37 = vmul.f32 %v4656_v56, %v4441_v46  ;;  %v4651_v6 = vpop.permute.xlu0 %4650  ;;  %v4458_v46 = vld [vmem:[#allocation4 + $0x1b0] sm:$0xff] }
 0x853   : > { %5818 = vst [vmem:[%s7435_s28 + $0x88] sm:$0xff] %v5730_v15   ;;  %v4824_v21 = vmul.f32 %v4651_v6, %v4440_v12 }
 0x855   : > { %v5735_v57 = vpack.c.bf16 %v4825_v37, %v4824_v21  ;;  %v4666_v36 = vpop.permute.xlu1 %4665  ;;  %v4461_v21 = vld [vmem:[#allocation4 + $0x1c8] sm:$0xff] }
 0x856   : > { %v4827_v0 = vmul.f32 %v4666_v36, %v4443_v10  ;;  %v4661_v14 = vpop.permute.xlu0 %4660  ;;  %v4460_v10 = vld [vmem:[#allocation4 + $0x1c0] sm:$0xff] }
 0x857   : > { %5819 = vst [vmem:[%s7435_s28 + $0x90] sm:$0xff] %v5735_v57   ;;  %v4826_v58 = vmul.f32 %v4661_v14, %v4442_v4 }
 0x859   : > { %v5740_v61 = vpack.c.bf16 %v4827_v0, %v4826_v58  ;;  %v4676_v30 = vpop.permute.xlu1 %4675  ;;  %v4463_v58 = vld [vmem:[#allocation4 + $0x1d8] sm:$0xff] }
 0x85a   : > { %v4829_v35 = vmul.f32 %v4676_v30, %v4445_v33  ;;  %v4671_v62 = vpop.permute.xlu0 %4670  ;;  %v4462_v33 = vld [vmem:[#allocation4 + $0x1d0] sm:$0xff] }
 0x85b   : > { %5820 = vst [vmem:[%s7435_s28 + $0x98] sm:$0xff] %v5740_v61   ;;  %v4828_v5 = vmul.f32 %v4671_v62, %v4444_v40 }
 0x85d   : > { %v5745_v52 = vpack.c.bf16 %v4829_v35, %v4828_v5  ;;  %v4686_v23 = vpop.permute.xlu1 %4685  ;;  %v4465_v5 = vld [vmem:[#allocation4 + $0x1e8] sm:$0xff] }
 0x85e   : > { %v4831_v44 = vmul.f32 %v4686_v23, %v4447_v53  ;;  %v4681_v47 = vpop.permute.xlu0 %4680  ;;  %v4464_v53 = vld [vmem:[#allocation4 + $0x1e0] sm:$0xff] }
 0x85f   : > { %5821 = vst [vmem:[%s7435_s28 + $0xa0] sm:$0xff] %v5745_v52   ;;  %v4830_v17 = vmul.f32 %v4681_v47, %v4446_v18 }
 0x861   : > { %v5750_v49 = vpack.c.bf16 %v4831_v44, %v4830_v17  ;;  %v4696_v24 = vpop.permute.xlu1 %4695  ;;  %v4467_v17 = vld [vmem:[#allocation4 + $0x1f8] sm:$0xff] }
 0x862   : > { %v4833_v34 = vmul.f32 %v4696_v24, %v4449_v50  ;;  %v4691_v60 = vpop.permute.xlu0 %4690  ;;  %v4466_v50 = vld [vmem:[#allocation4 + $0x1f0] sm:$0xff] }
 0x863   : > { %5822 = vst [vmem:[%s7435_s28 + $0xa8] sm:$0xff] %v5750_v49   ;;  %v4832_v43 = vmul.f32 %v4691_v60, %v4448_v2 }
 0x865   : > { %v5755_v28 = vpack.c.bf16 %v4833_v34, %v4832_v43  ;;  %v4706_v9 = vpop.permute.xlu1 %4705 }
 0x866   : > { %v4835_v31 = vmul.f32 %v4706_v9, %v4451_v1  ;;  %v4701_v11 = vpop.permute.xlu0 %4700 }
 0x867   : > { %5823 = vst [vmem:[%s7435_s28 + $0xb0] sm:$0xff] %v5755_v28   ;;  %v4834_v22 = vmul.f32 %v4701_v11, %v4450_v32 }
 0x869   : > { %v5760_v19 = vpack.c.bf16 %v4835_v31, %v4834_v22  ;;  %v4716_v16 = vpop.permute.xlu1 %4715 }
 0x86a   : > { %v4837_v29 = vmul.f32 %v4716_v16, %v4453_v54  ;;  %v4711_v7 = vpop.permute.xlu0 %4710 }
 0x86b   : > { %5824 = vst [vmem:[%s7435_s28 + $0xb8] sm:$0xff] %v5760_v19   ;;  %v4836_v3 = vmul.f32 %v4711_v7, %v4452_v27 }
 0x86d   : > { %v5765_v51 = vpack.c.bf16 %v4837_v29, %v4836_v3  ;;  %v4726_v48 = vpop.permute.xlu1 %4725 }
 0x86e   : > { %v4839_v41 = vmul.f32 %v4726_v48, %v4455_v8  ;;  %v4721_v13 = vpop.permute.xlu0 %4720 }
 0x86f   : > { %5825 = vst [vmem:[%s7435_s28 + $0xc0] sm:$0xff] %v5765_v51   ;;  %v4838_v63 = vmul.f32 %v4721_v13, %v4454_v25 }
 0x871   : > { %v5770_v38 = vpack.c.bf16 %v4839_v41, %v4838_v63  ;;  %v4736_v39 = vpop.permute.xlu1 %4735 }
 0x872   : > { %v4841_v20 = vmul.f32 %v4736_v39, %v4457_v55  ;;  %v4731_v26 = vpop.permute.xlu0 %4730 }
 0x873   : > { %5826 = vst [vmem:[%s7435_s28 + $0xc8] sm:$0xff] %v5770_v38   ;;  %v4840_v59 = vmul.f32 %v4731_v26, %v4456_v42 }
 0x875   : > { %v5775_v12 = vpack.c.bf16 %v4841_v20, %v4840_v59  ;;  %v4746_v15 = vpop.permute.xlu1 %4745 }
 0x876   : > { %v4843_v56 = vmul.f32 %v4746_v15, %v4459_v45  ;;  %v4741_v37 = vpop.permute.xlu0 %4740 }
 0x877   : > { %5827 = vst [vmem:[%s7435_s28 + $0xd0] sm:$0xff] %v5775_v12   ;;  %v4842_v6 = vmul.f32 %v4741_v37, %v4458_v46 }
 0x879   : > { %v5780_v4 = vpack.c.bf16 %v4843_v56, %v4842_v6  ;;  %v4756_v57 = vpop.permute.xlu1 %4755 }
 0x87a   : > { %v4845_v36 = vmul.f32 %v4756_v57, %v4461_v21  ;;  %v4751_v0 = vpop.permute.xlu0 %4750 }
 0x87b   : > { %5828 = vst [vmem:[%s7435_s28 + $0xd8] sm:$0xff] %v5780_v4   ;;  %v4844_v14 = vmul.f32 %v4751_v0, %v4460_v10 }
 0x87d   : > { %v5785_v40 = vpack.c.bf16 %v4845_v36, %v4844_v14  ;;  %v4766_v61 = vpop.permute.xlu1 %4765 }
 0x87e   : > { %v4847_v30 = vmul.f32 %v4766_v61, %v4463_v58  ;;  %v4761_v35 = vpop.permute.xlu0 %4760 }
 0x87f   : > { %5829 = vst [vmem:[%s7435_s28 + $0xe0] sm:$0xff] %v5785_v40   ;;  %v4846_v62 = vmul.f32 %v4761_v35, %v4462_v33 }
 0x881   : > { %v5790_v18 = vpack.c.bf16 %v4847_v30, %v4846_v62  ;;  %v4776_v52 = vpop.permute.xlu1 %4775 }
 0x882   : > { %v4849_v23 = vmul.f32 %v4776_v52, %v4465_v5  ;;  %v4771_v44 = vpop.permute.xlu0 %4770 }
 0x883   : > { %5830 = vst [vmem:[%s7435_s28 + $0xe8] sm:$0xff] %v5790_v18   ;;  %v4848_v47 = vmul.f32 %v4771_v44, %v4464_v53 }
 0x885   : > { %v5795_v2 = vpack.c.bf16 %v4849_v23, %v4848_v47  ;;  %v4786_v49 = vpop.permute.xlu1 %4785 }
 0x886   : > { %v4851_v24 = vmul.f32 %v4786_v49, %v4467_v17  ;;  %v4781_v34 = vpop.permute.xlu0 %4780 }
 0x887   : > { %5831 = vst [vmem:[%s7435_s28 + $0xf0] sm:$0xff] %v5795_v2   ;;  %v4850_v60 = vmul.f32 %v4781_v34, %v4466_v50 }
 0x889   : > { %v5800_v43 = vpack.c.bf16 %v4851_v24, %v4850_v60 }
 0x88b   : > { %5832 = vst [vmem:[%s7435_s28 + $0xf8] sm:$0xff] %v5800_v43  }
 0x88c PF: > { %s5173_s6 = scalar_lea.sflag [#allocation7], %s7415_s21 }
 0x88d   : > { %s10849_s5 = sld [smem:[#allocation22_spill]]  ;;  %s10850_s19 = sld [smem:[#allocation23_spill]] }
 0x88e   : > { %s10851_s11 = sld [smem:[#allocation24_spill]]  ;;  %s5207_s23 = sshll.u32 %s7435_s28, 4  ;;  %s5208_s23 = int_to_ptr.vmem [resolvable:$true] %s5207_s23 }
 0x88f   : > { %s10852_s17 = sld [smem:[#allocation174_spill]]  ;;  %s7114_s30 = smov 2048  }
 0x890   : > { %p10853_p4 = scmp.ne.s32.totalorder %s10302_s4, 0  ;;  %s7115_s8 = smov 4096  }
 0x891   : > { %s7116_s27 = smov 32   ;;  %s7118_s28 = smov 4  }
 0x892   : > { %6182 = sst [smem:[#allocation15]] (%p10853_p4), %s7114_s30 }
 0x893   : > { %s5570_s9 = sshll.u32 %s10849_s5, 5  ;;  %s5641_s3 = sshll.u32 %s10850_s19, 7 }
 0x894   : > { %s5186_s7 = sadd.s32 %s5641_s3, %s5570_s9  ;;  %s5572_s29 = sshll.u32 %s10851_s11, 8 }
 0x895   : > { %s5188_s10 = sadd.s32 %s5572_s29, %s5186_s7  ;;  %6183 = sst [smem:[#allocation15 + $0x1]] (%p10853_p4), %s7115_s8 }
 0x896   : > { %s5573_s12 = sshll.u32 %s5188_s10, 6  ;;  %6184 = sst [smem:[#allocation15 + $0x2]] (%p10853_p4), %s7116_s27 }
 0x897   : > { %s5190_s18 = scalar_lea.hbm %s10852_s17, %s5573_s12  ;;  %s7117_s5 = smov 64  }
 0x898   : > { %6185 = sst [smem:[#allocation15 + $0x3]] (%p10853_p4), %s7117_s5  ;;  %s7119_s19 = smov [#allocation14]  }
 0x899   : > { %6186 = sst [smem:[#allocation15 + $0x4]] (%p10853_p4), %s7117_s5  ;;  %s7120_s11 = smov 0  }
 0x89a   : > { %6187 = sst [smem:[#allocation15 + $0x5]] (%p10853_p4), %s7118_s28 }
 0x89b   : > { %6188 = dma.general (%p10853_p4), %s5208_s23, 4096, %s5190_s18, %s5173_s6, %s7119_s19, [#allocation15], %s7120_s11, 0  }
 0x89c PF: > { %s10854_s9 = sld [smem:[#allocation31_spill]]  ;;  %p6194_p5 = scmp.ge.s32.totalorder %s7098_s26, 2 }
 0x89d   : > { %s5235_s3 = sand.u32 1, %s7054_s15  }
 0x89e   : > { %s5236_s7 = scalar_lea.sflag [#allocation7], %s5235_s3 }
 0x8a2   : > { %p10855_p12 = scmp.ne.s32.totalorder %s10854_s9, 0 }
 0x8a4   : > { %p6191_p13 = pnand %p6194_p5, %p10855_p12 }
 0x8a6   : > { %7037 = dma.done.wait (!%p6191_p13), %s5236_s7, 4096  }
 0x8a7   : > { %7039 = vsyncadd (!%p6191_p13), %s5236_s7, 4294963200  ;;  %s22_s26 = sadd.s32 1, %s7098_s26   ;;  %s10857_s4 = sld [smem:[#allocation33_spill]] }
 0x8a8   : > { %p10017_p3 = scmp.ge.s32.totalorder %s22_s26, 18   ;;  %s10858_s6 = sld [smem:[#allocation20_spill]] }
 0x8a9   : > { %s10859_s17 = sld [smem:[#allocation32_spill]]  ;;  %s10860_s19 = sld [smem:[#allocation25_spill]] }
 0x8aa   : > { %s10861_s10 = sld [smem:[#allocation26_spill]]  ;;  %s10862_s23 = sld [smem:[#allocation27_spill]] }
 0x8ab   : > { %s10863_s30 = sld [smem:[#allocation28_spill]]  ;;  %s10864_s8 = sld [smem:[#allocation29_spill]] }
 0x8ac   : > { %s10865_s12 = smov %s7046_s13  ;;  %s10866_s13 = smov %s7050_s14 }
 0x8ad   : > { %s10867_s14 = smov %s10857_s4  ;;  %s10868_s15 = smov %s7058_s16 }
 0x8ae   : > { %s10869_s16 = smov %s10858_s6  ;;  %s10870_s18 = smov %s7082_s22 }
 0x8af   : > { %s10871_s20 = smov %s7090_s24  ;;  %s10872_s21 = smov %s7094_s25 }
 0x8b0   : > { %s10873_s22 = smov %s10861_s10  ;;  %21 = sbr.rel (!%p10017_p3) target bundleno = 15 (0xf), region = 123 }
 0x8b1   : > { %s10874_s24 = smov %s10863_s30  ;;  %s10875_s25 = smov %s10864_s8 }
 0x8b7   :  { %5241 = vsyncpa [#allocation6], 1 }
 0x8b8   :  { %5243 = vsyncpa [#allocation6 + $0x1], 1 }
 0x8b9   :  { %5244 = vsyncpa [#allocation9], 1 }
 0x8ba   :  { %5246 = vsyncpa [#allocation9 + $0x1], 1 }
 0x8bb   :  { %5247 = vsyncpa [#allocation7], 1 }
 0x8bc   :  { %5249 = vsyncpa [#allocation7 + $0x1], 1 }

</bundles_post_ra>
